<compile_context>
chip_gen: v7x
topology: tpu7x:2x2x1
jax: 0.10.0
libtpu: 0.0.40
codegen_flags: <defaults>
</compile_context>

<pallas_src>
import jax
import jax.numpy as jnp
from jax.experimental import pallas as pl
from jax.experimental.pallas import tpu as pltpu

HIDDEN = 2400                     # hidden width from the PyTorch module
HIDDEN_PAD = 2560                 # padded to a multiple of 128
N_HALVES = 2                      # leading "parallel" grid axis (v7x: 1 half / TC)
HALF = HIDDEN_PAD // N_HALVES     # 1280
KT = 1280                         # hidden-dim chunk (contraction tile for fc2)
N_K = HALF // KT                  # chunks per half (1 -> minimal grid overhead)
assert HALF % KT == 0


def _stream_kernel(x_ref, w1_ref, b1_ref, w2_ref, part_ref, acc_ref):
    """Weight-streaming part.  Grid = (half h, chunk k):
         h1_chunk = relu(x @ W1[:, chunk] + b1[chunk])        (f32)
         acc     += h1_chunk @ W2[chunk, :]                    (f32 accumulate)
       On the last chunk of a half, write that half's partial (B, HIDDEN)."""
    k = pl.program_id(1)

    @pl.when(k == 0)
    def _():
        acc_ref[...] = jnp.zeros_like(acc_ref)

    x_bf16 = x_ref[...].astype(jnp.bfloat16)
    h1 = jnp.dot(x_bf16, w1_ref[...], preferred_element_type=jnp.float32)
    h1 = jnp.maximum(h1 + b1_ref[...], 0.0)
    acc_ref[...] += jnp.dot(h1.astype(jnp.bfloat16), w2_ref[...],
                            preferred_element_type=jnp.float32)

    @pl.when(k == pl.num_programs(1) - 1)
    def _():
        part_ref[0] = acc_ref[...]


def _tail_kernel(part_ref, b2_ref, w3_ref, o_ref):
    """Cross-half reduction + b2 + ReLU + fc_out + sigmoid(10*logits)."""
    h2 = jnp.maximum(part_ref[0] + part_ref[1] + b2_ref[...], 0.0)
    logits = jnp.dot(h2.astype(jnp.bfloat16), w3_ref[...],
                     preferred_element_type=jnp.float32)
    o_ref[...] = jax.nn.sigmoid(logits * 10.0).astype(o_ref.dtype)


def prepare_params(w1, b1, w2, b2, w3):
    """ONE-TIME parameter prep (call once at init, NOT per forward):
       zero-pad hidden 2400 -> 2560 and cast large weights to bf16.
       Biases stay f32 (accumulation is f32 inside the kernels)."""
    input_dim = w1.shape[0]
    w1p = (jnp.zeros((input_dim, HIDDEN_PAD), jnp.float32)
           .at[:, :HIDDEN].set(w1).astype(jnp.bfloat16))
    b1p = jnp.zeros((1, HIDDEN_PAD), jnp.float32).at[0, :HIDDEN].set(b1)
    w2p = (jnp.zeros((HIDDEN_PAD, HIDDEN), jnp.float32)
           .at[:HIDDEN, :].set(w2).astype(jnp.bfloat16))
    b2p = b2.reshape(1, HIDDEN).astype(jnp.float32)
    w3b = w3.astype(jnp.bfloat16)
    return w1p, b1p, w2p, b2p, w3b


def embeddingnet_forward(x, params):
    """x: (B, C, H, W) or (B, input_dim).  params from prepare_params()."""
    w1p, b1p, w2p, b2p, w3b = params
    B = x.shape[0]
    x2d = x.reshape(B, -1).astype(jnp.float32)
    input_dim = x2d.shape[1]
    out_dim = w3b.shape[1]

    # ---- kernel 1: stream W1/W2 (bf16), split across halves of the hidden dim
    partial = pl.pallas_call(
        _stream_kernel,
        out_shape=jax.ShapeDtypeStruct((N_HALVES, B, HIDDEN), jnp.float32),
        grid_spec=pltpu.PrefetchScalarGridSpec(
            num_scalar_prefetch=0,
            grid=(N_HALVES, N_K),
            in_specs=[
                pl.BlockSpec((B, input_dim), lambda h, k: (0, 0)),            # x (resident)
                pl.BlockSpec((input_dim, KT), lambda h, k: (0, h * N_K + k)), # W1 chunk
                pl.BlockSpec((1, KT), lambda h, k: (0, h * N_K + k)),         # b1 chunk
                pl.BlockSpec((KT, HIDDEN), lambda h, k: (h * N_K + k, 0)),    # W2 chunk
            ],
            out_specs=pl.BlockSpec((1, B, HIDDEN), lambda h, k: (h, 0, 0)),
            scratch_shapes=[pltpu.VMEM((B, HIDDEN), jnp.float32)],
        ),
        compiler_params=pltpu.CompilerParams(
            dimension_semantics=("parallel", "arbitrary"),
            vmem_limit_bytes=32 << 20,   # ~17 MiB actually used; headroom on v7x
        ),
    )(x2d, w1p, b1p, w2p)

    # ---- kernel 2: tiny fused tail (cross-half sum, b2, ReLU, fc_out, sigmoid)
    out = pl.pallas_call(
        _tail_kernel,
        out_shape=jax.ShapeDtypeStruct((B, out_dim), jnp.float32),
        grid=(1,),
        in_specs=[
            pl.BlockSpec((N_HALVES, B, HIDDEN), lambda i: (0, 0, 0)),
            pl.BlockSpec((1, HIDDEN), lambda i: (0, 0)),
            pl.BlockSpec((HIDDEN, out_dim), lambda i: (0, 0)),
        ],
        out_specs=pl.BlockSpec((B, out_dim), lambda i: (0, 0)),
    )(partial, b2p, w3b)
    return out


# ----------------------------------------------------------------------------
# References for correctness checking.
def reference_forward_matched(x, params):
    """Same bf16-weight / f32-accumulation numerics as the kernel path."""
    w1p, b1p, w2p, b2p, w3b = params
    B = x.shape[0]
    xb = x.reshape(B, -1).astype(jnp.bfloat16)
    h1 = jnp.maximum(jnp.dot(xb, w1p, preferred_element_type=jnp.float32) + b1p, 0.0)
    h2 = jnp.maximum(jnp.dot(h1.astype(jnp.bfloat16), w2p,
                             preferred_element_type=jnp.float32) + b2p, 0.0)
    logits = jnp.dot(h2.astype(jnp.bfloat16), w3b, preferred_element_type=jnp.float32)
    return jax.nn.sigmoid(logits * 10.0)


def reference_forward_f32(x, w1, b1, w2, b2, w3):
    """Full-precision reference of the original module (loose sanity check;
       kernel streams weights in bf16, so only ~1e-2-level agreement expected)."""
    B = x.shape[0]
    hp = jax.lax.Precision.HIGHEST
    h = x.reshape(B, -1).astype(jnp.float32)
    h = jnp.maximum(jnp.dot(h, w1, precision=hp) + b1, 0.0)
    h = jnp.maximum(jnp.dot(h, w2, precision=hp) + b2, 0.0)
    return jax.nn.sigmoid(jnp.dot(h, w3, precision=hp) * 10.0)


def init_params(key, input_dim, output_dim):
    """Mimics nn.Linear's U(-1/sqrt(fan_in), 1/sqrt(fan_in)); weights (in, out)."""
    k1, k2, k3, k4, k5 = jax.random.split(key, 5)

    def u(k, shape, fan_in):
        bound = 1.0 / jnp.sqrt(fan_in)
        return jax.random.uniform(k, shape, jnp.float32, -bound, bound)

    w1 = u(k1, (input_dim, HIDDEN), input_dim)
    b1 = u(k2, (HIDDEN,), input_dim)
    w2 = u(k3, (HIDDEN, HIDDEN), HIDDEN)
    b2 = u(k4, (HIDDEN,), HIDDEN)
    w3 = u(k5, (HIDDEN, output_dim), HIDDEN)   # fc_out: no bias
    return w1, b1, w2, b2, w3


if __name__ == "__main__":
    key = jax.random.PRNGKey(0)
    kx, kp = jax.random.split(key)

    # image-like input, as the flatten in forward() implies: (B, C, H, W)
    B, C, H, W = 2, 4, 16, 16
    input_dim = C * H * W          # 1024
    output_dim = 32

    x = jax.random.normal(kx, (B, C, H, W), jnp.float32)
    w1, b1, w2, b2, w3 = init_params(kp, input_dim, output_dim)

    # One-time parameter preparation (padding + bf16 cast) -- NOT per call.
    params = jax.tree_util.tree_map(jax.block_until_ready,
                                    prepare_params(w1, b1, w2, b2, w3))

    fwd = jax.jit(embeddingnet_forward)
    out = fwd(x, params)
    out = jax.block_until_ready(out)

    assert out.shape == (B, output_dim)
    # exact-path check (same bf16/f32 numerics as the kernel)
    ref_m = reference_forward_matched(x, params)
    assert jnp.allclose(out, ref_m, atol=1e-3, rtol=0.0), "mismatch vs matched ref"
    # loose sanity check vs the full-f32 original-module semantics
    ref_f = reference_forward_f32(x, w1, b1, w2, b2, w3)
    assert jnp.allclose(out, ref_f, atol=5e-2, rtol=0.0), "mismatch vs f32 ref"

    print("KERNEL_OK")
</pallas_src>

<mosaic_0001>
module attributes {stable_mosaic.version = 11 : i64} {
  func.func @_stream_kernel(%arg0: i32, %arg1: i32, %arg2: memref<2x1024xf32, #tpu.memory_space<vmem>>, %arg3: memref<1024x1280xbf16, #tpu.memory_space<vmem>>, %arg4: memref<1x1280xf32, #tpu.memory_space<vmem>>, %arg5: memref<1280x2400xbf16, #tpu.memory_space<vmem>>, %arg6: memref<1x2x2400xf32, #tpu.memory_space<vmem>>, %arg7: memref<2x2400xf32, #tpu.memory_space<vmem>>) attributes {dimension_semantics = [#tpu.dimension_semantics<parallel>, #tpu.dimension_semantics<arbitrary>], iteration_bounds = array<i64: 2, 1>, scalar_prefetch = 0 : i64, scratch_operands = 1 : i64, tpu.core_type = #tpu.core_type<tc>, window_params = [{pipeline_mode = #tpu.pipeline_mode<synchronous>, transform_indices = @transform_0, window_bounds = array<i64: 2, 1024>}, {transform_indices = @transform_1, window_bounds = array<i64: 1024, 1280>}, {transform_indices = @transform_2, window_bounds = array<i64: 1, 1280>}, {transform_indices = @transform_3, window_bounds = array<i64: 1280, 2400>}, {transform_indices = @transform_4, window_bounds = array<i64: 1, 2, 2400>}]} {
    %c0_i32 = arith.constant 0 : i32
    %0 = arith.cmpi eq, %arg1, %c0_i32 : i32
    %1 = arith.extui %0 : i1 to i32
    %c0_i32_0 = arith.constant 0 : i32
    %2 = arith.cmpi ne, %1, %c0_i32_0 : i32
    scf.if %2 {
      %cst_16 = arith.constant 0.000000e+00 : f32
      %21 = vector.broadcast %cst_16 : f32 to vector<2x2400xf32>
      %c0_17 = arith.constant 0 : index
      %c0_18 = arith.constant 0 : index
      %22 = vector.load %arg7[%c0_17, %c0_18] : memref<2x2400xf32, #tpu.memory_space<vmem>>, vector<2x2400xf32>
      tpu.vector_store %arg7[%c0_17, %c0_18], %21 {strides = array<i32>} : memref<2x2400xf32, #tpu.memory_space<vmem>>, vector<2x2400xf32>,
    } else {
    }
    %c0 = arith.constant 0 : index
    %c0_1 = arith.constant 0 : index
    %3 = vector.load %arg2[%c0, %c0_1] : memref<2x1024xf32, #tpu.memory_space<vmem>>, vector<2x1024xf32>
    %4 = arith.truncf %3 : vector<2x1024xf32> to vector<2x1024xbf16>
    %c0_2 = arith.constant 0 : index
    %c0_3 = arith.constant 0 : index
    %5 = vector.load %arg3[%c0_2, %c0_3] : memref<1024x1280xbf16, #tpu.memory_space<vmem>>, vector<1024x1280xbf16>
    %cst = arith.constant dense<0.000000e+00> : vector<2x1280xf32>
    %6 = tpu.matmul %4, %5, %cst {dimension_numbers = #tpu.dot_dimension_numbers<[1], [0], [0], [1], [0, 0, 1, 1], [], []>} : vector<2x1024xbf16>, vector<1024x1280xbf16>, vector<2x1280xf32> -> vector<2x1280xf32>
    %c0_4 = arith.constant 0 : index
    %c0_5 = arith.constant 0 : index
    %7 = vector.load %arg4[%c0_4, %c0_5] : memref<1x1280xf32, #tpu.memory_space<vmem>>, vector<1x1280xf32>
    %8 = vector.broadcast %7 : vector<1x1280xf32> to vector<2x1280xf32>
    %9 = arith.addf %6, %8 : vector<2x1280xf32>
    %cst_6 = arith.constant 0.000000e+00 : f32
    %10 = vector.broadcast %cst_6 : f32 to vector<2x1280xf32>
    %11 = arith.maximumf %9, %10 : vector<2x1280xf32>
    %c0_7 = arith.constant 0 : index
    %c0_8 = arith.constant 0 : index
    %12 = vector.load %arg7[%c0_7, %c0_8] : memref<2x2400xf32, #tpu.memory_space<vmem>>, vector<2x2400xf32>
    %13 = arith.truncf %11 : vector<2x1280xf32> to vector<2x1280xbf16>
    %c0_9 = arith.constant 0 : index
    %c0_10 = arith.constant 0 : index
    %14 = vector.load %arg5[%c0_9, %c0_10] : memref<1280x2400xbf16, #tpu.memory_space<vmem>>, vector<1280x2400xbf16>
    %cst_11 = arith.constant dense<0.000000e+00> : vector<2x2400xf32>
    %15 = tpu.matmul %13, %14, %cst_11 {dimension_numbers = #tpu.dot_dimension_numbers<[1], [0], [0], [1], [0, 0, 1, 1], [], []>} : vector<2x1280xbf16>, vector<1280x2400xbf16>, vector<2x2400xf32> -> vector<2x2400xf32>
    %16 = arith.addf %12, %15 : vector<2x2400xf32>
    %c0_12 = arith.constant 0 : index
    %c0_13 = arith.constant 0 : index
    %17 = vector.load %arg7[%c0_12, %c0_13] : memref<2x2400xf32, #tpu.memory_space<vmem>>, vector<2x2400xf32>
    tpu.vector_store %arg7[%c0_12, %c0_13], %16 {strides = array<i32>} : memref<2x2400xf32, #tpu.memory_space<vmem>>, vector<2x2400xf32>,
    %c0_i32_14 = arith.constant 0 : i32
    %18 = arith.cmpi eq, %arg1, %c0_i32_14 : i32
    %19 = arith.extui %18 : i1 to i32
    %c0_i32_15 = arith.constant 0 : i32
    %20 = arith.cmpi ne, %19, %c0_i32_15 : i32
    scf.if %20 {
      %c0_16 = arith.constant 0 : index
      %c0_17 = arith.constant 0 : index
      %21 = vector.load %arg7[%c0_16, %c0_17] : memref<2x2400xf32, #tpu.memory_space<vmem>>, vector<2x2400xf32>
      %c0_18 = arith.constant 0 : index
      %c0_19 = arith.constant 0 : index
      %c0_20 = arith.constant 0 : index
      %22 = vector.load %arg6[%c0_18, %c0_19, %c0_20] : memref<1x2x2400xf32, #tpu.memory_space<vmem>>, vector<1x2x2400xf32>
      %23 = vector.shape_cast %22 : vector<1x2x2400xf32> to vector<2x2400xf32>
      %24 = vector.shape_cast %21 : vector<2x2400xf32> to vector<1x2x2400xf32>
      tpu.vector_store %arg6[%c0_18, %c0_19, %c0_20], %24 {strides = array<i32>} : memref<1x2x2400xf32, #tpu.memory_space<vmem>>, vector<1x2x2400xf32>,
    } else {
    }
    return
  }
  func.func @transform_0(%arg0: i32, %arg1: i32) -> (i32, i32) {
    %c0_i32 = arith.constant 0 : i32
    %c0_i32_0 = arith.constant 0 : i32
    %c0_i32_1 = arith.constant 0 : i32
    return %c0_i32, %c0_i32_0 : i32, i32
  }
  func.func @transform_1(%arg0: i32, %arg1: i32) -> (i32, i32) {
    %c1_i32 = arith.constant 1 : i32
    %0 = arith.muli %arg0, %c1_i32 : i32
    %1 = arith.addi %0, %arg1 : i32
    %c0_i32 = arith.constant 0 : i32
    %c0_i32_0 = arith.constant 0 : i32
    return %c0_i32, %1 : i32, i32
  }
  func.func @transform_2(%arg0: i32, %arg1: i32) -> (i32, i32) {
    %c1_i32 = arith.constant 1 : i32
    %0 = arith.muli %arg0, %c1_i32 : i32
    %1 = arith.addi %0, %arg1 : i32
    %c0_i32 = arith.constant 0 : i32
    %c0_i32_0 = arith.constant 0 : i32
    return %c0_i32, %1 : i32, i32
  }
  func.func @transform_3(%arg0: i32, %arg1: i32) -> (i32, i32) {
    %c1_i32 = arith.constant 1 : i32
    %0 = arith.muli %arg0, %c1_i32 : i32
    %1 = arith.addi %0, %arg1 : i32
    %c0_i32 = arith.constant 0 : i32
    %c0_i32_0 = arith.constant 0 : i32
    return %1, %c0_i32 : i32, i32
  }
  func.func @transform_4(%arg0: i32, %arg1: i32) -> (i32, i32, i32) {
    %c0_i32 = arith.constant 0 : i32
    %c0_i32_0 = arith.constant 0 : i32
    %c0_i32_1 = arith.constant 0 : i32
    return %arg0, %c0_i32, %c0_i32_0 : i32, i32, i32
  }
}

module attributes {stable_mosaic.version = 11 : i64} {
  func.func @_tail_kernel(%arg0: i32, %arg1: memref<2x2x2400xf32, #tpu.memory_space<vmem>>, %arg2: memref<1x2400xf32, #tpu.memory_space<vmem>>, %arg3: memref<2400x32xbf16, #tpu.memory_space<vmem>>, %arg4: memref<2x32xf32, #tpu.memory_space<vmem>>) attributes {dimension_semantics = [#tpu.dimension_semantics<arbitrary>], iteration_bounds = array<i64: 1>, scalar_prefetch = 0 : i64, scratch_operands = 0 : i64, tpu.core_type = #tpu.core_type<tc>, window_params = [{pipeline_mode = #tpu.pipeline_mode<synchronous>, transform_indices = @transform_0, window_bounds = array<i64: 2, 2, 2400>}, {pipeline_mode = #tpu.pipeline_mode<synchronous>, transform_indices = @transform_1, window_bounds = array<i64: 1, 2400>}, {pipeline_mode = #tpu.pipeline_mode<synchronous>, transform_indices = @transform_2, window_bounds = array<i64: 2400, 32>}, {pipeline_mode = #tpu.pipeline_mode<synchronous>, transform_indices = @transform_3, window_bounds = array<i64: 2, 32>}]} {
    %c0 = arith.constant 0 : index
    %c0_0 = arith.constant 0 : index
    %c0_1 = arith.constant 0 : index
    %0 = vector.load %arg1[%c0, %c0_0, %c0_1] : memref<2x2x2400xf32, #tpu.memory_space<vmem>>, vector<1x2x2400xf32>
    %1 = vector.shape_cast %0 : vector<1x2x2400xf32> to vector<2x2400xf32>
    %c1 = arith.constant 1 : index
    %c0_2 = arith.constant 0 : index
    %c0_3 = arith.constant 0 : index
    %2 = vector.load %arg1[%c1, %c0_2, %c0_3] : memref<2x2x2400xf32, #tpu.memory_space<vmem>>, vector<1x2x2400xf32>
    %3 = vector.shape_cast %2 : vector<1x2x2400xf32> to vector<2x2400xf32>
    %4 = arith.addf %1, %3 : vector<2x2400xf32>
    %c0_4 = arith.constant 0 : index
    %c0_5 = arith.constant 0 : index
    %5 = vector.load %arg2[%c0_4, %c0_5] : memref<1x2400xf32, #tpu.memory_space<vmem>>, vector<1x2400xf32>
    %6 = vector.broadcast %5 : vector<1x2400xf32> to vector<2x2400xf32>
    %7 = arith.addf %4, %6 : vector<2x2400xf32>
    %cst = arith.constant 0.000000e+00 : f32
    %8 = vector.broadcast %cst : f32 to vector<2x2400xf32>
    %9 = arith.maximumf %7, %8 : vector<2x2400xf32>
    %10 = arith.truncf %9 : vector<2x2400xf32> to vector<2x2400xbf16>
    %c0_6 = arith.constant 0 : index
    %c0_7 = arith.constant 0 : index
    %11 = vector.load %arg3[%c0_6, %c0_7] : memref<2400x32xbf16, #tpu.memory_space<vmem>>, vector<2400x32xbf16>
    %cst_8 = arith.constant dense<0.000000e+00> : vector<2x32xf32>
    %12 = tpu.matmul %10, %11, %cst_8 {dimension_numbers = #tpu.dot_dimension_numbers<[1], [0], [0], [1], [0, 0, 1, 1], [], []>} : vector<2x2400xbf16>, vector<2400x32xbf16>, vector<2x32xf32> -> vector<2x32xf32>
    %cst_9 = arith.constant 1.000000e+01 : f32
    %13 = vector.broadcast %cst_9 : f32 to vector<2x32xf32>
    %14 = arith.mulf %12, %13 : vector<2x32xf32>
    %15 = arith.negf %14 : vector<2x32xf32>
    %16 = math.exp %15 : vector<2x32xf32>
    %cst_10 = arith.constant 1.000000e+00 : f32
    %17 = vector.broadcast %cst_10 : f32 to vector<2x32xf32>
    %18 = arith.addf %17, %16 : vector<2x32xf32>
    %19 = arith.divf %17, %18 : vector<2x32xf32>
    %c0_11 = arith.constant 0 : index
    %c0_12 = arith.constant 0 : index
    %20 = vector.load %arg4[%c0_11, %c0_12] : memref<2x32xf32, #tpu.memory_space<vmem>>, vector<2x32xf32>
    tpu.vector_store %arg4[%c0_11, %c0_12], %19 {strides = array<i32>} : memref<2x32xf32, #tpu.memory_space<vmem>>, vector<2x32xf32>,
    return
  }
  func.func @transform_0(%arg0: i32) -> (i32, i32, i32) {
    %c0_i32 = arith.constant 0 : i32
    %c0_i32_0 = arith.constant 0 : i32
    %c0_i32_1 = arith.constant 0 : i32
    %c0_i32_2 = arith.constant 0 : i32
    return %c0_i32, %c0_i32_0, %c0_i32_1 : i32, i32, i32
  }
  func.func @transform_1(%arg0: i32) -> (i32, i32) {
    %c0_i32 = arith.constant 0 : i32
    %c0_i32_0 = arith.constant 0 : i32
    %c0_i32_1 = arith.constant 0 : i32
    return %c0_i32, %c0_i32_0 : i32, i32
  }
  func.func @transform_2(%arg0: i32) -> (i32, i32) {
    %c0_i32 = arith.constant 0 : i32
    %c0_i32_0 = arith.constant 0 : i32
    %c0_i32_1 = arith.constant 0 : i32
    return %c0_i32, %c0_i32_0 : i32, i32
  }
  func.func @transform_3(%arg0: i32) -> (i32, i32) {
    %c0_i32 = arith.constant 0 : i32
    %c0_i32_0 = arith.constant 0 : i32
    %c0_i32_1 = arith.constant 0 : i32
    return %c0_i32, %c0_i32_0 : i32, i32
  }
}

</mosaic_0001>

<bundles_post_ra>
// kernel: embeddingnet_forward.3
= control target key start
LH: loop header
LB: loop body
LE: loop exit
PB: predicated region body
PF: predicated region fallthrough
CT: control target
= control target key end

     0   :  { %v38_v20 = vlaneseq  ;;  %v2527_v44 = vmov 1983009808   ;;  %vm2529_vm0 = vmmov 0   ;;  %s3130_s0 = inlined_call_operand.vmem [shape: f32[2,2,2400], index: 0, kind: input, shape index: {}]   ;;  %s3131_s1 = inlined_call_operand.vmem [shape: f32[1,2400], index: 1, kind: input, shape index: {}]   ;;  %s3132_s2 = inlined_call_operand.vmem [shape: bf16[2400,32], index: 2, kind: input, shape index: {}]   ;;  %s3133_s3 = inlined_call_operand.hbm [shape: f32[2,32], index: 3, kind: output, shape index: {}]  }
   0x1   :  { %v2349_v0 = vld [vmem:[%s3132_s2 + $0x40] sm:$0xff]   ;;  %v2353_v4 = vld [vmem:[%s3132_s2 + $0x48] sm:$0xff]   ;;  %v2357_v8 = vld [vmem:[%s3132_s2 + $0x50] sm:$0xff]   ;;  %v117_v45 = vunpack.c.l.s4 %v2527_v44 }
   0x2   :  { %v2350_v1 = vld [vmem:[%s3132_s2 + $0xc0] sm:$0xff]   ;;  %2124 = vmatprep.subr.bf16.mxu0 %v2349_v0  ;;  %v2354_v5 = vld [vmem:[%s3132_s2 + $0xc8] sm:$0xff]   ;;  %v2358_v9 = vld [vmem:[%s3132_s2 + $0xd0] sm:$0xff]   ;;  %v2623_v25 = vshrl.u32 %v38_v20, 7 }
   0x3   :  { %v2351_v2 = vld [vmem:[%s3132_s2] sm:$0xff]   ;;  %2146 = vmatprep.subr.bf16.mxu1 %v2350_v1  ;;  %v2355_v6 = vld [vmem:[%s3132_s2 + $0x8] sm:$0xff]   ;;  %v2359_v10 = vld [vmem:[%s3132_s2 + $0x10] sm:$0xff]   ;;  %v118_v50 = vunpack.c.0.s8 %v117_v45 }
   0x4   :  { %v2352_v3 = vld [vmem:[%s3132_s2 + $0x80] sm:$0xff]   ;;  %2125 = vmatpush3.bf16.msra.mxu0 %v2351_v2  ;;  %v2356_v7 = vld [vmem:[%s3132_s2 + $0x88] sm:$0xff]   ;;  %v2360_v11 = vld [vmem:[%s3132_s2 + $0x90] sm:$0xff]   ;;  %v2638_v30 = vsub.s32 0, %v2623_v25  ;;  %v2644_v32 = vsub.s32 1, %v2623_v25  ;;  %v2650_v34 = vsub.s32 2, %v2623_v25 }
   0x5   :  { %2147 = vmatpush3.bf16.msra.mxu1 %v2352_v3  ;;  %2126 = vmatprep.subr.bf16.mxu0 %v2353_v4  ;;  %v2361_v12 = vld [vmem:[%s3132_s2 + $0x58] sm:$0xff]   ;;  %v2365_v16 = vld [vmem:[%s3132_s2 + $0x60] sm:$0xff]   ;;  %v2369_v21 = vld [vmem:[%s3132_s2 + $0x68] sm:$0xff]   ;;  %v52_v36 = vsub.s32 3, %v2623_v25  ;;  %v2680_v52 = vsub.s32 %v118_v50, %v2623_v25  ;;  %v56_v58 = vsub.s32 4, %v2623_v25  ;;  %v60_v60 = vsub.s32 5, %v2623_v25 }
   0x6   :  { %2148 = vmatprep.subr.bf16.mxu1 %v2354_v5  ;;  %v2362_v13 = vld [vmem:[%s3132_s2 + $0xd8] sm:$0xff]   ;;  %v2366_v17 = vld [vmem:[%s3132_s2 + $0xe0] sm:$0xff]   ;;  %v2370_v22 = vld [vmem:[%s3132_s2 + $0xe8] sm:$0xff]   ;;  %v64_v61 = vsub.s32 6, %v2623_v25  ;;  %v68_v62 = vsub.s32 7, %v2623_v25 }
   0x7   :  { %v2363_v14 = vld [vmem:[%s3132_s2 + $0x18] sm:$0xff]   ;;  %v2367_v18 = vld [vmem:[%s3132_s2 + $0x20] sm:$0xff]   ;;  %v2371_v23 = vld [vmem:[%s3132_s2 + $0x28] sm:$0xff]  }
   0x8   :  { %2127 = vmatpush3.bf16.msra.mxu0 %v2355_v6  ;;  %v2364_v15 = vld [vmem:[%s3132_s2 + $0x98] sm:$0xff]   ;;  %v2368_v19 = vld [vmem:[%s3132_s2 + $0xa0] sm:$0xff]   ;;  %v2372_v24 = vld [vmem:[%s3132_s2 + $0xa8] sm:$0xff]  }
   0x9   :  { %2149 = vmatpush3.bf16.msra.mxu1 %v2356_v7  ;;  %2128 = vmatprep.subr.bf16.mxu0 %v2357_v8  ;;  %v2373_v26 = vld [vmem:[%s3132_s2 + $0x70] sm:$0xff]   ;;  %v2377_v31 = vld [vmem:[%s3132_s2 + $0x78] sm:$0xff]   ;;  %v32_v38 = vld [vmem:[%s3131_s1] sm:$0xff] }
   0xa   :  { %2150 = vmatprep.subr.bf16.mxu1 %v2358_v9  ;;  %v2374_v27 = vld [vmem:[%s3132_s2 + $0xf0] sm:$0xff]   ;;  %v2378_v33 = vld [vmem:[%s3132_s2 + $0xf8] sm:$0xff]   ;;  %v41_v39 = vrot.slane %v32_v38, %v2638_v30  ;;  %v45_v40 = vrot.slane %v32_v38, %v2644_v32  ;;  %v49_v41 = vrot.slane %v32_v38, %v2650_v34  ;;  %v2381_v42 = vld [vmem:[%s3132_s2 + $0x140] sm:$0xff]   ;;  %v53_v43 = vrot.slane %v32_v38, %v52_v36 }
   0xb   :  { %v2375_v28 = vld [vmem:[%s3132_s2 + $0x30] sm:$0xff]   ;;  %v2379_v35 = vld [vmem:[%s3132_s2 + $0x38] sm:$0xff]   ;;  %v2383_v46 = vld [vmem:[%s3132_s2 + $0x1c0] sm:$0xff]   ;;  %v57_v3 = vrot.slane %v32_v38, %v56_v58  ;;  %v61_v6 = vrot.slane %v32_v38, %v60_v60  ;;  %v65_v7 = vrot.slane %v32_v38, %v64_v61  ;;  %v69_v8 = vrot.slane %v32_v38, %v68_v62 }
   0xc   :  { %2129 = vmatpush3.bf16.msra.mxu0 %v2359_v10  ;;  %v2376_v29 = vld [vmem:[%s3132_s2 + $0xb0] sm:$0xff]   ;;  %v2380_v37 = vld [vmem:[%s3132_s2 + $0xb8] sm:$0xff]   ;;  %v16_v47 = vld [vmem:[%s3130_s0] sm:$0xff]  ;;  %v114_v48 = vcombine.low %v41_v39, %v45_v40  ;;  %v115_v49 = vcombine.low %v49_v41, %v53_v43 }
   0xd   :  { %2151 = vmatpush3.bf16.msra.mxu1 %v2360_v11  ;;  %2130 = vmatprep.subr.bf16.mxu0 %v2361_v12  ;;  %v1967_v51 = vld [vmem:[%s3130_s0 + $0x26] sm:$0xff]  ;;  %v2389_v20 = vld [vmem:[%s3132_s2 + $0x150] sm:$0xff]   ;;  %v2396_v39 = vld [vmem:[%s3132_s2 + $0x198] sm:$0xff]  }
   0xe   :  { %2152 = vmatprep.subr.bf16.mxu1 %v2362_v13  ;;  %v27_v53 = vadd.f32 %v1967_v51, %v16_v47  ;;  %v122_v54 = vrot.slane %v114_v48, %v2680_v52  ;;  %v129_v55 = vrot.slane %v115_v49, %v2680_v52  ;;  %v2382_v5 = vld [vmem:[%s3132_s2 + $0x100] sm:$0xff]   ;;  %v2385_v13 = vld [vmem:[%s3132_s2 + $0x148] sm:$0xff]   ;;  %v2405_v50 = vld [vmem:[%s3132_s2 + $0x170] sm:$0xff]  }
   0xf   :  { %v2384_v11 = vld [vmem:[%s3132_s2 + $0x180] sm:$0xff]   ;;  %v2401_v43 = vld [vmem:[%s3132_s2 + $0x168] sm:$0xff]   ;;  %v2453_v25 = vld [vmem:[%s3132_s2 + $0x350] sm:$0xff]  }
  0x10   :  { %2131 = vmatpush3.bf16.msra.mxu0 %v2363_v14  ;;  %v130_v56 = vcombine.low %v122_v54, %v129_v55  ;;  %v2399_v40 = vld [vmem:[%s3132_s2 + $0x1e0] sm:$0xff]   ;;  %v2402_v49 = vld [vmem:[%s3132_s2 + $0x128] sm:$0xff]   ;;  %v2407_v55 = vld [vmem:[%s3132_s2 + $0x1f0] sm:$0xff]  }
  0x11   :  { %2153 = vmatpush3.bf16.msra.mxu1 %v2364_v15  ;;  %2132 = vmatprep.subr.bf16.mxu0 %v2365_v16  ;;  %v2386_v15 = vld [vmem:[%s3132_s2 + $0x108] sm:$0xff]   ;;  %v2400_v45 = vld [vmem:[%s3132_s2 + $0x1a0] sm:$0xff]  }
  0x12   :  { %2154 = vmatprep.subr.bf16.mxu1 %v2366_v17  ;;  %v203_v57 = vadd.f32 %v130_v56, %v27_v53  ;;  %v2387_v16 = vld [vmem:[%s3132_s2 + $0x1c8] sm:$0xff]   ;;  %v131_v17 = vcombine.low %v57_v3, %v61_v6  ;;  %v2410_v3 = vld [vmem:[%s3132_s2 + $0x138] sm:$0xff]  }
  0x13   :  { %v2404_v54 = vld [vmem:[%s3132_s2 + $0x1a8] sm:$0xff]  }
  0x14   :  { %2133 = vmatpush3.bf16.msra.mxu0 %v2367_v18  ;;  %v208_v59 = vmax.f32 %v203_v57, 0.0  ;;  %v132_v18 = vcombine.low %v65_v7, %v69_v8  ;;  %v2415_v7 = vld [vmem:[%s3132_s2 + $0x2c0] sm:$0xff]  }
  0x15   :  { %2155 = vmatpush3.bf16.msra.mxu1 %v2368_v19  ;;  %2134 = vmatprep.subr.bf16.mxu0 %v2369_v21  ;;  %v2388_v19 = vld [vmem:[%s3132_s2 + $0x188] sm:$0xff]   ;;  %v2390_v21 = vld [vmem:[%s3132_s2 + $0x110] sm:$0xff]   ;;  %v2414_v8 = vld [vmem:[%s3132_s2 + $0x200] sm:$0xff]  }
  0x16   :  { %2156 = vmatprep.subr.bf16.mxu1 %v2370_v22  ;;  %v225_v63 = vrot.slane %v208_v59, %v2680_v52  ;;  %v218_v0 = vcombine.high %v208_v59, %v208_v59  ;;  %v2391_v22 = vld [vmem:[%s3132_s2 + $0x1d0] sm:$0xff]  }
  0x17   :  { %v2406_v59 = vld [vmem:[%s3132_s2 + $0x130] sm:$0xff]  }
  0x18   :  { %2135 = vmatpush3.bf16.msra.mxu0 %v2371_v23  ;;  %v233_v1 = vcombine.high %v225_v63, %v225_v63  ;;  %v232_v2 = vrot.slane %v218_v0, %v2680_v52  ;;  %v321_v4 = vpack.c.bf16 %v225_v63, %v225_v63  ;;  %v139_v23 = vrot.slane %v131_v17, %v2680_v52  ;;  %v2409_v63 = vld [vmem:[%s3132_s2 + $0x178] sm:$0xff]   ;;  %v2422_v17 = vld [vmem:[%s3132_s2 + $0x210] sm:$0xff]  }
  0x19   :  { %2157 = vmatpush3.bf16.msra.mxu1 %v2372_v24  ;;  %2136 = vmatprep.subr.bf16.mxu0 %v2373_v26  ;;  %v146_v24 = vrot.slane %v132_v18, %v2680_v52  ;;  %v2392_v26 = vld [vmem:[%s3132_s2 + $0x190] sm:$0xff]   ;;  %v2425_v18 = vld [vmem:[%s3132_s2 + $0x258] sm:$0xff]  }
  0x1a   :  { %2158 = vmatprep.subr.bf16.mxu1 %v2374_v27  ;;  %v322_v9 = vpack.c.bf16 %v233_v1, %v233_v1  ;;  %v234_v10 = vcombine.high %v232_v2, %v232_v2  ;;  %v323_v12 = vpack.c.bf16 %v232_v2, %v232_v2  ;;  %v2393_v27 = vld [vmem:[%s3132_s2 + $0x158] sm:$0xff]   ;;  %v2408_v1 = vld [vmem:[%s3132_s2 + $0x1b0] sm:$0xff]  }
  0x1b   :  { %v2411_v2 = vld [vmem:[%s3132_s2 + $0x1f8] sm:$0xff]  }
  0x1c   :  { %2137 = vmatpush3.bf16.msra.mxu0 %v2375_v28  ;;  %1576 = vmatprep.mubr.bf16.mxu0 %v322_v9  ;;  %v324_v14 = vpack.c.bf16 %v234_v10, %v234_v10  ;;  %v2394_v28 = vld [vmem:[%s3132_s2 + $0x118] sm:$0xff]   ;;  %v2417_v10 = vld [vmem:[%s3132_s2 + $0x248] sm:$0xff]  }
  0x1d   :  { %2159 = vmatpush3.bf16.msra.mxu1 %v2376_v29  ;;  %2138 = vmatprep.subr.bf16.mxu0 %v2377_v31  ;;  %v2395_v29 = vld [vmem:[%s3132_s2 + $0x1d8] sm:$0xff]   ;;  %v147_v31 = vcombine.low %v139_v23, %v146_v24  ;;  %v2429_v23 = vld [vmem:[%s3132_s2 + $0x260] sm:$0xff]   ;;  %v2852_v24 = vld [vmem:[%s3131_s1 + $0x8] sm:$0xff] }
  0x1e   :  { %2160 = vmatprep.subr.bf16.mxu1 %v2378_v33  ;;  %1616 = vmatprep.mubr.bf16.mxu1 %v324_v14  ;;  %v17_v33 = vld [vmem:[%s3130_s0 + $0x8] sm:$0xff]  ;;  %v2421_v14 = vld [vmem:[%s3132_s2 + $0x250] sm:$0xff]  }
  0x20   :  { %2139 = vmatpush3.bf16.msra.mxu0 %v2379_v35  ;;  %v1968_v35 = vld [vmem:[%s3130_s0 + $0x2e] sm:$0xff] }
  0x21   :  { %2161 = vmatpush3.bf16.msra.mxu1 %v2380_v37  ;;  %2168 = vmatprep.subr.bf16.mxu0 %v2381_v42  ;;  %v2397_v37 = vld [vmem:[%s3132_s2 + $0x160] sm:$0xff]   ;;  %v28_v38 = vadd.f32 %v1968_v35, %v17_v33  ;;  %v18_v33 = vld [vmem:[%s3130_s0 + $0x10] sm:$0xff]  ;;  %v85_v35 = vrot.slane %v2852_v24, %v52_v36  ;;  %v2434_v36 = vld [vmem:[%s3132_s2 + $0x228] sm:$0xff]  }
  0x22   :  { %2190 = vmatprep.subr.bf16.mxu1 %v2383_v46  ;;  %v2398_v42 = vld [vmem:[%s3132_s2 + $0x120] sm:$0xff]   ;;  %v2403_v46 = vld [vmem:[%s3132_s2 + $0x1e8] sm:$0xff]  }
  0x23   :  { %1577 = vmatmul.mubr.bf16.vlgmr.msra.gmra.mrb[0].mxu0 %v321_v4  ;;  %v204_v41 = vadd.f32 %v147_v31, %v28_v38  ;;  %v2413_v4 = vld [vmem:[%s3132_s2 + $0x240] sm:$0xff]   ;;  %v81_v31 = vrot.slane %v2852_v24, %v2650_v34  ;;  %v1969_v38 = vld [vmem:[%s3130_s0 + $0x36] sm:$0xff] }
  0x24   :  { %2169 = vmatpush3.bf16.msra.mxu0 %v2382_v5  ;;  %1617 = vmatmul.mubr.bf16.vlgmr.msra.gmra.mrb[0].mxu1 %v323_v12  ;;  %v2412_v5 = vld [vmem:[%s3132_s2 + $0x1b8] sm:$0xff]   ;;  %v2419_v12 = vld [vmem:[%s3132_s2 + $0x2c8] sm:$0xff]  }
  0x25   :  { %2170 = vmatprep.subr.bf16.mxu0 %v2385_v13  ;;  %2191 = vmatpush3.bf16.msra.mxu1 %v2384_v11  ;;  %v209_v44 = vmax.f32 %v204_v41, 0.0  ;;  %v2416_v11 = vld [vmem:[%s3132_s2 + $0x280] sm:$0xff]   ;;  %v2418_v13 = vld [vmem:[%s3132_s2 + $0x208] sm:$0xff]   ;;  %v149_v41 = vcombine.low %v81_v31, %v85_v35 }
  0x26   :  { %2192 = vmatprep.subr.bf16.mxu1 %v2387_v16  ;;  %v2423_v16 = vld [vmem:[%s3132_s2 + $0x2d0] sm:$0xff]   ;;  %v2463_v35 = vld [vmem:[%s3132_s2 + $0x3e0] sm:$0xff]  }
  0x27   :  { %v242_v47 = vrot.slane %v209_v44, %v2680_v52  ;;  %v235_v48 = vcombine.high %v209_v44, %v209_v44  ;;  %v29_v44 = vadd.f32 %v1969_v38, %v18_v33  ;;  %v1970_v33 = vld [vmem:[%s3130_s0 + $0x3e] sm:$0xff] }
  0x28   :  { %2171 = vmatpush3.bf16.msra.mxu0 %v2386_v15  ;;  %v2420_v15 = vld [vmem:[%s3132_s2 + $0x288] sm:$0xff]   ;;  %v2462_v38 = vld [vmem:[%s3132_s2 + $0x320] sm:$0xff]  }
  0x29   :  { %2172 = vmatprep.subr.bf16.mxu0 %v2389_v20  ;;  %2193 = vmatpush3.bf16.msra.mxu1 %v2388_v19  ;;  %v250_v51 = vcombine.high %v242_v47, %v242_v47  ;;  %v249_v53 = vrot.slane %v235_v48, %v2680_v52  ;;  %v325_v6 = vpack.c.bf16 %v242_v47, %v242_v47  ;;  %v2424_v19 = vld [vmem:[%s3132_s2 + $0x290] sm:$0xff]   ;;  %v2427_v20 = vld [vmem:[%s3132_s2 + $0x2d8] sm:$0xff]  }
  0x2a   :  { %2194 = vmatprep.subr.bf16.mxu1 %v2391_v22  ;;  %v2428_v22 = vld [vmem:[%s3132_s2 + $0x298] sm:$0xff]   ;;  %v2437_v47 = vld [vmem:[%s3132_s2 + $0x270] sm:$0xff]  }
  0x2b   :  { %v326_v56 = vpack.c.bf16 %v250_v51, %v250_v51  ;;  %v251_v57 = vcombine.high %v249_v53, %v249_v53  ;;  %v327_v9 = vpack.c.bf16 %v249_v53, %v249_v53  ;;  %v2440_v53 = vld [vmem:[%s3132_s2 + $0x2b0] sm:$0xff]  }
  0x2c   :  { %2173 = vmatpush3.bf16.msra.mxu0 %v2390_v21  ;;  %v2426_v21 = vld [vmem:[%s3132_s2 + $0x218] sm:$0xff]  }
  0x2d   :  { %2174 = vmatprep.subr.bf16.mxu0 %v2393_v27  ;;  %2195 = vmatpush3.bf16.msra.mxu1 %v2392_v26  ;;  %v328_v0 = vpack.c.bf16 %v251_v57, %v251_v57  ;;  %v2430_v26 = vld [vmem:[%s3132_s2 + $0x220] sm:$0xff]   ;;  %v2443_v57 = vld [vmem:[%s3132_s2 + $0x2f8] sm:$0xff]  }
  0x2e   :  { %2196 = vmatprep.subr.bf16.mxu1 %v2395_v29  ;;  %1656 = vmatprep.mubr.bf16.mxu0 %v326_v56  ;;  %v2431_v27 = vld [vmem:[%s3132_s2 + $0x2e0] sm:$0xff]   ;;  %v77_v29 = vrot.slane %v2852_v24, %v2644_v32  ;;  %v2442_v56 = vld [vmem:[%s3132_s2 + $0x238] sm:$0xff]  }
  0x2f   :  { %1696 = vmatprep.mubr.bf16.mxu1 %v328_v0  ;;  %v2444_v0 = vld [vmem:[%s3132_s2 + $0x2b8] sm:$0xff]  }
  0x30   :  { %2175 = vmatpush3.bf16.msra.mxu0 %v2394_v28  ;;  %v73_v28 = vrot.slane %v2852_v24, %v2638_v30 }
  0x31   :  { %2176 = vmatprep.subr.bf16.mxu0 %v2397_v37  ;;  %2197 = vmatpush3.bf16.msra.mxu1 %v2396_v39  ;;  %v2432_v37 = vld [vmem:[%s3132_s2 + $0x2a0] sm:$0xff]  }
  0x32   :  { %2198 = vmatprep.subr.bf16.mxu1 %v2399_v40  ;;  %v148_v39 = vcombine.low %v73_v28, %v77_v29  ;;  %v2433_v40 = vld [vmem:[%s3132_s2 + $0x268] sm:$0xff]   ;;  %v2461_v28 = vld [vmem:[%s3132_s2 + $0x360] sm:$0xff]   ;;  %v19_v29 = vld [vmem:[%s3130_s0 + $0x18] sm:$0xff] }
  0x34   :  { %2177 = vmatpush3.bf16.msra.mxu0 %v2398_v42  ;;  %v156_v42 = vrot.slane %v148_v39, %v2680_v52  ;;  %v2465_v39 = vld [vmem:[%s3132_s2 + $0x368] sm:$0xff]  }
  0x35   :  { %2178 = vmatprep.subr.bf16.mxu0 %v2401_v43  ;;  %2199 = vmatpush3.bf16.msra.mxu1 %v2400_v45  ;;  %v2435_v43 = vld [vmem:[%s3132_s2 + $0x2e8] sm:$0xff]   ;;  %v163_v45 = vrot.slane %v149_v41, %v2680_v52  ;;  %v2464_v41 = vld [vmem:[%s3132_s2 + $0x3a0] sm:$0xff]  }
  0x36   :  { %2200 = vmatprep.subr.bf16.mxu1 %v2403_v46  ;;  %v2436_v46 = vld [vmem:[%s3132_s2 + $0x2a8] sm:$0xff]  }
  0x37   :  { %v164_v48 = vcombine.low %v156_v42, %v163_v45 }
  0x38   :  { %2179 = vmatpush3.bf16.msra.mxu0 %v2402_v49  ;;  %v2438_v49 = vld [vmem:[%s3132_s2 + $0x230] sm:$0xff]  }
  0x39   :  { %2180 = vmatprep.subr.bf16.mxu0 %v2405_v50  ;;  %2201 = vmatpush3.bf16.msra.mxu1 %v2404_v54  ;;  %v2439_v50 = vld [vmem:[%s3132_s2 + $0x2f0] sm:$0xff]   ;;  %v205_v51 = vadd.f32 %v164_v48, %v29_v44  ;;  %v2441_v54 = vld [vmem:[%s3132_s2 + $0x278] sm:$0xff]  }
  0x3a   :  { %2202 = vmatprep.subr.bf16.mxu1 %v2407_v55  ;;  %v2469_v44 = vld [vmem:[%s3132_s2 + $0x370] sm:$0xff]  }
  0x3b   :  { %v210_v55 = vmax.f32 %v205_v51, 0.0  ;;  %v2471_v48 = vld [vmem:[%s3132_s2 + $0x3f0] sm:$0xff]  }
  0x3c   :  { %2181 = vmatpush3.bf16.msra.mxu0 %v2406_v59  ;;  %v2470_v51 = vld [vmem:[%s3132_s2 + $0x330] sm:$0xff]  }
  0x3d   :  { %2182 = vmatprep.subr.bf16.mxu0 %v2409_v63  ;;  %2203 = vmatpush3.bf16.msra.mxu1 %v2408_v1  ;;  %v259_v59 = vrot.slane %v210_v55, %v2680_v52  ;;  %v252_v63 = vcombine.high %v210_v55, %v210_v55 }
  0x3e   :  { %2204 = vmatprep.subr.bf16.mxu1 %v2411_v2  ;;  %v2445_v2 = vld [vmem:[%s3132_s2 + $0x340] sm:$0xff]  }
  0x3f   :  { %v267_v1 = vcombine.high %v259_v59, %v259_v59 }
  0x40   :  { %2183 = vmatpush3.bf16.msra.mxu0 %v2410_v3  ;;  %v266_v3 = vrot.slane %v252_v63, %v2680_v52  ;;  %v2474_v63 = vld [vmem:[%s3132_s2 + $0x338] sm:$0xff]  }
  0x41   :  { %2212 = vmatprep.subr.bf16.mxu0 %v2413_v4  ;;  %2205 = vmatpush3.bf16.msra.mxu1 %v2412_v5  ;;  %v2446_v4 = vld [vmem:[%s3132_s2 + $0x300] sm:$0xff]   ;;  %v330_v5 = vpack.c.bf16 %v267_v1, %v267_v1  ;;  %v2476_v1 = vld [vmem:[%s3132_s2 + $0x3b8] sm:$0xff]  }
  0x42   :  { %2234 = vmatprep.subr.bf16.mxu1 %v2415_v7  ;;  %v268_v7 = vcombine.high %v266_v3, %v266_v3 }
  0x43   :  { %1657 = vmatmul.mubr.bf16.vlgmr.msra.gmra.mrb[4].mxu0 %v325_v6  ;;  %v329_v6 = vpack.c.bf16 %v259_v59, %v259_v59 }
  0x44   :  { %2213 = vmatpush3.bf16.msra.mxu0 %v2414_v8  ;;  %1697 = vmatmul.mubr.bf16.vlgmr.msra.gmra.mrb[4].mxu1 %v327_v9  ;;  %v2447_v8 = vld [vmem:[%s3132_s2 + $0x3c0] sm:$0xff]  }
  0x45   :  { %2214 = vmatprep.subr.bf16.mxu0 %v2417_v10  ;;  %2235 = vmatpush3.bf16.msra.mxu1 %v2416_v11  ;;  %v2448_v9 = vld [vmem:[%s3132_s2 + $0x380] sm:$0xff]   ;;  %v89_v10 = vrot.slane %v2852_v24, %v56_v58  ;;  %v93_v11 = vrot.slane %v2852_v24, %v60_v60  ;;  %v101_v58 = vrot.slane %v2852_v24, %v68_v62  ;;  %v2450_v60 = vld [vmem:[%s3132_s2 + $0x308] sm:$0xff]  }
  0x46   :  { %2236 = vmatprep.subr.bf16.mxu1 %v2419_v12  ;;  %v97_v12 = vrot.slane %v2852_v24, %v64_v61  ;;  %1736 = vmatprep.mubr.bf16.mxu0 %v330_v5  ;;  %v2451_v61 = vld [vmem:[%s3132_s2 + $0x3c8] sm:$0xff]   ;;  %v2458_v24 = vld [vmem:[%s3132_s2 + $0x318] sm:$0xff]  }
  0x47   :  { %v165_v62 = vcombine.low %v89_v10, %v93_v11  ;;  %v2479_v5 = vld [vmem:[%s3132_s2 + $0x448] sm:$0xff]   ;;  %v34_v10 = vld [vmem:[%s3131_s1 + $0x10] sm:$0x7] }
  0x48   :  { %2215 = vmatpush3.bf16.msra.mxu0 %v2418_v13  ;;  %v332_v13 = vpack.c.bf16 %v268_v7, %v268_v7  ;;  %v2528_v7 = vmov 0.0   ;;  %v2486_v11 = vld [vmem:[%s3132_s2 + $0x488] sm:$0xff]  }
  0x49   :  { %2216 = vmatprep.subr.bf16.mxu0 %v2421_v14  ;;  %2237 = vmatpush3.bf16.msra.mxu1 %v2420_v15  ;;  %v331_v14 = vpack.c.bf16 %v266_v3, %v266_v3  ;;  %v2449_v15 = vld [vmem:[%s3132_s2 + $0x348] sm:$0xff]   ;;  %v2478_v3 = vld [vmem:[%s3132_s2 + $0x400] sm:$0xff]  }
  0x4a   :  { %2238 = vmatprep.subr.bf16.mxu1 %v2423_v16  ;;  %1776 = vmatprep.mubr.bf16.mxu1 %v332_v13  ;;  %v2452_v16 = vld [vmem:[%s3132_s2 + $0x388] sm:$0xff]   ;;  %v109_v13 = vrot.slane %v34_v10, %v2644_v32 }
  0x4c   :  { %2217 = vmatpush3.bf16.msra.mxu0 %v2422_v17  ;;  %v166_v17 = vcombine.low %v97_v12, %v101_v58  ;;  %v105_v12 = vrot.slane %v34_v10, %v2638_v30 }
  0x4d   :  { %2218 = vmatprep.subr.bf16.mxu0 %v2425_v18  ;;  %2239 = vmatpush3.bf16.msra.mxu1 %v2424_v19  ;;  %v2454_v18 = vld [vmem:[%s3132_s2 + $0x310] sm:$0xff]  }
  0x4e   :  { %2240 = vmatprep.subr.bf16.mxu1 %v2427_v20  ;;  %v2455_v19 = vld [vmem:[%s3132_s2 + $0x3d0] sm:$0xff]  }
  0x4f   :  { %v2456_v20 = vld [vmem:[%s3132_s2 + $0x390] sm:$0xff]  }
  0x50   :  { %2219 = vmatpush3.bf16.msra.mxu0 %v2426_v21  ;;  %v2457_v21 = vld [vmem:[%s3132_s2 + $0x358] sm:$0xff]  }
  0x51   :  { %2220 = vmatprep.subr.bf16.mxu0 %v2429_v23  ;;  %2241 = vmatpush3.bf16.msra.mxu1 %v2428_v22  ;;  %v173_v22 = vrot.slane %v165_v62, %v2680_v52  ;;  %v180_v23 = vrot.slane %v166_v17, %v2680_v52 }
  0x52   :  { %2242 = vmatprep.subr.bf16.mxu1 %v2431_v27  ;;  %v2460_v27 = vld [vmem:[%s3132_s2 + $0x398] sm:$0xff]  }
  0x53   :  { %v181_v31 = vcombine.low %v173_v22, %v180_v23 }
  0x54   :  { %2221 = vmatpush3.bf16.msra.mxu0 %v2430_v26  ;;  %v2459_v26 = vld [vmem:[%s3132_s2 + $0x3d8] sm:$0xff]  }
  0x55   :  { %2222 = vmatprep.subr.bf16.mxu0 %v2433_v40  ;;  %2243 = vmatpush3.bf16.msra.mxu1 %v2432_v37  ;;  %v30_v37 = vadd.f32 %v1970_v33, %v19_v29 }
  0x56   :  { %2244 = vmatprep.subr.bf16.mxu1 %v2435_v43  ;;  %v2466_v43 = vld [vmem:[%s3132_s2 + $0x328] sm:$0xff]  }
  0x57   :  { %v206_v40 = vadd.f32 %v181_v31, %v30_v37 }
  0x58   :  { %2223 = vmatpush3.bf16.msra.mxu0 %v2434_v36  ;;  %v2467_v36 = vld [vmem:[%s3132_s2 + $0x3e8] sm:$0xff]  }
  0x59   :  { %2224 = vmatprep.subr.bf16.mxu0 %v2437_v47  ;;  %2245 = vmatpush3.bf16.msra.mxu1 %v2436_v46  ;;  %v211_v42 = vmax.f32 %v206_v40, 0.0  ;;  %v2468_v47 = vld [vmem:[%s3132_s2 + $0x3a8] sm:$0xff]  }
  0x5a   :  { %2246 = vmatprep.subr.bf16.mxu1 %v2439_v50 }
  0x5b   :  { %v276_v45 = vrot.slane %v211_v42, %v2680_v52  ;;  %v269_v46 = vcombine.high %v211_v42, %v211_v42 }
  0x5c   :  { %2225 = vmatpush3.bf16.msra.mxu0 %v2438_v49 }
  0x5d   :  { %2226 = vmatprep.subr.bf16.mxu0 %v2441_v54  ;;  %2247 = vmatpush3.bf16.msra.mxu1 %v2440_v53  ;;  %v284_v49 = vcombine.high %v276_v45, %v276_v45  ;;  %v283_v50 = vrot.slane %v269_v46, %v2680_v52  ;;  %v2473_v53 = vld [vmem:[%s3132_s2 + $0x378] sm:$0xff]  }
  0x5e   :  { %2248 = vmatprep.subr.bf16.mxu1 %v2443_v57  ;;  %v2475_v57 = vld [vmem:[%s3132_s2 + $0x3f8] sm:$0xff]  }
  0x5f   :  { %v334_v54 = vpack.c.bf16 %v284_v49, %v284_v49  ;;  %v285_v55 = vcombine.high %v283_v50, %v283_v50 }
  0x60   :  { %2227 = vmatpush3.bf16.msra.mxu0 %v2442_v56  ;;  %v2472_v56 = vld [vmem:[%s3132_s2 + $0x3b0] sm:$0xff]  }
  0x61   :  { %2256 = vmatprep.subr.bf16.mxu0 %v2445_v2  ;;  %2249 = vmatpush3.bf16.msra.mxu1 %v2444_v0  ;;  %v336_v59 = vpack.c.bf16 %v285_v55, %v285_v55  ;;  %v2477_v0 = vld [vmem:[%s3132_s2 + $0x440] sm:$0xff]   ;;  %v333_v2 = vpack.c.bf16 %v276_v45, %v276_v45 }
  0x62   :  { %2278 = vmatprep.subr.bf16.mxu1 %v2447_v8  ;;  %v2480_v8 = vld [vmem:[%s3132_s2 + $0x408] sm:$0xff]  }
  0x63   :  { %1737 = vmatmul.mubr.bf16.vlgmr.msra.gmra.mrb[8].mxu0 %v329_v6  ;;  %v2483_v6 = vld [vmem:[%s3132_s2 + $0x480] sm:$0xff]  }
  0x64   :  { %2257 = vmatpush3.bf16.msra.mxu0 %v2446_v4  ;;  %1777 = vmatmul.mubr.bf16.vlgmr.msra.gmra.mrb[8].mxu1 %v331_v14  ;;  %v335_v4 = vpack.c.bf16 %v283_v50, %v283_v50  ;;  %v113_v14 = vrot.slane %v34_v10, %v2650_v34 }
  0x65   :  { %2258 = vmatprep.subr.bf16.mxu0 %v2449_v15  ;;  %2279 = vmatpush3.bf16.msra.mxu1 %v2448_v9  ;;  %v2481_v9 = vld [vmem:[%s3132_s2 + $0x450] sm:$0xff]  }
  0x66   :  { %2280 = vmatprep.subr.bf16.mxu1 %v2451_v61  ;;  %1816 = vmatprep.mubr.bf16.mxu0 %v334_v54 }
  0x67   :  { %1856 = vmatprep.mubr.bf16.mxu1 %v336_v59 }
  0x68   :  { %2259 = vmatpush3.bf16.msra.mxu0 %v2450_v60 }
  0x69   :  { %2260 = vmatprep.subr.bf16.mxu0 %v2453_v25  ;;  %2281 = vmatpush3.bf16.msra.mxu1 %v2452_v16 }
  0x6a   :  { %2282 = vmatprep.subr.bf16.mxu1 %v2455_v19 }
  0x6c   :  { %2261 = vmatpush3.bf16.msra.mxu0 %v2454_v18 }
  0x6d   :  { %2262 = vmatprep.subr.bf16.mxu0 %v2457_v21  ;;  %2283 = vmatpush3.bf16.msra.mxu1 %v2456_v20 }
  0x6e   :  { %2284 = vmatprep.subr.bf16.mxu1 %v2459_v26 }
  0x70   :  { %2263 = vmatpush3.bf16.msra.mxu0 %v2458_v24 }
  0x71   :  { %2264 = vmatprep.subr.bf16.mxu0 %v2461_v28  ;;  %2285 = vmatpush3.bf16.msra.mxu1 %v2460_v27 }
  0x72   :  { %2286 = vmatprep.subr.bf16.mxu1 %v2463_v35 }
  0x74   :  { %2265 = vmatpush3.bf16.msra.mxu0 %v2462_v38 }
  0x75   :  { %2266 = vmatprep.subr.bf16.mxu0 %v2465_v39  ;;  %2287 = vmatpush3.bf16.msra.mxu1 %v2464_v41 }
  0x76   :  { %2288 = vmatprep.subr.bf16.mxu1 %v2467_v36 }
  0x78   :  { %2267 = vmatpush3.bf16.msra.mxu0 %v2466_v43 }
  0x79   :  { %2268 = vmatprep.subr.bf16.mxu0 %v2469_v44  ;;  %2289 = vmatpush3.bf16.msra.mxu1 %v2468_v47 }
  0x7a   :  { %2290 = vmatprep.subr.bf16.mxu1 %v2471_v48 }
  0x7c   :  { %2269 = vmatpush3.bf16.msra.mxu0 %v2470_v51 }
  0x7d   :  { %2270 = vmatprep.subr.bf16.mxu0 %v2473_v53  ;;  %2291 = vmatpush3.bf16.msra.mxu1 %v2472_v56 }
  0x7e   :  { %2292 = vmatprep.subr.bf16.mxu1 %v2475_v57 }
  0x80   :  { %2271 = vmatpush3.bf16.msra.mxu0 %v2474_v63 }
  0x81   :  { %2300 = vmatprep.subr.bf16.mxu0 %v2477_v0  ;;  %2293 = vmatpush3.bf16.msra.mxu1 %v2476_v1 }
  0x82   :  { %2329 = vmatprep.subr.bf16.mxu1 %v2528_v7 }
  0x83   :  { %1817 = vmatmul.mubr.bf16.vlgmr.msra.gmra.mrb[12].mxu0 %v333_v2 }
  0x84   :  { %2301 = vmatpush3.bf16.msra.mxu0 %v2478_v3  ;;  %1857 = vmatmul.mubr.bf16.vlgmr.msra.gmra.mrb[12].mxu1 %v335_v4 }
  0x85   :  { %2302 = vmatprep.subr.bf16.mxu0 %v2479_v5  ;;  %2330 = vmatpush3.bf16.msra.mxu1 %v2483_v6 }
  0x86   :  { %2341 = vmatprep.mubr.msk.bf16.mxu1 %vm2529_vm0, %v2528_v7 }
  0x87   :  { %8 = vsyncpa [#allocation3], 0  ;;  %2331 = vmatprep.subr.bf16.mxu1 %v2528_v7  ;;  %v20_v15 = vld [vmem:[%s3130_s0 + $0x20] sm:$0x3f]  ;;  %v1971_v58 = vld [vmem:[%s3130_s0 + $0x46] sm:$0x3f]  ;;  %v182_v32 = vcombine.low %v105_v12, %v109_v13  ;;  %v196_v34 = vrot.slane %v113_v14, %v2680_v52 }
  0x88   :  { %2303 = vmatpush3.bf16.msra.mxu0 %v2480_v8  ;;  %v2482_v30 = vld [vmem:[%s3132_s2 + $0x410] sm:$0xff]   ;;  %v2484_v60 = vld [vmem:[%s3132_s2 + $0x458] sm:$0xff]   ;;  %v31_v16 = vadd.f32 %v1971_v58, %v20_v15  ;;  %v2487_v18 = vld [vmem:[%s3132_s2 + $0x460] sm:$0xff]   ;;  %vm1540_vm1 = vcmask 785408   ;;  %vm1951_vm2 = vcmask 254976  }
  0x89   :  { %2304 = vmatprep.subr.bf16.mxu0 %v2481_v9  ;;  %2332 = vmatpush3.bf16.msra.mxu1 %v2486_v11  ;;  %v2489_v61 = vld [vmem:[%s3132_s2 + $0x490] sm:$0xff]   ;;  %v189_v25 = vrot.slane %v182_v32, %v2680_v52  ;;  %v2485_v62 = vld [vmem:[%s3132_s2 + $0x418] sm:$0xff]   ;;  %v2488_v21 = vld [vmem:[%s3132_s2 + $0x420] sm:$0xff]  }
  0x8a   :  { %2333 = vmatprep.subr.bf16.mxu1 %v2528_v7  ;;  %v2492_v19 = vld [vmem:[%s3132_s2 + $0x498] sm:$0xff]   ;;  %v2490_v23 = vld [vmem:[%s3132_s2 + $0x468] sm:$0xff]   ;;  %v2495_v24 = vld [vmem:[%s3132_s2 + $0x4a0] sm:$0xff]  }
  0x8b   :  { %v197_v17 = vcombine.low %v189_v25, %v196_v34  ;;  %v2491_v28 = vld [vmem:[%s3132_s2 + $0x428] sm:$0xff]   ;;  %v2493_v31 = vld [vmem:[%s3132_s2 + $0x470] sm:$0xff]   ;;  %v2496_v39 = vld [vmem:[%s3132_s2 + $0x478] sm:$0xff]  }
  0x8c   :  { %2305 = vmatpush3.bf16.msra.mxu0 %v2482_v30  ;;  %v2498_v37 = vld [vmem:[%s3132_s2 + $0x4a8] sm:$0xff]   ;;  %v2494_v38 = vld [vmem:[%s3132_s2 + $0x430] sm:$0xff]  }
  0x8d   :  { %2306 = vmatprep.subr.bf16.mxu0 %v2484_v60  ;;  %2334 = vmatpush3.bf16.msra.mxu1 %v2489_v61  ;;  %v207_v20 = vadd.f32 %v197_v17, %v31_v16 }
  0x8e   :  { %2335 = vmatprep.subr.bf16.mxu1 %v2528_v7 }
  0x8f   :  { %v212_v22 = vmax.f32 %v207_v20, 0.0 }
  0x90   :  { %2307 = vmatpush3.bf16.msra.mxu0 %v2485_v62 }
  0x91   :  { %2308 = vmatprep.subr.bf16.mxu0 %v2487_v18  ;;  %2336 = vmatpush3.bf16.msra.mxu1 %v2492_v19  ;;  %v286_v26 = vcombine.high %v212_v22, %v212_v22  ;;  %v293_v27 = vrot.slane %v212_v22, %v2680_v52 }
  0x92   :  { %2337 = vmatprep.subr.bf16.mxu1 %v2528_v7 }
  0x93   :  { %v301_v29 = vcombine.high %v293_v27, %v293_v27  ;;  %v300_v33 = vrot.slane %v286_v26, %v2680_v52  ;;  %v2497_v52 = vld [vmem:[%s3132_s2 + $0x438] sm:$0xff]   ;;  %v337_v41 = vpack.c.bf16 %v293_v27, %v293_v27  ;;  %s2530_s2 = smov [#allocation2]  }
  0x94   :  { %2309 = vmatpush3.bf16.msra.mxu0 %v2488_v21  ;;  %s1959_s11 = sshll.u32 %s2530_s2, 4  ;;  %s1960_s11 = int_to_ptr.vmem [resolvable:$true] %s1959_s11 }
  0x95   :  { %2310 = vmatprep.subr.bf16.mxu0 %v2490_v23  ;;  %2338 = vmatpush3.bf16.msra.mxu1 %v2495_v24  ;;  %v338_v35 = vpack.c.bf16 %v301_v29, %v301_v29  ;;  %v339_v40 = vpack.c.bf16 %v300_v33, %v300_v33  ;;  %s2503_s12 = scalar_lea.vmem %s1960_s11, 32  ;;  %p2508_p1 = scmp.lt.s32.totalorder %s1960_s11, %s1960_s11 }
  0x96   :  { %2339 = vmatprep.subr.bf16.mxu1 %v2528_v7  ;;  %p2504_p0 = scmp.ne.s32.totalorder %s1960_s11, %s2503_s12  ;;  %p2509_p2 = scmp.lt.s32.totalorder %s2503_s12, %s2503_s12 }
  0x97   :  { %1896 = vmatprep.mubr.bf16.mxu0 %v338_v35 }
  0x98   :  { %2311 = vmatpush3.bf16.msra.mxu0 %v2491_v28  ;;  %p2510_p3 = por %p2509_p2, %p2508_p1 }
  0x99   :  { %2312 = vmatprep.subr.bf16.mxu0 %v2493_v31  ;;  %2340 = vmatpush3.bf16.msra.mxu1 %v2498_v37 }
  0x9a   :  { %p2511_p4 = pnand %p2510_p3, %p2504_p0 }
  0x9c   :  { %2313 = vmatpush3.bf16.msra.mxu0 %v2494_v38  ;;  %2342 = vmatmul.mubr.msk.bf16.vlgmr.msra.gmra.mrb[16].mxu1 %vm1540_vm1, %v339_v40 }
  0x9d   :  { %2314 = vmatprep.subr.bf16.mxu0 %v2496_v39 }
  0xa0   :  { %2315 = vmatpush3.bf16.msra.mxu0 %v2497_v52 }
  0xa3   :  { %1897 = vmatmul.mubr.bf16.vlgmr.msra.gmra.mrb[16].mxu0 %v337_v41 }
  0xf6   :  { %v2140_v36 = vpop.f32.mrb[0].mxu0 }
  0xf7   :  { %v2141_v42 = vpop.f32.mrb[1].mxu0  ;;  %v2162_v43 = vpop.f32.mrb[0].mxu1 }
  0xf8   :  { %v2142_v44 = vadd.f32 %v2141_v42, %v2140_v36  ;;  %v2143_v45 = vpop.f32.mrb[2].mxu0  ;;  %v2163_v46 = vpop.f32.mrb[1].mxu1 }
  0xf9   :  { %v2144_v47 = vpop.f32.mrb[3].mxu0  ;;  %v2164_v48 = vadd.f32 %v2163_v46, %v2162_v43  ;;  %v2165_v49 = vpop.f32.mrb[2].mxu1 }
  0xfa   :  { %v2166_v50 = vpop.f32.mrb[3].mxu1 }
  0xfb   :  { %v1619_v51 = vadd.f32 %v2164_v48, %v2142_v44 }
 0x116   :  { %v2184_v53 = vpop.f32.mrb[4].mxu0 }
 0x117   :  { %v2185_v54 = vpop.f32.mrb[5].mxu0  ;;  %v2206_v57 = vpop.f32.mrb[4].mxu1 }
 0x118   :  { %v2186_v55 = vadd.f32 %v2185_v54, %v2184_v53  ;;  %v2187_v56 = vpop.f32.mrb[6].mxu0  ;;  %v2207_v63 = vpop.f32.mrb[5].mxu1 }
 0x119   :  { %v2188_v59 = vpop.f32.mrb[7].mxu0  ;;  %v2208_v1 = vadd.f32 %v2207_v63, %v2206_v57  ;;  %v2209_v2 = vpop.f32.mrb[6].mxu1 }
 0x11a   :  { %v1659_v0 = vadd.f32 %v2186_v55, %v1619_v51  ;;  %v2210_v3 = vpop.f32.mrb[7].mxu1 }
 0x11c   :  { %v1699_v4 = vadd.f32 %v2208_v1, %v1659_v0 }
 0x136   :  { %v2228_v5 = vpop.f32.mrb[8].mxu0 }
 0x137   :  { %v2229_v6 = vpop.f32.mrb[9].mxu0  ;;  %v2250_v9 = vpop.f32.mrb[8].mxu1 }
 0x138   :  { %v2230_v7 = vadd.f32 %v2229_v6, %v2228_v5  ;;  %v2231_v8 = vpop.f32.mrb[10].mxu0  ;;  %v2251_v11 = vpop.f32.mrb[9].mxu1 }
 0x139   :  { %v2232_v10 = vpop.f32.mrb[11].mxu0  ;;  %v2252_v13 = vadd.f32 %v2251_v11, %v2250_v9  ;;  %v2253_v14 = vpop.f32.mrb[10].mxu1 }
 0x13a   :  { %v1739_v12 = vadd.f32 %v2230_v7, %v1699_v4  ;;  %v2254_v15 = vpop.f32.mrb[11].mxu1 }
 0x13c   :  { %v1779_v58 = vadd.f32 %v2252_v13, %v1739_v12 }
 0x156   :  { %v2272_v30 = vpop.f32.mrb[12].mxu0 }
 0x157   :  { %v2273_v32 = vpop.f32.mrb[13].mxu0  ;;  %v2294_v61 = vpop.f32.mrb[12].mxu1 }
 0x158   :  { %v2274_v34 = vadd.f32 %v2273_v32, %v2272_v30  ;;  %v2275_v60 = vpop.f32.mrb[14].mxu0  ;;  %v2295_v25 = vpop.f32.mrb[13].mxu1 }
 0x159   :  { %v2276_v16 = vpop.f32.mrb[15].mxu0  ;;  %v2296_v17 = vadd.f32 %v2295_v25, %v2294_v61  ;;  %v2297_v18 = vpop.f32.mrb[14].mxu1 }
 0x15a   :  { %v1819_v62 = vadd.f32 %v2274_v34, %v1779_v58  ;;  %v2298_v19 = vpop.f32.mrb[15].mxu1 }
 0x15c   :  { %v1859_v20 = vadd.f32 %v2296_v17, %v1819_v62 }
 0x16f   :  { %v1938_v21 = vpop.f32.mrb[16].mxu1 }
 0x170   :  { %v2343_v22 = vpop.f32.mrb[17].mxu1 }
 0x171   :  { %v1941_v23 = vpop.f32.mrb[18].mxu1 }
 0x172   :  { %v2344_v24 = vpop.f32.mrb[19].mxu1 }
 0x176   :  { %v2316_v26 = vpop.f32.mrb[16].mxu0 }
 0x177   :  { %v2317_v27 = vpop.f32.mrb[17].mxu0 }
 0x178   :  { %v2318_v28 = vadd.f32 %v2317_v27, %v2316_v26  ;;  %v2319_v29 = vpop.f32.mrb[18].mxu0 }
 0x179   :  { %v2320_v31 = vpop.f32.mrb[19].mxu0 }
 0x17a   :  { %v1899_v33 = vadd.f32 %v2318_v28, %v1859_v20 }
 0x17c   :  { %v1939_v35 = vadd.f32 %v1938_v21, %v1899_v33 }
 0x17e   :  { %v2123_v37 = vmul.f32 -10.0, %v1939_v35 }
 0x180   :  { %v1946_v38 = vmul.f32 1.442695, %v2123_v37 }
 0x182   :  { %2499 = vpow2.f32 %v1946_v38 }
 0x18c   :  { %v2500_v39 = vpop.eup %2499 }
 0x18d   :  { %v1948_v40 = vadd.f32 1.0, %v2500_v39 }
 0x18f   :  { %2501 = vrcp.f32 %v1948_v40 }
 0x199   :  { %v2502_v52 = vpop.eup %2501 }
 0x19a   :  { %1952 = vst.msk [vmem:[#allocation2] sm:$0x3] %vm1951_vm2, %v2502_v52 }
 0x19b   :  { %2514 = shalt.err (!%p2511_p4)
}
 0x19c   :  { %s2515_s15 = scalar_lea.hbm %s3133_s3, 32 }
 0x19d   :  { %p2516_p5 = scmp.ne.s32.totalorder %s3133_s3, %s2515_s15  ;;  %p2519_p6 = scmp.lt.u32.totalorder %s2515_s15, %s3133_s3 }
 0x19f   :  { %p2521_p7 = pnand %p2519_p6, %p2516_p5 }
 0x1a1   :  { %2524 = shalt.err (!%p2521_p7)
}
 0x1a2   :  { %1962 = dma.vmem_to_hbm [thread:$0]  %s1960_s11, 32, %s3133_s3, [#allocation3]  }
 0x1a3   :  { %2525 = dma.done.wait [#allocation3], 32  }
 0x1a4   :  { %2526 = vsyncadd [#allocation3], 4294967264 }
 0x1a5   :  { %1966 = vsyncpa [#allocation3], 1 }

// kernel: embeddingnet_forward.2
= control target key start
LH: loop header
LB: loop body
LE: loop exit
PB: predicated region body
PF: predicated region fallthrough
CT: control target
= control target key end

     0   :  { %s23743_s15 = smov 0   ;;  %s23745_s16 = smov 0   ;;  %s27601_s0 = inlined_call_operand.vmem [shape: f32[2,1024], index: 0, kind: input, shape index: {}]   ;;  %s27602_s1 = inlined_call_operand.vmem [shape: bf16[1024,2560], index: 1, kind: input, shape index: {}]   ;;  %s27603_s2 = inlined_call_operand.vmem [shape: f32[1,2560], index: 2, kind: input, shape index: {}]   ;;  %s27604_s3 = inlined_call_operand.vmem [shape: bf16[2560,2400], index: 3, kind: input, shape index: {}]   ;;  %s27605_s4 = inlined_call_operand.vmem [shape: f32[2,2,2400], index: 4, kind: output, shape index: {}]  }
   0x1   :  { %s23747_s17 = smov 0   ;;  %s23749_s18 = smov 0  }
   0x2   :  { %s23751_s19 = smov 0  }
   0x3 LB: > { %s26_s20 = sadd.s32 1, %s23710_s18  ;;  %p63_p1 = scmp.ne.s32.totalorder %s23702_s16, %s23698_s15  ;;  %s23714_s19 = sphi %s23751_s19, %s14_s19   ;;  %s23710_s18 = sphi %s23749_s18, %s27611_s18   ;;  %s23706_s17 = sphi %s23747_s17, %s27610_s17   ;;  %s23702_s16 = sphi %s23745_s16, %s27609_s16   ;;  %s23698_s15 = sphi %s23743_s15, %s27608_s15  }
   0x4   : > { %p28_p0 = scmp.ge.s32.totalorder %s26_s20, 2  ;;  %p64_p2 = scmp.eq.s32.totalorder %s23714_s19, 0 }
   0x5   : > { %s56_s22 = sadd.s32 1, %s23702_s16  ;;  %p17934_p5 = scmp.ge.s32.totalorder %s23714_s19, 2 }
   0x6   : > { %s27613_s20 = smov (%p28_p0, %s26_s20), 0  ;;  %p65_p3 = por %p64_p2, %p63_p1 }
   0x7   : > { %s53_s21 = ssub.s32 %s23710_s18, %s27613_s20  ;;  %174 = sbr.rel (%p17934_p5) target bundleno = 339 (0x153), region = 20 }
   0x8   : > { %p54_p4 = scmp.eq.s32.totalorder %s53_s21, 0 }
   0xa   : > { %s23778_s23 = scalar_select %p54_p4, %s23702_s16, %s56_s22  }
   0xe   : > { %177 = sbr.rel (!%p65_p3) target bundleno = 339 (0x153), region = 24  ;;  %s179_s24 = sand.u32 (%p65_p3), 1, %s23702_s16  }
   0xf   : > { %s20101_s25 = smul.u32 (%p65_p3), 40, %s23710_s18 }
  0x10   : > { %s20426_s26 = smul.u32 (%p65_p3), 5120, %s179_s24 }
  0x11   : > { %s23786_s29 = scalar_lea.vmem (%p65_p3), %s27602_s1, %s20101_s25 }
  0x12   : > { %v198_v0 = vld [vmem:[%s23786_s29] sm:$0xff] (%p65_p3)  ;;  %v200_v1 = vld [vmem:[%s23786_s29 + $0x8] sm:$0xff] (%p65_p3)  ;;  %v202_v2 = vld [vmem:[%s23786_s29 + $0x10] sm:$0xff] (%p65_p3)  ;;  %s23791_s30 = scalar_lea.vmem (%p65_p3), [#allocation3], %s20426_s26 }
  0x13   : > { %199 = vst [vmem:[%s23791_s30] sm:$0xff] (%p65_p3), %v198_v0  ;;  %201 = vst [vmem:[%s23791_s30 + $0x8] sm:$0xff] (%p65_p3), %v200_v1  ;;  %v204_v3 = vld [vmem:[%s23786_s29 + $0x18] sm:$0xff] (%p65_p3)  ;;  %v206_v4 = vld [vmem:[%s23786_s29 + $0x20] sm:$0xff] (%p65_p3) }
  0x14   : > { %203 = vst [vmem:[%s23791_s30 + $0x10] sm:$0xff] (%p65_p3), %v202_v2  ;;  %v208_v5 = vld [vmem:[%s23786_s29 + $0x50] sm:$0xff] (%p65_p3)  ;;  %205 = vst [vmem:[%s23791_s30 + $0x18] sm:$0xff] (%p65_p3), %v204_v3  ;;  %v210_v6 = vld [vmem:[%s23786_s29 + $0x58] sm:$0xff] (%p65_p3) }
  0x15   : > { %207 = vst [vmem:[%s23791_s30 + $0x20] sm:$0xff] %v206_v4  ;;  %209 = vst [vmem:[%s23791_s30 + $0x28] sm:$0xff] %v208_v5  ;;  %v212_v7 = vld [vmem:[%s23786_s29 + $0x60] sm:$0xff]  ;;  %v214_v8 = vld [vmem:[%s23786_s29 + $0x68] sm:$0xff] }
  0x16   : > { %211 = vst [vmem:[%s23791_s30 + $0x30] sm:$0xff] %v210_v6  ;;  %213 = vst [vmem:[%s23791_s30 + $0x38] sm:$0xff] %v212_v7  ;;  %v216_v9 = vld [vmem:[%s23786_s29 + $0x70] sm:$0xff]  ;;  %v218_v10 = vld [vmem:[%s23786_s29 + $0xa0] sm:$0xff] }
  0x17   : > { %215 = vst [vmem:[%s23791_s30 + $0x40] sm:$0xff] %v214_v8  ;;  %v220_v11 = vld [vmem:[%s23786_s29 + $0xa8] sm:$0xff]  ;;  %217 = vst [vmem:[%s23791_s30 + $0x48] sm:$0xff] %v216_v9  ;;  %v222_v12 = vld [vmem:[%s23786_s29 + $0xb0] sm:$0xff] }
  0x18   : > { %219 = vst [vmem:[%s23791_s30 + $0x50] sm:$0xff] %v218_v10  ;;  %221 = vst [vmem:[%s23791_s30 + $0x58] sm:$0xff] %v220_v11  ;;  %v224_v13 = vld [vmem:[%s23786_s29 + $0xb8] sm:$0xff]  ;;  %v226_v14 = vld [vmem:[%s23786_s29 + $0xc0] sm:$0xff] }
  0x19   : > { %223 = vst [vmem:[%s23791_s30 + $0x60] sm:$0xff] %v222_v12  ;;  %225 = vst [vmem:[%s23791_s30 + $0x68] sm:$0xff] %v224_v13  ;;  %v228_v15 = vld [vmem:[%s23786_s29 + $0xf0] sm:$0xff]  ;;  %v230_v16 = vld [vmem:[%s23786_s29 + $0xf8] sm:$0xff] }
  0x1a   : > { %227 = vst [vmem:[%s23791_s30 + $0x70] sm:$0xff] %v226_v14  ;;  %v232_v17 = vld [vmem:[%s23786_s29 + $0x100] sm:$0xff]  ;;  %229 = vst [vmem:[%s23791_s30 + $0x78] sm:$0xff] %v228_v15  ;;  %v234_v18 = vld [vmem:[%s23786_s29 + $0x108] sm:$0xff] }
  0x1b   : > { %231 = vst [vmem:[%s23791_s30 + $0x80] sm:$0xff] %v230_v16  ;;  %233 = vst [vmem:[%s23791_s30 + $0x88] sm:$0xff] %v232_v17  ;;  %v236_v19 = vld [vmem:[%s23786_s29 + $0x110] sm:$0xff]  ;;  %v238_v20 = vld [vmem:[%s23786_s29 + $0x140] sm:$0xff] }
  0x1c   : > { %235 = vst [vmem:[%s23791_s30 + $0x90] sm:$0xff] %v234_v18  ;;  %237 = vst [vmem:[%s23791_s30 + $0x98] sm:$0xff] %v236_v19  ;;  %v240_v21 = vld [vmem:[%s23786_s29 + $0x148] sm:$0xff]  ;;  %v242_v22 = vld [vmem:[%s23786_s29 + $0x150] sm:$0xff] }
  0x1d   : > { %239 = vst [vmem:[%s23791_s30 + $0xa0] sm:$0xff] %v238_v20  ;;  %v244_v23 = vld [vmem:[%s23786_s29 + $0x158] sm:$0xff]  ;;  %241 = vst [vmem:[%s23791_s30 + $0xa8] sm:$0xff] %v240_v21  ;;  %v246_v24 = vld [vmem:[%s23786_s29 + $0x160] sm:$0xff] }
  0x1e   : > { %243 = vst [vmem:[%s23791_s30 + $0xb0] sm:$0xff] %v242_v22  ;;  %245 = vst [vmem:[%s23791_s30 + $0xb8] sm:$0xff] %v244_v23  ;;  %v248_v25 = vld [vmem:[%s23786_s29 + $0x190] sm:$0xff]  ;;  %v250_v26 = vld [vmem:[%s23786_s29 + $0x198] sm:$0xff] }
  0x1f   : > { %247 = vst [vmem:[%s23791_s30 + $0xc0] sm:$0xff] %v246_v24  ;;  %249 = vst [vmem:[%s23791_s30 + $0xc8] sm:$0xff] %v248_v25  ;;  %v252_v27 = vld [vmem:[%s23786_s29 + $0x1a0] sm:$0xff]  ;;  %v254_v28 = vld [vmem:[%s23786_s29 + $0x1a8] sm:$0xff] }
  0x20   : > { %251 = vst [vmem:[%s23791_s30 + $0xd0] sm:$0xff] %v250_v26  ;;  %v256_v29 = vld [vmem:[%s23786_s29 + $0x1b0] sm:$0xff]  ;;  %253 = vst [vmem:[%s23791_s30 + $0xd8] sm:$0xff] %v252_v27  ;;  %v258_v30 = vld [vmem:[%s23786_s29 + $0x1e0] sm:$0xff] }
  0x21   : > { %255 = vst [vmem:[%s23791_s30 + $0xe0] sm:$0xff] %v254_v28  ;;  %257 = vst [vmem:[%s23791_s30 + $0xe8] sm:$0xff] %v256_v29  ;;  %v260_v31 = vld [vmem:[%s23786_s29 + $0x1e8] sm:$0xff]  ;;  %v262_v32 = vld [vmem:[%s23786_s29 + $0x1f0] sm:$0xff] }
  0x22   : > { %259 = vst [vmem:[%s23791_s30 + $0xf0] sm:$0xff] %v258_v30  ;;  %261 = vst [vmem:[%s23791_s30 + $0xf8] sm:$0xff] %v260_v31  ;;  %v264_v33 = vld [vmem:[%s23786_s29 + $0x1f8] sm:$0xff]  ;;  %v266_v34 = vld [vmem:[%s23786_s29 + $0x200] sm:$0xff] }
  0x23   : > { %263 = vst [vmem:[%s23791_s30 + $0x100] sm:$0xff] %v262_v32  ;;  %v268_v35 = vld [vmem:[%s23786_s29 + $0x230] sm:$0xff]  ;;  %265 = vst [vmem:[%s23791_s30 + $0x108] sm:$0xff] %v264_v33  ;;  %v270_v36 = vld [vmem:[%s23786_s29 + $0x238] sm:$0xff] }
  0x24   : > { %267 = vst [vmem:[%s23791_s30 + $0x110] sm:$0xff] %v266_v34  ;;  %269 = vst [vmem:[%s23791_s30 + $0x118] sm:$0xff] %v268_v35  ;;  %v272_v37 = vld [vmem:[%s23786_s29 + $0x240] sm:$0xff]  ;;  %v274_v38 = vld [vmem:[%s23786_s29 + $0x248] sm:$0xff] }
  0x25   : > { %271 = vst [vmem:[%s23791_s30 + $0x120] sm:$0xff] %v270_v36  ;;  %273 = vst [vmem:[%s23791_s30 + $0x128] sm:$0xff] %v272_v37  ;;  %v276_v39 = vld [vmem:[%s23786_s29 + $0x250] sm:$0xff]  ;;  %v278_v40 = vld [vmem:[%s23786_s29 + $0x280] sm:$0xff] }
  0x26   : > { %275 = vst [vmem:[%s23791_s30 + $0x130] sm:$0xff] %v274_v38  ;;  %v280_v41 = vld [vmem:[%s23786_s29 + $0x288] sm:$0xff]  ;;  %277 = vst [vmem:[%s23791_s30 + $0x138] sm:$0xff] %v276_v39  ;;  %v282_v42 = vld [vmem:[%s23786_s29 + $0x290] sm:$0xff] }
  0x27   : > { %279 = vst [vmem:[%s23791_s30 + $0x140] sm:$0xff] %v278_v40  ;;  %281 = vst [vmem:[%s23791_s30 + $0x148] sm:$0xff] %v280_v41  ;;  %v284_v43 = vld [vmem:[%s23786_s29 + $0x298] sm:$0xff]  ;;  %v286_v44 = vld [vmem:[%s23786_s29 + $0x2a0] sm:$0xff] }
  0x28   : > { %283 = vst [vmem:[%s23791_s30 + $0x150] sm:$0xff] %v282_v42  ;;  %285 = vst [vmem:[%s23791_s30 + $0x158] sm:$0xff] %v284_v43  ;;  %v288_v45 = vld [vmem:[%s23786_s29 + $0x2d0] sm:$0xff]  ;;  %v290_v46 = vld [vmem:[%s23786_s29 + $0x2d8] sm:$0xff] }
  0x29   : > { %287 = vst [vmem:[%s23791_s30 + $0x160] sm:$0xff] %v286_v44  ;;  %v292_v47 = vld [vmem:[%s23786_s29 + $0x2e0] sm:$0xff]  ;;  %289 = vst [vmem:[%s23791_s30 + $0x168] sm:$0xff] %v288_v45  ;;  %v294_v48 = vld [vmem:[%s23786_s29 + $0x2e8] sm:$0xff] }
  0x2a   : > { %291 = vst [vmem:[%s23791_s30 + $0x170] sm:$0xff] %v290_v46  ;;  %293 = vst [vmem:[%s23791_s30 + $0x178] sm:$0xff] %v292_v47  ;;  %v296_v49 = vld [vmem:[%s23786_s29 + $0x2f0] sm:$0xff]  ;;  %v298_v50 = vld [vmem:[%s23786_s29 + $0x320] sm:$0xff] }
  0x2b   : > { %295 = vst [vmem:[%s23791_s30 + $0x180] sm:$0xff] %v294_v48  ;;  %297 = vst [vmem:[%s23791_s30 + $0x188] sm:$0xff] %v296_v49  ;;  %v300_v51 = vld [vmem:[%s23786_s29 + $0x328] sm:$0xff]  ;;  %v302_v52 = vld [vmem:[%s23786_s29 + $0x330] sm:$0xff] }
  0x2c   : > { %299 = vst [vmem:[%s23791_s30 + $0x190] sm:$0xff] %v298_v50  ;;  %v304_v53 = vld [vmem:[%s23786_s29 + $0x338] sm:$0xff]  ;;  %301 = vst [vmem:[%s23791_s30 + $0x198] sm:$0xff] %v300_v51  ;;  %v306_v54 = vld [vmem:[%s23786_s29 + $0x340] sm:$0xff] }
  0x2d   : > { %303 = vst [vmem:[%s23791_s30 + $0x1a0] sm:$0xff] %v302_v52  ;;  %305 = vst [vmem:[%s23791_s30 + $0x1a8] sm:$0xff] %v304_v53  ;;  %v308_v55 = vld [vmem:[%s23786_s29 + $0x370] sm:$0xff]  ;;  %v310_v56 = vld [vmem:[%s23786_s29 + $0x378] sm:$0xff] }
  0x2e   : > { %307 = vst [vmem:[%s23791_s30 + $0x1b0] sm:$0xff] %v306_v54  ;;  %309 = vst [vmem:[%s23791_s30 + $0x1b8] sm:$0xff] %v308_v55  ;;  %v312_v57 = vld [vmem:[%s23786_s29 + $0x380] sm:$0xff]  ;;  %v314_v58 = vld [vmem:[%s23786_s29 + $0x388] sm:$0xff] }
  0x2f   : > { %311 = vst [vmem:[%s23791_s30 + $0x1c0] sm:$0xff] %v310_v56  ;;  %v316_v59 = vld [vmem:[%s23786_s29 + $0x390] sm:$0xff]  ;;  %313 = vst [vmem:[%s23791_s30 + $0x1c8] sm:$0xff] %v312_v57  ;;  %v318_v60 = vld [vmem:[%s23786_s29 + $0x3c0] sm:$0xff] }
  0x30   : > { %315 = vst [vmem:[%s23791_s30 + $0x1d0] sm:$0xff] %v314_v58  ;;  %317 = vst [vmem:[%s23791_s30 + $0x1d8] sm:$0xff] %v316_v59  ;;  %v320_v61 = vld [vmem:[%s23786_s29 + $0x3c8] sm:$0xff]  ;;  %v322_v62 = vld [vmem:[%s23786_s29 + $0x3d0] sm:$0xff] }
  0x31   : > { %319 = vst [vmem:[%s23791_s30 + $0x1e0] sm:$0xff] %v318_v60  ;;  %321 = vst [vmem:[%s23791_s30 + $0x1e8] sm:$0xff] %v320_v61  ;;  %v324_v63 = vld [vmem:[%s23786_s29 + $0x3d8] sm:$0xff]  ;;  %v326_v0 = vld [vmem:[%s23786_s29 + $0x3e0] sm:$0xff] }
  0x32   : > { %323 = vst [vmem:[%s23791_s30 + $0x1f0] sm:$0xff] %v322_v62  ;;  %v328_v1 = vld [vmem:[%s23786_s29 + $0x410] sm:$0xff]  ;;  %325 = vst [vmem:[%s23791_s30 + $0x1f8] sm:$0xff] %v324_v63  ;;  %v330_v2 = vld [vmem:[%s23786_s29 + $0x418] sm:$0xff] }
  0x33   : > { %327 = vst [vmem:[%s23791_s30 + $0x200] sm:$0xff] %v326_v0  ;;  %329 = vst [vmem:[%s23791_s30 + $0x208] sm:$0xff] %v328_v1  ;;  %v332_v3 = vld [vmem:[%s23786_s29 + $0x420] sm:$0xff]  ;;  %v334_v4 = vld [vmem:[%s23786_s29 + $0x428] sm:$0xff] }
  0x34   : > { %331 = vst [vmem:[%s23791_s30 + $0x210] sm:$0xff] %v330_v2  ;;  %333 = vst [vmem:[%s23791_s30 + $0x218] sm:$0xff] %v332_v3  ;;  %v336_v5 = vld [vmem:[%s23786_s29 + $0x430] sm:$0xff]  ;;  %v338_v6 = vld [vmem:[%s23786_s29 + $0x460] sm:$0xff] }
  0x35   : > { %335 = vst [vmem:[%s23791_s30 + $0x220] sm:$0xff] %v334_v4  ;;  %v340_v7 = vld [vmem:[%s23786_s29 + $0x468] sm:$0xff]  ;;  %337 = vst [vmem:[%s23791_s30 + $0x228] sm:$0xff] %v336_v5  ;;  %v342_v8 = vld [vmem:[%s23786_s29 + $0x470] sm:$0xff] }
  0x36   : > { %339 = vst [vmem:[%s23791_s30 + $0x230] sm:$0xff] %v338_v6  ;;  %341 = vst [vmem:[%s23791_s30 + $0x238] sm:$0xff] %v340_v7  ;;  %v344_v9 = vld [vmem:[%s23786_s29 + $0x478] sm:$0xff]  ;;  %v346_v10 = vld [vmem:[%s23786_s29 + $0x480] sm:$0xff] }
  0x37   : > { %343 = vst [vmem:[%s23791_s30 + $0x240] sm:$0xff] %v342_v8  ;;  %345 = vst [vmem:[%s23791_s30 + $0x248] sm:$0xff] %v344_v9  ;;  %v348_v11 = vld [vmem:[%s23786_s29 + $0x4b0] sm:$0xff]  ;;  %v350_v12 = vld [vmem:[%s23786_s29 + $0x4b8] sm:$0xff] }
  0x38   : > { %347 = vst [vmem:[%s23791_s30 + $0x250] sm:$0xff] %v346_v10  ;;  %v352_v13 = vld [vmem:[%s23786_s29 + $0x4c0] sm:$0xff]  ;;  %349 = vst [vmem:[%s23791_s30 + $0x258] sm:$0xff] %v348_v11  ;;  %v354_v14 = vld [vmem:[%s23786_s29 + $0x4c8] sm:$0xff] }
  0x39   : > { %351 = vst [vmem:[%s23791_s30 + $0x260] sm:$0xff] %v350_v12  ;;  %353 = vst [vmem:[%s23791_s30 + $0x268] sm:$0xff] %v352_v13  ;;  %v356_v15 = vld [vmem:[%s23786_s29 + $0x4d0] sm:$0xff]  ;;  %v358_v16 = vld [vmem:[%s23786_s29 + $0x500] sm:$0xff] }
  0x3a   : > { %355 = vst [vmem:[%s23791_s30 + $0x270] sm:$0xff] %v354_v14  ;;  %357 = vst [vmem:[%s23791_s30 + $0x278] sm:$0xff] %v356_v15  ;;  %v360_v17 = vld [vmem:[%s23786_s29 + $0x508] sm:$0xff]  ;;  %v362_v18 = vld [vmem:[%s23786_s29 + $0x510] sm:$0xff] }
  0x3b   : > { %359 = vst [vmem:[%s23791_s30 + $0x280] sm:$0xff] %v358_v16  ;;  %v364_v19 = vld [vmem:[%s23786_s29 + $0x518] sm:$0xff]  ;;  %361 = vst [vmem:[%s23791_s30 + $0x288] sm:$0xff] %v360_v17  ;;  %v366_v20 = vld [vmem:[%s23786_s29 + $0x520] sm:$0xff] }
  0x3c   : > { %363 = vst [vmem:[%s23791_s30 + $0x290] sm:$0xff] %v362_v18  ;;  %365 = vst [vmem:[%s23791_s30 + $0x298] sm:$0xff] %v364_v19  ;;  %v368_v21 = vld [vmem:[%s23786_s29 + $0x550] sm:$0xff]  ;;  %v370_v22 = vld [vmem:[%s23786_s29 + $0x558] sm:$0xff] }
  0x3d   : > { %367 = vst [vmem:[%s23791_s30 + $0x2a0] sm:$0xff] %v366_v20  ;;  %369 = vst [vmem:[%s23791_s30 + $0x2a8] sm:$0xff] %v368_v21  ;;  %v372_v23 = vld [vmem:[%s23786_s29 + $0x560] sm:$0xff]  ;;  %v374_v24 = vld [vmem:[%s23786_s29 + $0x568] sm:$0xff] }
  0x3e   : > { %371 = vst [vmem:[%s23791_s30 + $0x2b0] sm:$0xff] %v370_v22  ;;  %v376_v25 = vld [vmem:[%s23786_s29 + $0x570] sm:$0xff]  ;;  %373 = vst [vmem:[%s23791_s30 + $0x2b8] sm:$0xff] %v372_v23  ;;  %v378_v26 = vld [vmem:[%s23786_s29 + $0x5a0] sm:$0xff] }
  0x3f   : > { %375 = vst [vmem:[%s23791_s30 + $0x2c0] sm:$0xff] %v374_v24  ;;  %377 = vst [vmem:[%s23791_s30 + $0x2c8] sm:$0xff] %v376_v25  ;;  %v380_v27 = vld [vmem:[%s23786_s29 + $0x5a8] sm:$0xff]  ;;  %v382_v28 = vld [vmem:[%s23786_s29 + $0x5b0] sm:$0xff] }
  0x40   : > { %379 = vst [vmem:[%s23791_s30 + $0x2d0] sm:$0xff] %v378_v26  ;;  %381 = vst [vmem:[%s23791_s30 + $0x2d8] sm:$0xff] %v380_v27  ;;  %v384_v29 = vld [vmem:[%s23786_s29 + $0x5b8] sm:$0xff]  ;;  %v386_v30 = vld [vmem:[%s23786_s29 + $0x5c0] sm:$0xff] }
  0x41   : > { %383 = vst [vmem:[%s23791_s30 + $0x2e0] sm:$0xff] %v382_v28  ;;  %v388_v31 = vld [vmem:[%s23786_s29 + $0x5f0] sm:$0xff]  ;;  %385 = vst [vmem:[%s23791_s30 + $0x2e8] sm:$0xff] %v384_v29  ;;  %v390_v32 = vld [vmem:[%s23786_s29 + $0x5f8] sm:$0xff] }
  0x42   : > { %387 = vst [vmem:[%s23791_s30 + $0x2f0] sm:$0xff] %v386_v30  ;;  %389 = vst [vmem:[%s23791_s30 + $0x2f8] sm:$0xff] %v388_v31  ;;  %v392_v33 = vld [vmem:[%s23786_s29 + $0x600] sm:$0xff]  ;;  %v394_v34 = vld [vmem:[%s23786_s29 + $0x608] sm:$0xff] }
  0x43   : > { %391 = vst [vmem:[%s23791_s30 + $0x300] sm:$0xff] %v390_v32  ;;  %393 = vst [vmem:[%s23791_s30 + $0x308] sm:$0xff] %v392_v33  ;;  %v396_v35 = vld [vmem:[%s23786_s29 + $0x610] sm:$0xff]  ;;  %v398_v36 = vld [vmem:[%s23786_s29 + $0x640] sm:$0xff] }
  0x44   : > { %395 = vst [vmem:[%s23791_s30 + $0x310] sm:$0xff] %v394_v34  ;;  %v400_v37 = vld [vmem:[%s23786_s29 + $0x648] sm:$0xff]  ;;  %397 = vst [vmem:[%s23791_s30 + $0x318] sm:$0xff] %v396_v35  ;;  %v402_v38 = vld [vmem:[%s23786_s29 + $0x650] sm:$0xff] }
  0x45   : > { %399 = vst [vmem:[%s23791_s30 + $0x320] sm:$0xff] %v398_v36  ;;  %401 = vst [vmem:[%s23791_s30 + $0x328] sm:$0xff] %v400_v37  ;;  %v404_v39 = vld [vmem:[%s23786_s29 + $0x658] sm:$0xff]  ;;  %v406_v40 = vld [vmem:[%s23786_s29 + $0x660] sm:$0xff] }
  0x46   : > { %403 = vst [vmem:[%s23791_s30 + $0x330] sm:$0xff] %v402_v38  ;;  %405 = vst [vmem:[%s23791_s30 + $0x338] sm:$0xff] %v404_v39  ;;  %v408_v41 = vld [vmem:[%s23786_s29 + $0x690] sm:$0xff]  ;;  %v410_v42 = vld [vmem:[%s23786_s29 + $0x698] sm:$0xff] }
  0x47   : > { %407 = vst [vmem:[%s23791_s30 + $0x340] sm:$0xff] %v406_v40  ;;  %v412_v43 = vld [vmem:[%s23786_s29 + $0x6a0] sm:$0xff]  ;;  %409 = vst [vmem:[%s23791_s30 + $0x348] sm:$0xff] %v408_v41  ;;  %v414_v44 = vld [vmem:[%s23786_s29 + $0x6a8] sm:$0xff] }
  0x48   : > { %411 = vst [vmem:[%s23791_s30 + $0x350] sm:$0xff] %v410_v42  ;;  %413 = vst [vmem:[%s23791_s30 + $0x358] sm:$0xff] %v412_v43  ;;  %v416_v45 = vld [vmem:[%s23786_s29 + $0x6b0] sm:$0xff]  ;;  %v418_v46 = vld [vmem:[%s23786_s29 + $0x6e0] sm:$0xff] }
  0x49   : > { %415 = vst [vmem:[%s23791_s30 + $0x360] sm:$0xff] %v414_v44  ;;  %417 = vst [vmem:[%s23791_s30 + $0x368] sm:$0xff] %v416_v45  ;;  %v420_v47 = vld [vmem:[%s23786_s29 + $0x6e8] sm:$0xff]  ;;  %v422_v48 = vld [vmem:[%s23786_s29 + $0x6f0] sm:$0xff] }
  0x4a   : > { %419 = vst [vmem:[%s23791_s30 + $0x370] sm:$0xff] %v418_v46  ;;  %v424_v49 = vld [vmem:[%s23786_s29 + $0x6f8] sm:$0xff]  ;;  %421 = vst [vmem:[%s23791_s30 + $0x378] sm:$0xff] %v420_v47  ;;  %v426_v50 = vld [vmem:[%s23786_s29 + $0x700] sm:$0xff] }
  0x4b   : > { %423 = vst [vmem:[%s23791_s30 + $0x380] sm:$0xff] %v422_v48  ;;  %425 = vst [vmem:[%s23791_s30 + $0x388] sm:$0xff] %v424_v49  ;;  %v428_v51 = vld [vmem:[%s23786_s29 + $0x730] sm:$0xff]  ;;  %v430_v52 = vld [vmem:[%s23786_s29 + $0x738] sm:$0xff] }
  0x4c   : > { %427 = vst [vmem:[%s23791_s30 + $0x390] sm:$0xff] %v426_v50  ;;  %429 = vst [vmem:[%s23791_s30 + $0x398] sm:$0xff] %v428_v51  ;;  %v432_v53 = vld [vmem:[%s23786_s29 + $0x740] sm:$0xff]  ;;  %v434_v54 = vld [vmem:[%s23786_s29 + $0x748] sm:$0xff] }
  0x4d   : > { %431 = vst [vmem:[%s23791_s30 + $0x3a0] sm:$0xff] %v430_v52  ;;  %v436_v55 = vld [vmem:[%s23786_s29 + $0x750] sm:$0xff]  ;;  %433 = vst [vmem:[%s23791_s30 + $0x3a8] sm:$0xff] %v432_v53  ;;  %v438_v56 = vld [vmem:[%s23786_s29 + $0x780] sm:$0xff] }
  0x4e   : > { %435 = vst [vmem:[%s23791_s30 + $0x3b0] sm:$0xff] %v434_v54  ;;  %437 = vst [vmem:[%s23791_s30 + $0x3b8] sm:$0xff] %v436_v55  ;;  %v440_v57 = vld [vmem:[%s23786_s29 + $0x788] sm:$0xff]  ;;  %v442_v58 = vld [vmem:[%s23786_s29 + $0x790] sm:$0xff] }
  0x4f   : > { %439 = vst [vmem:[%s23791_s30 + $0x3c0] sm:$0xff] %v438_v56  ;;  %441 = vst [vmem:[%s23791_s30 + $0x3c8] sm:$0xff] %v440_v57  ;;  %v444_v59 = vld [vmem:[%s23786_s29 + $0x798] sm:$0xff]  ;;  %v446_v60 = vld [vmem:[%s23786_s29 + $0x7a0] sm:$0xff] }
  0x50   : > { %443 = vst [vmem:[%s23791_s30 + $0x3d0] sm:$0xff] %v442_v58  ;;  %v448_v61 = vld [vmem:[%s23786_s29 + $0x7d0] sm:$0xff]  ;;  %445 = vst [vmem:[%s23791_s30 + $0x3d8] sm:$0xff] %v444_v59  ;;  %v450_v62 = vld [vmem:[%s23786_s29 + $0x7d8] sm:$0xff] }
  0x51   : > { %447 = vst [vmem:[%s23791_s30 + $0x3e0] sm:$0xff] %v446_v60  ;;  %449 = vst [vmem:[%s23791_s30 + $0x3e8] sm:$0xff] %v448_v61  ;;  %v452_v63 = vld [vmem:[%s23786_s29 + $0x7e0] sm:$0xff]  ;;  %v454_v0 = vld [vmem:[%s23786_s29 + $0x7e8] sm:$0xff] }
  0x52   : > { %451 = vst [vmem:[%s23791_s30 + $0x3f0] sm:$0xff] %v450_v62  ;;  %453 = vst [vmem:[%s23791_s30 + $0x3f8] sm:$0xff] %v452_v63  ;;  %v456_v1 = vld [vmem:[%s23786_s29 + $0x7f0] sm:$0xff]  ;;  %v458_v2 = vld [vmem:[%s23786_s29 + $0x820] sm:$0xff] }
  0x53   : > { %455 = vst [vmem:[%s23791_s30 + $0x400] sm:$0xff] %v454_v0  ;;  %v460_v3 = vld [vmem:[%s23786_s29 + $0x828] sm:$0xff]  ;;  %457 = vst [vmem:[%s23791_s30 + $0x408] sm:$0xff] %v456_v1  ;;  %v462_v4 = vld [vmem:[%s23786_s29 + $0x830] sm:$0xff] }
  0x54   : > { %459 = vst [vmem:[%s23791_s30 + $0x410] sm:$0xff] %v458_v2  ;;  %461 = vst [vmem:[%s23791_s30 + $0x418] sm:$0xff] %v460_v3  ;;  %v464_v5 = vld [vmem:[%s23786_s29 + $0x838] sm:$0xff]  ;;  %v466_v6 = vld [vmem:[%s23786_s29 + $0x840] sm:$0xff] }
  0x55   : > { %463 = vst [vmem:[%s23791_s30 + $0x420] sm:$0xff] %v462_v4  ;;  %465 = vst [vmem:[%s23791_s30 + $0x428] sm:$0xff] %v464_v5  ;;  %v468_v7 = vld [vmem:[%s23786_s29 + $0x870] sm:$0xff]  ;;  %v470_v8 = vld [vmem:[%s23786_s29 + $0x878] sm:$0xff] }
  0x56   : > { %467 = vst [vmem:[%s23791_s30 + $0x430] sm:$0xff] %v466_v6  ;;  %v472_v9 = vld [vmem:[%s23786_s29 + $0x880] sm:$0xff]  ;;  %469 = vst [vmem:[%s23791_s30 + $0x438] sm:$0xff] %v468_v7  ;;  %v474_v10 = vld [vmem:[%s23786_s29 + $0x888] sm:$0xff] }
  0x57   : > { %471 = vst [vmem:[%s23791_s30 + $0x440] sm:$0xff] %v470_v8  ;;  %473 = vst [vmem:[%s23791_s30 + $0x448] sm:$0xff] %v472_v9  ;;  %v476_v11 = vld [vmem:[%s23786_s29 + $0x890] sm:$0xff]  ;;  %v478_v12 = vld [vmem:[%s23786_s29 + $0x8c0] sm:$0xff] }
  0x58   : > { %475 = vst [vmem:[%s23791_s30 + $0x450] sm:$0xff] %v474_v10  ;;  %477 = vst [vmem:[%s23791_s30 + $0x458] sm:$0xff] %v476_v11  ;;  %v480_v13 = vld [vmem:[%s23786_s29 + $0x8c8] sm:$0xff]  ;;  %v482_v14 = vld [vmem:[%s23786_s29 + $0x8d0] sm:$0xff] }
  0x59   : > { %479 = vst [vmem:[%s23791_s30 + $0x460] sm:$0xff] %v478_v12  ;;  %v484_v15 = vld [vmem:[%s23786_s29 + $0x8d8] sm:$0xff]  ;;  %481 = vst [vmem:[%s23791_s30 + $0x468] sm:$0xff] %v480_v13  ;;  %v486_v16 = vld [vmem:[%s23786_s29 + $0x8e0] sm:$0xff] }
  0x5a   : > { %483 = vst [vmem:[%s23791_s30 + $0x470] sm:$0xff] %v482_v14  ;;  %485 = vst [vmem:[%s23791_s30 + $0x478] sm:$0xff] %v484_v15  ;;  %v488_v17 = vld [vmem:[%s23786_s29 + $0x910] sm:$0xff]  ;;  %v490_v18 = vld [vmem:[%s23786_s29 + $0x918] sm:$0xff] }
  0x5b   : > { %487 = vst [vmem:[%s23791_s30 + $0x480] sm:$0xff] %v486_v16  ;;  %489 = vst [vmem:[%s23791_s30 + $0x488] sm:$0xff] %v488_v17  ;;  %v492_v19 = vld [vmem:[%s23786_s29 + $0x920] sm:$0xff]  ;;  %v494_v20 = vld [vmem:[%s23786_s29 + $0x928] sm:$0xff] }
  0x5c   : > { %491 = vst [vmem:[%s23791_s30 + $0x490] sm:$0xff] %v490_v18  ;;  %v496_v21 = vld [vmem:[%s23786_s29 + $0x930] sm:$0xff]  ;;  %493 = vst [vmem:[%s23791_s30 + $0x498] sm:$0xff] %v492_v19  ;;  %v498_v22 = vld [vmem:[%s23786_s29 + $0x960] sm:$0xff] }
  0x5d   : > { %495 = vst [vmem:[%s23791_s30 + $0x4a0] sm:$0xff] %v494_v20  ;;  %497 = vst [vmem:[%s23791_s30 + $0x4a8] sm:$0xff] %v496_v21  ;;  %v500_v23 = vld [vmem:[%s23786_s29 + $0x968] sm:$0xff]  ;;  %v502_v24 = vld [vmem:[%s23786_s29 + $0x970] sm:$0xff] }
  0x5e   : > { %499 = vst [vmem:[%s23791_s30 + $0x4b0] sm:$0xff] %v498_v22  ;;  %501 = vst [vmem:[%s23791_s30 + $0x4b8] sm:$0xff] %v500_v23  ;;  %v504_v25 = vld [vmem:[%s23786_s29 + $0x978] sm:$0xff]  ;;  %v506_v26 = vld [vmem:[%s23786_s29 + $0x980] sm:$0xff] }
  0x5f   : > { %503 = vst [vmem:[%s23791_s30 + $0x4c0] sm:$0xff] %v502_v24  ;;  %v508_v27 = vld [vmem:[%s23786_s29 + $0x9b0] sm:$0xff]  ;;  %505 = vst [vmem:[%s23791_s30 + $0x4c8] sm:$0xff] %v504_v25  ;;  %v510_v28 = vld [vmem:[%s23786_s29 + $0x9b8] sm:$0xff] }
  0x60   : > { %507 = vst [vmem:[%s23791_s30 + $0x4d0] sm:$0xff] %v506_v26  ;;  %509 = vst [vmem:[%s23791_s30 + $0x4d8] sm:$0xff] %v508_v27  ;;  %v512_v29 = vld [vmem:[%s23786_s29 + $0x9c0] sm:$0xff]  ;;  %v514_v30 = vld [vmem:[%s23786_s29 + $0x9c8] sm:$0xff] }
  0x61   : > { %511 = vst [vmem:[%s23791_s30 + $0x4e0] sm:$0xff] %v510_v28  ;;  %513 = vst [vmem:[%s23791_s30 + $0x4e8] sm:$0xff] %v512_v29  ;;  %v516_v31 = vld [vmem:[%s23786_s29 + $0x9d0] sm:$0xff]  ;;  %v518_v32 = vld [vmem:[%s23786_s29 + $0xa00] sm:$0xff] }
  0x62   : > { %515 = vst [vmem:[%s23791_s30 + $0x4f0] sm:$0xff] %v514_v30  ;;  %v520_v33 = vld [vmem:[%s23786_s29 + $0xa08] sm:$0xff]  ;;  %517 = vst [vmem:[%s23791_s30 + $0x4f8] sm:$0xff] %v516_v31  ;;  %v522_v34 = vld [vmem:[%s23786_s29 + $0xa10] sm:$0xff] }
  0x63   : > { %519 = vst [vmem:[%s23791_s30 + $0x500] sm:$0xff] %v518_v32  ;;  %521 = vst [vmem:[%s23791_s30 + $0x508] sm:$0xff] %v520_v33  ;;  %v524_v35 = vld [vmem:[%s23786_s29 + $0xa18] sm:$0xff]  ;;  %v526_v36 = vld [vmem:[%s23786_s29 + $0xa20] sm:$0xff] }
  0x64   : > { %523 = vst [vmem:[%s23791_s30 + $0x510] sm:$0xff] %v522_v34  ;;  %525 = vst [vmem:[%s23791_s30 + $0x518] sm:$0xff] %v524_v35  ;;  %v528_v37 = vld [vmem:[%s23786_s29 + $0xa50] sm:$0xff]  ;;  %v530_v38 = vld [vmem:[%s23786_s29 + $0xa58] sm:$0xff] }
  0x65   : > { %527 = vst [vmem:[%s23791_s30 + $0x520] sm:$0xff] %v526_v36  ;;  %v532_v39 = vld [vmem:[%s23786_s29 + $0xa60] sm:$0xff]  ;;  %529 = vst [vmem:[%s23791_s30 + $0x528] sm:$0xff] %v528_v37  ;;  %v534_v40 = vld [vmem:[%s23786_s29 + $0xa68] sm:$0xff] }
  0x66   : > { %531 = vst [vmem:[%s23791_s30 + $0x530] sm:$0xff] %v530_v38  ;;  %533 = vst [vmem:[%s23791_s30 + $0x538] sm:$0xff] %v532_v39  ;;  %v536_v41 = vld [vmem:[%s23786_s29 + $0xa70] sm:$0xff]  ;;  %v538_v42 = vld [vmem:[%s23786_s29 + $0xaa0] sm:$0xff] }
  0x67   : > { %535 = vst [vmem:[%s23791_s30 + $0x540] sm:$0xff] %v534_v40  ;;  %537 = vst [vmem:[%s23791_s30 + $0x548] sm:$0xff] %v536_v41  ;;  %v540_v43 = vld [vmem:[%s23786_s29 + $0xaa8] sm:$0xff]  ;;  %v542_v44 = vld [vmem:[%s23786_s29 + $0xab0] sm:$0xff] }
  0x68   : > { %539 = vst [vmem:[%s23791_s30 + $0x550] sm:$0xff] %v538_v42  ;;  %v544_v45 = vld [vmem:[%s23786_s29 + $0xab8] sm:$0xff]  ;;  %541 = vst [vmem:[%s23791_s30 + $0x558] sm:$0xff] %v540_v43  ;;  %v546_v46 = vld [vmem:[%s23786_s29 + $0xac0] sm:$0xff] }
  0x69   : > { %543 = vst [vmem:[%s23791_s30 + $0x560] sm:$0xff] %v542_v44  ;;  %545 = vst [vmem:[%s23791_s30 + $0x568] sm:$0xff] %v544_v45  ;;  %v548_v47 = vld [vmem:[%s23786_s29 + $0xaf0] sm:$0xff]  ;;  %v550_v48 = vld [vmem:[%s23786_s29 + $0xaf8] sm:$0xff] }
  0x6a   : > { %547 = vst [vmem:[%s23791_s30 + $0x570] sm:$0xff] %v546_v46  ;;  %549 = vst [vmem:[%s23791_s30 + $0x578] sm:$0xff] %v548_v47  ;;  %v552_v49 = vld [vmem:[%s23786_s29 + $0xb00] sm:$0xff]  ;;  %v554_v50 = vld [vmem:[%s23786_s29 + $0xb08] sm:$0xff] }
  0x6b   : > { %551 = vst [vmem:[%s23791_s30 + $0x580] sm:$0xff] %v550_v48  ;;  %v556_v51 = vld [vmem:[%s23786_s29 + $0xb10] sm:$0xff]  ;;  %553 = vst [vmem:[%s23791_s30 + $0x588] sm:$0xff] %v552_v49  ;;  %v558_v52 = vld [vmem:[%s23786_s29 + $0xb40] sm:$0xff] }
  0x6c   : > { %555 = vst [vmem:[%s23791_s30 + $0x590] sm:$0xff] %v554_v50  ;;  %557 = vst [vmem:[%s23791_s30 + $0x598] sm:$0xff] %v556_v51  ;;  %v560_v53 = vld [vmem:[%s23786_s29 + $0xb48] sm:$0xff]  ;;  %v562_v54 = vld [vmem:[%s23786_s29 + $0xb50] sm:$0xff] }
  0x6d   : > { %559 = vst [vmem:[%s23791_s30 + $0x5a0] sm:$0xff] %v558_v52  ;;  %561 = vst [vmem:[%s23791_s30 + $0x5a8] sm:$0xff] %v560_v53  ;;  %v564_v55 = vld [vmem:[%s23786_s29 + $0xb58] sm:$0xff]  ;;  %v566_v56 = vld [vmem:[%s23786_s29 + $0xb60] sm:$0xff] }
  0x6e   : > { %563 = vst [vmem:[%s23791_s30 + $0x5b0] sm:$0xff] %v562_v54  ;;  %v568_v57 = vld [vmem:[%s23786_s29 + $0xb90] sm:$0xff]  ;;  %565 = vst [vmem:[%s23791_s30 + $0x5b8] sm:$0xff] %v564_v55  ;;  %v570_v58 = vld [vmem:[%s23786_s29 + $0xb98] sm:$0xff] }
  0x6f   : > { %567 = vst [vmem:[%s23791_s30 + $0x5c0] sm:$0xff] %v566_v56  ;;  %569 = vst [vmem:[%s23791_s30 + $0x5c8] sm:$0xff] %v568_v57  ;;  %v572_v59 = vld [vmem:[%s23786_s29 + $0xba0] sm:$0xff]  ;;  %v574_v60 = vld [vmem:[%s23786_s29 + $0xba8] sm:$0xff] }
  0x70   : > { %571 = vst [vmem:[%s23791_s30 + $0x5d0] sm:$0xff] %v570_v58  ;;  %573 = vst [vmem:[%s23791_s30 + $0x5d8] sm:$0xff] %v572_v59  ;;  %v576_v61 = vld [vmem:[%s23786_s29 + $0xbb0] sm:$0xff]  ;;  %v578_v62 = vld [vmem:[%s23786_s29 + $0xbe0] sm:$0xff] }
  0x71   : > { %575 = vst [vmem:[%s23791_s30 + $0x5e0] sm:$0xff] %v574_v60  ;;  %v580_v63 = vld [vmem:[%s23786_s29 + $0xbe8] sm:$0xff]  ;;  %577 = vst [vmem:[%s23791_s30 + $0x5e8] sm:$0xff] %v576_v61  ;;  %v582_v0 = vld [vmem:[%s23786_s29 + $0xbf0] sm:$0xff] }
  0x72   : > { %579 = vst [vmem:[%s23791_s30 + $0x5f0] sm:$0xff] %v578_v62  ;;  %581 = vst [vmem:[%s23791_s30 + $0x5f8] sm:$0xff] %v580_v63  ;;  %v584_v1 = vld [vmem:[%s23786_s29 + $0xbf8] sm:$0xff]  ;;  %v586_v2 = vld [vmem:[%s23786_s29 + $0xc00] sm:$0xff] }
  0x73   : > { %583 = vst [vmem:[%s23791_s30 + $0x600] sm:$0xff] %v582_v0  ;;  %585 = vst [vmem:[%s23791_s30 + $0x608] sm:$0xff] %v584_v1  ;;  %v588_v3 = vld [vmem:[%s23786_s29 + $0xc30] sm:$0xff]  ;;  %v590_v4 = vld [vmem:[%s23786_s29 + $0xc38] sm:$0xff] }
  0x74   : > { %587 = vst [vmem:[%s23791_s30 + $0x610] sm:$0xff] %v586_v2  ;;  %v592_v5 = vld [vmem:[%s23786_s29 + $0xc40] sm:$0xff]  ;;  %589 = vst [vmem:[%s23791_s30 + $0x618] sm:$0xff] %v588_v3  ;;  %v594_v6 = vld [vmem:[%s23786_s29 + $0xc48] sm:$0xff] }
  0x75   : > { %591 = vst [vmem:[%s23791_s30 + $0x620] sm:$0xff] %v590_v4  ;;  %593 = vst [vmem:[%s23791_s30 + $0x628] sm:$0xff] %v592_v5  ;;  %v596_v7 = vld [vmem:[%s23786_s29 + $0xc50] sm:$0xff]  ;;  %v598_v8 = vld [vmem:[%s23786_s29 + $0xc80] sm:$0xff] }
  0x76   : > { %595 = vst [vmem:[%s23791_s30 + $0x630] sm:$0xff] %v594_v6  ;;  %597 = vst [vmem:[%s23791_s30 + $0x638] sm:$0xff] %v596_v7  ;;  %v600_v9 = vld [vmem:[%s23786_s29 + $0xc88] sm:$0xff]  ;;  %v602_v10 = vld [vmem:[%s23786_s29 + $0xc90] sm:$0xff] }
  0x77   : > { %599 = vst [vmem:[%s23791_s30 + $0x640] sm:$0xff] %v598_v8  ;;  %v604_v11 = vld [vmem:[%s23786_s29 + $0xc98] sm:$0xff]  ;;  %601 = vst [vmem:[%s23791_s30 + $0x648] sm:$0xff] %v600_v9  ;;  %v606_v12 = vld [vmem:[%s23786_s29 + $0xca0] sm:$0xff] }
  0x78   : > { %603 = vst [vmem:[%s23791_s30 + $0x650] sm:$0xff] %v602_v10  ;;  %605 = vst [vmem:[%s23791_s30 + $0x658] sm:$0xff] %v604_v11  ;;  %v608_v13 = vld [vmem:[%s23786_s29 + $0xcd0] sm:$0xff]  ;;  %v610_v14 = vld [vmem:[%s23786_s29 + $0xcd8] sm:$0xff] }
  0x79   : > { %607 = vst [vmem:[%s23791_s30 + $0x660] sm:$0xff] %v606_v12  ;;  %609 = vst [vmem:[%s23791_s30 + $0x668] sm:$0xff] %v608_v13  ;;  %v612_v15 = vld [vmem:[%s23786_s29 + $0xce0] sm:$0xff]  ;;  %v614_v16 = vld [vmem:[%s23786_s29 + $0xce8] sm:$0xff] }
  0x7a   : > { %611 = vst [vmem:[%s23791_s30 + $0x670] sm:$0xff] %v610_v14  ;;  %v616_v17 = vld [vmem:[%s23786_s29 + $0xcf0] sm:$0xff]  ;;  %613 = vst [vmem:[%s23791_s30 + $0x678] sm:$0xff] %v612_v15  ;;  %v618_v18 = vld [vmem:[%s23786_s29 + $0xd20] sm:$0xff] }
  0x7b   : > { %615 = vst [vmem:[%s23791_s30 + $0x680] sm:$0xff] %v614_v16  ;;  %617 = vst [vmem:[%s23791_s30 + $0x688] sm:$0xff] %v616_v17  ;;  %v620_v19 = vld [vmem:[%s23786_s29 + $0xd28] sm:$0xff]  ;;  %v622_v20 = vld [vmem:[%s23786_s29 + $0xd30] sm:$0xff] }
  0x7c   : > { %619 = vst [vmem:[%s23791_s30 + $0x690] sm:$0xff] %v618_v18  ;;  %621 = vst [vmem:[%s23791_s30 + $0x698] sm:$0xff] %v620_v19  ;;  %v624_v21 = vld [vmem:[%s23786_s29 + $0xd38] sm:$0xff]  ;;  %v626_v22 = vld [vmem:[%s23786_s29 + $0xd40] sm:$0xff] }
  0x7d   : > { %623 = vst [vmem:[%s23791_s30 + $0x6a0] sm:$0xff] %v622_v20  ;;  %v628_v23 = vld [vmem:[%s23786_s29 + $0xd70] sm:$0xff]  ;;  %625 = vst [vmem:[%s23791_s30 + $0x6a8] sm:$0xff] %v624_v21  ;;  %v630_v24 = vld [vmem:[%s23786_s29 + $0xd78] sm:$0xff] }
  0x7e   : > { %627 = vst [vmem:[%s23791_s30 + $0x6b0] sm:$0xff] %v626_v22  ;;  %629 = vst [vmem:[%s23791_s30 + $0x6b8] sm:$0xff] %v628_v23  ;;  %v632_v25 = vld [vmem:[%s23786_s29 + $0xd80] sm:$0xff]  ;;  %v634_v26 = vld [vmem:[%s23786_s29 + $0xd88] sm:$0xff] }
  0x7f   : > { %631 = vst [vmem:[%s23791_s30 + $0x6c0] sm:$0xff] %v630_v24  ;;  %633 = vst [vmem:[%s23791_s30 + $0x6c8] sm:$0xff] %v632_v25  ;;  %v636_v27 = vld [vmem:[%s23786_s29 + $0xd90] sm:$0xff]  ;;  %v638_v28 = vld [vmem:[%s23786_s29 + $0xdc0] sm:$0xff] }
  0x80   : > { %635 = vst [vmem:[%s23791_s30 + $0x6d0] sm:$0xff] %v634_v26  ;;  %v640_v29 = vld [vmem:[%s23786_s29 + $0xdc8] sm:$0xff]  ;;  %637 = vst [vmem:[%s23791_s30 + $0x6d8] sm:$0xff] %v636_v27  ;;  %v642_v30 = vld [vmem:[%s23786_s29 + $0xdd0] sm:$0xff] }
  0x81   : > { %639 = vst [vmem:[%s23791_s30 + $0x6e0] sm:$0xff] %v638_v28  ;;  %641 = vst [vmem:[%s23791_s30 + $0x6e8] sm:$0xff] %v640_v29  ;;  %v644_v31 = vld [vmem:[%s23786_s29 + $0xdd8] sm:$0xff]  ;;  %v646_v32 = vld [vmem:[%s23786_s29 + $0xde0] sm:$0xff] }
  0x82   : > { %643 = vst [vmem:[%s23791_s30 + $0x6f0] sm:$0xff] %v642_v30  ;;  %645 = vst [vmem:[%s23791_s30 + $0x6f8] sm:$0xff] %v644_v31  ;;  %v648_v33 = vld [vmem:[%s23786_s29 + $0xe10] sm:$0xff]  ;;  %v650_v34 = vld [vmem:[%s23786_s29 + $0xe18] sm:$0xff] }
  0x83   : > { %647 = vst [vmem:[%s23791_s30 + $0x700] sm:$0xff] %v646_v32  ;;  %v652_v35 = vld [vmem:[%s23786_s29 + $0xe20] sm:$0xff]  ;;  %649 = vst [vmem:[%s23791_s30 + $0x708] sm:$0xff] %v648_v33  ;;  %v654_v36 = vld [vmem:[%s23786_s29 + $0xe28] sm:$0xff] }
  0x84   : > { %651 = vst [vmem:[%s23791_s30 + $0x710] sm:$0xff] %v650_v34  ;;  %653 = vst [vmem:[%s23791_s30 + $0x718] sm:$0xff] %v652_v35  ;;  %v656_v37 = vld [vmem:[%s23786_s29 + $0xe30] sm:$0xff]  ;;  %v658_v38 = vld [vmem:[%s23786_s29 + $0xe60] sm:$0xff] }
  0x85   : > { %655 = vst [vmem:[%s23791_s30 + $0x720] sm:$0xff] %v654_v36  ;;  %657 = vst [vmem:[%s23791_s30 + $0x728] sm:$0xff] %v656_v37  ;;  %v660_v39 = vld [vmem:[%s23786_s29 + $0xe68] sm:$0xff]  ;;  %v662_v40 = vld [vmem:[%s23786_s29 + $0xe70] sm:$0xff] }
  0x86   : > { %659 = vst [vmem:[%s23791_s30 + $0x730] sm:$0xff] %v658_v38  ;;  %v664_v41 = vld [vmem:[%s23786_s29 + $0xe78] sm:$0xff]  ;;  %661 = vst [vmem:[%s23791_s30 + $0x738] sm:$0xff] %v660_v39  ;;  %v666_v42 = vld [vmem:[%s23786_s29 + $0xe80] sm:$0xff] }
  0x87   : > { %663 = vst [vmem:[%s23791_s30 + $0x740] sm:$0xff] %v662_v40  ;;  %665 = vst [vmem:[%s23791_s30 + $0x748] sm:$0xff] %v664_v41  ;;  %v668_v43 = vld [vmem:[%s23786_s29 + $0xeb0] sm:$0xff]  ;;  %v670_v44 = vld [vmem:[%s23786_s29 + $0xeb8] sm:$0xff] }
  0x88   : > { %667 = vst [vmem:[%s23791_s30 + $0x750] sm:$0xff] %v666_v42  ;;  %669 = vst [vmem:[%s23791_s30 + $0x758] sm:$0xff] %v668_v43  ;;  %v672_v45 = vld [vmem:[%s23786_s29 + $0xec0] sm:$0xff]  ;;  %v674_v46 = vld [vmem:[%s23786_s29 + $0xec8] sm:$0xff] }
  0x89   : > { %671 = vst [vmem:[%s23791_s30 + $0x760] sm:$0xff] %v670_v44  ;;  %v676_v47 = vld [vmem:[%s23786_s29 + $0xed0] sm:$0xff]  ;;  %673 = vst [vmem:[%s23791_s30 + $0x768] sm:$0xff] %v672_v45  ;;  %v678_v48 = vld [vmem:[%s23786_s29 + $0xf00] sm:$0xff] }
  0x8a   : > { %675 = vst [vmem:[%s23791_s30 + $0x770] sm:$0xff] %v674_v46  ;;  %677 = vst [vmem:[%s23791_s30 + $0x778] sm:$0xff] %v676_v47  ;;  %v680_v49 = vld [vmem:[%s23786_s29 + $0xf08] sm:$0xff]  ;;  %v682_v50 = vld [vmem:[%s23786_s29 + $0xf10] sm:$0xff] }
  0x8b   : > { %679 = vst [vmem:[%s23791_s30 + $0x780] sm:$0xff] %v678_v48  ;;  %681 = vst [vmem:[%s23791_s30 + $0x788] sm:$0xff] %v680_v49  ;;  %v684_v51 = vld [vmem:[%s23786_s29 + $0xf18] sm:$0xff]  ;;  %v686_v52 = vld [vmem:[%s23786_s29 + $0xf20] sm:$0xff] }
  0x8c   : > { %683 = vst [vmem:[%s23791_s30 + $0x790] sm:$0xff] %v682_v50  ;;  %v688_v53 = vld [vmem:[%s23786_s29 + $0xf50] sm:$0xff]  ;;  %685 = vst [vmem:[%s23791_s30 + $0x798] sm:$0xff] %v684_v51  ;;  %v690_v54 = vld [vmem:[%s23786_s29 + $0xf58] sm:$0xff] }
  0x8d   : > { %687 = vst [vmem:[%s23791_s30 + $0x7a0] sm:$0xff] %v686_v52  ;;  %689 = vst [vmem:[%s23791_s30 + $0x7a8] sm:$0xff] %v688_v53  ;;  %v692_v55 = vld [vmem:[%s23786_s29 + $0xf60] sm:$0xff]  ;;  %v694_v56 = vld [vmem:[%s23786_s29 + $0xf68] sm:$0xff] }
  0x8e   : > { %691 = vst [vmem:[%s23791_s30 + $0x7b0] sm:$0xff] %v690_v54  ;;  %693 = vst [vmem:[%s23791_s30 + $0x7b8] sm:$0xff] %v692_v55  ;;  %v696_v57 = vld [vmem:[%s23786_s29 + $0xf70] sm:$0xff]  ;;  %v698_v58 = vld [vmem:[%s23786_s29 + $0xfa0] sm:$0xff] }
  0x8f   : > { %695 = vst [vmem:[%s23791_s30 + $0x7c0] sm:$0xff] %v694_v56  ;;  %v700_v59 = vld [vmem:[%s23786_s29 + $0xfa8] sm:$0xff]  ;;  %697 = vst [vmem:[%s23791_s30 + $0x7c8] sm:$0xff] %v696_v57  ;;  %v702_v60 = vld [vmem:[%s23786_s29 + $0xfb0] sm:$0xff] }
  0x90   : > { %699 = vst [vmem:[%s23791_s30 + $0x7d0] sm:$0xff] %v698_v58  ;;  %701 = vst [vmem:[%s23791_s30 + $0x7d8] sm:$0xff] %v700_v59  ;;  %v704_v61 = vld [vmem:[%s23786_s29 + $0xfb8] sm:$0xff]  ;;  %v706_v62 = vld [vmem:[%s23786_s29 + $0xfc0] sm:$0xff] }
  0x91   : > { %703 = vst [vmem:[%s23791_s30 + $0x7e0] sm:$0xff] %v702_v60  ;;  %705 = vst [vmem:[%s23791_s30 + $0x7e8] sm:$0xff] %v704_v61  ;;  %v708_v63 = vld [vmem:[%s23786_s29 + $0xff0] sm:$0xff]  ;;  %v710_v0 = vld [vmem:[%s23786_s29 + $0xff8] sm:$0xff] }
  0x92   : > { %707 = vst [vmem:[%s23791_s30 + $0x7f0] sm:$0xff] %v706_v62  ;;  %v712_v1 = vld [vmem:[%s23786_s29 + $0x1000] sm:$0xff]  ;;  %709 = vst [vmem:[%s23791_s30 + $0x7f8] sm:$0xff] %v708_v63  ;;  %v714_v2 = vld [vmem:[%s23786_s29 + $0x1008] sm:$0xff] }
  0x93   : > { %711 = vst [vmem:[%s23791_s30 + $0x800] sm:$0xff] %v710_v0  ;;  %713 = vst [vmem:[%s23791_s30 + $0x808] sm:$0xff] %v712_v1  ;;  %v716_v3 = vld [vmem:[%s23786_s29 + $0x1010] sm:$0xff]  ;;  %v718_v4 = vld [vmem:[%s23786_s29 + $0x1040] sm:$0xff] }
  0x94   : > { %715 = vst [vmem:[%s23791_s30 + $0x810] sm:$0xff] %v714_v2  ;;  %717 = vst [vmem:[%s23791_s30 + $0x818] sm:$0xff] %v716_v3  ;;  %v720_v5 = vld [vmem:[%s23786_s29 + $0x1048] sm:$0xff]  ;;  %v722_v6 = vld [vmem:[%s23786_s29 + $0x1050] sm:$0xff] }
  0x95   : > { %719 = vst [vmem:[%s23791_s30 + $0x820] sm:$0xff] %v718_v4  ;;  %v724_v7 = vld [vmem:[%s23786_s29 + $0x1058] sm:$0xff]  ;;  %721 = vst [vmem:[%s23791_s30 + $0x828] sm:$0xff] %v720_v5  ;;  %v726_v8 = vld [vmem:[%s23786_s29 + $0x1060] sm:$0xff] }
  0x96   : > { %723 = vst [vmem:[%s23791_s30 + $0x830] sm:$0xff] %v722_v6  ;;  %725 = vst [vmem:[%s23791_s30 + $0x838] sm:$0xff] %v724_v7  ;;  %v728_v9 = vld [vmem:[%s23786_s29 + $0x1090] sm:$0xff]  ;;  %v730_v10 = vld [vmem:[%s23786_s29 + $0x1098] sm:$0xff] }
  0x97   : > { %727 = vst [vmem:[%s23791_s30 + $0x840] sm:$0xff] %v726_v8  ;;  %729 = vst [vmem:[%s23791_s30 + $0x848] sm:$0xff] %v728_v9  ;;  %v732_v11 = vld [vmem:[%s23786_s29 + $0x10a0] sm:$0xff]  ;;  %v734_v12 = vld [vmem:[%s23786_s29 + $0x10a8] sm:$0xff] }
  0x98   : > { %731 = vst [vmem:[%s23791_s30 + $0x850] sm:$0xff] %v730_v10  ;;  %v736_v13 = vld [vmem:[%s23786_s29 + $0x10b0] sm:$0xff]  ;;  %733 = vst [vmem:[%s23791_s30 + $0x858] sm:$0xff] %v732_v11  ;;  %v738_v14 = vld [vmem:[%s23786_s29 + $0x10e0] sm:$0xff] }
  0x99   : > { %735 = vst [vmem:[%s23791_s30 + $0x860] sm:$0xff] %v734_v12  ;;  %737 = vst [vmem:[%s23791_s30 + $0x868] sm:$0xff] %v736_v13  ;;  %v740_v15 = vld [vmem:[%s23786_s29 + $0x10e8] sm:$0xff]  ;;  %v742_v16 = vld [vmem:[%s23786_s29 + $0x10f0] sm:$0xff] }
  0x9a   : > { %739 = vst [vmem:[%s23791_s30 + $0x870] sm:$0xff] %v738_v14  ;;  %741 = vst [vmem:[%s23791_s30 + $0x878] sm:$0xff] %v740_v15  ;;  %v744_v17 = vld [vmem:[%s23786_s29 + $0x10f8] sm:$0xff]  ;;  %v746_v18 = vld [vmem:[%s23786_s29 + $0x1100] sm:$0xff] }
  0x9b   : > { %743 = vst [vmem:[%s23791_s30 + $0x880] sm:$0xff] %v742_v16  ;;  %v748_v19 = vld [vmem:[%s23786_s29 + $0x1130] sm:$0xff]  ;;  %745 = vst [vmem:[%s23791_s30 + $0x888] sm:$0xff] %v744_v17  ;;  %v750_v20 = vld [vmem:[%s23786_s29 + $0x1138] sm:$0xff] }
  0x9c   : > { %747 = vst [vmem:[%s23791_s30 + $0x890] sm:$0xff] %v746_v18  ;;  %749 = vst [vmem:[%s23791_s30 + $0x898] sm:$0xff] %v748_v19  ;;  %v752_v21 = vld [vmem:[%s23786_s29 + $0x1140] sm:$0xff]  ;;  %v754_v22 = vld [vmem:[%s23786_s29 + $0x1148] sm:$0xff] }
  0x9d   : > { %751 = vst [vmem:[%s23791_s30 + $0x8a0] sm:$0xff] %v750_v20  ;;  %753 = vst [vmem:[%s23791_s30 + $0x8a8] sm:$0xff] %v752_v21  ;;  %v756_v23 = vld [vmem:[%s23786_s29 + $0x1150] sm:$0xff]  ;;  %v758_v24 = vld [vmem:[%s23786_s29 + $0x1180] sm:$0xff] }
  0x9e   : > { %755 = vst [vmem:[%s23791_s30 + $0x8b0] sm:$0xff] %v754_v22  ;;  %v760_v25 = vld [vmem:[%s23786_s29 + $0x1188] sm:$0xff]  ;;  %757 = vst [vmem:[%s23791_s30 + $0x8b8] sm:$0xff] %v756_v23  ;;  %v762_v26 = vld [vmem:[%s23786_s29 + $0x1190] sm:$0xff] }
  0x9f   : > { %759 = vst [vmem:[%s23791_s30 + $0x8c0] sm:$0xff] %v758_v24  ;;  %761 = vst [vmem:[%s23791_s30 + $0x8c8] sm:$0xff] %v760_v25  ;;  %v764_v27 = vld [vmem:[%s23786_s29 + $0x1198] sm:$0xff]  ;;  %v766_v28 = vld [vmem:[%s23786_s29 + $0x11a0] sm:$0xff] }
  0xa0   : > { %763 = vst [vmem:[%s23791_s30 + $0x8d0] sm:$0xff] %v762_v26  ;;  %765 = vst [vmem:[%s23791_s30 + $0x8d8] sm:$0xff] %v764_v27  ;;  %v768_v29 = vld [vmem:[%s23786_s29 + $0x11d0] sm:$0xff]  ;;  %v770_v30 = vld [vmem:[%s23786_s29 + $0x11d8] sm:$0xff] }
  0xa1   : > { %767 = vst [vmem:[%s23791_s30 + $0x8e0] sm:$0xff] %v766_v28  ;;  %v772_v31 = vld [vmem:[%s23786_s29 + $0x11e0] sm:$0xff]  ;;  %769 = vst [vmem:[%s23791_s30 + $0x8e8] sm:$0xff] %v768_v29  ;;  %v774_v32 = vld [vmem:[%s23786_s29 + $0x11e8] sm:$0xff] }
  0xa2   : > { %771 = vst [vmem:[%s23791_s30 + $0x8f0] sm:$0xff] %v770_v30  ;;  %773 = vst [vmem:[%s23791_s30 + $0x8f8] sm:$0xff] %v772_v31  ;;  %v776_v33 = vld [vmem:[%s23786_s29 + $0x11f0] sm:$0xff]  ;;  %v778_v34 = vld [vmem:[%s23786_s29 + $0x1220] sm:$0xff] }
  0xa3   : > { %775 = vst [vmem:[%s23791_s30 + $0x900] sm:$0xff] %v774_v32  ;;  %777 = vst [vmem:[%s23791_s30 + $0x908] sm:$0xff] %v776_v33  ;;  %v780_v35 = vld [vmem:[%s23786_s29 + $0x1228] sm:$0xff]  ;;  %v782_v36 = vld [vmem:[%s23786_s29 + $0x1230] sm:$0xff] }
  0xa4   : > { %779 = vst [vmem:[%s23791_s30 + $0x910] sm:$0xff] %v778_v34  ;;  %v784_v37 = vld [vmem:[%s23786_s29 + $0x1238] sm:$0xff]  ;;  %781 = vst [vmem:[%s23791_s30 + $0x918] sm:$0xff] %v780_v35  ;;  %v786_v38 = vld [vmem:[%s23786_s29 + $0x1240] sm:$0xff] }
  0xa5   : > { %783 = vst [vmem:[%s23791_s30 + $0x920] sm:$0xff] %v782_v36  ;;  %785 = vst [vmem:[%s23791_s30 + $0x928] sm:$0xff] %v784_v37  ;;  %v788_v39 = vld [vmem:[%s23786_s29 + $0x1270] sm:$0xff]  ;;  %v790_v40 = vld [vmem:[%s23786_s29 + $0x1278] sm:$0xff] }
  0xa6   : > { %787 = vst [vmem:[%s23791_s30 + $0x930] sm:$0xff] %v786_v38  ;;  %789 = vst [vmem:[%s23791_s30 + $0x938] sm:$0xff] %v788_v39  ;;  %v792_v41 = vld [vmem:[%s23786_s29 + $0x1280] sm:$0xff]  ;;  %v794_v42 = vld [vmem:[%s23786_s29 + $0x1288] sm:$0xff] }
  0xa7   : > { %791 = vst [vmem:[%s23791_s30 + $0x940] sm:$0xff] %v790_v40  ;;  %v796_v43 = vld [vmem:[%s23786_s29 + $0x1290] sm:$0xff]  ;;  %793 = vst [vmem:[%s23791_s30 + $0x948] sm:$0xff] %v792_v41  ;;  %v798_v44 = vld [vmem:[%s23786_s29 + $0x12c0] sm:$0xff] }
  0xa8   : > { %795 = vst [vmem:[%s23791_s30 + $0x950] sm:$0xff] %v794_v42  ;;  %797 = vst [vmem:[%s23791_s30 + $0x958] sm:$0xff] %v796_v43  ;;  %v800_v45 = vld [vmem:[%s23786_s29 + $0x12c8] sm:$0xff]  ;;  %v802_v46 = vld [vmem:[%s23786_s29 + $0x12d0] sm:$0xff] }
  0xa9   : > { %799 = vst [vmem:[%s23791_s30 + $0x960] sm:$0xff] %v798_v44  ;;  %801 = vst [vmem:[%s23791_s30 + $0x968] sm:$0xff] %v800_v45  ;;  %v804_v47 = vld [vmem:[%s23786_s29 + $0x12d8] sm:$0xff]  ;;  %v806_v48 = vld [vmem:[%s23786_s29 + $0x12e0] sm:$0xff] }
  0xaa   : > { %803 = vst [vmem:[%s23791_s30 + $0x970] sm:$0xff] %v802_v46  ;;  %v808_v49 = vld [vmem:[%s23786_s29 + $0x1310] sm:$0xff]  ;;  %805 = vst [vmem:[%s23791_s30 + $0x978] sm:$0xff] %v804_v47  ;;  %v810_v50 = vld [vmem:[%s23786_s29 + $0x1318] sm:$0xff] }
  0xab   : > { %807 = vst [vmem:[%s23791_s30 + $0x980] sm:$0xff] %v806_v48  ;;  %809 = vst [vmem:[%s23791_s30 + $0x988] sm:$0xff] %v808_v49  ;;  %v812_v51 = vld [vmem:[%s23786_s29 + $0x1320] sm:$0xff]  ;;  %v814_v52 = vld [vmem:[%s23786_s29 + $0x1328] sm:$0xff] }
  0xac   : > { %811 = vst [vmem:[%s23791_s30 + $0x990] sm:$0xff] %v810_v50  ;;  %813 = vst [vmem:[%s23791_s30 + $0x998] sm:$0xff] %v812_v51  ;;  %v816_v53 = vld [vmem:[%s23786_s29 + $0x1330] sm:$0xff]  ;;  %v818_v54 = vld [vmem:[%s23786_s29 + $0x1360] sm:$0xff] }
  0xad   : > { %815 = vst [vmem:[%s23791_s30 + $0x9a0] sm:$0xff] %v814_v52  ;;  %v820_v55 = vld [vmem:[%s23786_s29 + $0x1368] sm:$0xff]  ;;  %817 = vst [vmem:[%s23791_s30 + $0x9a8] sm:$0xff] %v816_v53  ;;  %v822_v56 = vld [vmem:[%s23786_s29 + $0x1370] sm:$0xff] }
  0xae   : > { %819 = vst [vmem:[%s23791_s30 + $0x9b0] sm:$0xff] %v818_v54  ;;  %821 = vst [vmem:[%s23791_s30 + $0x9b8] sm:$0xff] %v820_v55  ;;  %v824_v57 = vld [vmem:[%s23786_s29 + $0x1378] sm:$0xff]  ;;  %v826_v58 = vld [vmem:[%s23786_s29 + $0x1380] sm:$0xff] }
  0xaf   : > { %823 = vst [vmem:[%s23791_s30 + $0x9c0] sm:$0xff] %v822_v56  ;;  %825 = vst [vmem:[%s23791_s30 + $0x9c8] sm:$0xff] %v824_v57  ;;  %v828_v59 = vld [vmem:[%s23786_s29 + $0x13b0] sm:$0xff]  ;;  %v830_v60 = vld [vmem:[%s23786_s29 + $0x13b8] sm:$0xff] }
  0xb0   : > { %827 = vst [vmem:[%s23791_s30 + $0x9d0] sm:$0xff] %v826_v58  ;;  %v832_v61 = vld [vmem:[%s23786_s29 + $0x13c0] sm:$0xff]  ;;  %829 = vst [vmem:[%s23791_s30 + $0x9d8] sm:$0xff] %v828_v59  ;;  %v834_v62 = vld [vmem:[%s23786_s29 + $0x13c8] sm:$0xff] }
  0xb1   : > { %831 = vst [vmem:[%s23791_s30 + $0x9e0] sm:$0xff] %v830_v60  ;;  %833 = vst [vmem:[%s23791_s30 + $0x9e8] sm:$0xff] %v832_v61  ;;  %v836_v63 = vld [vmem:[%s23786_s29 + $0x13d0] sm:$0xff]  ;;  %v838_v0 = vld [vmem:[%s23786_s29 + $0x1400] sm:$0xff] }
  0xb2   : > { %835 = vst [vmem:[%s23791_s30 + $0x9f0] sm:$0xff] %v834_v62  ;;  %837 = vst [vmem:[%s23791_s30 + $0x9f8] sm:$0xff] %v836_v63  ;;  %v840_v1 = vld [vmem:[%s23786_s29 + $0x1408] sm:$0xff]  ;;  %v842_v2 = vld [vmem:[%s23786_s29 + $0x1410] sm:$0xff] }
  0xb3   : > { %839 = vst [vmem:[%s23791_s30 + $0xa00] sm:$0xff] %v838_v0  ;;  %v844_v3 = vld [vmem:[%s23786_s29 + $0x1418] sm:$0xff]  ;;  %841 = vst [vmem:[%s23791_s30 + $0xa08] sm:$0xff] %v840_v1  ;;  %v846_v4 = vld [vmem:[%s23786_s29 + $0x1420] sm:$0xff] }
  0xb4   : > { %843 = vst [vmem:[%s23791_s30 + $0xa10] sm:$0xff] %v842_v2  ;;  %845 = vst [vmem:[%s23791_s30 + $0xa18] sm:$0xff] %v844_v3  ;;  %v848_v5 = vld [vmem:[%s23786_s29 + $0x1450] sm:$0xff]  ;;  %v850_v6 = vld [vmem:[%s23786_s29 + $0x1458] sm:$0xff] }
  0xb5   : > { %847 = vst [vmem:[%s23791_s30 + $0xa20] sm:$0xff] %v846_v4  ;;  %849 = vst [vmem:[%s23791_s30 + $0xa28] sm:$0xff] %v848_v5  ;;  %v852_v7 = vld [vmem:[%s23786_s29 + $0x1460] sm:$0xff]  ;;  %v854_v8 = vld [vmem:[%s23786_s29 + $0x1468] sm:$0xff] }
  0xb6   : > { %851 = vst [vmem:[%s23791_s30 + $0xa30] sm:$0xff] %v850_v6  ;;  %v856_v9 = vld [vmem:[%s23786_s29 + $0x1470] sm:$0xff]  ;;  %853 = vst [vmem:[%s23791_s30 + $0xa38] sm:$0xff] %v852_v7  ;;  %v858_v10 = vld [vmem:[%s23786_s29 + $0x14a0] sm:$0xff] }
  0xb7   : > { %855 = vst [vmem:[%s23791_s30 + $0xa40] sm:$0xff] %v854_v8  ;;  %857 = vst [vmem:[%s23791_s30 + $0xa48] sm:$0xff] %v856_v9  ;;  %v860_v11 = vld [vmem:[%s23786_s29 + $0x14a8] sm:$0xff]  ;;  %v862_v12 = vld [vmem:[%s23786_s29 + $0x14b0] sm:$0xff] }
  0xb8   : > { %859 = vst [vmem:[%s23791_s30 + $0xa50] sm:$0xff] %v858_v10  ;;  %861 = vst [vmem:[%s23791_s30 + $0xa58] sm:$0xff] %v860_v11  ;;  %v864_v13 = vld [vmem:[%s23786_s29 + $0x14b8] sm:$0xff]  ;;  %v866_v14 = vld [vmem:[%s23786_s29 + $0x14c0] sm:$0xff] }
  0xb9   : > { %863 = vst [vmem:[%s23791_s30 + $0xa60] sm:$0xff] %v862_v12  ;;  %v868_v15 = vld [vmem:[%s23786_s29 + $0x14f0] sm:$0xff]  ;;  %865 = vst [vmem:[%s23791_s30 + $0xa68] sm:$0xff] %v864_v13  ;;  %v870_v16 = vld [vmem:[%s23786_s29 + $0x14f8] sm:$0xff] }
  0xba   : > { %867 = vst [vmem:[%s23791_s30 + $0xa70] sm:$0xff] %v866_v14  ;;  %869 = vst [vmem:[%s23791_s30 + $0xa78] sm:$0xff] %v868_v15  ;;  %v872_v17 = vld [vmem:[%s23786_s29 + $0x1500] sm:$0xff]  ;;  %v874_v18 = vld [vmem:[%s23786_s29 + $0x1508] sm:$0xff] }
  0xbb   : > { %871 = vst [vmem:[%s23791_s30 + $0xa80] sm:$0xff] %v870_v16  ;;  %873 = vst [vmem:[%s23791_s30 + $0xa88] sm:$0xff] %v872_v17  ;;  %v876_v19 = vld [vmem:[%s23786_s29 + $0x1510] sm:$0xff]  ;;  %v878_v20 = vld [vmem:[%s23786_s29 + $0x1540] sm:$0xff] }
  0xbc   : > { %875 = vst [vmem:[%s23791_s30 + $0xa90] sm:$0xff] %v874_v18  ;;  %v880_v21 = vld [vmem:[%s23786_s29 + $0x1548] sm:$0xff]  ;;  %877 = vst [vmem:[%s23791_s30 + $0xa98] sm:$0xff] %v876_v19  ;;  %v882_v22 = vld [vmem:[%s23786_s29 + $0x1550] sm:$0xff] }
  0xbd   : > { %879 = vst [vmem:[%s23791_s30 + $0xaa0] sm:$0xff] %v878_v20  ;;  %881 = vst [vmem:[%s23791_s30 + $0xaa8] sm:$0xff] %v880_v21  ;;  %v884_v23 = vld [vmem:[%s23786_s29 + $0x1558] sm:$0xff]  ;;  %v886_v24 = vld [vmem:[%s23786_s29 + $0x1560] sm:$0xff] }
  0xbe   : > { %883 = vst [vmem:[%s23791_s30 + $0xab0] sm:$0xff] %v882_v22  ;;  %885 = vst [vmem:[%s23791_s30 + $0xab8] sm:$0xff] %v884_v23  ;;  %v888_v25 = vld [vmem:[%s23786_s29 + $0x1590] sm:$0xff]  ;;  %v890_v26 = vld [vmem:[%s23786_s29 + $0x1598] sm:$0xff] }
  0xbf   : > { %887 = vst [vmem:[%s23791_s30 + $0xac0] sm:$0xff] %v886_v24  ;;  %v892_v27 = vld [vmem:[%s23786_s29 + $0x15a0] sm:$0xff]  ;;  %889 = vst [vmem:[%s23791_s30 + $0xac8] sm:$0xff] %v888_v25  ;;  %v894_v28 = vld [vmem:[%s23786_s29 + $0x15a8] sm:$0xff] }
  0xc0   : > { %891 = vst [vmem:[%s23791_s30 + $0xad0] sm:$0xff] %v890_v26  ;;  %893 = vst [vmem:[%s23791_s30 + $0xad8] sm:$0xff] %v892_v27  ;;  %v896_v29 = vld [vmem:[%s23786_s29 + $0x15b0] sm:$0xff]  ;;  %v898_v30 = vld [vmem:[%s23786_s29 + $0x15e0] sm:$0xff] }
  0xc1   : > { %895 = vst [vmem:[%s23791_s30 + $0xae0] sm:$0xff] %v894_v28  ;;  %897 = vst [vmem:[%s23791_s30 + $0xae8] sm:$0xff] %v896_v29  ;;  %v900_v31 = vld [vmem:[%s23786_s29 + $0x15e8] sm:$0xff]  ;;  %v902_v32 = vld [vmem:[%s23786_s29 + $0x15f0] sm:$0xff] }
  0xc2   : > { %899 = vst [vmem:[%s23791_s30 + $0xaf0] sm:$0xff] %v898_v30  ;;  %v904_v33 = vld [vmem:[%s23786_s29 + $0x15f8] sm:$0xff]  ;;  %901 = vst [vmem:[%s23791_s30 + $0xaf8] sm:$0xff] %v900_v31  ;;  %v906_v34 = vld [vmem:[%s23786_s29 + $0x1600] sm:$0xff] }
  0xc3   : > { %903 = vst [vmem:[%s23791_s30 + $0xb00] sm:$0xff] %v902_v32  ;;  %905 = vst [vmem:[%s23791_s30 + $0xb08] sm:$0xff] %v904_v33  ;;  %v908_v35 = vld [vmem:[%s23786_s29 + $0x1630] sm:$0xff]  ;;  %v910_v36 = vld [vmem:[%s23786_s29 + $0x1638] sm:$0xff] }
  0xc4   : > { %907 = vst [vmem:[%s23791_s30 + $0xb10] sm:$0xff] %v906_v34  ;;  %909 = vst [vmem:[%s23791_s30 + $0xb18] sm:$0xff] %v908_v35  ;;  %v912_v37 = vld [vmem:[%s23786_s29 + $0x1640] sm:$0xff]  ;;  %v914_v38 = vld [vmem:[%s23786_s29 + $0x1648] sm:$0xff] }
  0xc5   : > { %911 = vst [vmem:[%s23791_s30 + $0xb20] sm:$0xff] %v910_v36  ;;  %v916_v39 = vld [vmem:[%s23786_s29 + $0x1650] sm:$0xff]  ;;  %913 = vst [vmem:[%s23791_s30 + $0xb28] sm:$0xff] %v912_v37  ;;  %v918_v40 = vld [vmem:[%s23786_s29 + $0x1680] sm:$0xff] }
  0xc6   : > { %915 = vst [vmem:[%s23791_s30 + $0xb30] sm:$0xff] %v914_v38  ;;  %917 = vst [vmem:[%s23791_s30 + $0xb38] sm:$0xff] %v916_v39  ;;  %v920_v41 = vld [vmem:[%s23786_s29 + $0x1688] sm:$0xff]  ;;  %v922_v42 = vld [vmem:[%s23786_s29 + $0x1690] sm:$0xff] }
  0xc7   : > { %919 = vst [vmem:[%s23791_s30 + $0xb40] sm:$0xff] %v918_v40  ;;  %921 = vst [vmem:[%s23791_s30 + $0xb48] sm:$0xff] %v920_v41  ;;  %v924_v43 = vld [vmem:[%s23786_s29 + $0x1698] sm:$0xff]  ;;  %v926_v44 = vld [vmem:[%s23786_s29 + $0x16a0] sm:$0xff] }
  0xc8   : > { %923 = vst [vmem:[%s23791_s30 + $0xb50] sm:$0xff] %v922_v42  ;;  %v928_v45 = vld [vmem:[%s23786_s29 + $0x16d0] sm:$0xff]  ;;  %925 = vst [vmem:[%s23791_s30 + $0xb58] sm:$0xff] %v924_v43  ;;  %v930_v46 = vld [vmem:[%s23786_s29 + $0x16d8] sm:$0xff] }
  0xc9   : > { %927 = vst [vmem:[%s23791_s30 + $0xb60] sm:$0xff] %v926_v44  ;;  %929 = vst [vmem:[%s23791_s30 + $0xb68] sm:$0xff] %v928_v45  ;;  %v932_v47 = vld [vmem:[%s23786_s29 + $0x16e0] sm:$0xff]  ;;  %v934_v48 = vld [vmem:[%s23786_s29 + $0x16e8] sm:$0xff] }
  0xca   : > { %931 = vst [vmem:[%s23791_s30 + $0xb70] sm:$0xff] %v930_v46  ;;  %933 = vst [vmem:[%s23791_s30 + $0xb78] sm:$0xff] %v932_v47  ;;  %v936_v49 = vld [vmem:[%s23786_s29 + $0x16f0] sm:$0xff]  ;;  %v938_v50 = vld [vmem:[%s23786_s29 + $0x1720] sm:$0xff] }
  0xcb   : > { %935 = vst [vmem:[%s23791_s30 + $0xb80] sm:$0xff] %v934_v48  ;;  %v940_v51 = vld [vmem:[%s23786_s29 + $0x1728] sm:$0xff]  ;;  %937 = vst [vmem:[%s23791_s30 + $0xb88] sm:$0xff] %v936_v49  ;;  %v942_v52 = vld [vmem:[%s23786_s29 + $0x1730] sm:$0xff] }
  0xcc   : > { %939 = vst [vmem:[%s23791_s30 + $0xb90] sm:$0xff] %v938_v50  ;;  %941 = vst [vmem:[%s23791_s30 + $0xb98] sm:$0xff] %v940_v51  ;;  %v944_v53 = vld [vmem:[%s23786_s29 + $0x1738] sm:$0xff]  ;;  %v946_v54 = vld [vmem:[%s23786_s29 + $0x1740] sm:$0xff] }
  0xcd   : > { %943 = vst [vmem:[%s23791_s30 + $0xba0] sm:$0xff] %v942_v52  ;;  %945 = vst [vmem:[%s23791_s30 + $0xba8] sm:$0xff] %v944_v53  ;;  %v948_v55 = vld [vmem:[%s23786_s29 + $0x1770] sm:$0xff]  ;;  %v950_v56 = vld [vmem:[%s23786_s29 + $0x1778] sm:$0xff] }
  0xce   : > { %947 = vst [vmem:[%s23791_s30 + $0xbb0] sm:$0xff] %v946_v54  ;;  %v952_v57 = vld [vmem:[%s23786_s29 + $0x1780] sm:$0xff]  ;;  %949 = vst [vmem:[%s23791_s30 + $0xbb8] sm:$0xff] %v948_v55  ;;  %v954_v58 = vld [vmem:[%s23786_s29 + $0x1788] sm:$0xff] }
  0xcf   : > { %951 = vst [vmem:[%s23791_s30 + $0xbc0] sm:$0xff] %v950_v56  ;;  %953 = vst [vmem:[%s23791_s30 + $0xbc8] sm:$0xff] %v952_v57  ;;  %v956_v59 = vld [vmem:[%s23786_s29 + $0x1790] sm:$0xff]  ;;  %v958_v60 = vld [vmem:[%s23786_s29 + $0x17c0] sm:$0xff] }
  0xd0   : > { %955 = vst [vmem:[%s23791_s30 + $0xbd0] sm:$0xff] %v954_v58  ;;  %957 = vst [vmem:[%s23791_s30 + $0xbd8] sm:$0xff] %v956_v59  ;;  %v960_v61 = vld [vmem:[%s23786_s29 + $0x17c8] sm:$0xff]  ;;  %v962_v62 = vld [vmem:[%s23786_s29 + $0x17d0] sm:$0xff] }
  0xd1   : > { %959 = vst [vmem:[%s23791_s30 + $0xbe0] sm:$0xff] %v958_v60  ;;  %v964_v63 = vld [vmem:[%s23786_s29 + $0x17d8] sm:$0xff]  ;;  %961 = vst [vmem:[%s23791_s30 + $0xbe8] sm:$0xff] %v960_v61  ;;  %v966_v0 = vld [vmem:[%s23786_s29 + $0x17e0] sm:$0xff] }
  0xd2   : > { %963 = vst [vmem:[%s23791_s30 + $0xbf0] sm:$0xff] %v962_v62  ;;  %965 = vst [vmem:[%s23791_s30 + $0xbf8] sm:$0xff] %v964_v63  ;;  %v968_v1 = vld [vmem:[%s23786_s29 + $0x1810] sm:$0xff]  ;;  %v970_v2 = vld [vmem:[%s23786_s29 + $0x1818] sm:$0xff] }
  0xd3   : > { %967 = vst [vmem:[%s23791_s30 + $0xc00] sm:$0xff] %v966_v0  ;;  %969 = vst [vmem:[%s23791_s30 + $0xc08] sm:$0xff] %v968_v1  ;;  %v972_v3 = vld [vmem:[%s23786_s29 + $0x1820] sm:$0xff]  ;;  %v974_v4 = vld [vmem:[%s23786_s29 + $0x1828] sm:$0xff] }
  0xd4   : > { %971 = vst [vmem:[%s23791_s30 + $0xc10] sm:$0xff] %v970_v2  ;;  %v976_v5 = vld [vmem:[%s23786_s29 + $0x1830] sm:$0xff]  ;;  %973 = vst [vmem:[%s23791_s30 + $0xc18] sm:$0xff] %v972_v3  ;;  %v978_v6 = vld [vmem:[%s23786_s29 + $0x1860] sm:$0xff] }
  0xd5   : > { %975 = vst [vmem:[%s23791_s30 + $0xc20] sm:$0xff] %v974_v4  ;;  %977 = vst [vmem:[%s23791_s30 + $0xc28] sm:$0xff] %v976_v5  ;;  %v980_v7 = vld [vmem:[%s23786_s29 + $0x1868] sm:$0xff]  ;;  %v982_v8 = vld [vmem:[%s23786_s29 + $0x1870] sm:$0xff] }
  0xd6   : > { %979 = vst [vmem:[%s23791_s30 + $0xc30] sm:$0xff] %v978_v6  ;;  %981 = vst [vmem:[%s23791_s30 + $0xc38] sm:$0xff] %v980_v7  ;;  %v984_v9 = vld [vmem:[%s23786_s29 + $0x1878] sm:$0xff]  ;;  %v986_v10 = vld [vmem:[%s23786_s29 + $0x1880] sm:$0xff] }
  0xd7   : > { %983 = vst [vmem:[%s23791_s30 + $0xc40] sm:$0xff] %v982_v8  ;;  %v988_v11 = vld [vmem:[%s23786_s29 + $0x18b0] sm:$0xff]  ;;  %985 = vst [vmem:[%s23791_s30 + $0xc48] sm:$0xff] %v984_v9  ;;  %v990_v12 = vld [vmem:[%s23786_s29 + $0x18b8] sm:$0xff] }
  0xd8   : > { %987 = vst [vmem:[%s23791_s30 + $0xc50] sm:$0xff] %v986_v10  ;;  %989 = vst [vmem:[%s23791_s30 + $0xc58] sm:$0xff] %v988_v11  ;;  %v992_v13 = vld [vmem:[%s23786_s29 + $0x18c0] sm:$0xff]  ;;  %v994_v14 = vld [vmem:[%s23786_s29 + $0x18c8] sm:$0xff] }
  0xd9   : > { %991 = vst [vmem:[%s23791_s30 + $0xc60] sm:$0xff] %v990_v12  ;;  %993 = vst [vmem:[%s23791_s30 + $0xc68] sm:$0xff] %v992_v13  ;;  %v996_v15 = vld [vmem:[%s23786_s29 + $0x18d0] sm:$0xff]  ;;  %v998_v16 = vld [vmem:[%s23786_s29 + $0x1900] sm:$0xff] }
  0xda   : > { %995 = vst [vmem:[%s23791_s30 + $0xc70] sm:$0xff] %v994_v14  ;;  %v1000_v17 = vld [vmem:[%s23786_s29 + $0x1908] sm:$0xff]  ;;  %997 = vst [vmem:[%s23791_s30 + $0xc78] sm:$0xff] %v996_v15  ;;  %v1002_v18 = vld [vmem:[%s23786_s29 + $0x1910] sm:$0xff] }
  0xdb   : > { %999 = vst [vmem:[%s23791_s30 + $0xc80] sm:$0xff] %v998_v16  ;;  %1001 = vst [vmem:[%s23791_s30 + $0xc88] sm:$0xff] %v1000_v17  ;;  %v1004_v19 = vld [vmem:[%s23786_s29 + $0x1918] sm:$0xff]  ;;  %v1006_v20 = vld [vmem:[%s23786_s29 + $0x1920] sm:$0xff] }
  0xdc   : > { %1003 = vst [vmem:[%s23791_s30 + $0xc90] sm:$0xff] %v1002_v18  ;;  %1005 = vst [vmem:[%s23791_s30 + $0xc98] sm:$0xff] %v1004_v19  ;;  %v1008_v21 = vld [vmem:[%s23786_s29 + $0x1950] sm:$0xff]  ;;  %v1010_v22 = vld [vmem:[%s23786_s29 + $0x1958] sm:$0xff] }
  0xdd   : > { %1007 = vst [vmem:[%s23791_s30 + $0xca0] sm:$0xff] %v1006_v20  ;;  %v1012_v23 = vld [vmem:[%s23786_s29 + $0x1960] sm:$0xff]  ;;  %1009 = vst [vmem:[%s23791_s30 + $0xca8] sm:$0xff] %v1008_v21  ;;  %v1014_v24 = vld [vmem:[%s23786_s29 + $0x1968] sm:$0xff] }
  0xde   : > { %1011 = vst [vmem:[%s23791_s30 + $0xcb0] sm:$0xff] %v1010_v22  ;;  %1013 = vst [vmem:[%s23791_s30 + $0xcb8] sm:$0xff] %v1012_v23  ;;  %v1016_v25 = vld [vmem:[%s23786_s29 + $0x1970] sm:$0xff]  ;;  %v1018_v26 = vld [vmem:[%s23786_s29 + $0x19a0] sm:$0xff] }
  0xdf   : > { %1015 = vst [vmem:[%s23791_s30 + $0xcc0] sm:$0xff] %v1014_v24  ;;  %1017 = vst [vmem:[%s23791_s30 + $0xcc8] sm:$0xff] %v1016_v25  ;;  %v1020_v27 = vld [vmem:[%s23786_s29 + $0x19a8] sm:$0xff]  ;;  %v1022_v28 = vld [vmem:[%s23786_s29 + $0x19b0] sm:$0xff] }
  0xe0   : > { %1019 = vst [vmem:[%s23791_s30 + $0xcd0] sm:$0xff] %v1018_v26  ;;  %v1024_v29 = vld [vmem:[%s23786_s29 + $0x19b8] sm:$0xff]  ;;  %1021 = vst [vmem:[%s23791_s30 + $0xcd8] sm:$0xff] %v1020_v27  ;;  %v1026_v30 = vld [vmem:[%s23786_s29 + $0x19c0] sm:$0xff] }
  0xe1   : > { %1023 = vst [vmem:[%s23791_s30 + $0xce0] sm:$0xff] %v1022_v28  ;;  %1025 = vst [vmem:[%s23791_s30 + $0xce8] sm:$0xff] %v1024_v29  ;;  %v1028_v31 = vld [vmem:[%s23786_s29 + $0x19f0] sm:$0xff]  ;;  %v1030_v32 = vld [vmem:[%s23786_s29 + $0x19f8] sm:$0xff] }
  0xe2   : > { %1027 = vst [vmem:[%s23791_s30 + $0xcf0] sm:$0xff] %v1026_v30  ;;  %1029 = vst [vmem:[%s23791_s30 + $0xcf8] sm:$0xff] %v1028_v31  ;;  %v1032_v33 = vld [vmem:[%s23786_s29 + $0x1a00] sm:$0xff]  ;;  %v1034_v34 = vld [vmem:[%s23786_s29 + $0x1a08] sm:$0xff] }
  0xe3   : > { %1031 = vst [vmem:[%s23791_s30 + $0xd00] sm:$0xff] %v1030_v32  ;;  %v1036_v35 = vld [vmem:[%s23786_s29 + $0x1a10] sm:$0xff]  ;;  %1033 = vst [vmem:[%s23791_s30 + $0xd08] sm:$0xff] %v1032_v33  ;;  %v1038_v36 = vld [vmem:[%s23786_s29 + $0x1a40] sm:$0xff] }
  0xe4   : > { %1035 = vst [vmem:[%s23791_s30 + $0xd10] sm:$0xff] %v1034_v34  ;;  %1037 = vst [vmem:[%s23791_s30 + $0xd18] sm:$0xff] %v1036_v35  ;;  %v1040_v37 = vld [vmem:[%s23786_s29 + $0x1a48] sm:$0xff]  ;;  %v1042_v38 = vld [vmem:[%s23786_s29 + $0x1a50] sm:$0xff] }
  0xe5   : > { %1039 = vst [vmem:[%s23791_s30 + $0xd20] sm:$0xff] %v1038_v36  ;;  %1041 = vst [vmem:[%s23791_s30 + $0xd28] sm:$0xff] %v1040_v37  ;;  %v1044_v39 = vld [vmem:[%s23786_s29 + $0x1a58] sm:$0xff]  ;;  %v1046_v40 = vld [vmem:[%s23786_s29 + $0x1a60] sm:$0xff] }
  0xe6   : > { %1043 = vst [vmem:[%s23791_s30 + $0xd30] sm:$0xff] %v1042_v38  ;;  %v1048_v41 = vld [vmem:[%s23786_s29 + $0x1a90] sm:$0xff]  ;;  %1045 = vst [vmem:[%s23791_s30 + $0xd38] sm:$0xff] %v1044_v39  ;;  %v1050_v42 = vld [vmem:[%s23786_s29 + $0x1a98] sm:$0xff] }
  0xe7   : > { %1047 = vst [vmem:[%s23791_s30 + $0xd40] sm:$0xff] %v1046_v40  ;;  %1049 = vst [vmem:[%s23791_s30 + $0xd48] sm:$0xff] %v1048_v41  ;;  %v1052_v43 = vld [vmem:[%s23786_s29 + $0x1aa0] sm:$0xff]  ;;  %v1054_v44 = vld [vmem:[%s23786_s29 + $0x1aa8] sm:$0xff] }
  0xe8   : > { %1051 = vst [vmem:[%s23791_s30 + $0xd50] sm:$0xff] %v1050_v42  ;;  %1053 = vst [vmem:[%s23791_s30 + $0xd58] sm:$0xff] %v1052_v43  ;;  %v1056_v45 = vld [vmem:[%s23786_s29 + $0x1ab0] sm:$0xff]  ;;  %v1058_v46 = vld [vmem:[%s23786_s29 + $0x1ae0] sm:$0xff] }
  0xe9   : > { %1055 = vst [vmem:[%s23791_s30 + $0xd60] sm:$0xff] %v1054_v44  ;;  %v1060_v47 = vld [vmem:[%s23786_s29 + $0x1ae8] sm:$0xff]  ;;  %1057 = vst [vmem:[%s23791_s30 + $0xd68] sm:$0xff] %v1056_v45  ;;  %v1062_v48 = vld [vmem:[%s23786_s29 + $0x1af0] sm:$0xff] }
  0xea   : > { %1059 = vst [vmem:[%s23791_s30 + $0xd70] sm:$0xff] %v1058_v46  ;;  %1061 = vst [vmem:[%s23791_s30 + $0xd78] sm:$0xff] %v1060_v47  ;;  %v1064_v49 = vld [vmem:[%s23786_s29 + $0x1af8] sm:$0xff]  ;;  %v1066_v50 = vld [vmem:[%s23786_s29 + $0x1b00] sm:$0xff] }
  0xeb   : > { %1063 = vst [vmem:[%s23791_s30 + $0xd80] sm:$0xff] %v1062_v48  ;;  %1065 = vst [vmem:[%s23791_s30 + $0xd88] sm:$0xff] %v1064_v49  ;;  %v1068_v51 = vld [vmem:[%s23786_s29 + $0x1b30] sm:$0xff]  ;;  %v1070_v52 = vld [vmem:[%s23786_s29 + $0x1b38] sm:$0xff] }
  0xec   : > { %1067 = vst [vmem:[%s23791_s30 + $0xd90] sm:$0xff] %v1066_v50  ;;  %v1072_v53 = vld [vmem:[%s23786_s29 + $0x1b40] sm:$0xff]  ;;  %1069 = vst [vmem:[%s23791_s30 + $0xd98] sm:$0xff] %v1068_v51  ;;  %v1074_v54 = vld [vmem:[%s23786_s29 + $0x1b48] sm:$0xff] }
  0xed   : > { %1071 = vst [vmem:[%s23791_s30 + $0xda0] sm:$0xff] %v1070_v52  ;;  %1073 = vst [vmem:[%s23791_s30 + $0xda8] sm:$0xff] %v1072_v53  ;;  %v1076_v55 = vld [vmem:[%s23786_s29 + $0x1b50] sm:$0xff]  ;;  %v1078_v56 = vld [vmem:[%s23786_s29 + $0x1b80] sm:$0xff] }
  0xee   : > { %1075 = vst [vmem:[%s23791_s30 + $0xdb0] sm:$0xff] %v1074_v54  ;;  %1077 = vst [vmem:[%s23791_s30 + $0xdb8] sm:$0xff] %v1076_v55  ;;  %v1080_v57 = vld [vmem:[%s23786_s29 + $0x1b88] sm:$0xff]  ;;  %v1082_v58 = vld [vmem:[%s23786_s29 + $0x1b90] sm:$0xff] }
  0xef   : > { %1079 = vst [vmem:[%s23791_s30 + $0xdc0] sm:$0xff] %v1078_v56  ;;  %v1084_v59 = vld [vmem:[%s23786_s29 + $0x1b98] sm:$0xff]  ;;  %1081 = vst [vmem:[%s23791_s30 + $0xdc8] sm:$0xff] %v1080_v57  ;;  %v1086_v60 = vld [vmem:[%s23786_s29 + $0x1ba0] sm:$0xff] }
  0xf0   : > { %1083 = vst [vmem:[%s23791_s30 + $0xdd0] sm:$0xff] %v1082_v58  ;;  %1085 = vst [vmem:[%s23791_s30 + $0xdd8] sm:$0xff] %v1084_v59  ;;  %v1088_v61 = vld [vmem:[%s23786_s29 + $0x1bd0] sm:$0xff]  ;;  %v1090_v62 = vld [vmem:[%s23786_s29 + $0x1bd8] sm:$0xff] }
  0xf1   : > { %1087 = vst [vmem:[%s23791_s30 + $0xde0] sm:$0xff] %v1086_v60  ;;  %1089 = vst [vmem:[%s23791_s30 + $0xde8] sm:$0xff] %v1088_v61  ;;  %v1092_v63 = vld [vmem:[%s23786_s29 + $0x1be0] sm:$0xff]  ;;  %v1094_v0 = vld [vmem:[%s23786_s29 + $0x1be8] sm:$0xff] }
  0xf2   : > { %1091 = vst [vmem:[%s23791_s30 + $0xdf0] sm:$0xff] %v1090_v62  ;;  %v1096_v1 = vld [vmem:[%s23786_s29 + $0x1bf0] sm:$0xff]  ;;  %1093 = vst [vmem:[%s23791_s30 + $0xdf8] sm:$0xff] %v1092_v63  ;;  %v1098_v2 = vld [vmem:[%s23786_s29 + $0x1c20] sm:$0xff] }
  0xf3   : > { %1095 = vst [vmem:[%s23791_s30 + $0xe00] sm:$0xff] %v1094_v0  ;;  %1097 = vst [vmem:[%s23791_s30 + $0xe08] sm:$0xff] %v1096_v1  ;;  %v1100_v3 = vld [vmem:[%s23786_s29 + $0x1c28] sm:$0xff]  ;;  %v1102_v4 = vld [vmem:[%s23786_s29 + $0x1c30] sm:$0xff] }
  0xf4   : > { %1099 = vst [vmem:[%s23791_s30 + $0xe10] sm:$0xff] %v1098_v2  ;;  %1101 = vst [vmem:[%s23791_s30 + $0xe18] sm:$0xff] %v1100_v3  ;;  %v1104_v5 = vld [vmem:[%s23786_s29 + $0x1c38] sm:$0xff]  ;;  %v1106_v6 = vld [vmem:[%s23786_s29 + $0x1c40] sm:$0xff] }
  0xf5   : > { %1103 = vst [vmem:[%s23791_s30 + $0xe20] sm:$0xff] %v1102_v4  ;;  %v1108_v7 = vld [vmem:[%s23786_s29 + $0x1c70] sm:$0xff]  ;;  %1105 = vst [vmem:[%s23791_s30 + $0xe28] sm:$0xff] %v1104_v5  ;;  %v1110_v8 = vld [vmem:[%s23786_s29 + $0x1c78] sm:$0xff] }
  0xf6   : > { %1107 = vst [vmem:[%s23791_s30 + $0xe30] sm:$0xff] %v1106_v6  ;;  %1109 = vst [vmem:[%s23791_s30 + $0xe38] sm:$0xff] %v1108_v7  ;;  %v1112_v9 = vld [vmem:[%s23786_s29 + $0x1c80] sm:$0xff]  ;;  %v1114_v10 = vld [vmem:[%s23786_s29 + $0x1c88] sm:$0xff] }
  0xf7   : > { %1111 = vst [vmem:[%s23791_s30 + $0xe40] sm:$0xff] %v1110_v8  ;;  %1113 = vst [vmem:[%s23791_s30 + $0xe48] sm:$0xff] %v1112_v9  ;;  %v1116_v11 = vld [vmem:[%s23786_s29 + $0x1c90] sm:$0xff]  ;;  %v1118_v12 = vld [vmem:[%s23786_s29 + $0x1cc0] sm:$0xff] }
  0xf8   : > { %1115 = vst [vmem:[%s23791_s30 + $0xe50] sm:$0xff] %v1114_v10  ;;  %v1120_v13 = vld [vmem:[%s23786_s29 + $0x1cc8] sm:$0xff]  ;;  %1117 = vst [vmem:[%s23791_s30 + $0xe58] sm:$0xff] %v1116_v11  ;;  %v1122_v14 = vld [vmem:[%s23786_s29 + $0x1cd0] sm:$0xff] }
  0xf9   : > { %1119 = vst [vmem:[%s23791_s30 + $0xe60] sm:$0xff] %v1118_v12  ;;  %1121 = vst [vmem:[%s23791_s30 + $0xe68] sm:$0xff] %v1120_v13  ;;  %v1124_v15 = vld [vmem:[%s23786_s29 + $0x1cd8] sm:$0xff]  ;;  %v1126_v16 = vld [vmem:[%s23786_s29 + $0x1ce0] sm:$0xff] }
  0xfa   : > { %1123 = vst [vmem:[%s23791_s30 + $0xe70] sm:$0xff] %v1122_v14  ;;  %1125 = vst [vmem:[%s23791_s30 + $0xe78] sm:$0xff] %v1124_v15  ;;  %v1128_v17 = vld [vmem:[%s23786_s29 + $0x1d10] sm:$0xff]  ;;  %v1130_v18 = vld [vmem:[%s23786_s29 + $0x1d18] sm:$0xff] }
  0xfb   : > { %1127 = vst [vmem:[%s23791_s30 + $0xe80] sm:$0xff] %v1126_v16  ;;  %v1132_v19 = vld [vmem:[%s23786_s29 + $0x1d20] sm:$0xff]  ;;  %1129 = vst [vmem:[%s23791_s30 + $0xe88] sm:$0xff] %v1128_v17  ;;  %v1134_v20 = vld [vmem:[%s23786_s29 + $0x1d28] sm:$0xff] }
  0xfc   : > { %1131 = vst [vmem:[%s23791_s30 + $0xe90] sm:$0xff] %v1130_v18  ;;  %1133 = vst [vmem:[%s23791_s30 + $0xe98] sm:$0xff] %v1132_v19  ;;  %v1136_v21 = vld [vmem:[%s23786_s29 + $0x1d30] sm:$0xff]  ;;  %v1138_v22 = vld [vmem:[%s23786_s29 + $0x1d60] sm:$0xff] }
  0xfd   : > { %1135 = vst [vmem:[%s23791_s30 + $0xea0] sm:$0xff] %v1134_v20  ;;  %1137 = vst [vmem:[%s23791_s30 + $0xea8] sm:$0xff] %v1136_v21  ;;  %v1140_v23 = vld [vmem:[%s23786_s29 + $0x1d68] sm:$0xff]  ;;  %v1142_v24 = vld [vmem:[%s23786_s29 + $0x1d70] sm:$0xff] }
  0xfe   : > { %1139 = vst [vmem:[%s23791_s30 + $0xeb0] sm:$0xff] %v1138_v22  ;;  %v1144_v25 = vld [vmem:[%s23786_s29 + $0x1d78] sm:$0xff]  ;;  %1141 = vst [vmem:[%s23791_s30 + $0xeb8] sm:$0xff] %v1140_v23  ;;  %v1146_v26 = vld [vmem:[%s23786_s29 + $0x1d80] sm:$0xff] }
  0xff   : > { %1143 = vst [vmem:[%s23791_s30 + $0xec0] sm:$0xff] %v1142_v24  ;;  %1145 = vst [vmem:[%s23791_s30 + $0xec8] sm:$0xff] %v1144_v25  ;;  %v1148_v27 = vld [vmem:[%s23786_s29 + $0x1db0] sm:$0xff]  ;;  %v1150_v28 = vld [vmem:[%s23786_s29 + $0x1db8] sm:$0xff] }
 0x100   : > { %1147 = vst [vmem:[%s23791_s30 + $0xed0] sm:$0xff] %v1146_v26  ;;  %1149 = vst [vmem:[%s23791_s30 + $0xed8] sm:$0xff] %v1148_v27  ;;  %v1152_v29 = vld [vmem:[%s23786_s29 + $0x1dc0] sm:$0xff]  ;;  %v1154_v30 = vld [vmem:[%s23786_s29 + $0x1dc8] sm:$0xff] }
 0x101   : > { %1151 = vst [vmem:[%s23791_s30 + $0xee0] sm:$0xff] %v1150_v28  ;;  %v1156_v31 = vld [vmem:[%s23786_s29 + $0x1dd0] sm:$0xff]  ;;  %1153 = vst [vmem:[%s23791_s30 + $0xee8] sm:$0xff] %v1152_v29  ;;  %v1158_v32 = vld [vmem:[%s23786_s29 + $0x1e00] sm:$0xff] }
 0x102   : > { %1155 = vst [vmem:[%s23791_s30 + $0xef0] sm:$0xff] %v1154_v30  ;;  %1157 = vst [vmem:[%s23791_s30 + $0xef8] sm:$0xff] %v1156_v31  ;;  %v1160_v33 = vld [vmem:[%s23786_s29 + $0x1e08] sm:$0xff]  ;;  %v1162_v34 = vld [vmem:[%s23786_s29 + $0x1e10] sm:$0xff] }
 0x103   : > { %1159 = vst [vmem:[%s23791_s30 + $0xf00] sm:$0xff] %v1158_v32  ;;  %1161 = vst [vmem:[%s23791_s30 + $0xf08] sm:$0xff] %v1160_v33  ;;  %v1164_v35 = vld [vmem:[%s23786_s29 + $0x1e18] sm:$0xff]  ;;  %v1166_v36 = vld [vmem:[%s23786_s29 + $0x1e20] sm:$0xff] }
 0x104   : > { %1163 = vst [vmem:[%s23791_s30 + $0xf10] sm:$0xff] %v1162_v34  ;;  %v1168_v37 = vld [vmem:[%s23786_s29 + $0x1e50] sm:$0xff]  ;;  %1165 = vst [vmem:[%s23791_s30 + $0xf18] sm:$0xff] %v1164_v35  ;;  %v1170_v38 = vld [vmem:[%s23786_s29 + $0x1e58] sm:$0xff] }
 0x105   : > { %1167 = vst [vmem:[%s23791_s30 + $0xf20] sm:$0xff] %v1166_v36  ;;  %1169 = vst [vmem:[%s23791_s30 + $0xf28] sm:$0xff] %v1168_v37  ;;  %v1172_v39 = vld [vmem:[%s23786_s29 + $0x1e60] sm:$0xff]  ;;  %v1174_v40 = vld [vmem:[%s23786_s29 + $0x1e68] sm:$0xff] }
 0x106   : > { %1171 = vst [vmem:[%s23791_s30 + $0xf30] sm:$0xff] %v1170_v38  ;;  %1173 = vst [vmem:[%s23791_s30 + $0xf38] sm:$0xff] %v1172_v39  ;;  %v1176_v41 = vld [vmem:[%s23786_s29 + $0x1e70] sm:$0xff]  ;;  %v1178_v42 = vld [vmem:[%s23786_s29 + $0x1ea0] sm:$0xff] }
 0x107   : > { %1175 = vst [vmem:[%s23791_s30 + $0xf40] sm:$0xff] %v1174_v40  ;;  %v1180_v43 = vld [vmem:[%s23786_s29 + $0x1ea8] sm:$0xff]  ;;  %1177 = vst [vmem:[%s23791_s30 + $0xf48] sm:$0xff] %v1176_v41  ;;  %v1182_v44 = vld [vmem:[%s23786_s29 + $0x1eb0] sm:$0xff] }
 0x108   : > { %1179 = vst [vmem:[%s23791_s30 + $0xf50] sm:$0xff] %v1178_v42  ;;  %1181 = vst [vmem:[%s23791_s30 + $0xf58] sm:$0xff] %v1180_v43  ;;  %v1184_v45 = vld [vmem:[%s23786_s29 + $0x1eb8] sm:$0xff]  ;;  %v1186_v46 = vld [vmem:[%s23786_s29 + $0x1ec0] sm:$0xff] }
 0x109   : > { %1183 = vst [vmem:[%s23791_s30 + $0xf60] sm:$0xff] %v1182_v44  ;;  %1185 = vst [vmem:[%s23791_s30 + $0xf68] sm:$0xff] %v1184_v45  ;;  %v1188_v47 = vld [vmem:[%s23786_s29 + $0x1ef0] sm:$0xff]  ;;  %v1190_v48 = vld [vmem:[%s23786_s29 + $0x1ef8] sm:$0xff] }
 0x10a   : > { %1187 = vst [vmem:[%s23791_s30 + $0xf70] sm:$0xff] %v1186_v46  ;;  %v1192_v49 = vld [vmem:[%s23786_s29 + $0x1f00] sm:$0xff]  ;;  %1189 = vst [vmem:[%s23791_s30 + $0xf78] sm:$0xff] %v1188_v47  ;;  %v1194_v50 = vld [vmem:[%s23786_s29 + $0x1f08] sm:$0xff] }
 0x10b   : > { %1191 = vst [vmem:[%s23791_s30 + $0xf80] sm:$0xff] %v1190_v48  ;;  %1193 = vst [vmem:[%s23791_s30 + $0xf88] sm:$0xff] %v1192_v49  ;;  %v1196_v51 = vld [vmem:[%s23786_s29 + $0x1f10] sm:$0xff]  ;;  %v1198_v52 = vld [vmem:[%s23786_s29 + $0x1f40] sm:$0xff] }
 0x10c   : > { %1195 = vst [vmem:[%s23791_s30 + $0xf90] sm:$0xff] %v1194_v50  ;;  %1197 = vst [vmem:[%s23791_s30 + $0xf98] sm:$0xff] %v1196_v51  ;;  %v1200_v53 = vld [vmem:[%s23786_s29 + $0x1f48] sm:$0xff]  ;;  %v1202_v54 = vld [vmem:[%s23786_s29 + $0x1f50] sm:$0xff] }
 0x10d   : > { %1199 = vst [vmem:[%s23791_s30 + $0xfa0] sm:$0xff] %v1198_v52  ;;  %v1204_v55 = vld [vmem:[%s23786_s29 + $0x1f58] sm:$0xff]  ;;  %1201 = vst [vmem:[%s23791_s30 + $0xfa8] sm:$0xff] %v1200_v53  ;;  %v1206_v56 = vld [vmem:[%s23786_s29 + $0x1f60] sm:$0xff] }
 0x10e   : > { %1203 = vst [vmem:[%s23791_s30 + $0xfb0] sm:$0xff] %v1202_v54  ;;  %1205 = vst [vmem:[%s23791_s30 + $0xfb8] sm:$0xff] %v1204_v55  ;;  %v1208_v57 = vld [vmem:[%s23786_s29 + $0x1f90] sm:$0xff]  ;;  %v1210_v58 = vld [vmem:[%s23786_s29 + $0x1f98] sm:$0xff] }
 0x10f   : > { %1207 = vst [vmem:[%s23791_s30 + $0xfc0] sm:$0xff] %v1206_v56  ;;  %1209 = vst [vmem:[%s23791_s30 + $0xfc8] sm:$0xff] %v1208_v57  ;;  %v1212_v59 = vld [vmem:[%s23786_s29 + $0x1fa0] sm:$0xff]  ;;  %v1214_v60 = vld [vmem:[%s23786_s29 + $0x1fa8] sm:$0xff] }
 0x110   : > { %1211 = vst [vmem:[%s23791_s30 + $0xfd0] sm:$0xff] %v1210_v58  ;;  %v1216_v61 = vld [vmem:[%s23786_s29 + $0x1fb0] sm:$0xff]  ;;  %1213 = vst [vmem:[%s23791_s30 + $0xfd8] sm:$0xff] %v1212_v59  ;;  %v1218_v62 = vld [vmem:[%s23786_s29 + $0x1fe0] sm:$0xff] }
 0x111   : > { %1215 = vst [vmem:[%s23791_s30 + $0xfe0] sm:$0xff] %v1214_v60  ;;  %1217 = vst [vmem:[%s23791_s30 + $0xfe8] sm:$0xff] %v1216_v61  ;;  %v1220_v63 = vld [vmem:[%s23786_s29 + $0x1fe8] sm:$0xff]  ;;  %v1222_v0 = vld [vmem:[%s23786_s29 + $0x1ff0] sm:$0xff] }
 0x112   : > { %1219 = vst [vmem:[%s23791_s30 + $0xff0] sm:$0xff] %v1218_v62  ;;  %1221 = vst [vmem:[%s23791_s30 + $0xff8] sm:$0xff] %v1220_v63  ;;  %v1224_v1 = vld [vmem:[%s23786_s29 + $0x1ff8] sm:$0xff]  ;;  %v1226_v2 = vld [vmem:[%s23786_s29 + $0x2000] sm:$0xff] }
 0x113   : > { %1223 = vst [vmem:[%s23791_s30 + $0x1000] sm:$0xff] %v1222_v0  ;;  %v1228_v3 = vld [vmem:[%s23786_s29 + $0x2030] sm:$0xff]  ;;  %1225 = vst [vmem:[%s23791_s30 + $0x1008] sm:$0xff] %v1224_v1  ;;  %v1230_v4 = vld [vmem:[%s23786_s29 + $0x2038] sm:$0xff] }
 0x114   : > { %1227 = vst [vmem:[%s23791_s30 + $0x1010] sm:$0xff] %v1226_v2  ;;  %1229 = vst [vmem:[%s23791_s30 + $0x1018] sm:$0xff] %v1228_v3  ;;  %v1232_v5 = vld [vmem:[%s23786_s29 + $0x2040] sm:$0xff]  ;;  %v1234_v6 = vld [vmem:[%s23786_s29 + $0x2048] sm:$0xff] }
 0x115   : > { %1231 = vst [vmem:[%s23791_s30 + $0x1020] sm:$0xff] %v1230_v4  ;;  %1233 = vst [vmem:[%s23791_s30 + $0x1028] sm:$0xff] %v1232_v5  ;;  %v1236_v7 = vld [vmem:[%s23786_s29 + $0x2050] sm:$0xff]  ;;  %v1238_v8 = vld [vmem:[%s23786_s29 + $0x2080] sm:$0xff] }
 0x116   : > { %1235 = vst [vmem:[%s23791_s30 + $0x1030] sm:$0xff] %v1234_v6  ;;  %v1240_v9 = vld [vmem:[%s23786_s29 + $0x2088] sm:$0xff]  ;;  %1237 = vst [vmem:[%s23791_s30 + $0x1038] sm:$0xff] %v1236_v7  ;;  %v1242_v10 = vld [vmem:[%s23786_s29 + $0x2090] sm:$0xff] }
 0x117   : > { %1239 = vst [vmem:[%s23791_s30 + $0x1040] sm:$0xff] %v1238_v8  ;;  %1241 = vst [vmem:[%s23791_s30 + $0x1048] sm:$0xff] %v1240_v9  ;;  %v1244_v11 = vld [vmem:[%s23786_s29 + $0x2098] sm:$0xff]  ;;  %v1246_v12 = vld [vmem:[%s23786_s29 + $0x20a0] sm:$0xff] }
 0x118   : > { %1243 = vst [vmem:[%s23791_s30 + $0x1050] sm:$0xff] %v1242_v10  ;;  %1245 = vst [vmem:[%s23791_s30 + $0x1058] sm:$0xff] %v1244_v11  ;;  %v1248_v13 = vld [vmem:[%s23786_s29 + $0x20d0] sm:$0xff]  ;;  %v1250_v14 = vld [vmem:[%s23786_s29 + $0x20d8] sm:$0xff] }
 0x119   : > { %1247 = vst [vmem:[%s23791_s30 + $0x1060] sm:$0xff] %v1246_v12  ;;  %v1252_v15 = vld [vmem:[%s23786_s29 + $0x20e0] sm:$0xff]  ;;  %1249 = vst [vmem:[%s23791_s30 + $0x1068] sm:$0xff] %v1248_v13  ;;  %v1254_v16 = vld [vmem:[%s23786_s29 + $0x20e8] sm:$0xff] }
 0x11a   : > { %1251 = vst [vmem:[%s23791_s30 + $0x1070] sm:$0xff] %v1250_v14  ;;  %1253 = vst [vmem:[%s23791_s30 + $0x1078] sm:$0xff] %v1252_v15  ;;  %v1256_v17 = vld [vmem:[%s23786_s29 + $0x20f0] sm:$0xff]  ;;  %v1258_v18 = vld [vmem:[%s23786_s29 + $0x2120] sm:$0xff] }
 0x11b   : > { %1255 = vst [vmem:[%s23791_s30 + $0x1080] sm:$0xff] %v1254_v16  ;;  %1257 = vst [vmem:[%s23791_s30 + $0x1088] sm:$0xff] %v1256_v17  ;;  %v1260_v19 = vld [vmem:[%s23786_s29 + $0x2128] sm:$0xff]  ;;  %v1262_v20 = vld [vmem:[%s23786_s29 + $0x2130] sm:$0xff] }
 0x11c   : > { %1259 = vst [vmem:[%s23791_s30 + $0x1090] sm:$0xff] %v1258_v18  ;;  %v1264_v21 = vld [vmem:[%s23786_s29 + $0x2138] sm:$0xff]  ;;  %1261 = vst [vmem:[%s23791_s30 + $0x1098] sm:$0xff] %v1260_v19  ;;  %v1266_v22 = vld [vmem:[%s23786_s29 + $0x2140] sm:$0xff] }
 0x11d   : > { %1263 = vst [vmem:[%s23791_s30 + $0x10a0] sm:$0xff] %v1262_v20  ;;  %1265 = vst [vmem:[%s23791_s30 + $0x10a8] sm:$0xff] %v1264_v21  ;;  %v1268_v23 = vld [vmem:[%s23786_s29 + $0x2170] sm:$0xff]  ;;  %v1270_v24 = vld [vmem:[%s23786_s29 + $0x2178] sm:$0xff] }
 0x11e   : > { %1267 = vst [vmem:[%s23791_s30 + $0x10b0] sm:$0xff] %v1266_v22  ;;  %1269 = vst [vmem:[%s23791_s30 + $0x10b8] sm:$0xff] %v1268_v23  ;;  %v1272_v25 = vld [vmem:[%s23786_s29 + $0x2180] sm:$0xff]  ;;  %v1274_v26 = vld [vmem:[%s23786_s29 + $0x2188] sm:$0xff] }
 0x11f   : > { %1271 = vst [vmem:[%s23791_s30 + $0x10c0] sm:$0xff] %v1270_v24  ;;  %v1276_v27 = vld [vmem:[%s23786_s29 + $0x2190] sm:$0xff]  ;;  %1273 = vst [vmem:[%s23791_s30 + $0x10c8] sm:$0xff] %v1272_v25  ;;  %v1278_v28 = vld [vmem:[%s23786_s29 + $0x21c0] sm:$0xff] }
 0x120   : > { %1275 = vst [vmem:[%s23791_s30 + $0x10d0] sm:$0xff] %v1274_v26  ;;  %1277 = vst [vmem:[%s23791_s30 + $0x10d8] sm:$0xff] %v1276_v27  ;;  %v1280_v29 = vld [vmem:[%s23786_s29 + $0x21c8] sm:$0xff]  ;;  %v1282_v30 = vld [vmem:[%s23786_s29 + $0x21d0] sm:$0xff] }
 0x121   : > { %1279 = vst [vmem:[%s23791_s30 + $0x10e0] sm:$0xff] %v1278_v28  ;;  %1281 = vst [vmem:[%s23791_s30 + $0x10e8] sm:$0xff] %v1280_v29  ;;  %v1284_v31 = vld [vmem:[%s23786_s29 + $0x21d8] sm:$0xff]  ;;  %v1286_v32 = vld [vmem:[%s23786_s29 + $0x21e0] sm:$0xff] }
 0x122   : > { %1283 = vst [vmem:[%s23791_s30 + $0x10f0] sm:$0xff] %v1282_v30  ;;  %v1288_v33 = vld [vmem:[%s23786_s29 + $0x2210] sm:$0xff]  ;;  %1285 = vst [vmem:[%s23791_s30 + $0x10f8] sm:$0xff] %v1284_v31  ;;  %v1290_v34 = vld [vmem:[%s23786_s29 + $0x2218] sm:$0xff] }
 0x123   : > { %1287 = vst [vmem:[%s23791_s30 + $0x1100] sm:$0xff] %v1286_v32  ;;  %1289 = vst [vmem:[%s23791_s30 + $0x1108] sm:$0xff] %v1288_v33  ;;  %v1292_v35 = vld [vmem:[%s23786_s29 + $0x2220] sm:$0xff]  ;;  %v1294_v36 = vld [vmem:[%s23786_s29 + $0x2228] sm:$0xff] }
 0x124   : > { %1291 = vst [vmem:[%s23791_s30 + $0x1110] sm:$0xff] %v1290_v34  ;;  %1293 = vst [vmem:[%s23791_s30 + $0x1118] sm:$0xff] %v1292_v35  ;;  %v1296_v37 = vld [vmem:[%s23786_s29 + $0x2230] sm:$0xff]  ;;  %v1298_v38 = vld [vmem:[%s23786_s29 + $0x2260] sm:$0xff] }
 0x125   : > { %1295 = vst [vmem:[%s23791_s30 + $0x1120] sm:$0xff] %v1294_v36  ;;  %v1300_v39 = vld [vmem:[%s23786_s29 + $0x2268] sm:$0xff]  ;;  %1297 = vst [vmem:[%s23791_s30 + $0x1128] sm:$0xff] %v1296_v37  ;;  %v1302_v40 = vld [vmem:[%s23786_s29 + $0x2270] sm:$0xff] }
 0x126   : > { %1299 = vst [vmem:[%s23791_s30 + $0x1130] sm:$0xff] %v1298_v38  ;;  %1301 = vst [vmem:[%s23791_s30 + $0x1138] sm:$0xff] %v1300_v39  ;;  %v1304_v41 = vld [vmem:[%s23786_s29 + $0x2278] sm:$0xff]  ;;  %v1306_v42 = vld [vmem:[%s23786_s29 + $0x2280] sm:$0xff] }
 0x127   : > { %1303 = vst [vmem:[%s23791_s30 + $0x1140] sm:$0xff] %v1302_v40  ;;  %1305 = vst [vmem:[%s23791_s30 + $0x1148] sm:$0xff] %v1304_v41  ;;  %v1308_v43 = vld [vmem:[%s23786_s29 + $0x22b0] sm:$0xff]  ;;  %v1310_v44 = vld [vmem:[%s23786_s29 + $0x22b8] sm:$0xff] }
 0x128   : > { %1307 = vst [vmem:[%s23791_s30 + $0x1150] sm:$0xff] %v1306_v42  ;;  %v1312_v45 = vld [vmem:[%s23786_s29 + $0x22c0] sm:$0xff]  ;;  %1309 = vst [vmem:[%s23791_s30 + $0x1158] sm:$0xff] %v1308_v43  ;;  %v1314_v46 = vld [vmem:[%s23786_s29 + $0x22c8] sm:$0xff] }
 0x129   : > { %1311 = vst [vmem:[%s23791_s30 + $0x1160] sm:$0xff] %v1310_v44  ;;  %1313 = vst [vmem:[%s23791_s30 + $0x1168] sm:$0xff] %v1312_v45  ;;  %v1316_v47 = vld [vmem:[%s23786_s29 + $0x22d0] sm:$0xff]  ;;  %v1318_v48 = vld [vmem:[%s23786_s29 + $0x2300] sm:$0xff] }
 0x12a   : > { %1315 = vst [vmem:[%s23791_s30 + $0x1170] sm:$0xff] %v1314_v46  ;;  %1317 = vst [vmem:[%s23791_s30 + $0x1178] sm:$0xff] %v1316_v47  ;;  %v1320_v49 = vld [vmem:[%s23786_s29 + $0x2308] sm:$0xff]  ;;  %v1322_v50 = vld [vmem:[%s23786_s29 + $0x2310] sm:$0xff] }
 0x12b   : > { %1319 = vst [vmem:[%s23791_s30 + $0x1180] sm:$0xff] %v1318_v48  ;;  %v1324_v51 = vld [vmem:[%s23786_s29 + $0x2318] sm:$0xff]  ;;  %1321 = vst [vmem:[%s23791_s30 + $0x1188] sm:$0xff] %v1320_v49  ;;  %v1326_v52 = vld [vmem:[%s23786_s29 + $0x2320] sm:$0xff] }
 0x12c   : > { %1323 = vst [vmem:[%s23791_s30 + $0x1190] sm:$0xff] %v1322_v50  ;;  %1325 = vst [vmem:[%s23791_s30 + $0x1198] sm:$0xff] %v1324_v51  ;;  %v1328_v53 = vld [vmem:[%s23786_s29 + $0x2350] sm:$0xff]  ;;  %v1330_v54 = vld [vmem:[%s23786_s29 + $0x2358] sm:$0xff] }
 0x12d   : > { %1327 = vst [vmem:[%s23791_s30 + $0x11a0] sm:$0xff] %v1326_v52  ;;  %1329 = vst [vmem:[%s23791_s30 + $0x11a8] sm:$0xff] %v1328_v53  ;;  %v1332_v55 = vld [vmem:[%s23786_s29 + $0x2360] sm:$0xff]  ;;  %v1334_v56 = vld [vmem:[%s23786_s29 + $0x2368] sm:$0xff] }
 0x12e   : > { %1331 = vst [vmem:[%s23791_s30 + $0x11b0] sm:$0xff] %v1330_v54  ;;  %v1336_v57 = vld [vmem:[%s23786_s29 + $0x2370] sm:$0xff]  ;;  %1333 = vst [vmem:[%s23791_s30 + $0x11b8] sm:$0xff] %v1332_v55  ;;  %v1338_v58 = vld [vmem:[%s23786_s29 + $0x23a0] sm:$0xff] }
 0x12f   : > { %1335 = vst [vmem:[%s23791_s30 + $0x11c0] sm:$0xff] %v1334_v56  ;;  %1337 = vst [vmem:[%s23791_s30 + $0x11c8] sm:$0xff] %v1336_v57  ;;  %v1340_v59 = vld [vmem:[%s23786_s29 + $0x23a8] sm:$0xff]  ;;  %v1342_v60 = vld [vmem:[%s23786_s29 + $0x23b0] sm:$0xff] }
 0x130   : > { %1339 = vst [vmem:[%s23791_s30 + $0x11d0] sm:$0xff] %v1338_v58  ;;  %1341 = vst [vmem:[%s23791_s30 + $0x11d8] sm:$0xff] %v1340_v59  ;;  %v1344_v61 = vld [vmem:[%s23786_s29 + $0x23b8] sm:$0xff]  ;;  %v1346_v62 = vld [vmem:[%s23786_s29 + $0x23c0] sm:$0xff] }
 0x131   : > { %1343 = vst [vmem:[%s23791_s30 + $0x11e0] sm:$0xff] %v1342_v60  ;;  %v1348_v63 = vld [vmem:[%s23786_s29 + $0x23f0] sm:$0xff]  ;;  %1345 = vst [vmem:[%s23791_s30 + $0x11e8] sm:$0xff] %v1344_v61  ;;  %v1350_v0 = vld [vmem:[%s23786_s29 + $0x23f8] sm:$0xff] }
 0x132   : > { %1347 = vst [vmem:[%s23791_s30 + $0x11f0] sm:$0xff] %v1346_v62  ;;  %1349 = vst [vmem:[%s23791_s30 + $0x11f8] sm:$0xff] %v1348_v63  ;;  %v1352_v1 = vld [vmem:[%s23786_s29 + $0x2400] sm:$0xff]  ;;  %v1354_v2 = vld [vmem:[%s23786_s29 + $0x2408] sm:$0xff] }
 0x133   : > { %1351 = vst [vmem:[%s23791_s30 + $0x1200] sm:$0xff] %v1350_v0  ;;  %1353 = vst [vmem:[%s23791_s30 + $0x1208] sm:$0xff] %v1352_v1  ;;  %v1356_v3 = vld [vmem:[%s23786_s29 + $0x2410] sm:$0xff]  ;;  %v1358_v4 = vld [vmem:[%s23786_s29 + $0x2440] sm:$0xff] }
 0x134   : > { %1355 = vst [vmem:[%s23791_s30 + $0x1210] sm:$0xff] %v1354_v2  ;;  %v1360_v5 = vld [vmem:[%s23786_s29 + $0x2448] sm:$0xff]  ;;  %1357 = vst [vmem:[%s23791_s30 + $0x1218] sm:$0xff] %v1356_v3  ;;  %v1362_v6 = vld [vmem:[%s23786_s29 + $0x2450] sm:$0xff] }
 0x135   : > { %1359 = vst [vmem:[%s23791_s30 + $0x1220] sm:$0xff] %v1358_v4  ;;  %1361 = vst [vmem:[%s23791_s30 + $0x1228] sm:$0xff] %v1360_v5  ;;  %v1364_v7 = vld [vmem:[%s23786_s29 + $0x2458] sm:$0xff]  ;;  %v1366_v8 = vld [vmem:[%s23786_s29 + $0x2460] sm:$0xff] }
 0x136   : > { %1363 = vst [vmem:[%s23791_s30 + $0x1230] sm:$0xff] %v1362_v6  ;;  %1365 = vst [vmem:[%s23791_s30 + $0x1238] sm:$0xff] %v1364_v7  ;;  %v1368_v9 = vld [vmem:[%s23786_s29 + $0x2490] sm:$0xff]  ;;  %v1370_v10 = vld [vmem:[%s23786_s29 + $0x2498] sm:$0xff] }
 0x137   : > { %1367 = vst [vmem:[%s23791_s30 + $0x1240] sm:$0xff] %v1366_v8  ;;  %v1372_v11 = vld [vmem:[%s23786_s29 + $0x24a0] sm:$0xff]  ;;  %1369 = vst [vmem:[%s23791_s30 + $0x1248] sm:$0xff] %v1368_v9  ;;  %v1374_v12 = vld [vmem:[%s23786_s29 + $0x24a8] sm:$0xff] }
 0x138   : > { %1371 = vst [vmem:[%s23791_s30 + $0x1250] sm:$0xff] %v1370_v10  ;;  %1373 = vst [vmem:[%s23791_s30 + $0x1258] sm:$0xff] %v1372_v11  ;;  %v1376_v13 = vld [vmem:[%s23786_s29 + $0x24b0] sm:$0xff]  ;;  %v1378_v14 = vld [vmem:[%s23786_s29 + $0x24e0] sm:$0xff] }
 0x139   : > { %1375 = vst [vmem:[%s23791_s30 + $0x1260] sm:$0xff] %v1374_v12  ;;  %1377 = vst [vmem:[%s23791_s30 + $0x1268] sm:$0xff] %v1376_v13  ;;  %v1380_v15 = vld [vmem:[%s23786_s29 + $0x24e8] sm:$0xff]  ;;  %v1382_v16 = vld [vmem:[%s23786_s29 + $0x24f0] sm:$0xff] }
 0x13a   : > { %1379 = vst [vmem:[%s23791_s30 + $0x1270] sm:$0xff] %v1378_v14  ;;  %v1384_v17 = vld [vmem:[%s23786_s29 + $0x24f8] sm:$0xff]  ;;  %1381 = vst [vmem:[%s23791_s30 + $0x1278] sm:$0xff] %v1380_v15  ;;  %v1386_v18 = vld [vmem:[%s23786_s29 + $0x2500] sm:$0xff] }
 0x13b   : > { %1383 = vst [vmem:[%s23791_s30 + $0x1280] sm:$0xff] %v1382_v16  ;;  %1385 = vst [vmem:[%s23791_s30 + $0x1288] sm:$0xff] %v1384_v17  ;;  %v1388_v19 = vld [vmem:[%s23786_s29 + $0x2530] sm:$0xff]  ;;  %v1390_v20 = vld [vmem:[%s23786_s29 + $0x2538] sm:$0xff] }
 0x13c   : > { %1387 = vst [vmem:[%s23791_s30 + $0x1290] sm:$0xff] %v1386_v18  ;;  %1389 = vst [vmem:[%s23791_s30 + $0x1298] sm:$0xff] %v1388_v19  ;;  %v1392_v21 = vld [vmem:[%s23786_s29 + $0x2540] sm:$0xff]  ;;  %v1394_v22 = vld [vmem:[%s23786_s29 + $0x2548] sm:$0xff] }
 0x13d   : > { %1391 = vst [vmem:[%s23791_s30 + $0x12a0] sm:$0xff] %v1390_v20  ;;  %v1396_v23 = vld [vmem:[%s23786_s29 + $0x2550] sm:$0xff]  ;;  %1393 = vst [vmem:[%s23791_s30 + $0x12a8] sm:$0xff] %v1392_v21  ;;  %v1398_v24 = vld [vmem:[%s23786_s29 + $0x2580] sm:$0xff] }
 0x13e   : > { %1395 = vst [vmem:[%s23791_s30 + $0x12b0] sm:$0xff] %v1394_v22  ;;  %1397 = vst [vmem:[%s23791_s30 + $0x12b8] sm:$0xff] %v1396_v23  ;;  %v1400_v25 = vld [vmem:[%s23786_s29 + $0x2588] sm:$0xff]  ;;  %v1402_v26 = vld [vmem:[%s23786_s29 + $0x2590] sm:$0xff] }
 0x13f   : > { %1399 = vst [vmem:[%s23791_s30 + $0x12c0] sm:$0xff] %v1398_v24  ;;  %1401 = vst [vmem:[%s23791_s30 + $0x12c8] sm:$0xff] %v1400_v25  ;;  %v1404_v27 = vld [vmem:[%s23786_s29 + $0x2598] sm:$0xff]  ;;  %v1406_v28 = vld [vmem:[%s23786_s29 + $0x25a0] sm:$0xff] }
 0x140   : > { %1403 = vst [vmem:[%s23791_s30 + $0x12d0] sm:$0xff] %v1402_v26  ;;  %v1408_v29 = vld [vmem:[%s23786_s29 + $0x25d0] sm:$0xff]  ;;  %1405 = vst [vmem:[%s23791_s30 + $0x12d8] sm:$0xff] %v1404_v27  ;;  %v1410_v30 = vld [vmem:[%s23786_s29 + $0x25d8] sm:$0xff] }
 0x141   : > { %1407 = vst [vmem:[%s23791_s30 + $0x12e0] sm:$0xff] %v1406_v28  ;;  %1409 = vst [vmem:[%s23791_s30 + $0x12e8] sm:$0xff] %v1408_v29  ;;  %v1412_v31 = vld [vmem:[%s23786_s29 + $0x25e0] sm:$0xff]  ;;  %v1414_v32 = vld [vmem:[%s23786_s29 + $0x25e8] sm:$0xff] }
 0x142   : > { %1411 = vst [vmem:[%s23791_s30 + $0x12f0] sm:$0xff] %v1410_v30  ;;  %1413 = vst [vmem:[%s23791_s30 + $0x12f8] sm:$0xff] %v1412_v31  ;;  %v1416_v33 = vld [vmem:[%s23786_s29 + $0x25f0] sm:$0xff]  ;;  %v1418_v34 = vld [vmem:[%s23786_s29 + $0x2620] sm:$0xff] }
 0x143   : > { %1415 = vst [vmem:[%s23791_s30 + $0x1300] sm:$0xff] %v1414_v32  ;;  %v1420_v35 = vld [vmem:[%s23786_s29 + $0x2628] sm:$0xff]  ;;  %1417 = vst [vmem:[%s23791_s30 + $0x1308] sm:$0xff] %v1416_v33  ;;  %v1422_v36 = vld [vmem:[%s23786_s29 + $0x2630] sm:$0xff] }
 0x144   : > { %1419 = vst [vmem:[%s23791_s30 + $0x1310] sm:$0xff] %v1418_v34  ;;  %1421 = vst [vmem:[%s23791_s30 + $0x1318] sm:$0xff] %v1420_v35  ;;  %v1424_v37 = vld [vmem:[%s23786_s29 + $0x2638] sm:$0xff]  ;;  %v1426_v38 = vld [vmem:[%s23786_s29 + $0x2640] sm:$0xff] }
 0x145   : > { %1423 = vst [vmem:[%s23791_s30 + $0x1320] sm:$0xff] %v1422_v36  ;;  %1425 = vst [vmem:[%s23791_s30 + $0x1328] sm:$0xff] %v1424_v37  ;;  %v1428_v39 = vld [vmem:[%s23786_s29 + $0x2670] sm:$0xff]  ;;  %v1430_v40 = vld [vmem:[%s23786_s29 + $0x2678] sm:$0xff] }
 0x146   : > { %1427 = vst [vmem:[%s23791_s30 + $0x1330] sm:$0xff] %v1426_v38  ;;  %v1432_v41 = vld [vmem:[%s23786_s29 + $0x2680] sm:$0xff]  ;;  %1429 = vst [vmem:[%s23791_s30 + $0x1338] sm:$0xff] %v1428_v39  ;;  %v1434_v42 = vld [vmem:[%s23786_s29 + $0x2688] sm:$0xff] }
 0x147   : > { %1431 = vst [vmem:[%s23791_s30 + $0x1340] sm:$0xff] %v1430_v40  ;;  %1433 = vst [vmem:[%s23791_s30 + $0x1348] sm:$0xff] %v1432_v41  ;;  %v1436_v43 = vld [vmem:[%s23786_s29 + $0x2690] sm:$0xff]  ;;  %v1438_v44 = vld [vmem:[%s23786_s29 + $0x26c0] sm:$0xff] }
 0x148   : > { %1435 = vst [vmem:[%s23791_s30 + $0x1350] sm:$0xff] %v1434_v42  ;;  %1437 = vst [vmem:[%s23791_s30 + $0x1358] sm:$0xff] %v1436_v43  ;;  %v1440_v45 = vld [vmem:[%s23786_s29 + $0x26c8] sm:$0xff]  ;;  %v1442_v46 = vld [vmem:[%s23786_s29 + $0x26d0] sm:$0xff] }
 0x149   : > { %1439 = vst [vmem:[%s23791_s30 + $0x1360] sm:$0xff] %v1438_v44  ;;  %v1444_v47 = vld [vmem:[%s23786_s29 + $0x26d8] sm:$0xff]  ;;  %1441 = vst [vmem:[%s23791_s30 + $0x1368] sm:$0xff] %v1440_v45  ;;  %v1446_v48 = vld [vmem:[%s23786_s29 + $0x26e0] sm:$0xff] }
 0x14a   : > { %1443 = vst [vmem:[%s23791_s30 + $0x1370] sm:$0xff] %v1442_v46  ;;  %1445 = vst [vmem:[%s23791_s30 + $0x1378] sm:$0xff] %v1444_v47  ;;  %v1448_v49 = vld [vmem:[%s23786_s29 + $0x2710] sm:$0xff]  ;;  %v1450_v50 = vld [vmem:[%s23786_s29 + $0x2718] sm:$0xff] }
 0x14b   : > { %1447 = vst [vmem:[%s23791_s30 + $0x1380] sm:$0xff] %v1446_v48  ;;  %1449 = vst [vmem:[%s23791_s30 + $0x1388] sm:$0xff] %v1448_v49  ;;  %v1452_v51 = vld [vmem:[%s23786_s29 + $0x2720] sm:$0xff]  ;;  %v1454_v52 = vld [vmem:[%s23786_s29 + $0x2728] sm:$0xff] }
 0x14c   : > { %1451 = vst [vmem:[%s23791_s30 + $0x1390] sm:$0xff] %v1450_v50  ;;  %v1456_v53 = vld [vmem:[%s23786_s29 + $0x2730] sm:$0xff]  ;;  %1453 = vst [vmem:[%s23791_s30 + $0x1398] sm:$0xff] %v1452_v51  ;;  %v1458_v54 = vld [vmem:[%s23786_s29 + $0x2760] sm:$0xff] }
 0x14d   : > { %1455 = vst [vmem:[%s23791_s30 + $0x13a0] sm:$0xff] %v1454_v52  ;;  %1457 = vst [vmem:[%s23791_s30 + $0x13a8] sm:$0xff] %v1456_v53  ;;  %v1460_v55 = vld [vmem:[%s23786_s29 + $0x2768] sm:$0xff]  ;;  %v1462_v56 = vld [vmem:[%s23786_s29 + $0x2770] sm:$0xff] }
 0x14e   : > { %1459 = vst [vmem:[%s23791_s30 + $0x13b0] sm:$0xff] %v1458_v54  ;;  %1461 = vst [vmem:[%s23791_s30 + $0x13b8] sm:$0xff] %v1460_v55  ;;  %v1464_v57 = vld [vmem:[%s23786_s29 + $0x2778] sm:$0xff]  ;;  %v1466_v58 = vld [vmem:[%s23786_s29 + $0x2780] sm:$0xff] }
 0x14f   : > { %1463 = vst [vmem:[%s23791_s30 + $0x13c0] sm:$0xff] %v1462_v56  ;;  %v1468_v59 = vld [vmem:[%s23786_s29 + $0x27b0] sm:$0xff]  ;;  %1465 = vst [vmem:[%s23791_s30 + $0x13c8] sm:$0xff] %v1464_v57  ;;  %v1470_v60 = vld [vmem:[%s23786_s29 + $0x27b8] sm:$0xff] }
 0x150   : > { %1467 = vst [vmem:[%s23791_s30 + $0x13d0] sm:$0xff] %v1466_v58  ;;  %1469 = vst [vmem:[%s23791_s30 + $0x13d8] sm:$0xff] %v1468_v59  ;;  %v1472_v61 = vld [vmem:[%s23786_s29 + $0x27c0] sm:$0xff]  ;;  %v1474_v62 = vld [vmem:[%s23786_s29 + $0x27c8] sm:$0xff] }
 0x151   : > { %1471 = vst [vmem:[%s23791_s30 + $0x13e0] sm:$0xff] %v1470_v60  ;;  %1473 = vst [vmem:[%s23791_s30 + $0x13e8] sm:$0xff] %v1472_v61  ;;  %v1476_v63 = vld [vmem:[%s23786_s29 + $0x27d0] sm:$0xff] }
 0x152   : > { %1475 = vst [vmem:[%s23791_s30 + $0x13f0] sm:$0xff] %v1474_v62  ;;  %1477 = vst [vmem:[%s23791_s30 + $0x13f8] sm:$0xff] %v1476_v63 }
 0x153 PF: > { %p17936_p6 = scmp.ge.s32.totalorder %s23714_s19, 1  ;;  %p1504_p7 = scmp.lt.s32.totalorder %s23714_s19, 3 }
 0x155   : > { %p1505_p8 = pnand %p17936_p6, %p1504_p7 }
 0x156   : > { %s1511_s5 = sand.u32 (!%p1505_p8), 1, %s23698_s15   ;;  %v1594_v0 = vlaneseq (!%p1505_p8)  ;;  %v23716_v1 = vmov (!%p1505_p8), 1983009808   ;;  %v25078_v4 = vld [vmem:[%s27601_s0] sm:$0xff] (!%p1505_p8)  ;;  %s1558_s12 = smul.u32 (!%p1505_p8), 160, %s23706_s17  ;;  %vm1580_vm0 = vcmask (!%p1505_p8), 1041408  }
 0x157   : > { %1508 = sbr.rel (%p1505_p8) target bundleno = 2882 (0xb42), region = 55  ;;  %v1592_v2 = vunpack.c.l.s4 (!%p1505_p8), %v23716_v1  ;;  %p1566_p11 = scmp.lt.s32.totalorder (!%p1505_p8), %s23706_s17, 1  ;;  %vm1581_vm1 = vcmask (!%p1505_p8), 1043458   ;;  %vm1583_vm2 = vcmask (!%p1505_p8), 783364  }
 0x158   : > { %s20427_s6 = smul.u32 (!%p1505_p8), 5120, %s1511_s5  ;;  %v25073_v3 = vshrl.u32 (!%p1505_p8), %v1594_v0, 7  ;;  %p1559_p9 = scmp.lt.s32.totalorder (!%p1505_p8), %s1558_s12, 319  ;;  %vm1582_vm3 = vmor (!%p1505_p8), %vm1581_vm1, %vm1580_vm0 }
 0x159   : > { %v1593_v5 = vunpack.c.0.s8 (!%p1505_p8), %v1592_v2  ;;  %s1551_s22 = smul.u32 (!%p1505_p8), 10, %s23706_s17  ;;  %vm27573_vm4 = vmor (!%p1505_p8), %vm1583_vm2, %vm1582_vm3 }
 0x15a   : > { %s25080_s9 = scalar_lea.vmem (!%p1505_p8), [#allocation3], %s20427_s6 }
 0x15b   : > { %v20472_v6 = vld [vmem:[%s25080_s9 + $0x4] ss:$40 sps:$4 sm:$0xff] (!%p1505_p8)   ;;  %v25085_v8 = vsub.s32 (!%p1505_p8), %v1593_v5, %v25073_v3  ;;  %v20476_v9 = vld [vmem:[%s25080_s9] ss:$40 sps:$4 sm:$0xff] (!%p1505_p8)   ;;  %v20478_v11 = vld [vmem:[%s25080_s9 + $0x54] ss:$40 sps:$4 sm:$0xff] (!%p1505_p8)  }
 0x15c   : > { %v20474_v7 = vld [vmem:[%s25080_s9 + $0xc] ss:$40 sps:$4 sm:$0xff] (!%p1505_p8)   ;;  %5534 = vmatprep.subr.bf16.mxu0 (!%p1505_p8), %v20472_v6  ;;  %v20477_v10 = vld [vmem:[%s25080_s9 + $0x8] ss:$40 sps:$4 sm:$0xff] (!%p1505_p8)   ;;  %v20480_v13 = vld [vmem:[%s25080_s9 + $0x5c] ss:$40 sps:$4 sm:$0xff] (!%p1505_p8)   ;;  %v1590_v6 = vcombine.high (!%p1505_p8), %v25078_v4, %v25078_v4 }
 0x15d   : > { %5698 = vmatprep.subr.bf16.mxu1 (!%p1505_p8), %v20474_v7  ;;  %v25092_v12 = vrot.slane (!%p1505_p8), %v25078_v4, %v25085_v8  ;;  %5535 = vmatpush1.bf16.msra.mxu0 (!%p1505_p8), %v20476_v9  ;;  %v20482_v14 = vld [vmem:[%s25080_s9 + $0x50] ss:$40 sps:$4 sm:$0xff] (!%p1505_p8)   ;;  %v20484_v17 = vld [vmem:[%s25080_s9 + $0xa4] ss:$40 sps:$4 sm:$0xff] (!%p1505_p8)   ;;  %v20488_v19 = vld [vmem:[%s25080_s9 + $0xa0] ss:$40 sps:$4 sm:$0xff] (!%p1505_p8)  }
 0x15e   : > { %5699 = vmatpush1.bf16.msra.mxu1 %v20477_v10  ;;  %5536 = vmatprep.subr.bf16.mxu0 %v20478_v11  ;;  %v20483_v15 = vld [vmem:[%s25080_s9 + $0x58] ss:$40 sps:$4 sm:$0xff]   ;;  %v20486_v18 = vld [vmem:[%s25080_s9 + $0xac] ss:$40 sps:$4 sm:$0xff]   ;;  %v20489_v20 = vld [vmem:[%s25080_s9 + $0xa8] ss:$40 sps:$4 sm:$0xff]  }
 0x15f   : > { %v1605_v16 = vcombine.high %v25092_v12, %v25092_v12  ;;  %5700 = vmatprep.subr.bf16.mxu1 %v20480_v13  ;;  %v20490_v22 = vld [vmem:[%s25080_s9 + $0xf4] ss:$40 sps:$4 sm:$0xff]   ;;  %v20494_v24 = vld [vmem:[%s25080_s9 + $0xf0] ss:$40 sps:$4 sm:$0xff]   ;;  %v20496_v26 = vld [vmem:[%s25080_s9 + $0x144] ss:$40 sps:$4 sm:$0xff]   ;;  %v25160_v13 = vrot.slane %v1590_v6, %v25085_v8 }
 0x160   : > { %v20492_v23 = vld [vmem:[%s25080_s9 + $0xfc] ss:$40 sps:$4 sm:$0xff]   ;;  %v20495_v25 = vld [vmem:[%s25080_s9 + $0xf8] ss:$40 sps:$4 sm:$0xff]   ;;  %v20498_v27 = vld [vmem:[%s25080_s9 + $0x14c] ss:$40 sps:$4 sm:$0xff]  }
 0x161   : > { %v25103_v21 = vpack.c.bf16 %v1605_v16, %v1605_v16  ;;  %5537 = vmatpush1.bf16.msra.mxu0 %v20482_v14  ;;  %v20500_v28 = vld [vmem:[%s25080_s9 + $0x140] ss:$40 sps:$4 sm:$0xff]   ;;  %v20502_v30 = vld [vmem:[%s25080_s9 + $0x194] ss:$40 sps:$4 sm:$0xff]   ;;  %v20506_v32 = vld [vmem:[%s25080_s9 + $0x190] ss:$40 sps:$4 sm:$0xff]  }
 0x162   : > { %5701 = vmatpush1.bf16.msra.mxu1 %v20483_v15  ;;  %5538 = vmatprep.subr.bf16.mxu0 %v20484_v17  ;;  %v20501_v29 = vld [vmem:[%s25080_s9 + $0x148] ss:$40 sps:$4 sm:$0xff]   ;;  %v20504_v31 = vld [vmem:[%s25080_s9 + $0x19c] ss:$40 sps:$4 sm:$0xff]   ;;  %v20507_v33 = vld [vmem:[%s25080_s9 + $0x198] ss:$40 sps:$4 sm:$0xff]   ;;  %v1606_v17 = vcombine.high %v25160_v13, %v25160_v13 }
 0x163   : > { %5702 = vmatprep.subr.bf16.mxu1 %v20486_v18  ;;  %5566 = vmatprep.mubr.bf16.mxu0 %v25103_v21  ;;  %v20508_v34 = vld [vmem:[%s25080_s9 + $0x1e4] ss:$40 sps:$4 sm:$0xff]   ;;  %v20512_v36 = vld [vmem:[%s25080_s9 + $0x1e0] ss:$40 sps:$4 sm:$0xff]   ;;  %v20514_v38 = vld [vmem:[%s25080_s9 + $0x234] ss:$40 sps:$4 sm:$0xff]  }
 0x164   : > { %5730 = vmatprep.mubr.bf16.mxu1 %v25103_v21  ;;  %v20510_v35 = vld [vmem:[%s25080_s9 + $0x1ec] ss:$40 sps:$4 sm:$0xff]   ;;  %v20513_v37 = vld [vmem:[%s25080_s9 + $0x1e8] ss:$40 sps:$4 sm:$0xff]   ;;  %v20516_v39 = vld [vmem:[%s25080_s9 + $0x23c] ss:$40 sps:$4 sm:$0xff]  }
 0x165   : > { %5539 = vmatpush1.bf16.msra.mxu0 %v20488_v19  ;;  %v20518_v40 = vld [vmem:[%s25080_s9 + $0x230] ss:$40 sps:$4 sm:$0xff]   ;;  %v20520_v42 = vld [vmem:[%s25080_s9 + $0x284] ss:$40 sps:$4 sm:$0xff]   ;;  %v20524_v44 = vld [vmem:[%s25080_s9 + $0x280] ss:$40 sps:$4 sm:$0xff]  }
 0x166   : > { %5703 = vmatpush1.bf16.msra.mxu1 %v20489_v20  ;;  %5540 = vmatprep.subr.bf16.mxu0 %v20490_v22  ;;  %v20519_v41 = vld [vmem:[%s25080_s9 + $0x238] ss:$40 sps:$4 sm:$0xff]   ;;  %v20522_v43 = vld [vmem:[%s25080_s9 + $0x28c] ss:$40 sps:$4 sm:$0xff]   ;;  %v20525_v45 = vld [vmem:[%s25080_s9 + $0x288] ss:$40 sps:$4 sm:$0xff]   ;;  %v25172_v20 = vpack.c.bf16 %v25092_v12, %v25092_v12 }
 0x167   : > { %5704 = vmatprep.subr.bf16.mxu1 %v20492_v23  ;;  %v20526_v46 = vld [vmem:[%s25080_s9 + $0x2d4] ss:$40 sps:$4 sm:$0xff]   ;;  %v20530_v48 = vld [vmem:[%s25080_s9 + $0x2d0] ss:$40 sps:$4 sm:$0xff]   ;;  %v20532_v50 = vld [vmem:[%s25080_s9 + $0x324] ss:$40 sps:$4 sm:$0xff]  }
 0x168   : > { %v20528_v47 = vld [vmem:[%s25080_s9 + $0x2dc] ss:$40 sps:$4 sm:$0xff]   ;;  %v20531_v49 = vld [vmem:[%s25080_s9 + $0x2d8] ss:$40 sps:$4 sm:$0xff]   ;;  %v20534_v51 = vld [vmem:[%s25080_s9 + $0x32c] ss:$40 sps:$4 sm:$0xff]  }
 0x169   : > { %5541 = vmatpush1.bf16.msra.mxu0 %v20494_v24  ;;  %v20536_v52 = vld [vmem:[%s25080_s9 + $0x320] ss:$40 sps:$4 sm:$0xff]   ;;  %v20538_v54 = vld [vmem:[%s25080_s9 + $0x374] ss:$40 sps:$4 sm:$0xff]   ;;  %v20542_v56 = vld [vmem:[%s25080_s9 + $0x370] ss:$40 sps:$4 sm:$0xff]   ;;  %v25176_v24 = vpack.c.bf16 %v1606_v17, %v1606_v17 }
 0x16a   : > { %5705 = vmatpush1.bf16.msra.mxu1 %v20495_v25  ;;  %5542 = vmatprep.subr.bf16.mxu0 %v20496_v26  ;;  %v20537_v53 = vld [vmem:[%s25080_s9 + $0x328] ss:$40 sps:$4 sm:$0xff]   ;;  %v20540_v55 = vld [vmem:[%s25080_s9 + $0x37c] ss:$40 sps:$4 sm:$0xff]   ;;  %v20543_v57 = vld [vmem:[%s25080_s9 + $0x378] ss:$40 sps:$4 sm:$0xff]  }
 0x16b   : > { %5706 = vmatprep.subr.bf16.mxu1 %v20498_v27  ;;  %v20544_v58 = vld [vmem:[%s25080_s9 + $0x3c4] ss:$40 sps:$4 sm:$0xff]   ;;  %v20548_v60 = vld [vmem:[%s25080_s9 + $0x3c0] ss:$40 sps:$4 sm:$0xff]   ;;  %v20550_v62 = vld [vmem:[%s25080_s9 + $0x414] ss:$40 sps:$4 sm:$0xff]  }
 0x16c   : > { %v20546_v59 = vld [vmem:[%s25080_s9 + $0x3cc] ss:$40 sps:$4 sm:$0xff]   ;;  %v20549_v61 = vld [vmem:[%s25080_s9 + $0x3c8] ss:$40 sps:$4 sm:$0xff]   ;;  %v20552_v63 = vld [vmem:[%s25080_s9 + $0x41c] ss:$40 sps:$4 sm:$0xff]  }
 0x16d   : > { %5543 = vmatpush1.bf16.msra.mxu0 %v20500_v28  ;;  %v20554_v0 = vld [vmem:[%s25080_s9 + $0x410] ss:$40 sps:$4 sm:$0xff]   ;;  %v20556_v2 = vld [vmem:[%s25080_s9 + $0x464] ss:$40 sps:$4 sm:$0xff]   ;;  %v20560_v7 = vld [vmem:[%s25080_s9 + $0x460] ss:$40 sps:$4 sm:$0xff]  }
 0x16e   : > { %5707 = vmatpush1.bf16.msra.mxu1 %v20501_v29  ;;  %5544 = vmatprep.subr.bf16.mxu0 %v20502_v30  ;;  %v20555_v1 = vld [vmem:[%s25080_s9 + $0x418] ss:$40 sps:$4 sm:$0xff]   ;;  %v20558_v5 = vld [vmem:[%s25080_s9 + $0x46c] ss:$40 sps:$4 sm:$0xff]   ;;  %v20561_v9 = vld [vmem:[%s25080_s9 + $0x468] ss:$40 sps:$4 sm:$0xff]  }
 0x16f   : > { %5708 = vmatprep.subr.bf16.mxu1 %v20504_v31  ;;  %v20562_v10 = vld [vmem:[%s25080_s9 + $0x4b4] ss:$40 sps:$4 sm:$0xff]   ;;  %v20566_v14 = vld [vmem:[%s25080_s9 + $0x4b0] ss:$40 sps:$4 sm:$0xff]   ;;  %v20570_v4 = vld [vmem:[%s25080_s9 + $0x504] ss:$40 sps:$4 sm:$0xff]  }
 0x170   : > { %v20564_v11 = vld [vmem:[%s25080_s9 + $0x4bc] ss:$40 sps:$4 sm:$0xff]   ;;  %v20567_v15 = vld [vmem:[%s25080_s9 + $0x4b8] ss:$40 sps:$4 sm:$0xff]   ;;  %v20573_v16 = vld [vmem:[%s25080_s9 + $0x50c] ss:$40 sps:$4 sm:$0xff]  }
 0x171   : > { %5545 = vmatpush1.bf16.msra.mxu0 %v20506_v32  ;;  %v20568_v18 = vld [vmem:[%s25080_s9 + $0x500] ss:$40 sps:$4 sm:$0xff]   ;;  %v20576_v22 = vld [vmem:[%s25080_s9 + $0x554] ss:$40 sps:$4 sm:$0xff]   ;;  %v20574_v25 = vld [vmem:[%s25080_s9 + $0x550] ss:$40 sps:$4 sm:$0xff]  }
 0x172   : > { %5709 = vmatpush1.bf16.msra.mxu1 %v20507_v33  ;;  %5546 = vmatprep.subr.bf16.mxu0 %v20508_v34  ;;  %v20571_v19 = vld [vmem:[%s25080_s9 + $0x508] ss:$40 sps:$4 sm:$0xff]   ;;  %v20579_v23 = vld [vmem:[%s25080_s9 + $0x55c] ss:$40 sps:$4 sm:$0xff]   ;;  %v20577_v26 = vld [vmem:[%s25080_s9 + $0x558] ss:$40 sps:$4 sm:$0xff]  }
 0x173   : > { %5710 = vmatprep.subr.bf16.mxu1 %v20510_v35  ;;  %v20582_v12 = vld [vmem:[%s25080_s9 + $0x5a4] ss:$40 sps:$4 sm:$0xff]   ;;  %v20580_v28 = vld [vmem:[%s25080_s9 + $0x5a0] ss:$40 sps:$4 sm:$0xff]   ;;  %v20588_v30 = vld [vmem:[%s25080_s9 + $0x5f4] ss:$40 sps:$4 sm:$0xff]  }
 0x174   : > { %v20585_v27 = vld [vmem:[%s25080_s9 + $0x5ac] ss:$40 sps:$4 sm:$0xff]   ;;  %v20583_v29 = vld [vmem:[%s25080_s9 + $0x5a8] ss:$40 sps:$4 sm:$0xff]   ;;  %v20591_v31 = vld [vmem:[%s25080_s9 + $0x5fc] ss:$40 sps:$4 sm:$0xff]  }
 0x175   : > { %5547 = vmatpush1.bf16.msra.mxu0 %v20512_v36  ;;  %v20586_v32 = vld [vmem:[%s25080_s9 + $0x5f0] ss:$40 sps:$4 sm:$0xff]   ;;  %v20594_v34 = vld [vmem:[%s25080_s9 + $0x644] ss:$40 sps:$4 sm:$0xff]   ;;  %v20592_v36 = vld [vmem:[%s25080_s9 + $0x640] ss:$40 sps:$4 sm:$0xff]  }
 0x176   : > { %5711 = vmatpush1.bf16.msra.mxu1 %v20513_v37  ;;  %5548 = vmatprep.subr.bf16.mxu0 %v20514_v38  ;;  %v20589_v33 = vld [vmem:[%s25080_s9 + $0x5f8] ss:$40 sps:$4 sm:$0xff]   ;;  %v20597_v35 = vld [vmem:[%s25080_s9 + $0x64c] ss:$40 sps:$4 sm:$0xff]   ;;  %v20595_v37 = vld [vmem:[%s25080_s9 + $0x648] ss:$40 sps:$4 sm:$0xff]  }
 0x177   : > { %5712 = vmatprep.subr.bf16.mxu1 %v20516_v39  ;;  %v20600_v38 = vld [vmem:[%s25080_s9 + $0x694] ss:$40 sps:$4 sm:$0xff]   ;;  %v20640_v6 = vld [vmem:[%s25080_s9 + $0x8c0] ss:$40 sps:$4 sm:$0xff]   ;;  %s27615_s12 = smov (!%p1559_p9, %s1558_s12), 319  ;;  %p1552_p10 = scmp.lt.s32.totalorder %s1551_s22, 19 }
 0x178   : > { %v20603_v39 = vld [vmem:[%s25080_s9 + $0x69c] ss:$40 sps:$4 sm:$0xff]   ;;  %v20655_v17 = vld [vmem:[%s25080_s9 + $0x968] ss:$40 sps:$4 sm:$0xff]   ;;  %s20428_s13 = smul.u32 76, %s27615_s12  ;;  %s27619_s17 = smov (!%p1566_p11, %s23706_s17), 1 }
 0x179   : > { %5549 = vmatpush1.bf16.msra.mxu0 %v20518_v40  ;;  %v20598_v40 = vld [vmem:[%s25080_s9 + $0x690] ss:$40 sps:$4 sm:$0xff]   ;;  %s27617_s22 = smov (!%p1552_p10, %s1551_s22), 19  ;;  %s20429_s27 = smul.u32 38, %s27619_s17 }
 0x17a   : > { %5713 = vmatpush1.bf16.msra.mxu1 %v20519_v41  ;;  %5550 = vmatprep.subr.bf16.mxu0 %v20520_v42  ;;  %v20601_v41 = vld [vmem:[%s25080_s9 + $0x698] ss:$40 sps:$4 sm:$0xff]   ;;  %v20606_v42 = vld [vmem:[%s25080_s9 + $0x6e4] ss:$40 sps:$4 sm:$0xff]   ;;  %s25555_s21 = scalar_lea.vmem %s27604_s3, %s20428_s13  ;;  %s25686_s26 = scalar_lea.vmem %s27603_s2, %s27617_s22 }
 0x17b   : > { %5714 = vmatprep.subr.bf16.mxu1 %v20522_v43  ;;  %v20609_v43 = vld [vmem:[%s25080_s9 + $0x6ec] ss:$40 sps:$4 sm:$0xff]   ;;  %s26556_s30 = scalar_lea.vmem %s27605_s4, %s20429_s27 }
 0x17d   : > { %5551 = vmatpush1.bf16.msra.mxu0 %v20524_v44  ;;  %v20604_v44 = vld [vmem:[%s25080_s9 + $0x6e0] ss:$40 sps:$4 sm:$0xff]  }
 0x17e   : > { %5715 = vmatpush1.bf16.msra.mxu1 %v20525_v45  ;;  %5552 = vmatprep.subr.bf16.mxu0 %v20526_v46  ;;  %v20607_v45 = vld [vmem:[%s25080_s9 + $0x6e8] ss:$40 sps:$4 sm:$0xff]   ;;  %v20612_v46 = vld [vmem:[%s25080_s9 + $0x734] ss:$40 sps:$4 sm:$0xff]  }
 0x17f   : > { %5716 = vmatprep.subr.bf16.mxu1 %v20528_v47  ;;  %v20615_v47 = vld [vmem:[%s25080_s9 + $0x73c] ss:$40 sps:$4 sm:$0xff]  }
 0x181   : > { %5553 = vmatpush1.bf16.msra.mxu0 %v20530_v48  ;;  %v20610_v48 = vld [vmem:[%s25080_s9 + $0x730] ss:$40 sps:$4 sm:$0xff]  }
 0x182   : > { %5717 = vmatpush1.bf16.msra.mxu1 %v20531_v49  ;;  %5554 = vmatprep.subr.bf16.mxu0 %v20532_v50  ;;  %v20613_v49 = vld [vmem:[%s25080_s9 + $0x738] ss:$40 sps:$4 sm:$0xff]   ;;  %v20618_v50 = vld [vmem:[%s25080_s9 + $0x784] ss:$40 sps:$4 sm:$0xff]  }
 0x183   : > { %5718 = vmatprep.subr.bf16.mxu1 %v20534_v51  ;;  %v20621_v51 = vld [vmem:[%s25080_s9 + $0x78c] ss:$40 sps:$4 sm:$0xff]  }
 0x185   : > { %5555 = vmatpush1.bf16.msra.mxu0 %v20536_v52  ;;  %v20616_v52 = vld [vmem:[%s25080_s9 + $0x780] ss:$40 sps:$4 sm:$0xff]  }
 0x186   : > { %5719 = vmatpush1.bf16.msra.mxu1 %v20537_v53  ;;  %5556 = vmatprep.subr.bf16.mxu0 %v20538_v54  ;;  %v20619_v53 = vld [vmem:[%s25080_s9 + $0x788] ss:$40 sps:$4 sm:$0xff]   ;;  %v20624_v54 = vld [vmem:[%s25080_s9 + $0x7d4] ss:$40 sps:$4 sm:$0xff]  }
 0x187   : > { %5720 = vmatprep.subr.bf16.mxu1 %v20540_v55  ;;  %v20627_v55 = vld [vmem:[%s25080_s9 + $0x7dc] ss:$40 sps:$4 sm:$0xff]  }
 0x189   : > { %5557 = vmatpush1.bf16.msra.mxu0 %v20542_v56  ;;  %v20622_v56 = vld [vmem:[%s25080_s9 + $0x7d0] ss:$40 sps:$4 sm:$0xff]  }
 0x18a   : > { %5721 = vmatpush1.bf16.msra.mxu1 %v20543_v57  ;;  %5558 = vmatprep.subr.bf16.mxu0 %v20544_v58  ;;  %v20625_v57 = vld [vmem:[%s25080_s9 + $0x7d8] ss:$40 sps:$4 sm:$0xff]   ;;  %v20630_v58 = vld [vmem:[%s25080_s9 + $0x824] ss:$40 sps:$4 sm:$0xff]  }
 0x18b   : > { %5722 = vmatprep.subr.bf16.mxu1 %v20546_v59  ;;  %v20633_v59 = vld [vmem:[%s25080_s9 + $0x82c] ss:$40 sps:$4 sm:$0xff]  }
 0x18d   : > { %5559 = vmatpush1.bf16.msra.mxu0 %v20548_v60  ;;  %v20628_v60 = vld [vmem:[%s25080_s9 + $0x820] ss:$40 sps:$4 sm:$0xff]  }
 0x18e   : > { %5723 = vmatpush1.bf16.msra.mxu1 %v20549_v61  ;;  %5560 = vmatprep.subr.bf16.mxu0 %v20550_v62  ;;  %v20631_v61 = vld [vmem:[%s25080_s9 + $0x828] ss:$40 sps:$4 sm:$0xff]   ;;  %v20636_v62 = vld [vmem:[%s25080_s9 + $0x874] ss:$40 sps:$4 sm:$0xff]  }
 0x18f   : > { %5724 = vmatprep.subr.bf16.mxu1 %v20552_v63  ;;  %v20639_v63 = vld [vmem:[%s25080_s9 + $0x87c] ss:$40 sps:$4 sm:$0xff]  }
 0x191   : > { %5561 = vmatpush1.bf16.msra.mxu0 %v20554_v0  ;;  %v20634_v0 = vld [vmem:[%s25080_s9 + $0x870] ss:$40 sps:$4 sm:$0xff]  }
 0x192   : > { %5725 = vmatpush1.bf16.msra.mxu1 %v20555_v1  ;;  %5562 = vmatprep.subr.bf16.mxu0 %v20556_v2  ;;  %v20637_v1 = vld [vmem:[%s25080_s9 + $0x878] ss:$40 sps:$4 sm:$0xff]   ;;  %v20642_v2 = vld [vmem:[%s25080_s9 + $0x8c4] ss:$40 sps:$4 sm:$0xff]  }
 0x193   : > { %5726 = vmatprep.subr.bf16.mxu1 %v20558_v5  ;;  %v20645_v5 = vld [vmem:[%s25080_s9 + $0x8cc] ss:$40 sps:$4 sm:$0xff]  }
 0x195   : > { %5563 = vmatpush1.bf16.msra.mxu0 %v20560_v7  ;;  %v20643_v7 = vld [vmem:[%s25080_s9 + $0x8c8] ss:$40 sps:$4 sm:$0xff]  }
 0x196   : > { %5727 = vmatpush1.bf16.msra.mxu1 %v20561_v9  ;;  %5564 = vmatprep.subr.bf16.mxu0 %v20562_v10  ;;  %v20648_v9 = vld [vmem:[%s25080_s9 + $0x914] ss:$40 sps:$4 sm:$0xff]  }
 0x197   : > { %5728 = vmatprep.subr.bf16.mxu1 %v20564_v11  ;;  %v20651_v10 = vld [vmem:[%s25080_s9 + $0x91c] ss:$40 sps:$4 sm:$0xff]   ;;  %v20646_v11 = vld [vmem:[%s25080_s9 + $0x910] ss:$40 sps:$4 sm:$0xff]  }
 0x199   : > { %5565 = vmatpush1.bf16.msra.mxu0 %v20566_v14  ;;  %v20649_v14 = vld [vmem:[%s25080_s9 + $0x918] ss:$40 sps:$4 sm:$0xff]  }
 0x19a   : > { %5729 = vmatpush1.bf16.msra.mxu1 %v20567_v15  ;;  %5575 = vmatprep.subr.bf16.mxu0 %v20570_v4  ;;  %v20654_v15 = vld [vmem:[%s25080_s9 + $0x964] ss:$40 sps:$4 sm:$0xff]  }
 0x19b   : > { %5739 = vmatprep.subr.bf16.mxu1 %v20573_v16  ;;  %v20657_v4 = vld [vmem:[%s25080_s9 + $0x96c] ss:$40 sps:$4 sm:$0xff]   ;;  %v20652_v16 = vld [vmem:[%s25080_s9 + $0x960] ss:$40 sps:$4 sm:$0xff]  }
 0x19c   : > { %5567 = vmatmul.mubr.bf16.vlgmr.msra.gmra.mrb[0].mxu0 %v25172_v20 }
 0x19d   : > { %5731 = vmatmul.mubr.bf16.vlgmr.msra.gmra.mrb[0].mxu1 %v25172_v20  ;;  %5576 = vmatpush1.bf16.msra.mxu0 %v20568_v18  ;;  %v20660_v18 = vld [vmem:[%s25080_s9 + $0x9b4] ss:$40 sps:$4 sm:$0xff]  }
 0x19e   : > { %5740 = vmatpush1.bf16.msra.mxu1 %v20571_v19  ;;  %5577 = vmatprep.subr.bf16.mxu0 %v20576_v22  ;;  %v20663_v19 = vld [vmem:[%s25080_s9 + $0x9bc] ss:$40 sps:$4 sm:$0xff]   ;;  %v20658_v22 = vld [vmem:[%s25080_s9 + $0x9b0] ss:$40 sps:$4 sm:$0xff]  }
 0x19f   : > { %5741 = vmatprep.subr.bf16.mxu1 %v20579_v23  ;;  %5607 = vmatprep.mubr.bf16.mxu0 %v25176_v24  ;;  %v20661_v23 = vld [vmem:[%s25080_s9 + $0x9b8] ss:$40 sps:$4 sm:$0xff]  }
 0x1a0   : > { %5771 = vmatprep.mubr.bf16.mxu1 %v25176_v24 }
 0x1a1   : > { %5578 = vmatpush1.bf16.msra.mxu0 %v20574_v25  ;;  %v20667_v25 = vld [vmem:[%s25080_s9 + $0xa04] ss:$40 sps:$4 sm:$0xff]  }
 0x1a2   : > { %5742 = vmatpush1.bf16.msra.mxu1 %v20577_v26  ;;  %5579 = vmatprep.subr.bf16.mxu0 %v20582_v12  ;;  %v20670_v26 = vld [vmem:[%s25080_s9 + $0xa0c] ss:$40 sps:$4 sm:$0xff]   ;;  %v20665_v12 = vld [vmem:[%s25080_s9 + $0xa00] ss:$40 sps:$4 sm:$0xff]  }
 0x1a3   : > { %5743 = vmatprep.subr.bf16.mxu1 %v20585_v27  ;;  %v20668_v27 = vld [vmem:[%s25080_s9 + $0xa08] ss:$40 sps:$4 sm:$0xff]  }
 0x1a5   : > { %5580 = vmatpush1.bf16.msra.mxu0 %v20580_v28  ;;  %v25246_v28 = vpack.c.bf16 %v25160_v13, %v25160_v13  ;;  %v20671_v13 = vld [vmem:[%s25080_s9 + $0xa50] ss:$40 sps:$4 sm:$0xff]  }
 0x1a6   : > { %5744 = vmatpush1.bf16.msra.mxu1 %v20583_v29  ;;  %5581 = vmatprep.subr.bf16.mxu0 %v20588_v30  ;;  %v25251_v29 = vld [vmem:[%s27601_s0 + $0x8] sm:$0xff]  ;;  %v20673_v30 = vld [vmem:[%s25080_s9 + $0xa54] ss:$40 sps:$4 sm:$0xff]  }
 0x1a7   : > { %5745 = vmatprep.subr.bf16.mxu1 %v20591_v31  ;;  %v20676_v31 = vld [vmem:[%s25080_s9 + $0xa5c] ss:$40 sps:$4 sm:$0xff]  }
 0x1a9   : > { %5582 = vmatpush1.bf16.msra.mxu0 %v20586_v32  ;;  %v25257_v32 = vrot.slane %v25251_v29, %v25085_v8 }
 0x1aa   : > { %5746 = vmatpush1.bf16.msra.mxu1 %v20589_v33  ;;  %5583 = vmatprep.subr.bf16.mxu0 %v20594_v34  ;;  %v20674_v34 = vld [vmem:[%s25080_s9 + $0xa58] ss:$40 sps:$4 sm:$0xff]  }
 0x1ab   : > { %5747 = vmatprep.subr.bf16.mxu1 %v20597_v35  ;;  %v1622_v33 = vcombine.high %v25257_v32, %v25257_v32  ;;  %v20679_v35 = vld [vmem:[%s25080_s9 + $0xaa4] ss:$40 sps:$4 sm:$0xff]  }
 0x1ad   : > { %5584 = vmatpush1.bf16.msra.mxu0 %v20592_v36  ;;  %v20682_v36 = vld [vmem:[%s25080_s9 + $0xaac] ss:$40 sps:$4 sm:$0xff]  }
 0x1ae   : > { %5748 = vmatpush1.bf16.msra.mxu1 %v20595_v37  ;;  %5585 = vmatprep.subr.bf16.mxu0 %v20600_v38  ;;  %v25267_v37 = vpack.c.bf16 %v1622_v33, %v1622_v33  ;;  %v20677_v38 = vld [vmem:[%s25080_s9 + $0xaa0] ss:$40 sps:$4 sm:$0xff]   ;;  %v20757_v33 = vld [vmem:[%s25080_s9 + $0xeb4] ss:$40 sps:$4 sm:$0xff]  }
 0x1af   : > { %5749 = vmatprep.subr.bf16.mxu1 %v20603_v39  ;;  %v20680_v39 = vld [vmem:[%s25080_s9 + $0xaa8] ss:$40 sps:$4 sm:$0xff]  }
 0x1b1   : > { %5586 = vmatpush1.bf16.msra.mxu0 %v20598_v40  ;;  %v20685_v40 = vld [vmem:[%s25080_s9 + $0xaf4] ss:$40 sps:$4 sm:$0xff]  }
 0x1b2   : > { %5750 = vmatpush1.bf16.msra.mxu1 %v20601_v41  ;;  %5587 = vmatprep.subr.bf16.mxu0 %v20606_v42  ;;  %v20688_v41 = vld [vmem:[%s25080_s9 + $0xafc] ss:$40 sps:$4 sm:$0xff]   ;;  %v20683_v42 = vld [vmem:[%s25080_s9 + $0xaf0] ss:$40 sps:$4 sm:$0xff]  }
 0x1b3   : > { %5751 = vmatprep.subr.bf16.mxu1 %v20609_v43  ;;  %v20686_v43 = vld [vmem:[%s25080_s9 + $0xaf8] ss:$40 sps:$4 sm:$0xff]  }
 0x1b5   : > { %5588 = vmatpush1.bf16.msra.mxu0 %v20604_v44  ;;  %v20691_v44 = vld [vmem:[%s25080_s9 + $0xb44] ss:$40 sps:$4 sm:$0xff]  }
 0x1b6   : > { %5752 = vmatpush1.bf16.msra.mxu1 %v20607_v45  ;;  %5589 = vmatprep.subr.bf16.mxu0 %v20612_v46  ;;  %v20694_v45 = vld [vmem:[%s25080_s9 + $0xb4c] ss:$40 sps:$4 sm:$0xff]   ;;  %v20689_v46 = vld [vmem:[%s25080_s9 + $0xb40] ss:$40 sps:$4 sm:$0xff]  }
 0x1b7   : > { %5753 = vmatprep.subr.bf16.mxu1 %v20615_v47  ;;  %v20692_v47 = vld [vmem:[%s25080_s9 + $0xb48] ss:$40 sps:$4 sm:$0xff]  }
 0x1b9   : > { %5590 = vmatpush1.bf16.msra.mxu0 %v20610_v48  ;;  %v20697_v48 = vld [vmem:[%s25080_s9 + $0xb94] ss:$40 sps:$4 sm:$0xff]  }
 0x1ba   : > { %5754 = vmatpush1.bf16.msra.mxu1 %v20613_v49  ;;  %5591 = vmatprep.subr.bf16.mxu0 %v20618_v50  ;;  %v20700_v49 = vld [vmem:[%s25080_s9 + $0xb9c] ss:$40 sps:$4 sm:$0xff]   ;;  %v20695_v50 = vld [vmem:[%s25080_s9 + $0xb90] ss:$40 sps:$4 sm:$0xff]  }
 0x1bb   : > { %5755 = vmatprep.subr.bf16.mxu1 %v20621_v51  ;;  %v20698_v51 = vld [vmem:[%s25080_s9 + $0xb98] ss:$40 sps:$4 sm:$0xff]  }
 0x1bd   : > { %5592 = vmatpush1.bf16.msra.mxu0 %v20616_v52  ;;  %v20703_v52 = vld [vmem:[%s25080_s9 + $0xbe4] ss:$40 sps:$4 sm:$0xff]  }
 0x1be   : > { %5756 = vmatpush1.bf16.msra.mxu1 %v20619_v53  ;;  %5593 = vmatprep.subr.bf16.mxu0 %v20624_v54  ;;  %v20706_v53 = vld [vmem:[%s25080_s9 + $0xbec] ss:$40 sps:$4 sm:$0xff]   ;;  %v20701_v54 = vld [vmem:[%s25080_s9 + $0xbe0] ss:$40 sps:$4 sm:$0xff]  }
 0x1bf   : > { %5757 = vmatprep.subr.bf16.mxu1 %v20627_v55  ;;  %v20704_v55 = vld [vmem:[%s25080_s9 + $0xbe8] ss:$40 sps:$4 sm:$0xff]  }
 0x1c1   : > { %5594 = vmatpush1.bf16.msra.mxu0 %v20622_v56  ;;  %v20709_v56 = vld [vmem:[%s25080_s9 + $0xc34] ss:$40 sps:$4 sm:$0xff]  }
 0x1c2   : > { %5758 = vmatpush1.bf16.msra.mxu1 %v20625_v57  ;;  %5595 = vmatprep.subr.bf16.mxu0 %v20630_v58  ;;  %v20712_v57 = vld [vmem:[%s25080_s9 + $0xc3c] ss:$40 sps:$4 sm:$0xff]   ;;  %v20707_v58 = vld [vmem:[%s25080_s9 + $0xc30] ss:$40 sps:$4 sm:$0xff]  }
 0x1c3   : > { %5759 = vmatprep.subr.bf16.mxu1 %v20633_v59  ;;  %v20710_v59 = vld [vmem:[%s25080_s9 + $0xc38] ss:$40 sps:$4 sm:$0xff]  }
 0x1c5   : > { %5596 = vmatpush1.bf16.msra.mxu0 %v20628_v60  ;;  %v20715_v60 = vld [vmem:[%s25080_s9 + $0xc84] ss:$40 sps:$4 sm:$0xff]  }
 0x1c6   : > { %5760 = vmatpush1.bf16.msra.mxu1 %v20631_v61  ;;  %5597 = vmatprep.subr.bf16.mxu0 %v20636_v62  ;;  %v20718_v61 = vld [vmem:[%s25080_s9 + $0xc8c] ss:$40 sps:$4 sm:$0xff]   ;;  %v20713_v62 = vld [vmem:[%s25080_s9 + $0xc80] ss:$40 sps:$4 sm:$0xff]  }
 0x1c7   : > { %5761 = vmatprep.subr.bf16.mxu1 %v20639_v63  ;;  %v20716_v63 = vld [vmem:[%s25080_s9 + $0xc88] ss:$40 sps:$4 sm:$0xff]  }
 0x1c9   : > { %5598 = vmatpush1.bf16.msra.mxu0 %v20634_v0  ;;  %v20721_v0 = vld [vmem:[%s25080_s9 + $0xcd4] ss:$40 sps:$4 sm:$0xff]  }
 0x1ca   : > { %5762 = vmatpush1.bf16.msra.mxu1 %v20637_v1  ;;  %5599 = vmatprep.subr.bf16.mxu0 %v20642_v2  ;;  %v20724_v1 = vld [vmem:[%s25080_s9 + $0xcdc] ss:$40 sps:$4 sm:$0xff]   ;;  %v20719_v2 = vld [vmem:[%s25080_s9 + $0xcd0] ss:$40 sps:$4 sm:$0xff]  }
 0x1cb   : > { %5763 = vmatprep.subr.bf16.mxu1 %v20645_v5  ;;  %v20722_v5 = vld [vmem:[%s25080_s9 + $0xcd8] ss:$40 sps:$4 sm:$0xff]  }
 0x1cd   : > { %5600 = vmatpush1.bf16.msra.mxu0 %v20640_v6  ;;  %v20727_v6 = vld [vmem:[%s25080_s9 + $0xd24] ss:$40 sps:$4 sm:$0xff]  }
 0x1ce   : > { %5764 = vmatpush1.bf16.msra.mxu1 %v20643_v7  ;;  %5601 = vmatprep.subr.bf16.mxu0 %v20648_v9  ;;  %v20730_v7 = vld [vmem:[%s25080_s9 + $0xd2c] ss:$40 sps:$4 sm:$0xff]   ;;  %v20725_v9 = vld [vmem:[%s25080_s9 + $0xd20] ss:$40 sps:$4 sm:$0xff]  }
 0x1cf   : > { %5765 = vmatprep.subr.bf16.mxu1 %v20651_v10  ;;  %v20728_v10 = vld [vmem:[%s25080_s9 + $0xd28] ss:$40 sps:$4 sm:$0xff]  }
 0x1d1   : > { %5602 = vmatpush1.bf16.msra.mxu0 %v20646_v11  ;;  %v20733_v11 = vld [vmem:[%s25080_s9 + $0xd74] ss:$40 sps:$4 sm:$0xff]  }
 0x1d2   : > { %5766 = vmatpush1.bf16.msra.mxu1 %v20649_v14  ;;  %5603 = vmatprep.subr.bf16.mxu0 %v20654_v15  ;;  %v20736_v14 = vld [vmem:[%s25080_s9 + $0xd7c] ss:$40 sps:$4 sm:$0xff]   ;;  %v20731_v15 = vld [vmem:[%s25080_s9 + $0xd70] ss:$40 sps:$4 sm:$0xff]  }
 0x1d3   : > { %5767 = vmatprep.subr.bf16.mxu1 %v20657_v4  ;;  %v20734_v4 = vld [vmem:[%s25080_s9 + $0xd78] ss:$40 sps:$4 sm:$0xff]  }
 0x1d5   : > { %5604 = vmatpush1.bf16.msra.mxu0 %v20652_v16  ;;  %v20739_v16 = vld [vmem:[%s25080_s9 + $0xdc4] ss:$40 sps:$4 sm:$0xff]  }
 0x1d6   : > { %5768 = vmatpush1.bf16.msra.mxu1 %v20655_v17  ;;  %5605 = vmatprep.subr.bf16.mxu0 %v20660_v18  ;;  %v20742_v17 = vld [vmem:[%s25080_s9 + $0xdcc] ss:$40 sps:$4 sm:$0xff]   ;;  %v20737_v18 = vld [vmem:[%s25080_s9 + $0xdc0] ss:$40 sps:$4 sm:$0xff]  }
 0x1d7   : > { %5769 = vmatprep.subr.bf16.mxu1 %v20663_v19  ;;  %v20740_v19 = vld [vmem:[%s25080_s9 + $0xdc8] ss:$40 sps:$4 sm:$0xff]  }
 0x1d9   : > { %5606 = vmatpush1.bf16.msra.mxu0 %v20658_v22  ;;  %v20745_v22 = vld [vmem:[%s25080_s9 + $0xe14] ss:$40 sps:$4 sm:$0xff]  }
 0x1da   : > { %5770 = vmatpush1.bf16.msra.mxu1 %v20661_v23  ;;  %5616 = vmatprep.subr.bf16.mxu0 %v20667_v25  ;;  %v20748_v23 = vld [vmem:[%s25080_s9 + $0xe1c] ss:$40 sps:$4 sm:$0xff]   ;;  %v20743_v25 = vld [vmem:[%s25080_s9 + $0xe10] ss:$40 sps:$4 sm:$0xff]  }
 0x1db   : > { %5780 = vmatprep.subr.bf16.mxu1 %v20670_v26  ;;  %v20746_v26 = vld [vmem:[%s25080_s9 + $0xe18] ss:$40 sps:$4 sm:$0xff]  }
 0x1dc   : > { %5608 = vmatmul.mubr.bf16.vlgmr.msra.gmra.mrb[0].mxu0 %v25246_v28 }
 0x1dd   : > { %5772 = vmatmul.mubr.bf16.vlgmr.msra.gmra.mrb[0].mxu1 %v25246_v28  ;;  %5617 = vmatpush1.bf16.msra.mxu0 %v20665_v12  ;;  %v20751_v12 = vld [vmem:[%s25080_s9 + $0xe64] ss:$40 sps:$4 sm:$0xff]  }
 0x1de   : > { %5781 = vmatpush1.bf16.msra.mxu1 %v20668_v27  ;;  %5618 = vmatprep.subr.bf16.mxu0 %v20673_v30  ;;  %v20754_v27 = vld [vmem:[%s25080_s9 + $0xe6c] ss:$40 sps:$4 sm:$0xff]   ;;  %v1607_v30 = vcombine.high %v25251_v29, %v25251_v29  ;;  %v20758_v29 = vld [vmem:[%s25080_s9 + $0xeb8] ss:$40 sps:$4 sm:$0xff]  }
 0x1df   : > { %5782 = vmatprep.subr.bf16.mxu1 %v20676_v31  ;;  %5648 = vmatprep.mubr.bf16.mxu0 %v25267_v37  ;;  %v20749_v31 = vld [vmem:[%s25080_s9 + $0xe60] ss:$40 sps:$4 sm:$0xff]  }
 0x1e0   : > { %5812 = vmatprep.mubr.bf16.mxu1 %v25267_v37 }
 0x1e1   : > { %5619 = vmatpush1.bf16.msra.mxu0 %v20671_v13  ;;  %v20752_v13 = vld [vmem:[%s25080_s9 + $0xe68] ss:$40 sps:$4 sm:$0xff]  }
 0x1e2   : > { %5783 = vmatpush1.bf16.msra.mxu1 %v20674_v34  ;;  %5620 = vmatprep.subr.bf16.mxu0 %v20679_v35  ;;  %v20760_v34 = vld [vmem:[%s25080_s9 + $0xebc] ss:$40 sps:$4 sm:$0xff]   ;;  %v25326_v35 = vrot.slane %v1607_v30, %v25085_v8  ;;  %v20827_v30 = vld [vmem:[%s25080_s9 + $0x1270] ss:$40 sps:$4 sm:$0xff]  }
 0x1e3   : > { %5784 = vmatprep.subr.bf16.mxu1 %v20682_v36  ;;  %v20755_v36 = vld [vmem:[%s25080_s9 + $0xeb0] ss:$40 sps:$4 sm:$0xff]  }
 0x1e5   : > { %5621 = vmatpush1.bf16.msra.mxu0 %v20677_v38  ;;  %v20763_v38 = vld [vmem:[%s25080_s9 + $0xf04] ss:$40 sps:$4 sm:$0xff]  }
 0x1e6   : > { %5785 = vmatpush1.bf16.msra.mxu1 %v20680_v39  ;;  %5622 = vmatprep.subr.bf16.mxu0 %v20685_v40  ;;  %v20766_v39 = vld [vmem:[%s25080_s9 + $0xf0c] ss:$40 sps:$4 sm:$0xff]   ;;  %v1623_v40 = vcombine.high %v25326_v35, %v25326_v35 }
 0x1e7   : > { %5786 = vmatprep.subr.bf16.mxu1 %v20688_v41  ;;  %v20761_v41 = vld [vmem:[%s25080_s9 + $0xf00] ss:$40 sps:$4 sm:$0xff]  }
 0x1e9   : > { %5623 = vmatpush1.bf16.msra.mxu0 %v20683_v42  ;;  %v25337_v42 = vpack.c.bf16 %v25257_v32, %v25257_v32  ;;  %v20770_v32 = vld [vmem:[%s25080_s9 + $0xf58] ss:$40 sps:$4 sm:$0xff]  }
 0x1ea   : > { %5787 = vmatpush1.bf16.msra.mxu1 %v20686_v43  ;;  %5624 = vmatprep.subr.bf16.mxu0 %v20691_v44  ;;  %v20764_v43 = vld [vmem:[%s25080_s9 + $0xf08] ss:$40 sps:$4 sm:$0xff]   ;;  %v20769_v44 = vld [vmem:[%s25080_s9 + $0xf54] ss:$40 sps:$4 sm:$0xff]  }
 0x1eb   : > { %5788 = vmatprep.subr.bf16.mxu1 %v20694_v45  ;;  %v20772_v45 = vld [vmem:[%s25080_s9 + $0xf5c] ss:$40 sps:$4 sm:$0xff]  }
 0x1ed   : > { %5625 = vmatpush1.bf16.msra.mxu0 %v20689_v46  ;;  %v25342_v46 = vpack.c.bf16 %v1623_v40, %v1623_v40  ;;  %v20842_v40 = vld [vmem:[%s25080_s9 + $0x1318] ss:$40 sps:$4 sm:$0xff]  }
 0x1ee   : > { %5789 = vmatpush1.bf16.msra.mxu1 %v20692_v47  ;;  %5626 = vmatprep.subr.bf16.mxu0 %v20697_v48  ;;  %v20767_v47 = vld [vmem:[%s25080_s9 + $0xf50] ss:$40 sps:$4 sm:$0xff]   ;;  %v20775_v48 = vld [vmem:[%s25080_s9 + $0xfa4] ss:$40 sps:$4 sm:$0xff]  }
 0x1ef   : > { %5790 = vmatprep.subr.bf16.mxu1 %v20700_v49  ;;  %v20778_v49 = vld [vmem:[%s25080_s9 + $0xfac] ss:$40 sps:$4 sm:$0xff]  }
 0x1f1   : > { %5627 = vmatpush1.bf16.msra.mxu0 %v20695_v50  ;;  %v20773_v50 = vld [vmem:[%s25080_s9 + $0xfa0] ss:$40 sps:$4 sm:$0xff]  }
 0x1f2   : > { %5791 = vmatpush1.bf16.msra.mxu1 %v20698_v51  ;;  %5628 = vmatprep.subr.bf16.mxu0 %v20703_v52  ;;  %v20776_v51 = vld [vmem:[%s25080_s9 + $0xfa8] ss:$40 sps:$4 sm:$0xff]   ;;  %v20781_v52 = vld [vmem:[%s25080_s9 + $0xff4] ss:$40 sps:$4 sm:$0xff]  }
 0x1f3   : > { %5792 = vmatprep.subr.bf16.mxu1 %v20706_v53  ;;  %v20784_v53 = vld [vmem:[%s25080_s9 + $0xffc] ss:$40 sps:$4 sm:$0xff]  }
 0x1f5   : > { %5629 = vmatpush1.bf16.msra.mxu0 %v20701_v54  ;;  %v20779_v54 = vld [vmem:[%s25080_s9 + $0xff0] ss:$40 sps:$4 sm:$0xff]  }
 0x1f6   : > { %5793 = vmatpush1.bf16.msra.mxu1 %v20704_v55  ;;  %5630 = vmatprep.subr.bf16.mxu0 %v20709_v56  ;;  %v20782_v55 = vld [vmem:[%s25080_s9 + $0xff8] ss:$40 sps:$4 sm:$0xff]   ;;  %v20787_v56 = vld [vmem:[%s25080_s9 + $0x1044] ss:$40 sps:$4 sm:$0xff]  }
 0x1f7   : > { %5794 = vmatprep.subr.bf16.mxu1 %v20712_v57  ;;  %v20790_v57 = vld [vmem:[%s25080_s9 + $0x104c] ss:$40 sps:$4 sm:$0xff]  }
 0x1f9   : > { %5631 = vmatpush1.bf16.msra.mxu0 %v20707_v58  ;;  %v20785_v58 = vld [vmem:[%s25080_s9 + $0x1040] ss:$40 sps:$4 sm:$0xff]  }
 0x1fa   : > { %5795 = vmatpush1.bf16.msra.mxu1 %v20710_v59  ;;  %5632 = vmatprep.subr.bf16.mxu0 %v20715_v60  ;;  %v20788_v59 = vld [vmem:[%s25080_s9 + $0x1048] ss:$40 sps:$4 sm:$0xff]   ;;  %v20793_v60 = vld [vmem:[%s25080_s9 + $0x1094] ss:$40 sps:$4 sm:$0xff]  }
 0x1fb   : > { %5796 = vmatprep.subr.bf16.mxu1 %v20718_v61  ;;  %v20796_v61 = vld [vmem:[%s25080_s9 + $0x109c] ss:$40 sps:$4 sm:$0xff]  }
 0x1fd   : > { %5633 = vmatpush1.bf16.msra.mxu0 %v20713_v62  ;;  %v20791_v62 = vld [vmem:[%s25080_s9 + $0x1090] ss:$40 sps:$4 sm:$0xff]  }
 0x1fe   : > { %5797 = vmatpush1.bf16.msra.mxu1 %v20716_v63  ;;  %5634 = vmatprep.subr.bf16.mxu0 %v20721_v0  ;;  %v20794_v63 = vld [vmem:[%s25080_s9 + $0x1098] ss:$40 sps:$4 sm:$0xff]   ;;  %v20799_v0 = vld [vmem:[%s25080_s9 + $0x10e4] ss:$40 sps:$4 sm:$0xff]  }
 0x1ff   : > { %5798 = vmatprep.subr.bf16.mxu1 %v20724_v1  ;;  %v20802_v1 = vld [vmem:[%s25080_s9 + $0x10ec] ss:$40 sps:$4 sm:$0xff]  }
 0x201   : > { %5635 = vmatpush1.bf16.msra.mxu0 %v20719_v2  ;;  %v20797_v2 = vld [vmem:[%s25080_s9 + $0x10e0] ss:$40 sps:$4 sm:$0xff]  }
 0x202   : > { %5799 = vmatpush1.bf16.msra.mxu1 %v20722_v5  ;;  %5636 = vmatprep.subr.bf16.mxu0 %v20727_v6  ;;  %v20800_v5 = vld [vmem:[%s25080_s9 + $0x10e8] ss:$40 sps:$4 sm:$0xff]   ;;  %v20805_v6 = vld [vmem:[%s25080_s9 + $0x1134] ss:$40 sps:$4 sm:$0xff]  }
 0x203   : > { %5800 = vmatprep.subr.bf16.mxu1 %v20730_v7  ;;  %v20808_v7 = vld [vmem:[%s25080_s9 + $0x113c] ss:$40 sps:$4 sm:$0xff]  }
 0x205   : > { %5637 = vmatpush1.bf16.msra.mxu0 %v20725_v9  ;;  %v20803_v9 = vld [vmem:[%s25080_s9 + $0x1130] ss:$40 sps:$4 sm:$0xff]  }
 0x206   : > { %5801 = vmatpush1.bf16.msra.mxu1 %v20728_v10  ;;  %5638 = vmatprep.subr.bf16.mxu0 %v20733_v11  ;;  %v20806_v10 = vld [vmem:[%s25080_s9 + $0x1138] ss:$40 sps:$4 sm:$0xff]   ;;  %v20811_v11 = vld [vmem:[%s25080_s9 + $0x1184] ss:$40 sps:$4 sm:$0xff]  }
 0x207   : > { %5802 = vmatprep.subr.bf16.mxu1 %v20736_v14  ;;  %v20814_v14 = vld [vmem:[%s25080_s9 + $0x118c] ss:$40 sps:$4 sm:$0xff]  }
 0x209   : > { %5639 = vmatpush1.bf16.msra.mxu0 %v20731_v15  ;;  %v20809_v15 = vld [vmem:[%s25080_s9 + $0x1180] ss:$40 sps:$4 sm:$0xff]  }
 0x20a   : > { %5803 = vmatpush1.bf16.msra.mxu1 %v20734_v4  ;;  %5640 = vmatprep.subr.bf16.mxu0 %v20739_v16  ;;  %v20812_v4 = vld [vmem:[%s25080_s9 + $0x1188] ss:$40 sps:$4 sm:$0xff]   ;;  %v20817_v16 = vld [vmem:[%s25080_s9 + $0x11d4] ss:$40 sps:$4 sm:$0xff]  }
 0x20b   : > { %5804 = vmatprep.subr.bf16.mxu1 %v20742_v17  ;;  %v20820_v17 = vld [vmem:[%s25080_s9 + $0x11dc] ss:$40 sps:$4 sm:$0xff]  }
 0x20d   : > { %5641 = vmatpush1.bf16.msra.mxu0 %v20737_v18  ;;  %v20815_v18 = vld [vmem:[%s25080_s9 + $0x11d0] ss:$40 sps:$4 sm:$0xff]  }
 0x20e   : > { %5805 = vmatpush1.bf16.msra.mxu1 %v20740_v19  ;;  %5642 = vmatprep.subr.bf16.mxu0 %v20745_v22  ;;  %v20818_v19 = vld [vmem:[%s25080_s9 + $0x11d8] ss:$40 sps:$4 sm:$0xff]   ;;  %v20823_v22 = vld [vmem:[%s25080_s9 + $0x1224] ss:$40 sps:$4 sm:$0xff]  }
 0x20f   : > { %5806 = vmatprep.subr.bf16.mxu1 %v20748_v23  ;;  %v20826_v23 = vld [vmem:[%s25080_s9 + $0x122c] ss:$40 sps:$4 sm:$0xff]  }
 0x211   : > { %5643 = vmatpush1.bf16.msra.mxu0 %v20743_v25  ;;  %v20821_v25 = vld [vmem:[%s25080_s9 + $0x1220] ss:$40 sps:$4 sm:$0xff]  }
 0x212   : > { %5807 = vmatpush1.bf16.msra.mxu1 %v20746_v26  ;;  %5644 = vmatprep.subr.bf16.mxu0 %v20751_v12  ;;  %v20824_v26 = vld [vmem:[%s25080_s9 + $0x1228] ss:$40 sps:$4 sm:$0xff]   ;;  %v20829_v12 = vld [vmem:[%s25080_s9 + $0x1274] ss:$40 sps:$4 sm:$0xff]  }
 0x213   : > { %5808 = vmatprep.subr.bf16.mxu1 %v20754_v27  ;;  %v20832_v27 = vld [vmem:[%s25080_s9 + $0x127c] ss:$40 sps:$4 sm:$0xff]  }
 0x215   : > { %5645 = vmatpush1.bf16.msra.mxu0 %v20749_v31  ;;  %v20830_v31 = vld [vmem:[%s25080_s9 + $0x1278] ss:$40 sps:$4 sm:$0xff]  }
 0x216   : > { %5809 = vmatpush1.bf16.msra.mxu1 %v20752_v13  ;;  %5646 = vmatprep.subr.bf16.mxu0 %v20757_v33  ;;  %v20835_v13 = vld [vmem:[%s25080_s9 + $0x12c4] ss:$40 sps:$4 sm:$0xff]  }
 0x217   : > { %5810 = vmatprep.subr.bf16.mxu1 %v20760_v34  ;;  %v20838_v33 = vld [vmem:[%s25080_s9 + $0x12cc] ss:$40 sps:$4 sm:$0xff]   ;;  %v20833_v34 = vld [vmem:[%s25080_s9 + $0x12c0] ss:$40 sps:$4 sm:$0xff]  }
 0x219   : > { %5647 = vmatpush1.bf16.msra.mxu0 %v20755_v36  ;;  %v20836_v36 = vld [vmem:[%s25080_s9 + $0x12c8] ss:$40 sps:$4 sm:$0xff]  }
 0x21a   : > { %5811 = vmatpush1.bf16.msra.mxu1 %v20758_v29  ;;  %5657 = vmatprep.subr.bf16.mxu0 %v20763_v38  ;;  %v20841_v29 = vld [vmem:[%s25080_s9 + $0x1314] ss:$40 sps:$4 sm:$0xff]  }
 0x21b   : > { %5821 = vmatprep.subr.bf16.mxu1 %v20766_v39  ;;  %v20844_v38 = vld [vmem:[%s25080_s9 + $0x131c] ss:$40 sps:$4 sm:$0xff]   ;;  %v20839_v39 = vld [vmem:[%s25080_s9 + $0x1310] ss:$40 sps:$4 sm:$0xff]  }
 0x21c   : > { %5649 = vmatmul.mubr.bf16.vlgmr.msra.gmra.mrb[0].mxu0 %v25337_v42 }
 0x21d   : > { %5813 = vmatmul.mubr.bf16.vlgmr.msra.gmra.mrb[0].mxu1 %v25337_v42  ;;  %5658 = vmatpush1.bf16.msra.mxu0 %v20761_v41  ;;  %v20847_v41 = vld [vmem:[%s25080_s9 + $0x1364] ss:$40 sps:$4 sm:$0xff]  }
 0x21e   : > { %5822 = vmatpush1.bf16.msra.mxu1 %v20764_v43  ;;  %5659 = vmatprep.subr.bf16.mxu0 %v20769_v44  ;;  %v20850_v43 = vld [vmem:[%s25080_s9 + $0x136c] ss:$40 sps:$4 sm:$0xff]   ;;  %v20845_v44 = vld [vmem:[%s25080_s9 + $0x1360] ss:$40 sps:$4 sm:$0xff]  }
 0x21f   : > { %5823 = vmatprep.subr.bf16.mxu1 %v20772_v45  ;;  %5689 = vmatprep.mubr.bf16.mxu0 %v25342_v46  ;;  %v20848_v45 = vld [vmem:[%s25080_s9 + $0x1368] ss:$40 sps:$4 sm:$0xff]  }
 0x220   : > { %5853 = vmatprep.mubr.bf16.mxu1 %v25342_v46 }
 0x221   : > { %5660 = vmatpush1.bf16.msra.mxu0 %v20767_v47  ;;  %v20853_v47 = vld [vmem:[%s25080_s9 + $0x13b4] ss:$40 sps:$4 sm:$0xff]  }
 0x222   : > { %5824 = vmatpush1.bf16.msra.mxu1 %v20770_v32  ;;  %5661 = vmatprep.subr.bf16.mxu0 %v20775_v48  ;;  %v20856_v32 = vld [vmem:[%s25080_s9 + $0x13bc] ss:$40 sps:$4 sm:$0xff]   ;;  %v20851_v48 = vld [vmem:[%s25080_s9 + $0x13b0] ss:$40 sps:$4 sm:$0xff]  }
 0x223   : > { %5825 = vmatprep.subr.bf16.mxu1 %v20778_v49  ;;  %v20854_v49 = vld [vmem:[%s25080_s9 + $0x13b8] ss:$40 sps:$4 sm:$0xff]  }
 0x225   : > { %5662 = vmatpush1.bf16.msra.mxu0 %v20773_v50  ;;  %v20860_v50 = vld [vmem:[%s25080_s9 + $0x14] ss:$40 sps:$4 sm:$0xff]  }
 0x226   : > { %5826 = vmatpush1.bf16.msra.mxu1 %v20776_v51  ;;  %5663 = vmatprep.subr.bf16.mxu0 %v20781_v52  ;;  %v20863_v51 = vld [vmem:[%s25080_s9 + $0x1c] ss:$40 sps:$4 sm:$0xff]   ;;  %v25410_v52 = vpack.c.bf16 %v25326_v35, %v25326_v35  ;;  %v20864_v35 = vld [vmem:[%s25080_s9 + $0x60] ss:$40 sps:$4 sm:$0xff]  }
 0x227   : > { %5827 = vmatprep.subr.bf16.mxu1 %v20784_v53  ;;  %v20858_v53 = vld [vmem:[%s25080_s9 + $0x10] ss:$40 sps:$4 sm:$0xff]  }
 0x229   : > { %5664 = vmatpush1.bf16.msra.mxu0 %v20779_v54  ;;  %v20861_v54 = vld [vmem:[%s25080_s9 + $0x18] ss:$40 sps:$4 sm:$0xff]  }
 0x22a   : > { %5828 = vmatpush1.bf16.msra.mxu1 %v20782_v55  ;;  %5665 = vmatprep.subr.bf16.mxu0 %v20787_v56  ;;  %v20866_v55 = vld [vmem:[%s25080_s9 + $0x64] ss:$40 sps:$4 sm:$0xff]  }
 0x22b   : > { %5829 = vmatprep.subr.bf16.mxu1 %v20790_v57  ;;  %v20869_v56 = vld [vmem:[%s25080_s9 + $0x6c] ss:$40 sps:$4 sm:$0xff]   ;;  %v20867_v57 = vld [vmem:[%s25080_s9 + $0x68] ss:$40 sps:$4 sm:$0xff]  }
 0x22d   : > { %5666 = vmatpush1.bf16.msra.mxu0 %v20785_v58  ;;  %v20872_v58 = vld [vmem:[%s25080_s9 + $0xb4] ss:$40 sps:$4 sm:$0xff]  }
 0x22e   : > { %5830 = vmatpush1.bf16.msra.mxu1 %v20788_v59  ;;  %5667 = vmatprep.subr.bf16.mxu0 %v20793_v60  ;;  %v20875_v59 = vld [vmem:[%s25080_s9 + $0xbc] ss:$40 sps:$4 sm:$0xff]   ;;  %v20870_v60 = vld [vmem:[%s25080_s9 + $0xb0] ss:$40 sps:$4 sm:$0xff]  }
 0x22f   : > { %5831 = vmatprep.subr.bf16.mxu1 %v20796_v61  ;;  %v20873_v61 = vld [vmem:[%s25080_s9 + $0xb8] ss:$40 sps:$4 sm:$0xff]  }
 0x231   : > { %5668 = vmatpush1.bf16.msra.mxu0 %v20791_v62  ;;  %v20878_v62 = vld [vmem:[%s25080_s9 + $0x104] ss:$40 sps:$4 sm:$0xff]  }
 0x232   : > { %5832 = vmatpush1.bf16.msra.mxu1 %v20794_v63  ;;  %5669 = vmatprep.subr.bf16.mxu0 %v20799_v0  ;;  %v20881_v63 = vld [vmem:[%s25080_s9 + $0x10c] ss:$40 sps:$4 sm:$0xff]   ;;  %v20876_v0 = vld [vmem:[%s25080_s9 + $0x100] ss:$40 sps:$4 sm:$0xff]  }
 0x233   : > { %5833 = vmatprep.subr.bf16.mxu1 %v20802_v1  ;;  %v20879_v1 = vld [vmem:[%s25080_s9 + $0x108] ss:$40 sps:$4 sm:$0xff]  }
 0x235   : > { %5670 = vmatpush1.bf16.msra.mxu0 %v20797_v2  ;;  %v20884_v2 = vld [vmem:[%s25080_s9 + $0x154] ss:$40 sps:$4 sm:$0xff]  }
 0x236   : > { %5834 = vmatpush1.bf16.msra.mxu1 %v20800_v5  ;;  %5671 = vmatprep.subr.bf16.mxu0 %v20805_v6  ;;  %v20887_v5 = vld [vmem:[%s25080_s9 + $0x15c] ss:$40 sps:$4 sm:$0xff]   ;;  %v20882_v6 = vld [vmem:[%s25080_s9 + $0x150] ss:$40 sps:$4 sm:$0xff]  }
 0x237   : > { %5835 = vmatprep.subr.bf16.mxu1 %v20808_v7  ;;  %v20885_v7 = vld [vmem:[%s25080_s9 + $0x158] ss:$40 sps:$4 sm:$0xff]  }
 0x239   : > { %5672 = vmatpush1.bf16.msra.mxu0 %v20803_v9  ;;  %v20890_v9 = vld [vmem:[%s25080_s9 + $0x1a4] ss:$40 sps:$4 sm:$0xff]  }
 0x23a   : > { %5836 = vmatpush1.bf16.msra.mxu1 %v20806_v10  ;;  %5673 = vmatprep.subr.bf16.mxu0 %v20811_v11  ;;  %v20893_v10 = vld [vmem:[%s25080_s9 + $0x1ac] ss:$40 sps:$4 sm:$0xff]   ;;  %v20888_v11 = vld [vmem:[%s25080_s9 + $0x1a0] ss:$40 sps:$4 sm:$0xff]  }
 0x23b   : > { %5837 = vmatprep.subr.bf16.mxu1 %v20814_v14  ;;  %v20891_v14 = vld [vmem:[%s25080_s9 + $0x1a8] ss:$40 sps:$4 sm:$0xff]  }
 0x23d   : > { %5674 = vmatpush1.bf16.msra.mxu0 %v20809_v15  ;;  %v20896_v15 = vld [vmem:[%s25080_s9 + $0x1f4] ss:$40 sps:$4 sm:$0xff]  }
 0x23e   : > { %5838 = vmatpush1.bf16.msra.mxu1 %v20812_v4  ;;  %5675 = vmatprep.subr.bf16.mxu0 %v20817_v16  ;;  %v20899_v4 = vld [vmem:[%s25080_s9 + $0x1fc] ss:$40 sps:$4 sm:$0xff]   ;;  %v20894_v16 = vld [vmem:[%s25080_s9 + $0x1f0] ss:$40 sps:$4 sm:$0xff]  }
 0x23f   : > { %5839 = vmatprep.subr.bf16.mxu1 %v20820_v17  ;;  %v20897_v17 = vld [vmem:[%s25080_s9 + $0x1f8] ss:$40 sps:$4 sm:$0xff]  }
 0x241   : > { %5676 = vmatpush1.bf16.msra.mxu0 %v20815_v18  ;;  %v20902_v18 = vld [vmem:[%s25080_s9 + $0x244] ss:$40 sps:$4 sm:$0xff]  }
 0x242   : > { %5840 = vmatpush1.bf16.msra.mxu1 %v20818_v19  ;;  %5677 = vmatprep.subr.bf16.mxu0 %v20823_v22  ;;  %v20905_v19 = vld [vmem:[%s25080_s9 + $0x24c] ss:$40 sps:$4 sm:$0xff]   ;;  %v20900_v22 = vld [vmem:[%s25080_s9 + $0x240] ss:$40 sps:$4 sm:$0xff]  }
 0x243   : > { %5841 = vmatprep.subr.bf16.mxu1 %v20826_v23  ;;  %v20903_v23 = vld [vmem:[%s25080_s9 + $0x248] ss:$40 sps:$4 sm:$0xff]  }
 0x245   : > { %5678 = vmatpush1.bf16.msra.mxu0 %v20821_v25  ;;  %v20908_v25 = vld [vmem:[%s25080_s9 + $0x294] ss:$40 sps:$4 sm:$0xff]  }
 0x246   : > { %5842 = vmatpush1.bf16.msra.mxu1 %v20824_v26  ;;  %5679 = vmatprep.subr.bf16.mxu0 %v20829_v12  ;;  %v20911_v26 = vld [vmem:[%s25080_s9 + $0x29c] ss:$40 sps:$4 sm:$0xff]   ;;  %v20906_v12 = vld [vmem:[%s25080_s9 + $0x290] ss:$40 sps:$4 sm:$0xff]  }
 0x247   : > { %5843 = vmatprep.subr.bf16.mxu1 %v20832_v27  ;;  %v20909_v27 = vld [vmem:[%s25080_s9 + $0x298] ss:$40 sps:$4 sm:$0xff]  }
 0x249   : > { %5680 = vmatpush1.bf16.msra.mxu0 %v20827_v30  ;;  %v20914_v30 = vld [vmem:[%s25080_s9 + $0x2e4] ss:$40 sps:$4 sm:$0xff]  }
 0x24a   : > { %5844 = vmatpush1.bf16.msra.mxu1 %v20830_v31  ;;  %5681 = vmatprep.subr.bf16.mxu0 %v20835_v13  ;;  %v20917_v31 = vld [vmem:[%s25080_s9 + $0x2ec] ss:$40 sps:$4 sm:$0xff]   ;;  %v20912_v13 = vld [vmem:[%s25080_s9 + $0x2e0] ss:$40 sps:$4 sm:$0xff]  }
 0x24b   : > { %5845 = vmatprep.subr.bf16.mxu1 %v20838_v33  ;;  %v20915_v33 = vld [vmem:[%s25080_s9 + $0x2e8] ss:$40 sps:$4 sm:$0xff]  }
 0x24d   : > { %5682 = vmatpush1.bf16.msra.mxu0 %v20833_v34  ;;  %v20920_v34 = vld [vmem:[%s25080_s9 + $0x334] ss:$40 sps:$4 sm:$0xff]  }
 0x24e   : > { %5846 = vmatpush1.bf16.msra.mxu1 %v20836_v36  ;;  %5683 = vmatprep.subr.bf16.mxu0 %v20841_v29  ;;  %v20923_v36 = vld [vmem:[%s25080_s9 + $0x33c] ss:$40 sps:$4 sm:$0xff]   ;;  %v20918_v29 = vld [vmem:[%s25080_s9 + $0x330] ss:$40 sps:$4 sm:$0xff]  }
 0x24f   : > { %5847 = vmatprep.subr.bf16.mxu1 %v20844_v38  ;;  %v20921_v38 = vld [vmem:[%s25080_s9 + $0x338] ss:$40 sps:$4 sm:$0xff]  }
 0x251   : > { %5684 = vmatpush1.bf16.msra.mxu0 %v20839_v39  ;;  %v20926_v39 = vld [vmem:[%s25080_s9 + $0x384] ss:$40 sps:$4 sm:$0xff]  }
 0x252   : > { %5848 = vmatpush1.bf16.msra.mxu1 %v20842_v40  ;;  %5685 = vmatprep.subr.bf16.mxu0 %v20847_v41  ;;  %v20929_v40 = vld [vmem:[%s25080_s9 + $0x38c] ss:$40 sps:$4 sm:$0xff]   ;;  %v20924_v41 = vld [vmem:[%s25080_s9 + $0x380] ss:$40 sps:$4 sm:$0xff]  }
 0x253   : > { %5849 = vmatprep.subr.bf16.mxu1 %v20850_v43  ;;  %v20927_v43 = vld [vmem:[%s25080_s9 + $0x388] ss:$40 sps:$4 sm:$0xff]  }
 0x255   : > { %5686 = vmatpush1.bf16.msra.mxu0 %v20845_v44  ;;  %v20932_v44 = vld [vmem:[%s25080_s9 + $0x3d4] ss:$40 sps:$4 sm:$0xff]  }
 0x256   : > { %5850 = vmatpush1.bf16.msra.mxu1 %v20848_v45  ;;  %5687 = vmatprep.subr.bf16.mxu0 %v20853_v47  ;;  %v20935_v45 = vld [vmem:[%s25080_s9 + $0x3dc] ss:$40 sps:$4 sm:$0xff]   ;;  %v20930_v47 = vld [vmem:[%s25080_s9 + $0x3d0] ss:$40 sps:$4 sm:$0xff]  }
 0x257   : > { %5851 = vmatprep.subr.bf16.mxu1 %v20856_v32  ;;  %v20933_v32 = vld [vmem:[%s25080_s9 + $0x3d8] ss:$40 sps:$4 sm:$0xff]  }
 0x259   : > { %5688 = vmatpush1.bf16.msra.mxu0 %v20851_v48  ;;  %v20938_v48 = vld [vmem:[%s25080_s9 + $0x424] ss:$40 sps:$4 sm:$0xff]  }
 0x25a   : > { %5852 = vmatpush1.bf16.msra.mxu1 %v20854_v49  ;;  %5862 = vmatprep.subr.bf16.mxu0 %v20860_v50  ;;  %v20941_v49 = vld [vmem:[%s25080_s9 + $0x42c] ss:$40 sps:$4 sm:$0xff]   ;;  %v20936_v50 = vld [vmem:[%s25080_s9 + $0x420] ss:$40 sps:$4 sm:$0xff]  }
 0x25b   : > { %6026 = vmatprep.subr.bf16.mxu1 %v20863_v51  ;;  %v20939_v51 = vld [vmem:[%s25080_s9 + $0x428] ss:$40 sps:$4 sm:$0xff]  }
 0x25c   : > { %5690 = vmatmul.mubr.bf16.vlgmr.msra.gmra.mrb[0].mxu0 %v25410_v52 }
 0x25d   : > { %5854 = vmatmul.mubr.bf16.vlgmr.msra.gmra.mrb[0].mxu1 %v25410_v52  ;;  %5863 = vmatpush1.bf16.msra.mxu0 %v20858_v53  ;;  %v20944_v53 = vld [vmem:[%s25080_s9 + $0x474] ss:$40 sps:$4 sm:$0xff]  }
 0x25e   : > { %6027 = vmatpush1.bf16.msra.mxu1 %v20861_v54  ;;  %5864 = vmatprep.subr.bf16.mxu0 %v20866_v55  ;;  %v20947_v54 = vld [vmem:[%s25080_s9 + $0x47c] ss:$40 sps:$4 sm:$0xff]   ;;  %v20942_v55 = vld [vmem:[%s25080_s9 + $0x470] ss:$40 sps:$4 sm:$0xff]  }
 0x25f   : > { %6028 = vmatprep.subr.bf16.mxu1 %v20869_v56  ;;  %5894 = vmatprep.mubr.bf16.mxu0 %v25103_v21  ;;  %v20945_v56 = vld [vmem:[%s25080_s9 + $0x478] ss:$40 sps:$4 sm:$0xff]  }
 0x260   : > { %6058 = vmatprep.mubr.bf16.mxu1 %v25103_v21 }
 0x261   : > { %5865 = vmatpush1.bf16.msra.mxu0 %v20864_v35  ;;  %v20950_v35 = vld [vmem:[%s25080_s9 + $0x4c4] ss:$40 sps:$4 sm:$0xff]  }
 0x262   : > { %6029 = vmatpush1.bf16.msra.mxu1 %v20867_v57  ;;  %5866 = vmatprep.subr.bf16.mxu0 %v20872_v58  ;;  %v20953_v57 = vld [vmem:[%s25080_s9 + $0x4cc] ss:$40 sps:$4 sm:$0xff]   ;;  %v20948_v58 = vld [vmem:[%s25080_s9 + $0x4c0] ss:$40 sps:$4 sm:$0xff]  }
 0x263   : > { %6030 = vmatprep.subr.bf16.mxu1 %v20875_v59  ;;  %v20951_v59 = vld [vmem:[%s25080_s9 + $0x4c8] ss:$40 sps:$4 sm:$0xff]  }
 0x265   : > { %5867 = vmatpush1.bf16.msra.mxu0 %v20870_v60  ;;  %v20956_v60 = vld [vmem:[%s25080_s9 + $0x514] ss:$40 sps:$4 sm:$0xff]  }
 0x266   : > { %6031 = vmatpush1.bf16.msra.mxu1 %v20873_v61  ;;  %5868 = vmatprep.subr.bf16.mxu0 %v20878_v62  ;;  %v20959_v61 = vld [vmem:[%s25080_s9 + $0x51c] ss:$40 sps:$4 sm:$0xff]   ;;  %v20954_v62 = vld [vmem:[%s25080_s9 + $0x510] ss:$40 sps:$4 sm:$0xff]  }
 0x267   : > { %6032 = vmatprep.subr.bf16.mxu1 %v20881_v63  ;;  %v20957_v63 = vld [vmem:[%s25080_s9 + $0x518] ss:$40 sps:$4 sm:$0xff]  }
 0x269   : > { %5869 = vmatpush1.bf16.msra.mxu0 %v20876_v0  ;;  %v20962_v0 = vld [vmem:[%s25080_s9 + $0x564] ss:$40 sps:$4 sm:$0xff]  }
 0x26a   : > { %6033 = vmatpush1.bf16.msra.mxu1 %v20879_v1  ;;  %5870 = vmatprep.subr.bf16.mxu0 %v20884_v2  ;;  %v20965_v1 = vld [vmem:[%s25080_s9 + $0x56c] ss:$40 sps:$4 sm:$0xff]   ;;  %v20960_v2 = vld [vmem:[%s25080_s9 + $0x560] ss:$40 sps:$4 sm:$0xff]  }
 0x26b   : > { %6034 = vmatprep.subr.bf16.mxu1 %v20887_v5  ;;  %v20963_v5 = vld [vmem:[%s25080_s9 + $0x568] ss:$40 sps:$4 sm:$0xff]  }
 0x26d   : > { %5871 = vmatpush1.bf16.msra.mxu0 %v20882_v6  ;;  %v20968_v6 = vld [vmem:[%s25080_s9 + $0x5b4] ss:$40 sps:$4 sm:$0xff]  }
 0x26e   : > { %6035 = vmatpush1.bf16.msra.mxu1 %v20885_v7  ;;  %5872 = vmatprep.subr.bf16.mxu0 %v20890_v9  ;;  %v20971_v7 = vld [vmem:[%s25080_s9 + $0x5bc] ss:$40 sps:$4 sm:$0xff]   ;;  %v20966_v9 = vld [vmem:[%s25080_s9 + $0x5b0] ss:$40 sps:$4 sm:$0xff]  }
 0x26f   : > { %6036 = vmatprep.subr.bf16.mxu1 %v20893_v10  ;;  %v20969_v10 = vld [vmem:[%s25080_s9 + $0x5b8] ss:$40 sps:$4 sm:$0xff]  }
 0x271   : > { %5873 = vmatpush1.bf16.msra.mxu0 %v20888_v11  ;;  %v20974_v11 = vld [vmem:[%s25080_s9 + $0x604] ss:$40 sps:$4 sm:$0xff]  }
 0x272   : > { %6037 = vmatpush1.bf16.msra.mxu1 %v20891_v14  ;;  %5874 = vmatprep.subr.bf16.mxu0 %v20896_v15  ;;  %v20977_v14 = vld [vmem:[%s25080_s9 + $0x60c] ss:$40 sps:$4 sm:$0xff]   ;;  %v20972_v15 = vld [vmem:[%s25080_s9 + $0x600] ss:$40 sps:$4 sm:$0xff]  }
 0x273   : > { %6038 = vmatprep.subr.bf16.mxu1 %v20899_v4  ;;  %v20975_v4 = vld [vmem:[%s25080_s9 + $0x608] ss:$40 sps:$4 sm:$0xff]  }
 0x275   : > { %5875 = vmatpush1.bf16.msra.mxu0 %v20894_v16  ;;  %v20980_v16 = vld [vmem:[%s25080_s9 + $0x654] ss:$40 sps:$4 sm:$0xff]  }
 0x276   : > { %6039 = vmatpush1.bf16.msra.mxu1 %v20897_v17  ;;  %5876 = vmatprep.subr.bf16.mxu0 %v20902_v18  ;;  %v20983_v17 = vld [vmem:[%s25080_s9 + $0x65c] ss:$40 sps:$4 sm:$0xff]   ;;  %v20978_v18 = vld [vmem:[%s25080_s9 + $0x650] ss:$40 sps:$4 sm:$0xff]  }
 0x277   : > { %6040 = vmatprep.subr.bf16.mxu1 %v20905_v19  ;;  %v20981_v19 = vld [vmem:[%s25080_s9 + $0x658] ss:$40 sps:$4 sm:$0xff]  }
 0x279   : > { %5877 = vmatpush1.bf16.msra.mxu0 %v20900_v22  ;;  %v20986_v22 = vld [vmem:[%s25080_s9 + $0x6a4] ss:$40 sps:$4 sm:$0xff]  }
 0x27a   : > { %6041 = vmatpush1.bf16.msra.mxu1 %v20903_v23  ;;  %5878 = vmatprep.subr.bf16.mxu0 %v20908_v25  ;;  %v20989_v23 = vld [vmem:[%s25080_s9 + $0x6ac] ss:$40 sps:$4 sm:$0xff]   ;;  %v20984_v25 = vld [vmem:[%s25080_s9 + $0x6a0] ss:$40 sps:$4 sm:$0xff]  }
 0x27b   : > { %6042 = vmatprep.subr.bf16.mxu1 %v20911_v26  ;;  %v20987_v26 = vld [vmem:[%s25080_s9 + $0x6a8] ss:$40 sps:$4 sm:$0xff]  }
 0x27d   : > { %5879 = vmatpush1.bf16.msra.mxu0 %v20906_v12  ;;  %v20992_v12 = vld [vmem:[%s25080_s9 + $0x6f4] ss:$40 sps:$4 sm:$0xff]  }
 0x27e   : > { %6043 = vmatpush1.bf16.msra.mxu1 %v20909_v27  ;;  %5880 = vmatprep.subr.bf16.mxu0 %v20914_v30  ;;  %v20995_v27 = vld [vmem:[%s25080_s9 + $0x6fc] ss:$40 sps:$4 sm:$0xff]   ;;  %v20990_v30 = vld [vmem:[%s25080_s9 + $0x6f0] ss:$40 sps:$4 sm:$0xff]  }
 0x27f   : > { %6044 = vmatprep.subr.bf16.mxu1 %v20917_v31  ;;  %v20993_v31 = vld [vmem:[%s25080_s9 + $0x6f8] ss:$40 sps:$4 sm:$0xff]  }
 0x281   : > { %5881 = vmatpush1.bf16.msra.mxu0 %v20912_v13  ;;  %v20998_v13 = vld [vmem:[%s25080_s9 + $0x744] ss:$40 sps:$4 sm:$0xff]  }
 0x282   : > { %6045 = vmatpush1.bf16.msra.mxu1 %v20915_v33  ;;  %5882 = vmatprep.subr.bf16.mxu0 %v20920_v34  ;;  %v21001_v33 = vld [vmem:[%s25080_s9 + $0x74c] ss:$40 sps:$4 sm:$0xff]   ;;  %v20996_v34 = vld [vmem:[%s25080_s9 + $0x740] ss:$40 sps:$4 sm:$0xff]  }
 0x283   : > { %6046 = vmatprep.subr.bf16.mxu1 %v20923_v36  ;;  %v20999_v36 = vld [vmem:[%s25080_s9 + $0x748] ss:$40 sps:$4 sm:$0xff]  }
 0x285   : > { %5883 = vmatpush1.bf16.msra.mxu0 %v20918_v29  ;;  %v21004_v29 = vld [vmem:[%s25080_s9 + $0x794] ss:$40 sps:$4 sm:$0xff]  }
 0x286   : > { %6047 = vmatpush1.bf16.msra.mxu1 %v20921_v38  ;;  %5884 = vmatprep.subr.bf16.mxu0 %v20926_v39  ;;  %v21007_v38 = vld [vmem:[%s25080_s9 + $0x79c] ss:$40 sps:$4 sm:$0xff]   ;;  %v21002_v39 = vld [vmem:[%s25080_s9 + $0x790] ss:$40 sps:$4 sm:$0xff]  }
 0x287   : > { %6048 = vmatprep.subr.bf16.mxu1 %v20929_v40  ;;  %v21005_v40 = vld [vmem:[%s25080_s9 + $0x798] ss:$40 sps:$4 sm:$0xff]  }
 0x289   : > { %5885 = vmatpush1.bf16.msra.mxu0 %v20924_v41  ;;  %v21010_v41 = vld [vmem:[%s25080_s9 + $0x7e4] ss:$40 sps:$4 sm:$0xff]  }
 0x28a   : > { %6049 = vmatpush1.bf16.msra.mxu1 %v20927_v43  ;;  %5886 = vmatprep.subr.bf16.mxu0 %v20932_v44  ;;  %v21013_v43 = vld [vmem:[%s25080_s9 + $0x7ec] ss:$40 sps:$4 sm:$0xff]   ;;  %v21008_v44 = vld [vmem:[%s25080_s9 + $0x7e0] ss:$40 sps:$4 sm:$0xff]  }
 0x28b   : > { %6050 = vmatprep.subr.bf16.mxu1 %v20935_v45  ;;  %v21011_v45 = vld [vmem:[%s25080_s9 + $0x7e8] ss:$40 sps:$4 sm:$0xff]  }
 0x28d   : > { %5887 = vmatpush1.bf16.msra.mxu0 %v20930_v47  ;;  %v21016_v47 = vld [vmem:[%s25080_s9 + $0x834] ss:$40 sps:$4 sm:$0xff]  }
 0x28e   : > { %6051 = vmatpush1.bf16.msra.mxu1 %v20933_v32  ;;  %5888 = vmatprep.subr.bf16.mxu0 %v20938_v48  ;;  %v21019_v32 = vld [vmem:[%s25080_s9 + $0x83c] ss:$40 sps:$4 sm:$0xff]   ;;  %v21014_v48 = vld [vmem:[%s25080_s9 + $0x830] ss:$40 sps:$4 sm:$0xff]  }
 0x28f   : > { %6052 = vmatprep.subr.bf16.mxu1 %v20941_v49  ;;  %v21017_v49 = vld [vmem:[%s25080_s9 + $0x838] ss:$40 sps:$4 sm:$0xff]  }
 0x291   : > { %5889 = vmatpush1.bf16.msra.mxu0 %v20936_v50  ;;  %v21022_v50 = vld [vmem:[%s25080_s9 + $0x884] ss:$40 sps:$4 sm:$0xff]  }
 0x292   : > { %6053 = vmatpush1.bf16.msra.mxu1 %v20939_v51  ;;  %5890 = vmatprep.subr.bf16.mxu0 %v20944_v53  ;;  %v21025_v51 = vld [vmem:[%s25080_s9 + $0x88c] ss:$40 sps:$4 sm:$0xff]   ;;  %v21020_v53 = vld [vmem:[%s25080_s9 + $0x880] ss:$40 sps:$4 sm:$0xff]  }
 0x293   : > { %6054 = vmatprep.subr.bf16.mxu1 %v20947_v54  ;;  %v21023_v54 = vld [vmem:[%s25080_s9 + $0x888] ss:$40 sps:$4 sm:$0xff]  }
 0x295   : > { %5891 = vmatpush1.bf16.msra.mxu0 %v20942_v55  ;;  %v21028_v55 = vld [vmem:[%s25080_s9 + $0x8d4] ss:$40 sps:$4 sm:$0xff]  }
 0x296   : > { %6055 = vmatpush1.bf16.msra.mxu1 %v20945_v56  ;;  %5892 = vmatprep.subr.bf16.mxu0 %v20950_v35  ;;  %v21031_v56 = vld [vmem:[%s25080_s9 + $0x8dc] ss:$40 sps:$4 sm:$0xff]   ;;  %v21026_v35 = vld [vmem:[%s25080_s9 + $0x8d0] ss:$40 sps:$4 sm:$0xff]  }
 0x297   : > { %6056 = vmatprep.subr.bf16.mxu1 %v20953_v57  ;;  %v21029_v57 = vld [vmem:[%s25080_s9 + $0x8d8] ss:$40 sps:$4 sm:$0xff]  }
 0x299   : > { %5893 = vmatpush1.bf16.msra.mxu0 %v20948_v58  ;;  %v21034_v58 = vld [vmem:[%s25080_s9 + $0x924] ss:$40 sps:$4 sm:$0xff]  }
 0x29a   : > { %6057 = vmatpush1.bf16.msra.mxu1 %v20951_v59  ;;  %5903 = vmatprep.subr.bf16.mxu0 %v20956_v60  ;;  %v21037_v59 = vld [vmem:[%s25080_s9 + $0x92c] ss:$40 sps:$4 sm:$0xff]   ;;  %v21032_v60 = vld [vmem:[%s25080_s9 + $0x920] ss:$40 sps:$4 sm:$0xff]  }
 0x29b   : > { %6067 = vmatprep.subr.bf16.mxu1 %v20959_v61  ;;  %v21035_v61 = vld [vmem:[%s25080_s9 + $0x928] ss:$40 sps:$4 sm:$0xff]  }
 0x29c   : > { %5895 = vmatmul.mubr.bf16.vlgmr.msra.gmra.mrb[4].mxu0 %v25172_v20 }
 0x29d   : > { %6059 = vmatmul.mubr.bf16.vlgmr.msra.gmra.mrb[4].mxu1 %v25172_v20  ;;  %5904 = vmatpush1.bf16.msra.mxu0 %v20954_v62  ;;  %v21040_v62 = vld [vmem:[%s25080_s9 + $0x974] ss:$40 sps:$4 sm:$0xff]  }
 0x29e   : > { %6068 = vmatpush1.bf16.msra.mxu1 %v20957_v63  ;;  %5905 = vmatprep.subr.bf16.mxu0 %v20962_v0  ;;  %v21043_v63 = vld [vmem:[%s25080_s9 + $0x97c] ss:$40 sps:$4 sm:$0xff]   ;;  %v21038_v0 = vld [vmem:[%s25080_s9 + $0x970] ss:$40 sps:$4 sm:$0xff]  }
 0x29f   : > { %6069 = vmatprep.subr.bf16.mxu1 %v20965_v1  ;;  %5935 = vmatprep.mubr.bf16.mxu0 %v25176_v24  ;;  %v21041_v1 = vld [vmem:[%s25080_s9 + $0x978] ss:$40 sps:$4 sm:$0xff]  }
 0x2a0   : > { %6099 = vmatprep.mubr.bf16.mxu1 %v25176_v24 }
 0x2a1   : > { %5906 = vmatpush1.bf16.msra.mxu0 %v20960_v2  ;;  %v21046_v2 = vld [vmem:[%s25080_s9 + $0x9c4] ss:$40 sps:$4 sm:$0xff]  }
 0x2a2   : > { %6070 = vmatpush1.bf16.msra.mxu1 %v20963_v5  ;;  %5907 = vmatprep.subr.bf16.mxu0 %v20968_v6  ;;  %v21049_v5 = vld [vmem:[%s25080_s9 + $0x9cc] ss:$40 sps:$4 sm:$0xff]   ;;  %v21044_v6 = vld [vmem:[%s25080_s9 + $0x9c0] ss:$40 sps:$4 sm:$0xff]  }
 0x2a3   : > { %6071 = vmatprep.subr.bf16.mxu1 %v20971_v7  ;;  %v21047_v7 = vld [vmem:[%s25080_s9 + $0x9c8] ss:$40 sps:$4 sm:$0xff]  }
 0x2a5   : > { %5908 = vmatpush1.bf16.msra.mxu0 %v20966_v9  ;;  %v21052_v9 = vld [vmem:[%s25080_s9 + $0xa14] ss:$40 sps:$4 sm:$0xff]  }
 0x2a6   : > { %6072 = vmatpush1.bf16.msra.mxu1 %v20969_v10  ;;  %5909 = vmatprep.subr.bf16.mxu0 %v20974_v11  ;;  %v21055_v10 = vld [vmem:[%s25080_s9 + $0xa1c] ss:$40 sps:$4 sm:$0xff]   ;;  %v21050_v11 = vld [vmem:[%s25080_s9 + $0xa10] ss:$40 sps:$4 sm:$0xff]  }
 0x2a7   : > { %6073 = vmatprep.subr.bf16.mxu1 %v20977_v14  ;;  %v21053_v14 = vld [vmem:[%s25080_s9 + $0xa18] ss:$40 sps:$4 sm:$0xff]  }
 0x2a9   : > { %5910 = vmatpush1.bf16.msra.mxu0 %v20972_v15  ;;  %v21058_v15 = vld [vmem:[%s25080_s9 + $0xa64] ss:$40 sps:$4 sm:$0xff]  }
 0x2aa   : > { %6074 = vmatpush1.bf16.msra.mxu1 %v20975_v4  ;;  %5911 = vmatprep.subr.bf16.mxu0 %v20980_v16  ;;  %v21061_v4 = vld [vmem:[%s25080_s9 + $0xa6c] ss:$40 sps:$4 sm:$0xff]   ;;  %v21056_v16 = vld [vmem:[%s25080_s9 + $0xa60] ss:$40 sps:$4 sm:$0xff]  }
 0x2ab   : > { %6075 = vmatprep.subr.bf16.mxu1 %v20983_v17  ;;  %v21059_v17 = vld [vmem:[%s25080_s9 + $0xa68] ss:$40 sps:$4 sm:$0xff]  }
 0x2ad   : > { %5912 = vmatpush1.bf16.msra.mxu0 %v20978_v18  ;;  %v21064_v18 = vld [vmem:[%s25080_s9 + $0xab4] ss:$40 sps:$4 sm:$0xff]  }
 0x2ae   : > { %6076 = vmatpush1.bf16.msra.mxu1 %v20981_v19  ;;  %5913 = vmatprep.subr.bf16.mxu0 %v20986_v22  ;;  %v21067_v19 = vld [vmem:[%s25080_s9 + $0xabc] ss:$40 sps:$4 sm:$0xff]   ;;  %v21062_v22 = vld [vmem:[%s25080_s9 + $0xab0] ss:$40 sps:$4 sm:$0xff]  }
 0x2af   : > { %6077 = vmatprep.subr.bf16.mxu1 %v20989_v23  ;;  %v21065_v23 = vld [vmem:[%s25080_s9 + $0xab8] ss:$40 sps:$4 sm:$0xff]  }
 0x2b1   : > { %5914 = vmatpush1.bf16.msra.mxu0 %v20984_v25  ;;  %v21070_v25 = vld [vmem:[%s25080_s9 + $0xb04] ss:$40 sps:$4 sm:$0xff]  }
 0x2b2   : > { %6078 = vmatpush1.bf16.msra.mxu1 %v20987_v26  ;;  %5915 = vmatprep.subr.bf16.mxu0 %v20992_v12  ;;  %v21073_v26 = vld [vmem:[%s25080_s9 + $0xb0c] ss:$40 sps:$4 sm:$0xff]   ;;  %v21068_v12 = vld [vmem:[%s25080_s9 + $0xb00] ss:$40 sps:$4 sm:$0xff]  }
 0x2b3   : > { %6079 = vmatprep.subr.bf16.mxu1 %v20995_v27  ;;  %v21071_v27 = vld [vmem:[%s25080_s9 + $0xb08] ss:$40 sps:$4 sm:$0xff]  }
 0x2b5   : > { %5916 = vmatpush1.bf16.msra.mxu0 %v20990_v30  ;;  %v21076_v30 = vld [vmem:[%s25080_s9 + $0xb54] ss:$40 sps:$4 sm:$0xff]  }
 0x2b6   : > { %6080 = vmatpush1.bf16.msra.mxu1 %v20993_v31  ;;  %5917 = vmatprep.subr.bf16.mxu0 %v20998_v13  ;;  %v21079_v31 = vld [vmem:[%s25080_s9 + $0xb5c] ss:$40 sps:$4 sm:$0xff]   ;;  %v21074_v13 = vld [vmem:[%s25080_s9 + $0xb50] ss:$40 sps:$4 sm:$0xff]  }
 0x2b7   : > { %6081 = vmatprep.subr.bf16.mxu1 %v21001_v33  ;;  %v21077_v33 = vld [vmem:[%s25080_s9 + $0xb58] ss:$40 sps:$4 sm:$0xff]  }
 0x2b9   : > { %5918 = vmatpush1.bf16.msra.mxu0 %v20996_v34  ;;  %v21082_v34 = vld [vmem:[%s25080_s9 + $0xba4] ss:$40 sps:$4 sm:$0xff]  }
 0x2ba   : > { %6082 = vmatpush1.bf16.msra.mxu1 %v20999_v36  ;;  %5919 = vmatprep.subr.bf16.mxu0 %v21004_v29  ;;  %v21085_v36 = vld [vmem:[%s25080_s9 + $0xbac] ss:$40 sps:$4 sm:$0xff]   ;;  %v21080_v29 = vld [vmem:[%s25080_s9 + $0xba0] ss:$40 sps:$4 sm:$0xff]  }
 0x2bb   : > { %6083 = vmatprep.subr.bf16.mxu1 %v21007_v38  ;;  %v21083_v38 = vld [vmem:[%s25080_s9 + $0xba8] ss:$40 sps:$4 sm:$0xff]  }
 0x2bd   : > { %5920 = vmatpush1.bf16.msra.mxu0 %v21002_v39  ;;  %v21088_v39 = vld [vmem:[%s25080_s9 + $0xbf4] ss:$40 sps:$4 sm:$0xff]  }
 0x2be   : > { %6084 = vmatpush1.bf16.msra.mxu1 %v21005_v40  ;;  %5921 = vmatprep.subr.bf16.mxu0 %v21010_v41  ;;  %v21091_v40 = vld [vmem:[%s25080_s9 + $0xbfc] ss:$40 sps:$4 sm:$0xff]   ;;  %v21086_v41 = vld [vmem:[%s25080_s9 + $0xbf0] ss:$40 sps:$4 sm:$0xff]  }
 0x2bf   : > { %6085 = vmatprep.subr.bf16.mxu1 %v21013_v43  ;;  %v21089_v43 = vld [vmem:[%s25080_s9 + $0xbf8] ss:$40 sps:$4 sm:$0xff]  }
 0x2c1   : > { %5922 = vmatpush1.bf16.msra.mxu0 %v21008_v44  ;;  %v21094_v44 = vld [vmem:[%s25080_s9 + $0xc44] ss:$40 sps:$4 sm:$0xff]  }
 0x2c2   : > { %6086 = vmatpush1.bf16.msra.mxu1 %v21011_v45  ;;  %5923 = vmatprep.subr.bf16.mxu0 %v21016_v47  ;;  %v21097_v45 = vld [vmem:[%s25080_s9 + $0xc4c] ss:$40 sps:$4 sm:$0xff]   ;;  %v21092_v47 = vld [vmem:[%s25080_s9 + $0xc40] ss:$40 sps:$4 sm:$0xff]  }
 0x2c3   : > { %6087 = vmatprep.subr.bf16.mxu1 %v21019_v32  ;;  %v21095_v32 = vld [vmem:[%s25080_s9 + $0xc48] ss:$40 sps:$4 sm:$0xff]  }
 0x2c5   : > { %5924 = vmatpush1.bf16.msra.mxu0 %v21014_v48  ;;  %v21100_v48 = vld [vmem:[%s25080_s9 + $0xc94] ss:$40 sps:$4 sm:$0xff]  }
 0x2c6   : > { %6088 = vmatpush1.bf16.msra.mxu1 %v21017_v49  ;;  %5925 = vmatprep.subr.bf16.mxu0 %v21022_v50  ;;  %v21103_v49 = vld [vmem:[%s25080_s9 + $0xc9c] ss:$40 sps:$4 sm:$0xff]   ;;  %v21098_v50 = vld [vmem:[%s25080_s9 + $0xc90] ss:$40 sps:$4 sm:$0xff]  }
 0x2c7   : > { %6089 = vmatprep.subr.bf16.mxu1 %v21025_v51  ;;  %v21101_v51 = vld [vmem:[%s25080_s9 + $0xc98] ss:$40 sps:$4 sm:$0xff]  }
 0x2c9   : > { %5926 = vmatpush1.bf16.msra.mxu0 %v21020_v53  ;;  %v21106_v53 = vld [vmem:[%s25080_s9 + $0xce4] ss:$40 sps:$4 sm:$0xff]  }
 0x2ca   : > { %6090 = vmatpush1.bf16.msra.mxu1 %v21023_v54  ;;  %5927 = vmatprep.subr.bf16.mxu0 %v21028_v55  ;;  %v21109_v54 = vld [vmem:[%s25080_s9 + $0xcec] ss:$40 sps:$4 sm:$0xff]   ;;  %v21104_v55 = vld [vmem:[%s25080_s9 + $0xce0] ss:$40 sps:$4 sm:$0xff]  }
 0x2cb   : > { %6091 = vmatprep.subr.bf16.mxu1 %v21031_v56  ;;  %v21107_v56 = vld [vmem:[%s25080_s9 + $0xce8] ss:$40 sps:$4 sm:$0xff]  }
 0x2cd   : > { %5928 = vmatpush1.bf16.msra.mxu0 %v21026_v35  ;;  %v21112_v35 = vld [vmem:[%s25080_s9 + $0xd34] ss:$40 sps:$4 sm:$0xff]  }
 0x2ce   : > { %6092 = vmatpush1.bf16.msra.mxu1 %v21029_v57  ;;  %5929 = vmatprep.subr.bf16.mxu0 %v21034_v58  ;;  %v21115_v57 = vld [vmem:[%s25080_s9 + $0xd3c] ss:$40 sps:$4 sm:$0xff]   ;;  %v21110_v58 = vld [vmem:[%s25080_s9 + $0xd30] ss:$40 sps:$4 sm:$0xff]  }
 0x2cf   : > { %6093 = vmatprep.subr.bf16.mxu1 %v21037_v59  ;;  %v21113_v59 = vld [vmem:[%s25080_s9 + $0xd38] ss:$40 sps:$4 sm:$0xff]  }
 0x2d1   : > { %5930 = vmatpush1.bf16.msra.mxu0 %v21032_v60  ;;  %v21118_v60 = vld [vmem:[%s25080_s9 + $0xd84] ss:$40 sps:$4 sm:$0xff]  }
 0x2d2   : > { %6094 = vmatpush1.bf16.msra.mxu1 %v21035_v61  ;;  %5931 = vmatprep.subr.bf16.mxu0 %v21040_v62  ;;  %v21121_v61 = vld [vmem:[%s25080_s9 + $0xd8c] ss:$40 sps:$4 sm:$0xff]   ;;  %v21116_v62 = vld [vmem:[%s25080_s9 + $0xd80] ss:$40 sps:$4 sm:$0xff]  }
 0x2d3   : > { %6095 = vmatprep.subr.bf16.mxu1 %v21043_v63  ;;  %v21119_v63 = vld [vmem:[%s25080_s9 + $0xd88] ss:$40 sps:$4 sm:$0xff]  }
 0x2d5   : > { %5932 = vmatpush1.bf16.msra.mxu0 %v21038_v0  ;;  %v21124_v0 = vld [vmem:[%s25080_s9 + $0xdd4] ss:$40 sps:$4 sm:$0xff]  }
 0x2d6   : > { %6096 = vmatpush1.bf16.msra.mxu1 %v21041_v1  ;;  %5933 = vmatprep.subr.bf16.mxu0 %v21046_v2  ;;  %v21127_v1 = vld [vmem:[%s25080_s9 + $0xddc] ss:$40 sps:$4 sm:$0xff]   ;;  %v21122_v2 = vld [vmem:[%s25080_s9 + $0xdd0] ss:$40 sps:$4 sm:$0xff]  }
 0x2d7   : > { %6097 = vmatprep.subr.bf16.mxu1 %v21049_v5  ;;  %v21125_v5 = vld [vmem:[%s25080_s9 + $0xdd8] ss:$40 sps:$4 sm:$0xff]  }
 0x2d9   : > { %5934 = vmatpush1.bf16.msra.mxu0 %v21044_v6  ;;  %v21130_v6 = vld [vmem:[%s25080_s9 + $0xe24] ss:$40 sps:$4 sm:$0xff]  }
 0x2da   : > { %6098 = vmatpush1.bf16.msra.mxu1 %v21047_v7  ;;  %5944 = vmatprep.subr.bf16.mxu0 %v21052_v9  ;;  %v21133_v7 = vld [vmem:[%s25080_s9 + $0xe2c] ss:$40 sps:$4 sm:$0xff]   ;;  %v21128_v9 = vld [vmem:[%s25080_s9 + $0xe20] ss:$40 sps:$4 sm:$0xff]  }
 0x2db   : > { %6108 = vmatprep.subr.bf16.mxu1 %v21055_v10  ;;  %v21131_v10 = vld [vmem:[%s25080_s9 + $0xe28] ss:$40 sps:$4 sm:$0xff]  }
 0x2dc   : > { %5936 = vmatmul.mubr.bf16.vlgmr.msra.gmra.mrb[4].mxu0 %v25246_v28 }
 0x2dd   : > { %6100 = vmatmul.mubr.bf16.vlgmr.msra.gmra.mrb[4].mxu1 %v25246_v28  ;;  %5945 = vmatpush1.bf16.msra.mxu0 %v21050_v11  ;;  %v21136_v11 = vld [vmem:[%s25080_s9 + $0xe74] ss:$40 sps:$4 sm:$0xff]  }
 0x2de   : > { %6109 = vmatpush1.bf16.msra.mxu1 %v21053_v14  ;;  %5946 = vmatprep.subr.bf16.mxu0 %v21058_v15  ;;  %v21139_v14 = vld [vmem:[%s25080_s9 + $0xe7c] ss:$40 sps:$4 sm:$0xff]   ;;  %v21134_v15 = vld [vmem:[%s25080_s9 + $0xe70] ss:$40 sps:$4 sm:$0xff]  }
 0x2df   : > { %6110 = vmatprep.subr.bf16.mxu1 %v21061_v4  ;;  %5976 = vmatprep.mubr.bf16.mxu0 %v25267_v37  ;;  %v21137_v4 = vld [vmem:[%s25080_s9 + $0xe78] ss:$40 sps:$4 sm:$0xff]  }
 0x2e0   : > { %6140 = vmatprep.mubr.bf16.mxu1 %v25267_v37 }
 0x2e1   : > { %5947 = vmatpush1.bf16.msra.mxu0 %v21056_v16  ;;  %v21142_v16 = vld [vmem:[%s25080_s9 + $0xec4] ss:$40 sps:$4 sm:$0xff]  }
 0x2e2   : > { %6111 = vmatpush1.bf16.msra.mxu1 %v21059_v17  ;;  %5948 = vmatprep.subr.bf16.mxu0 %v21064_v18  ;;  %v21145_v17 = vld [vmem:[%s25080_s9 + $0xecc] ss:$40 sps:$4 sm:$0xff]   ;;  %v21140_v18 = vld [vmem:[%s25080_s9 + $0xec0] ss:$40 sps:$4 sm:$0xff]  }
 0x2e3   : > { %6112 = vmatprep.subr.bf16.mxu1 %v21067_v19  ;;  %v21143_v19 = vld [vmem:[%s25080_s9 + $0xec8] ss:$40 sps:$4 sm:$0xff]  }
 0x2e5   : > { %5949 = vmatpush1.bf16.msra.mxu0 %v21062_v22  ;;  %v21148_v22 = vld [vmem:[%s25080_s9 + $0xf14] ss:$40 sps:$4 sm:$0xff]  }
 0x2e6   : > { %6113 = vmatpush1.bf16.msra.mxu1 %v21065_v23  ;;  %5950 = vmatprep.subr.bf16.mxu0 %v21070_v25  ;;  %v21151_v23 = vld [vmem:[%s25080_s9 + $0xf1c] ss:$40 sps:$4 sm:$0xff]   ;;  %v21146_v25 = vld [vmem:[%s25080_s9 + $0xf10] ss:$40 sps:$4 sm:$0xff]  }
 0x2e7   : > { %6114 = vmatprep.subr.bf16.mxu1 %v21073_v26  ;;  %v21149_v26 = vld [vmem:[%s25080_s9 + $0xf18] ss:$40 sps:$4 sm:$0xff]  }
 0x2e9   : > { %5951 = vmatpush1.bf16.msra.mxu0 %v21068_v12  ;;  %v21154_v12 = vld [vmem:[%s25080_s9 + $0xf64] ss:$40 sps:$4 sm:$0xff]  }
 0x2ea   : > { %6115 = vmatpush1.bf16.msra.mxu1 %v21071_v27  ;;  %5952 = vmatprep.subr.bf16.mxu0 %v21076_v30  ;;  %v21157_v27 = vld [vmem:[%s25080_s9 + $0xf6c] ss:$40 sps:$4 sm:$0xff]   ;;  %v21152_v30 = vld [vmem:[%s25080_s9 + $0xf60] ss:$40 sps:$4 sm:$0xff]  }
 0x2eb   : > { %6116 = vmatprep.subr.bf16.mxu1 %v21079_v31  ;;  %v21155_v31 = vld [vmem:[%s25080_s9 + $0xf68] ss:$40 sps:$4 sm:$0xff]  }
 0x2ed   : > { %5953 = vmatpush1.bf16.msra.mxu0 %v21074_v13  ;;  %v21160_v13 = vld [vmem:[%s25080_s9 + $0xfb4] ss:$40 sps:$4 sm:$0xff]  }
 0x2ee   : > { %6117 = vmatpush1.bf16.msra.mxu1 %v21077_v33  ;;  %5954 = vmatprep.subr.bf16.mxu0 %v21082_v34  ;;  %v21163_v33 = vld [vmem:[%s25080_s9 + $0xfbc] ss:$40 sps:$4 sm:$0xff]   ;;  %v21158_v34 = vld [vmem:[%s25080_s9 + $0xfb0] ss:$40 sps:$4 sm:$0xff]  }
 0x2ef   : > { %6118 = vmatprep.subr.bf16.mxu1 %v21085_v36  ;;  %v21161_v36 = vld [vmem:[%s25080_s9 + $0xfb8] ss:$40 sps:$4 sm:$0xff]  }
 0x2f1   : > { %5955 = vmatpush1.bf16.msra.mxu0 %v21080_v29  ;;  %v21166_v29 = vld [vmem:[%s25080_s9 + $0x1004] ss:$40 sps:$4 sm:$0xff]  }
 0x2f2   : > { %6119 = vmatpush1.bf16.msra.mxu1 %v21083_v38  ;;  %5956 = vmatprep.subr.bf16.mxu0 %v21088_v39  ;;  %v21169_v38 = vld [vmem:[%s25080_s9 + $0x100c] ss:$40 sps:$4 sm:$0xff]   ;;  %v21164_v39 = vld [vmem:[%s25080_s9 + $0x1000] ss:$40 sps:$4 sm:$0xff]  }
 0x2f3   : > { %6120 = vmatprep.subr.bf16.mxu1 %v21091_v40  ;;  %v21167_v40 = vld [vmem:[%s25080_s9 + $0x1008] ss:$40 sps:$4 sm:$0xff]  }
 0x2f5   : > { %5957 = vmatpush1.bf16.msra.mxu0 %v21086_v41  ;;  %v21172_v41 = vld [vmem:[%s25080_s9 + $0x1054] ss:$40 sps:$4 sm:$0xff]  }
 0x2f6   : > { %6121 = vmatpush1.bf16.msra.mxu1 %v21089_v43  ;;  %5958 = vmatprep.subr.bf16.mxu0 %v21094_v44  ;;  %v21175_v43 = vld [vmem:[%s25080_s9 + $0x105c] ss:$40 sps:$4 sm:$0xff]   ;;  %v21170_v44 = vld [vmem:[%s25080_s9 + $0x1050] ss:$40 sps:$4 sm:$0xff]  }
 0x2f7   : > { %6122 = vmatprep.subr.bf16.mxu1 %v21097_v45  ;;  %v21173_v45 = vld [vmem:[%s25080_s9 + $0x1058] ss:$40 sps:$4 sm:$0xff]  }
 0x2f9   : > { %5959 = vmatpush1.bf16.msra.mxu0 %v21092_v47  ;;  %v21178_v47 = vld [vmem:[%s25080_s9 + $0x10a4] ss:$40 sps:$4 sm:$0xff]  }
 0x2fa   : > { %6123 = vmatpush1.bf16.msra.mxu1 %v21095_v32  ;;  %5960 = vmatprep.subr.bf16.mxu0 %v21100_v48  ;;  %v21181_v32 = vld [vmem:[%s25080_s9 + $0x10ac] ss:$40 sps:$4 sm:$0xff]   ;;  %v21176_v48 = vld [vmem:[%s25080_s9 + $0x10a0] ss:$40 sps:$4 sm:$0xff]  }
 0x2fb   : > { %6124 = vmatprep.subr.bf16.mxu1 %v21103_v49  ;;  %v21179_v49 = vld [vmem:[%s25080_s9 + $0x10a8] ss:$40 sps:$4 sm:$0xff]  }
 0x2fd   : > { %5961 = vmatpush1.bf16.msra.mxu0 %v21098_v50  ;;  %v21184_v50 = vld [vmem:[%s25080_s9 + $0x10f4] ss:$40 sps:$4 sm:$0xff]  }
 0x2fe   : > { %6125 = vmatpush1.bf16.msra.mxu1 %v21101_v51  ;;  %5962 = vmatprep.subr.bf16.mxu0 %v21106_v53  ;;  %v21187_v51 = vld [vmem:[%s25080_s9 + $0x10fc] ss:$40 sps:$4 sm:$0xff]  }
 0x2ff   : > { %6126 = vmatprep.subr.bf16.mxu1 %v21109_v54 }
 0x301   : > { %5963 = vmatpush1.bf16.msra.mxu0 %v21104_v55 }
 0x302   : > { %6127 = vmatpush1.bf16.msra.mxu1 %v21107_v56  ;;  %5964 = vmatprep.subr.bf16.mxu0 %v21112_v35 }
 0x303   : > { %6128 = vmatprep.subr.bf16.mxu1 %v21115_v57 }
 0x305   : > { %5965 = vmatpush1.bf16.msra.mxu0 %v21110_v58  ;;  %v21182_v58 = vld [vmem:[%s25080_s9 + $0x10f0] ss:$40 sps:$4 sm:$0xff]  }
 0x306   : > { %6129 = vmatpush1.bf16.msra.mxu1 %v21113_v59  ;;  %5966 = vmatprep.subr.bf16.mxu0 %v21118_v60  ;;  %v21185_v59 = vld [vmem:[%s25080_s9 + $0x10f8] ss:$40 sps:$4 sm:$0xff]  }
 0x307   : > { %6130 = vmatprep.subr.bf16.mxu1 %v21121_v61 }
 0x309   : > { %5967 = vmatpush1.bf16.msra.mxu0 %v21116_v62  ;;  %v21190_v62 = vld [vmem:[%s25080_s9 + $0x1144] ss:$40 sps:$4 sm:$0xff]  }
 0x30a   : > { %6131 = vmatpush1.bf16.msra.mxu1 %v21119_v63  ;;  %5968 = vmatprep.subr.bf16.mxu0 %v21124_v0  ;;  %v21193_v63 = vld [vmem:[%s25080_s9 + $0x114c] ss:$40 sps:$4 sm:$0xff]   ;;  %v21188_v0 = vld [vmem:[%s25080_s9 + $0x1140] ss:$40 sps:$4 sm:$0xff]  }
 0x30b   : > { %6132 = vmatprep.subr.bf16.mxu1 %v21127_v1  ;;  %v21191_v1 = vld [vmem:[%s25080_s9 + $0x1148] ss:$40 sps:$4 sm:$0xff]  }
 0x30d   : > { %5969 = vmatpush1.bf16.msra.mxu0 %v21122_v2  ;;  %v21196_v2 = vld [vmem:[%s25080_s9 + $0x1194] ss:$40 sps:$4 sm:$0xff]  }
 0x30e   : > { %6133 = vmatpush1.bf16.msra.mxu1 %v21125_v5  ;;  %5970 = vmatprep.subr.bf16.mxu0 %v21130_v6  ;;  %v21199_v5 = vld [vmem:[%s25080_s9 + $0x119c] ss:$40 sps:$4 sm:$0xff]   ;;  %v21194_v6 = vld [vmem:[%s25080_s9 + $0x1190] ss:$40 sps:$4 sm:$0xff]  }
 0x30f   : > { %6134 = vmatprep.subr.bf16.mxu1 %v21133_v7  ;;  %v21197_v7 = vld [vmem:[%s25080_s9 + $0x1198] ss:$40 sps:$4 sm:$0xff]  }
 0x311   : > { %5971 = vmatpush1.bf16.msra.mxu0 %v21128_v9  ;;  %v21202_v9 = vld [vmem:[%s25080_s9 + $0x11e4] ss:$40 sps:$4 sm:$0xff]  }
 0x312   : > { %6135 = vmatpush1.bf16.msra.mxu1 %v21131_v10  ;;  %5972 = vmatprep.subr.bf16.mxu0 %v21136_v11  ;;  %v21205_v10 = vld [vmem:[%s25080_s9 + $0x11ec] ss:$40 sps:$4 sm:$0xff]   ;;  %v21200_v11 = vld [vmem:[%s25080_s9 + $0x11e0] ss:$40 sps:$4 sm:$0xff]  }
 0x313   : > { %6136 = vmatprep.subr.bf16.mxu1 %v21139_v14  ;;  %v21203_v14 = vld [vmem:[%s25080_s9 + $0x11e8] ss:$40 sps:$4 sm:$0xff]  }
 0x315   : > { %5973 = vmatpush1.bf16.msra.mxu0 %v21134_v15  ;;  %v21208_v15 = vld [vmem:[%s25080_s9 + $0x1234] ss:$40 sps:$4 sm:$0xff]  }
 0x316   : > { %6137 = vmatpush1.bf16.msra.mxu1 %v21137_v4  ;;  %5974 = vmatprep.subr.bf16.mxu0 %v21142_v16  ;;  %v21211_v4 = vld [vmem:[%s25080_s9 + $0x123c] ss:$40 sps:$4 sm:$0xff]   ;;  %v21206_v16 = vld [vmem:[%s25080_s9 + $0x1230] ss:$40 sps:$4 sm:$0xff]  }
 0x317   : > { %6138 = vmatprep.subr.bf16.mxu1 %v21145_v17  ;;  %v21209_v17 = vld [vmem:[%s25080_s9 + $0x1238] ss:$40 sps:$4 sm:$0xff]  }
 0x319   : > { %5975 = vmatpush1.bf16.msra.mxu0 %v21140_v18  ;;  %v21214_v18 = vld [vmem:[%s25080_s9 + $0x1284] ss:$40 sps:$4 sm:$0xff]  }
 0x31a   : > { %6139 = vmatpush1.bf16.msra.mxu1 %v21143_v19  ;;  %5985 = vmatprep.subr.bf16.mxu0 %v21148_v22  ;;  %v21217_v19 = vld [vmem:[%s25080_s9 + $0x128c] ss:$40 sps:$4 sm:$0xff]   ;;  %v21212_v22 = vld [vmem:[%s25080_s9 + $0x1280] ss:$40 sps:$4 sm:$0xff]  }
 0x31b   : > { %6149 = vmatprep.subr.bf16.mxu1 %v21151_v23  ;;  %v21215_v23 = vld [vmem:[%s25080_s9 + $0x1288] ss:$40 sps:$4 sm:$0xff]  }
 0x31c   : > { %5977 = vmatmul.mubr.bf16.vlgmr.msra.gmra.mrb[4].mxu0 %v25337_v42 }
 0x31d   : > { %6141 = vmatmul.mubr.bf16.vlgmr.msra.gmra.mrb[4].mxu1 %v25337_v42  ;;  %5986 = vmatpush1.bf16.msra.mxu0 %v21146_v25  ;;  %v21220_v25 = vld [vmem:[%s25080_s9 + $0x12d4] ss:$40 sps:$4 sm:$0xff]  }
 0x31e   : > { %6150 = vmatpush1.bf16.msra.mxu1 %v21149_v26  ;;  %5987 = vmatprep.subr.bf16.mxu0 %v21154_v12  ;;  %v21223_v26 = vld [vmem:[%s25080_s9 + $0x12dc] ss:$40 sps:$4 sm:$0xff]   ;;  %v21218_v12 = vld [vmem:[%s25080_s9 + $0x12d0] ss:$40 sps:$4 sm:$0xff]  }
 0x31f   : > { %6151 = vmatprep.subr.bf16.mxu1 %v21157_v27  ;;  %6017 = vmatprep.mubr.bf16.mxu0 %v25342_v46  ;;  %v21221_v27 = vld [vmem:[%s25080_s9 + $0x12d8] ss:$40 sps:$4 sm:$0xff]  }
 0x320   : > { %6181 = vmatprep.mubr.bf16.mxu1 %v25342_v46 }
 0x321   : > { %5988 = vmatpush1.bf16.msra.mxu0 %v21152_v30  ;;  %v21226_v30 = vld [vmem:[%s25080_s9 + $0x1324] ss:$40 sps:$4 sm:$0xff]  }
 0x322   : > { %6152 = vmatpush1.bf16.msra.mxu1 %v21155_v31  ;;  %5989 = vmatprep.subr.bf16.mxu0 %v21160_v13  ;;  %v21229_v31 = vld [vmem:[%s25080_s9 + $0x132c] ss:$40 sps:$4 sm:$0xff]   ;;  %v25693_v13 = vld [vmem:[%s25686_s26] sm:$0xff] }
 0x323   : > { %6153 = vmatprep.subr.bf16.mxu1 %v21163_v33  ;;  %v2290_v33 = vsub.s32 1, %v25073_v3 }
 0x325   : > { %5990 = vmatpush1.bf16.msra.mxu0 %v21158_v34  ;;  %v21224_v34 = vld [vmem:[%s25080_s9 + $0x1320] ss:$40 sps:$4 sm:$0xff]  }
 0x326   : > { %6154 = vmatpush1.bf16.msra.mxu1 %v21161_v36  ;;  %5991 = vmatprep.subr.bf16.mxu0 %v21166_v29  ;;  %v21227_v36 = vld [vmem:[%s25080_s9 + $0x1328] ss:$40 sps:$4 sm:$0xff]   ;;  %v21232_v29 = vld [vmem:[%s25080_s9 + $0x1374] ss:$40 sps:$4 sm:$0xff]  }
 0x327   : > { %6155 = vmatprep.subr.bf16.mxu1 %v21169_v38  ;;  %v21235_v38 = vld [vmem:[%s25080_s9 + $0x137c] ss:$40 sps:$4 sm:$0xff]  }
 0x329   : > { %5992 = vmatpush1.bf16.msra.mxu0 %v21164_v39  ;;  %v2291_v39 = vrot.slane %v25693_v13, %v2290_v33 }
 0x32a   : > { %6156 = vmatpush1.bf16.msra.mxu1 %v21167_v40  ;;  %5993 = vmatprep.subr.bf16.mxu0 %v21172_v41  ;;  %v21230_v40 = vld [vmem:[%s25080_s9 + $0x1370] ss:$40 sps:$4 sm:$0xff]  }
 0x32b   : > { %6157 = vmatprep.subr.bf16.mxu1 %v21175_v43  ;;  %v21233_v41 = vld [vmem:[%s25080_s9 + $0x1378] ss:$40 sps:$4 sm:$0xff]   ;;  %v21238_v43 = vld [vmem:[%s25080_s9 + $0x13c4] ss:$40 sps:$4 sm:$0xff]  }
 0x32d   : > { %5994 = vmatpush1.bf16.msra.mxu0 %v21170_v44  ;;  %v21241_v44 = vld [vmem:[%s25080_s9 + $0x13cc] ss:$40 sps:$4 sm:$0xff]  }
 0x32e   : > { %6158 = vmatpush1.bf16.msra.mxu1 %v21173_v45  ;;  %5995 = vmatprep.subr.bf16.mxu0 %v21178_v47  ;;  %v21236_v47 = vld [vmem:[%s25080_s9 + $0x13c0] ss:$40 sps:$4 sm:$0xff]  }
 0x32f   : > { %6159 = vmatprep.subr.bf16.mxu1 %v21181_v32  ;;  %v25650_v53 = vpop.f32.mrb[0].mxu0  ;;  %v21239_v32 = vld [vmem:[%s25080_s9 + $0x13c8] ss:$40 sps:$4 sm:$0xff]  }
 0x330   : > { %v25652_v54 = vpop.f32.mrb[0].mxu1  ;;  %v25654_v55 = vpop.f32.mrb[1].mxu0 }
 0x331   : > { %v25656_v56 = vpop.f32.mrb[1].mxu1  ;;  %v5695_v35 = vpop.f32.mrb[2].mxu0  ;;  %5996 = vmatpush1.bf16.msra.mxu0 %v21176_v48  ;;  %v20213_v45 = vadd.f32 %v25654_v55, %v2291_v39  ;;  %v21244_v48 = vld [vmem:[%s25080_s9 + $0x24] ss:$40 sps:$4 sm:$0xff]  }
 0x332   : > { %v5859_v57 = vpop.f32.mrb[2].mxu1  ;;  %6160 = vmatpush1.bf16.msra.mxu1 %v21179_v49  ;;  %v5696_v60 = vpop.f32.mrb[3].mxu0  ;;  %5997 = vmatprep.subr.bf16.mxu0 %v21184_v50  ;;  %v21247_v49 = vld [vmem:[%s25555_s21 + $0x4] ss:$76 sps:$4 sm:$0xff]   ;;  %v21253_v55 = vld [vmem:[%s25555_s21 + $0x9c] ss:$76 sps:$4 sm:$0xff]  }
 0x333   : > { %v5860_v61 = vpop.f32.mrb[3].mxu1  ;;  %6161 = vmatprep.subr.bf16.mxu1 %v21187_v51  ;;  %v21242_v50 = vld [vmem:[%s25080_s9 + $0x20] ss:$40 sps:$4 sm:$0xff]   ;;  %v6355_v35 = vmax.f32 %v20213_v45, 0.0  ;;  %v21250_v57 = vld [vmem:[%s25080_s9 + $0x74] ss:$40 sps:$4 sm:$0xff]  }
 0x334   : > { %v21245_v51 = vld [vmem:[%s25555_s21] ss:$76 sps:$4 sm:$0xff]  }
 0x335   : > { %5998 = vmatpush1.bf16.msra.mxu0 %v21182_v58  ;;  %v21248_v58 = vld [vmem:[%s25080_s9 + $0x70] ss:$40 sps:$4 sm:$0xff]   ;;  %v25718_v60 = vpack.c.bf16 %v6355_v35, %v6355_v35  ;;  %v21256_v61 = vld [vmem:[%s25080_s9 + $0xc4] ss:$40 sps:$4 sm:$0xff]   ;;  %v21322_v35 = vld [vmem:[%s25080_s9 + $0x434] ss:$40 sps:$4 sm:$0xff]  }
 0x336   : > { %6162 = vmatpush1.bf16.msra.mxu1 %v21185_v59  ;;  %5999 = vmatprep.subr.bf16.mxu0 %v21190_v62  ;;  %v21251_v59 = vld [vmem:[%s25555_s21 + $0x98] ss:$76 sps:$4 sm:$0xff]   ;;  %v21259_v62 = vld [vmem:[%s25555_s21 + $0x134] ss:$76 sps:$4 sm:$0xff]  }
 0x337   : > { %6163 = vmatprep.subr.bf16.mxu1 %v21193_v63  ;;  %v21254_v63 = vld [vmem:[%s25080_s9 + $0xc0] ss:$40 sps:$4 sm:$0xff]   ;;  %v21304_v39 = vld [vmem:[%s25080_s9 + $0x344] ss:$40 sps:$4 sm:$0xff]  }
 0x338   : > { %v21313_v45 = vld [vmem:[%s25555_s21 + $0x68c] ss:$76 sps:$4 sm:$0xff]  }
 0x339   : > { %6000 = vmatpush1.bf16.msra.mxu0 %v21188_v0  ;;  %v21257_v0 = vld [vmem:[%s25555_s21 + $0x130] ss:$76 sps:$4 sm:$0xff]  }
 0x33a   : > { %6164 = vmatpush1.bf16.msra.mxu1 %v21191_v1  ;;  %6001 = vmatprep.subr.bf16.mxu0 %v21196_v2  ;;  %v21262_v1 = vld [vmem:[%s25080_s9 + $0x114] ss:$40 sps:$4 sm:$0xff]  }
 0x33b   : > { %6165 = vmatprep.subr.bf16.mxu1 %v21199_v5  ;;  %v21265_v2 = vld [vmem:[%s25555_s21 + $0x1cc] ss:$76 sps:$4 sm:$0xff]  }
 0x33c   : > { %v21260_v5 = vld [vmem:[%s25080_s9 + $0x110] ss:$40 sps:$4 sm:$0xff]  }
 0x33d   : > { %6002 = vmatpush1.bf16.msra.mxu0 %v21194_v6  ;;  %v21263_v6 = vld [vmem:[%s25555_s21 + $0x1c8] ss:$76 sps:$4 sm:$0xff]  }
 0x33e   : > { %6166 = vmatpush1.bf16.msra.mxu1 %v21197_v7  ;;  %6003 = vmatprep.subr.bf16.mxu0 %v21202_v9  ;;  %v21268_v7 = vld [vmem:[%s25080_s9 + $0x164] ss:$40 sps:$4 sm:$0xff]  }
 0x33f   : > { %6167 = vmatprep.subr.bf16.mxu1 %v21205_v10  ;;  %v21271_v9 = vld [vmem:[%s25555_s21 + $0x264] ss:$76 sps:$4 sm:$0xff]   ;;  %v21269_v10 = vld [vmem:[%s25555_s21 + $0x260] ss:$76 sps:$4 sm:$0xff]  }
 0x341   : > { %6004 = vmatpush1.bf16.msra.mxu0 %v21200_v11  ;;  %v21274_v11 = vld [vmem:[%s25080_s9 + $0x1b4] ss:$40 sps:$4 sm:$0xff]  }
 0x342   : > { %6168 = vmatpush1.bf16.msra.mxu1 %v21203_v14  ;;  %6005 = vmatprep.subr.bf16.mxu0 %v21208_v15  ;;  %v21277_v14 = vld [vmem:[%s25555_s21 + $0x2fc] ss:$76 sps:$4 sm:$0xff]  }
 0x343   : > { %6169 = vmatprep.subr.bf16.mxu1 %v21211_v4  ;;  %v21272_v15 = vld [vmem:[%s25080_s9 + $0x1b0] ss:$40 sps:$4 sm:$0xff]  }
 0x344   : > { %v21275_v4 = vld [vmem:[%s25555_s21 + $0x2f8] ss:$76 sps:$4 sm:$0xff]  }
 0x345   : > { %6006 = vmatpush1.bf16.msra.mxu0 %v21206_v16  ;;  %v21280_v16 = vld [vmem:[%s25080_s9 + $0x204] ss:$40 sps:$4 sm:$0xff]  }
 0x346   : > { %6170 = vmatpush1.bf16.msra.mxu1 %v21209_v17  ;;  %6007 = vmatprep.subr.bf16.mxu0 %v21214_v18  ;;  %v21283_v17 = vld [vmem:[%s25555_s21 + $0x394] ss:$76 sps:$4 sm:$0xff]   ;;  %v21278_v18 = vld [vmem:[%s25080_s9 + $0x200] ss:$40 sps:$4 sm:$0xff]  }
 0x347   : > { %6171 = vmatprep.subr.bf16.mxu1 %v21217_v19  ;;  %v21281_v19 = vld [vmem:[%s25555_s21 + $0x390] ss:$76 sps:$4 sm:$0xff]  }
 0x349   : > { %6008 = vmatpush1.bf16.msra.mxu0 %v21212_v22  ;;  %v21286_v22 = vld [vmem:[%s25080_s9 + $0x254] ss:$40 sps:$4 sm:$0xff]  }
 0x34a   : > { %6172 = vmatpush1.bf16.msra.mxu1 %v21215_v23  ;;  %6009 = vmatprep.subr.bf16.mxu0 %v21220_v25  ;;  %v21289_v23 = vld [vmem:[%s25555_s21 + $0x42c] ss:$76 sps:$4 sm:$0xff]  }
 0x34b   : > { %6173 = vmatprep.subr.bf16.mxu1 %v21223_v26  ;;  %v21284_v25 = vld [vmem:[%s25080_s9 + $0x250] ss:$40 sps:$4 sm:$0xff]  }
 0x34c   : > { %v21287_v26 = vld [vmem:[%s25555_s21 + $0x428] ss:$76 sps:$4 sm:$0xff]  }
 0x34d   : > { %6010 = vmatpush1.bf16.msra.mxu0 %v21218_v12  ;;  %v21292_v12 = vld [vmem:[%s25080_s9 + $0x2a4] ss:$40 sps:$4 sm:$0xff]  }
 0x34e   : > { %6174 = vmatpush1.bf16.msra.mxu1 %v21221_v27  ;;  %6011 = vmatprep.subr.bf16.mxu0 %v21226_v30  ;;  %v21295_v27 = vld [vmem:[%s25555_s21 + $0x4c4] ss:$76 sps:$4 sm:$0xff]  }
 0x34f   : > { %6175 = vmatprep.subr.bf16.mxu1 %v21229_v31  ;;  %v21290_v30 = vld [vmem:[%s25080_s9 + $0x2a0] ss:$40 sps:$4 sm:$0xff]  }
 0x350   : > { %v21293_v31 = vld [vmem:[%s25555_s21 + $0x4c0] ss:$76 sps:$4 sm:$0xff]  }
 0x351   : > { %6012 = vmatpush1.bf16.msra.mxu0 %v21224_v34  ;;  %v21298_v34 = vld [vmem:[%s25080_s9 + $0x2f4] ss:$40 sps:$4 sm:$0xff]  }
 0x352   : > { %6176 = vmatpush1.bf16.msra.mxu1 %v21227_v36  ;;  %6013 = vmatprep.subr.bf16.mxu0 %v21232_v29  ;;  %v21301_v36 = vld [vmem:[%s25555_s21 + $0x55c] ss:$76 sps:$4 sm:$0xff]  }
 0x353   : > { %6177 = vmatprep.subr.bf16.mxu1 %v21235_v38  ;;  %v21296_v29 = vld [vmem:[%s25080_s9 + $0x2f0] ss:$40 sps:$4 sm:$0xff]  }
 0x354   : > { %v21299_v38 = vld [vmem:[%s25555_s21 + $0x558] ss:$76 sps:$4 sm:$0xff]  }
 0x355   : > { %6014 = vmatpush1.bf16.msra.mxu0 %v21230_v40  ;;  %v21307_v40 = vld [vmem:[%s25555_s21 + $0x5f4] ss:$76 sps:$4 sm:$0xff]  }
 0x356   : > { %6178 = vmatpush1.bf16.msra.mxu1 %v21233_v41  ;;  %6015 = vmatprep.subr.bf16.mxu0 %v21238_v43  ;;  %v21302_v41 = vld [vmem:[%s25080_s9 + $0x340] ss:$40 sps:$4 sm:$0xff]  }
 0x357   : > { %6179 = vmatprep.subr.bf16.mxu1 %v21241_v44  ;;  %v21305_v43 = vld [vmem:[%s25555_s21 + $0x5f0] ss:$76 sps:$4 sm:$0xff]  }
 0x358   : > { %v21310_v44 = vld [vmem:[%s25080_s9 + $0x394] ss:$40 sps:$4 sm:$0xff]  }
 0x359   : > { %6016 = vmatpush1.bf16.msra.mxu0 %v21236_v47  ;;  %v21308_v47 = vld [vmem:[%s25080_s9 + $0x390] ss:$40 sps:$4 sm:$0xff]  }
 0x35a   : > { %6180 = vmatpush1.bf16.msra.mxu1 %v21239_v32  ;;  %6190 = vmatprep.subr.bf16.mxu0 %v21244_v48  ;;  %v21311_v32 = vld [vmem:[%s25555_s21 + $0x688] ss:$76 sps:$4 sm:$0xff]  }
 0x35b   : > { %15659 = vmatprep.subr.bf16.mxu1 %v21247_v49  ;;  %v21316_v48 = vld [vmem:[%s25080_s9 + $0x3e4] ss:$40 sps:$4 sm:$0xff]  }
 0x35c   : > { %6018 = vmatmul.mubr.bf16.vlgmr.msra.gmra.mrb[4].mxu0 %v25410_v52  ;;  %v21319_v49 = vld [vmem:[%s25555_s21 + $0x724] ss:$76 sps:$4 sm:$0xff]  }
 0x35d   : > { %6182 = vmatmul.mubr.bf16.vlgmr.msra.gmra.mrb[4].mxu1 %v25410_v52  ;;  %6191 = vmatpush1.bf16.msra.mxu0 %v21242_v50  ;;  %v21314_v50 = vld [vmem:[%s25080_s9 + $0x3e0] ss:$40 sps:$4 sm:$0xff]  }
 0x35e   : > { %15660 = vmatpush1.bf16.msra.mxu1 %v21245_v51  ;;  %15691 = vmatprep.mubr.bf16.mxu1 %v25718_v60  ;;  %v21317_v51 = vld [vmem:[%s25555_s21 + $0x720] ss:$76 sps:$4 sm:$0xff]  }
 0x35f   : > { %6192 = vmatprep.subr.bf16.mxu0 %v21250_v57  ;;  %15661 = vmatprep.subr.bf16.mxu1 %v21253_v55  ;;  %v2286_v57 = vsub.s32 0, %v25073_v3  ;;  %v21325_v55 = vld [vmem:[%s25555_s21 + $0x7bc] ss:$76 sps:$4 sm:$0xff]  }
 0x360   : > { %6222 = vmatprep.mubr.bf16.mxu0 %v25103_v21  ;;  %v21266_v21 = vld [vmem:[%s25080_s9 + $0x160] ss:$40 sps:$4 sm:$0xff]  }
 0x361   : > { %6193 = vmatpush1.bf16.msra.mxu0 %v21248_v58  ;;  %v2298_v58 = vsub.s32 3, %v25073_v3 }
 0x362   : > { %15662 = vmatpush1.bf16.msra.mxu1 %v21251_v59  ;;  %6194 = vmatprep.subr.bf16.mxu0 %v21256_v61  ;;  %v21320_v59 = vld [vmem:[%s25080_s9 + $0x430] ss:$40 sps:$4 sm:$0xff]  }
 0x363   : > { %15663 = vmatprep.subr.bf16.mxu1 %v21259_v62  ;;  %v21323_v61 = vld [vmem:[%s25555_s21 + $0x7b8] ss:$76 sps:$4 sm:$0xff]   ;;  %v21328_v62 = vld [vmem:[%s25080_s9 + $0x484] ss:$40 sps:$4 sm:$0xff]  }
 0x365   : > { %6195 = vmatpush1.bf16.msra.mxu0 %v21254_v63  ;;  %v2287_v63 = vrot.slane %v25693_v13, %v2286_v57 }
 0x366   : > { %15664 = vmatpush1.bf16.msra.mxu1 %v21257_v0  ;;  %6196 = vmatprep.subr.bf16.mxu0 %v21262_v1  ;;  %v21331_v0 = vld [vmem:[%s25555_s21 + $0x854] ss:$76 sps:$4 sm:$0xff]   ;;  %v2299_v1 = vrot.slane %v25693_v13, %v2298_v58  ;;  %v21386_v58 = vld [vmem:[%s25080_s9 + $0x7a0] ss:$40 sps:$4 sm:$0xff]  }
 0x367   : > { %15665 = vmatprep.subr.bf16.mxu1 %v21265_v2  ;;  %v21326_v2 = vld [vmem:[%s25080_s9 + $0x480] ss:$40 sps:$4 sm:$0xff]  }
 0x368   : > { %v21335_v13 = vld [vmem:[%s25555_s21 + $0x8e8] ss:$76 sps:$4 sm:$0xff]  }
 0x369   : > { %6197 = vmatpush1.bf16.msra.mxu0 %v21260_v5  ;;  %v21329_v5 = vld [vmem:[%s25555_s21 + $0x850] ss:$76 sps:$4 sm:$0xff]  }
 0x36a   : > { %15666 = vmatpush1.bf16.msra.mxu1 %v21263_v6  ;;  %6198 = vmatprep.subr.bf16.mxu0 %v21268_v7  ;;  %v21334_v6 = vld [vmem:[%s25080_s9 + $0x4d4] ss:$40 sps:$4 sm:$0xff]   ;;  %v20212_v7 = vadd.f32 %v25650_v53, %v2287_v63  ;;  %v21392_v63 = vld [vmem:[%s25080_s9 + $0x7f0] ss:$40 sps:$4 sm:$0xff]  }
 0x36b   : > { %15667 = vmatprep.subr.bf16.mxu1 %v21271_v9  ;;  %v21337_v9 = vld [vmem:[%s25555_s21 + $0x8ec] ss:$76 sps:$4 sm:$0xff]  }
 0x36d   : > { %6199 = vmatpush1.bf16.msra.mxu0 %v21266_v21  ;;  %v20215_v21 = vadd.f32 %v25656_v56, %v2299_v1  ;;  %v21346_v56 = vld [vmem:[%s25080_s9 + $0x574] ss:$40 sps:$4 sm:$0xff]   ;;  %v21400_v1 = vld [vmem:[%s25080_s9 + $0x844] ss:$40 sps:$4 sm:$0xff]  }
 0x36e   : > { %15668 = vmatpush1.bf16.msra.mxu1 %v21269_v10  ;;  %6200 = vmatprep.subr.bf16.mxu0 %v21274_v11  ;;  %v21332_v10 = vld [vmem:[%s25080_s9 + $0x4d0] ss:$40 sps:$4 sm:$0xff]   ;;  %v21340_v11 = vld [vmem:[%s25080_s9 + $0x524] ss:$40 sps:$4 sm:$0xff]  }
 0x36f   : > { %15669 = vmatprep.subr.bf16.mxu1 %v21277_v14  ;;  %v6354_v14 = vmax.f32 %v20212_v7, 0.0  ;;  %v6357_v53 = vmax.f32 %v20215_v21, 0.0  ;;  %v21406_v7 = vld [vmem:[%s25080_s9 + $0x894] ss:$40 sps:$4 sm:$0xff]   ;;  %v21404_v21 = vld [vmem:[%s25080_s9 + $0x890] ss:$40 sps:$4 sm:$0xff]  }
 0x371   : > { %6201 = vmatpush1.bf16.msra.mxu0 %v21272_v15  ;;  %v21343_v15 = vld [vmem:[%s25555_s21 + $0x984] ss:$76 sps:$4 sm:$0xff]  }
 0x372   : > { %15670 = vmatpush1.bf16.msra.mxu1 %v21275_v4  ;;  %6202 = vmatprep.subr.bf16.mxu0 %v21280_v16  ;;  %v21338_v4 = vld [vmem:[%s25080_s9 + $0x520] ss:$40 sps:$4 sm:$0xff]  }
 0x373   : > { %15671 = vmatprep.subr.bf16.mxu1 %v21283_v17  ;;  %v21341_v16 = vld [vmem:[%s25555_s21 + $0x980] ss:$76 sps:$4 sm:$0xff]   ;;  %v25793_v17 = vpack.c.bf16 %v6354_v14, %v6354_v14 }
 0x374   : > { %v21410_v14 = vld [vmem:[%s25080_s9 + $0x8e0] ss:$40 sps:$4 sm:$0xff]  }
 0x375   : > { %6203 = vmatpush1.bf16.msra.mxu0 %v21278_v18  ;;  %v21349_v18 = vld [vmem:[%s25555_s21 + $0xa1c] ss:$76 sps:$4 sm:$0xff]  }
 0x376   : > { %15672 = vmatpush1.bf16.msra.mxu1 %v21281_v19  ;;  %6204 = vmatprep.subr.bf16.mxu0 %v21286_v22  ;;  %v25796_v19 = vpack.c.bf16 %v6357_v53, %v6357_v53  ;;  %v21344_v22 = vld [vmem:[%s25080_s9 + $0x570] ss:$40 sps:$4 sm:$0xff]   ;;  %v2294_v53 = vsub.s32 2, %v25073_v3 }
 0x377   : > { %15673 = vmatprep.subr.bf16.mxu1 %v21289_v23  ;;  %v21347_v23 = vld [vmem:[%s25555_s21 + $0xa18] ss:$76 sps:$4 sm:$0xff]  }
 0x379   : > { %6205 = vmatpush1.bf16.msra.mxu0 %v21284_v25  ;;  %v21352_v25 = vld [vmem:[%s25080_s9 + $0x5c4] ss:$40 sps:$4 sm:$0xff]  }
 0x37a   : > { %15674 = vmatpush1.bf16.msra.mxu1 %v21287_v26  ;;  %6206 = vmatprep.subr.bf16.mxu0 %v21292_v12  ;;  %v21355_v26 = vld [vmem:[%s25555_s21 + $0xab4] ss:$76 sps:$4 sm:$0xff]   ;;  %v21353_v12 = vld [vmem:[%s25555_s21 + $0xab0] ss:$76 sps:$4 sm:$0xff]  }
 0x37b   : > { %15675 = vmatprep.subr.bf16.mxu1 %v21295_v27  ;;  %v21358_v27 = vld [vmem:[%s25080_s9 + $0x614] ss:$40 sps:$4 sm:$0xff]  }
 0x37d   : > { %6207 = vmatpush1.bf16.msra.mxu0 %v21290_v30  ;;  %v21361_v30 = vld [vmem:[%s25555_s21 + $0xb4c] ss:$76 sps:$4 sm:$0xff]  }
 0x37e   : > { %15676 = vmatpush1.bf16.msra.mxu1 %v21293_v31  ;;  %6208 = vmatprep.subr.bf16.mxu0 %v21298_v34  ;;  %v21356_v31 = vld [vmem:[%s25080_s9 + $0x610] ss:$40 sps:$4 sm:$0xff]   ;;  %v21364_v34 = vld [vmem:[%s25080_s9 + $0x664] ss:$40 sps:$4 sm:$0xff]  }
 0x37f   : > { %15677 = vmatprep.subr.bf16.mxu1 %v21301_v36  ;;  %v21367_v36 = vld [vmem:[%s25555_s21 + $0xbe4] ss:$76 sps:$4 sm:$0xff]  }
 0x381   : > { %6209 = vmatpush1.bf16.msra.mxu0 %v21296_v29  ;;  %v21362_v29 = vld [vmem:[%s25080_s9 + $0x660] ss:$40 sps:$4 sm:$0xff]  }
 0x382   : > { %15678 = vmatpush1.bf16.msra.mxu1 %v21299_v38  ;;  %6210 = vmatprep.subr.bf16.mxu0 %v21304_v39  ;;  %v21365_v38 = vld [vmem:[%s25555_s21 + $0xbe0] ss:$76 sps:$4 sm:$0xff]  }
 0x383   : > { %15679 = vmatprep.subr.bf16.mxu1 %v21307_v40  ;;  %v21370_v39 = vld [vmem:[%s25080_s9 + $0x6b4] ss:$40 sps:$4 sm:$0xff]  }
 0x384   : > { %v21373_v40 = vld [vmem:[%s25555_s21 + $0xc7c] ss:$76 sps:$4 sm:$0xff]  }
 0x385   : > { %6211 = vmatpush1.bf16.msra.mxu0 %v21302_v41  ;;  %v21368_v41 = vld [vmem:[%s25080_s9 + $0x6b0] ss:$40 sps:$4 sm:$0xff]  }
 0x386   : > { %15680 = vmatpush1.bf16.msra.mxu1 %v21305_v43  ;;  %6212 = vmatprep.subr.bf16.mxu0 %v21310_v44  ;;  %v21371_v43 = vld [vmem:[%s25555_s21 + $0xc78] ss:$76 sps:$4 sm:$0xff]   ;;  %v21376_v44 = vld [vmem:[%s25080_s9 + $0x704] ss:$40 sps:$4 sm:$0xff]  }
 0x387   : > { %15681 = vmatprep.subr.bf16.mxu1 %v21313_v45  ;;  %v21379_v45 = vld [vmem:[%s25555_s21 + $0xd14] ss:$76 sps:$4 sm:$0xff]  }
 0x389   : > { %6213 = vmatpush1.bf16.msra.mxu0 %v21308_v47  ;;  %v21374_v47 = vld [vmem:[%s25080_s9 + $0x700] ss:$40 sps:$4 sm:$0xff]  }
 0x38a   : > { %15682 = vmatpush1.bf16.msra.mxu1 %v21311_v32  ;;  %6214 = vmatprep.subr.bf16.mxu0 %v21316_v48  ;;  %v21377_v32 = vld [vmem:[%s25555_s21 + $0xd10] ss:$76 sps:$4 sm:$0xff]  }
 0x38b   : > { %15683 = vmatprep.subr.bf16.mxu1 %v21319_v49  ;;  %v21382_v48 = vld [vmem:[%s25080_s9 + $0x754] ss:$40 sps:$4 sm:$0xff]  }
 0x38c   : > { %v21385_v49 = vld [vmem:[%s25555_s21 + $0xdac] ss:$76 sps:$4 sm:$0xff]  }
 0x38d   : > { %6215 = vmatpush1.bf16.msra.mxu0 %v21314_v50  ;;  %v21380_v50 = vld [vmem:[%s25080_s9 + $0x750] ss:$40 sps:$4 sm:$0xff]  }
 0x38e   : > { %15684 = vmatpush1.bf16.msra.mxu1 %v21317_v51  ;;  %6216 = vmatprep.subr.bf16.mxu0 %v21322_v35  ;;  %v21383_v51 = vld [vmem:[%s25555_s21 + $0xda8] ss:$76 sps:$4 sm:$0xff]  }
 0x38f   : > { %15685 = vmatprep.subr.bf16.mxu1 %v21325_v55  ;;  %v21388_v35 = vld [vmem:[%s25080_s9 + $0x7a4] ss:$40 sps:$4 sm:$0xff]  }
 0x390   : > { %v21391_v55 = vld [vmem:[%s25555_s21 + $0xe44] ss:$76 sps:$4 sm:$0xff]  }
 0x391   : > { %6217 = vmatpush1.bf16.msra.mxu0 %v21320_v59  ;;  %v21389_v59 = vld [vmem:[%s25555_s21 + $0xe40] ss:$76 sps:$4 sm:$0xff]  }
 0x392   : > { %15686 = vmatpush1.bf16.msra.mxu1 %v21323_v61  ;;  %6218 = vmatprep.subr.bf16.mxu0 %v21328_v62  ;;  %v21394_v61 = vld [vmem:[%s25080_s9 + $0x7f4] ss:$40 sps:$4 sm:$0xff]  }
 0x393   : > { %15687 = vmatprep.subr.bf16.mxu1 %v21331_v0  ;;  %v21397_v62 = vld [vmem:[%s25555_s21 + $0xedc] ss:$76 sps:$4 sm:$0xff]   ;;  %v21395_v0 = vld [vmem:[%s25555_s21 + $0xed8] ss:$76 sps:$4 sm:$0xff]  }
 0x395   : > { %6219 = vmatpush1.bf16.msra.mxu0 %v21326_v2  ;;  %v21403_v2 = vld [vmem:[%s25555_s21 + $0xf74] ss:$76 sps:$4 sm:$0xff]  }
 0x396   : > { %15688 = vmatpush1.bf16.msra.mxu1 %v21329_v5  ;;  %6220 = vmatprep.subr.bf16.mxu0 %v21334_v6  ;;  %v21398_v5 = vld [vmem:[%s25080_s9 + $0x840] ss:$40 sps:$4 sm:$0xff]  }
 0x397   : > { %15689 = vmatprep.subr.bf16.mxu1 %v21337_v9  ;;  %v21401_v6 = vld [vmem:[%s25555_s21 + $0xf70] ss:$76 sps:$4 sm:$0xff]   ;;  %v21409_v9 = vld [vmem:[%s25555_s21 + $0x100c] ss:$76 sps:$4 sm:$0xff]  }
 0x399   : > { %6221 = vmatpush1.bf16.msra.mxu0 %v21332_v10  ;;  %v21407_v10 = vld [vmem:[%s25555_s21 + $0x1008] ss:$76 sps:$4 sm:$0xff]  }
 0x39a   : > { %15690 = vmatpush1.bf16.msra.mxu1 %v21335_v13  ;;  %6231 = vmatprep.subr.bf16.mxu0 %v21340_v11  ;;  %v21412_v13 = vld [vmem:[%s25080_s9 + $0x8e4] ss:$40 sps:$4 sm:$0xff]  }
 0x39b   : > { %15700 = vmatprep.subr.bf16.mxu1 %v21343_v15  ;;  %v21415_v11 = vld [vmem:[%s25555_s21 + $0x10a4] ss:$76 sps:$4 sm:$0xff]   ;;  %v21413_v15 = vld [vmem:[%s25555_s21 + $0x10a0] ss:$76 sps:$4 sm:$0xff]  }
 0x39c   : > { %6223 = vmatmul.mubr.bf16.vlgmr.msra.gmra.mrb[8].mxu0 %v25172_v20  ;;  %v21350_v20 = vld [vmem:[%s25080_s9 + $0x5c0] ss:$40 sps:$4 sm:$0xff]  }
 0x39d   : > { %15692 = vmatmul.mubr.bf16.vlgmr.msra.gmra.mrb[8].mxu1 %v25793_v17  ;;  %6232 = vmatpush1.bf16.msra.mxu0 %v21338_v4  ;;  %v21418_v4 = vld [vmem:[%s25080_s9 + $0x934] ss:$40 sps:$4 sm:$0xff]  }
 0x39e   : > { %15701 = vmatpush1.bf16.msra.mxu1 %v21341_v16  ;;  %15732 = vmatprep.mubr.bf16.mxu1 %v25796_v19  ;;  %v21421_v16 = vld [vmem:[%s25555_s21 + $0x113c] ss:$76 sps:$4 sm:$0xff]  }
 0x39f   : > { %6233 = vmatprep.subr.bf16.mxu0 %v21346_v56  ;;  %15702 = vmatprep.subr.bf16.mxu1 %v21349_v18  ;;  %v21416_v56 = vld [vmem:[%s25080_s9 + $0x930] ss:$40 sps:$4 sm:$0xff]  }
 0x3a0   : > { %6263 = vmatprep.mubr.bf16.mxu0 %v25176_v24  ;;  %v21359_v24 = vld [vmem:[%s25555_s21 + $0xb48] ss:$76 sps:$4 sm:$0xff]   ;;  %v21419_v18 = vld [vmem:[%s25555_s21 + $0x1138] ss:$76 sps:$4 sm:$0xff]  }
 0x3a1   : > { %6234 = vmatpush1.bf16.msra.mxu0 %v21344_v22  ;;  %v25854_v22 = vld [vmem:[%s25686_s26] sm:$0xff] }
 0x3a2   : > { %15703 = vmatpush1.bf16.msra.mxu1 %v21347_v23  ;;  %6235 = vmatprep.subr.bf16.mxu0 %v21352_v25  ;;  %v2295_v23 = vrot.slane %v25854_v22, %v2294_v53  ;;  %v21424_v25 = vld [vmem:[%s25080_s9 + $0x984] ss:$40 sps:$4 sm:$0xff]  }
 0x3a3   : > { %15704 = vmatprep.subr.bf16.mxu1 %v21355_v26  ;;  %v21427_v26 = vld [vmem:[%s25555_s21 + $0x11d4] ss:$76 sps:$4 sm:$0xff]  }
 0x3a4   : > { %v21503_v53 = vld [vmem:[%s25555_s21 + $0x17c0] ss:$76 sps:$4 sm:$0xff]  }
 0x3a5   : > { %6236 = vmatpush1.bf16.msra.mxu0 %v21350_v20  ;;  %v21422_v20 = vld [vmem:[%s25080_s9 + $0x980] ss:$40 sps:$4 sm:$0xff]  }
 0x3a6   : > { %15705 = vmatpush1.bf16.msra.mxu1 %v21353_v12  ;;  %6237 = vmatprep.subr.bf16.mxu0 %v21358_v27  ;;  %v21425_v12 = vld [vmem:[%s25555_s21 + $0x11d0] ss:$76 sps:$4 sm:$0xff]   ;;  %v20214_v27 = vadd.f32 %v25652_v54, %v2295_v23  ;;  %v21517_v23 = vld [vmem:[%s25555_s21 + $0x18f4] ss:$76 sps:$4 sm:$0xff]  }
 0x3a7   : > { %15706 = vmatprep.subr.bf16.mxu1 %v21361_v30  ;;  %v21430_v30 = vld [vmem:[%s25080_s9 + $0x9d4] ss:$40 sps:$4 sm:$0xff]  }
 0x3a8   : > { %v21439_v54 = vld [vmem:[%s25080_s9 + $0xa74] ss:$40 sps:$4 sm:$0xff]  }
 0x3a9   : > { %6238 = vmatpush1.bf16.msra.mxu0 %v21356_v31  ;;  %v21433_v31 = vld [vmem:[%s25555_s21 + $0x126c] ss:$76 sps:$4 sm:$0xff]  }
 0x3aa   : > { %15707 = vmatpush1.bf16.msra.mxu1 %v21359_v24  ;;  %6239 = vmatprep.subr.bf16.mxu0 %v21364_v34  ;;  %v21428_v24 = vld [vmem:[%s25080_s9 + $0x9d0] ss:$40 sps:$4 sm:$0xff]  }
 0x3ab   : > { %15708 = vmatprep.subr.bf16.mxu1 %v21367_v36  ;;  %v21431_v34 = vld [vmem:[%s25555_s21 + $0x1268] ss:$76 sps:$4 sm:$0xff]   ;;  %v6356_v36 = vmax.f32 %v20214_v27, 0.0 }
 0x3ac   : > { %v21482_v27 = vld [vmem:[%s25080_s9 + $0xd90] ss:$40 sps:$4 sm:$0xff]  }
 0x3ad   : > { %6240 = vmatpush1.bf16.msra.mxu0 %v21362_v29  ;;  %v21436_v29 = vld [vmem:[%s25080_s9 + $0xa24] ss:$40 sps:$4 sm:$0xff]  }
 0x3ae   : > { %15709 = vmatpush1.bf16.msra.mxu1 %v21365_v38  ;;  %6241 = vmatprep.subr.bf16.mxu0 %v21370_v39  ;;  %v21457_v38 = vld [vmem:[%s25555_s21 + $0x1304] ss:$76 sps:$4 sm:$0xff]  }
 0x3af   : > { %15710 = vmatprep.subr.bf16.mxu1 %v21373_v40  ;;  %v21434_v39 = vld [vmem:[%s25080_s9 + $0xa20] ss:$40 sps:$4 sm:$0xff]  }
 0x3b0   : > { %v21455_v40 = vld [vmem:[%s25555_s21 + $0x1300] ss:$76 sps:$4 sm:$0xff]  }
 0x3b1   : > { %6242 = vmatpush1.bf16.msra.mxu0 %v21368_v41  ;;  %v21463_v41 = vld [vmem:[%s25555_s21 + $0x139c] ss:$76 sps:$4 sm:$0xff]  }
 0x3b2   : > { %15711 = vmatpush1.bf16.msra.mxu1 %v21371_v43  ;;  %6243 = vmatprep.subr.bf16.mxu0 %v21376_v44  ;;  %v25872_v43 = vpack.c.bf16 %v6356_v36, %v6356_v36  ;;  %v21437_v44 = vld [vmem:[%s25080_s9 + $0xa70] ss:$40 sps:$4 sm:$0xff]   ;;  %v21496_v36 = vld [vmem:[%s25080_s9 + $0xe34] ss:$40 sps:$4 sm:$0xff]  }
 0x3b3   : > { %15712 = vmatprep.subr.bf16.mxu1 %v21379_v45  ;;  %v21461_v45 = vld [vmem:[%s25555_s21 + $0x1398] ss:$76 sps:$4 sm:$0xff]  }
 0x3b5   : > { %6244 = vmatpush1.bf16.msra.mxu0 %v21374_v47  ;;  %v21442_v47 = vld [vmem:[%s25080_s9 + $0xac4] ss:$40 sps:$4 sm:$0xff]  }
 0x3b6   : > { %15713 = vmatpush1.bf16.msra.mxu1 %v21377_v32  ;;  %6245 = vmatprep.subr.bf16.mxu0 %v21382_v48  ;;  %v21469_v32 = vld [vmem:[%s25555_s21 + $0x1434] ss:$76 sps:$4 sm:$0xff]   ;;  %v21440_v48 = vld [vmem:[%s25080_s9 + $0xac0] ss:$40 sps:$4 sm:$0xff]  }
 0x3b7   : > { %15714 = vmatprep.subr.bf16.mxu1 %v21385_v49  ;;  %v21445_v49 = vld [vmem:[%s25080_s9 + $0xb14] ss:$40 sps:$4 sm:$0xff]  }
 0x3b9   : > { %6246 = vmatpush1.bf16.msra.mxu0 %v21380_v50  ;;  %v21475_v50 = vld [vmem:[%s25555_s21 + $0x14cc] ss:$76 sps:$4 sm:$0xff]  }
 0x3ba   : > { %15715 = vmatpush1.bf16.msra.mxu1 %v21383_v51  ;;  %6247 = vmatprep.subr.bf16.mxu0 %v21388_v35  ;;  %v21443_v51 = vld [vmem:[%s25080_s9 + $0xb10] ss:$40 sps:$4 sm:$0xff]   ;;  %v21448_v35 = vld [vmem:[%s25080_s9 + $0xb64] ss:$40 sps:$4 sm:$0xff]  }
 0x3bb   : > { %15716 = vmatprep.subr.bf16.mxu1 %v21391_v55  ;;  %v21473_v55 = vld [vmem:[%s25555_s21 + $0x14c8] ss:$76 sps:$4 sm:$0xff]  }
 0x3bd   : > { %6248 = vmatpush1.bf16.msra.mxu0 %v21386_v58  ;;  %v21446_v58 = vld [vmem:[%s25080_s9 + $0xb60] ss:$40 sps:$4 sm:$0xff]  }
 0x3be   : > { %15717 = vmatpush1.bf16.msra.mxu1 %v21389_v59  ;;  %6249 = vmatprep.subr.bf16.mxu0 %v21394_v61  ;;  %v21451_v59 = vld [vmem:[%s25080_s9 + $0xbb4] ss:$40 sps:$4 sm:$0xff]  }
 0x3bf   : > { %15718 = vmatprep.subr.bf16.mxu1 %v21397_v62  ;;  %v21479_v61 = vld [vmem:[%s25555_s21 + $0x1560] ss:$76 sps:$4 sm:$0xff]   ;;  %v21487_v62 = vld [vmem:[%s25555_s21 + $0x15fc] ss:$76 sps:$4 sm:$0xff]  }
 0x3c1   : > { %6250 = vmatpush1.bf16.msra.mxu0 %v21392_v63  ;;  %v21449_v63 = vld [vmem:[%s25080_s9 + $0xbb0] ss:$40 sps:$4 sm:$0xff]  }
 0x3c2   : > { %15719 = vmatpush1.bf16.msra.mxu1 %v21395_v0  ;;  %6251 = vmatprep.subr.bf16.mxu0 %v21400_v1  ;;  %v21454_v0 = vld [vmem:[%s25080_s9 + $0xc04] ss:$40 sps:$4 sm:$0xff]   ;;  %v21485_v1 = vld [vmem:[%s25555_s21 + $0x15f8] ss:$76 sps:$4 sm:$0xff]  }
 0x3c3   : > { %15720 = vmatprep.subr.bf16.mxu1 %v21403_v2  ;;  %v21493_v2 = vld [vmem:[%s25555_s21 + $0x1694] ss:$76 sps:$4 sm:$0xff]  }
 0x3c5   : > { %6252 = vmatpush1.bf16.msra.mxu0 %v21398_v5  ;;  %v21452_v5 = vld [vmem:[%s25080_s9 + $0xc00] ss:$40 sps:$4 sm:$0xff]  }
 0x3c6   : > { %15721 = vmatpush1.bf16.msra.mxu1 %v21401_v6  ;;  %6253 = vmatprep.subr.bf16.mxu0 %v21406_v7  ;;  %v21460_v6 = vld [vmem:[%s25080_s9 + $0xc54] ss:$40 sps:$4 sm:$0xff]  }
 0x3c7   : > { %15722 = vmatprep.subr.bf16.mxu1 %v21409_v9  ;;  %v21491_v7 = vld [vmem:[%s25555_s21 + $0x1690] ss:$76 sps:$4 sm:$0xff]   ;;  %v21499_v9 = vld [vmem:[%s25555_s21 + $0x172c] ss:$76 sps:$4 sm:$0xff]  }
 0x3c9   : > { %6254 = vmatpush1.bf16.msra.mxu0 %v21404_v21  ;;  %v21458_v21 = vld [vmem:[%s25080_s9 + $0xc50] ss:$40 sps:$4 sm:$0xff]  }
 0x3ca   : > { %15723 = vmatpush1.bf16.msra.mxu1 %v21407_v10  ;;  %6255 = vmatprep.subr.bf16.mxu0 %v21412_v13  ;;  %v21497_v10 = vld [vmem:[%s25555_s21 + $0x1728] ss:$76 sps:$4 sm:$0xff]  }
 0x3cb   : > { %15724 = vmatprep.subr.bf16.mxu1 %v21415_v11  ;;  %v21466_v13 = vld [vmem:[%s25080_s9 + $0xca4] ss:$40 sps:$4 sm:$0xff]  }
 0x3cc   : > { %v21505_v11 = vld [vmem:[%s25555_s21 + $0x17c4] ss:$76 sps:$4 sm:$0xff]  }
 0x3cd   : > { %6256 = vmatpush1.bf16.msra.mxu0 %v21410_v14  ;;  %v21464_v14 = vld [vmem:[%s25080_s9 + $0xca0] ss:$40 sps:$4 sm:$0xff]  }
 0x3ce   : > { %15725 = vmatpush1.bf16.msra.mxu1 %v21413_v15  ;;  %6257 = vmatprep.subr.bf16.mxu0 %v21418_v4  ;;  %v21472_v15 = vld [vmem:[%s25080_s9 + $0xcf4] ss:$40 sps:$4 sm:$0xff]  }
 0x3cf   : > { %15726 = vmatprep.subr.bf16.mxu1 %v21421_v16  ;;  %v21511_v4 = vld [vmem:[%s25555_s21 + $0x185c] ss:$76 sps:$4 sm:$0xff]  }
 0x3d0   : > { %v21470_v16 = vld [vmem:[%s25080_s9 + $0xcf0] ss:$40 sps:$4 sm:$0xff]  }
 0x3d1   : > { %6258 = vmatpush1.bf16.msra.mxu0 %v21416_v56  ;;  %v21478_v56 = vld [vmem:[%s25080_s9 + $0xd44] ss:$40 sps:$4 sm:$0xff]  }
 0x3d2   : > { %15727 = vmatpush1.bf16.msra.mxu1 %v21419_v18  ;;  %6259 = vmatprep.subr.bf16.mxu0 %v21424_v25  ;;  %v21509_v18 = vld [vmem:[%s25555_s21 + $0x1858] ss:$76 sps:$4 sm:$0xff]  }
 0x3d3   : > { %15728 = vmatprep.subr.bf16.mxu1 %v21427_v26  ;;  %v21476_v25 = vld [vmem:[%s25080_s9 + $0xd40] ss:$40 sps:$4 sm:$0xff]   ;;  %v21484_v26 = vld [vmem:[%s25080_s9 + $0xd94] ss:$40 sps:$4 sm:$0xff]  }
 0x3d5   : > { %6260 = vmatpush1.bf16.msra.mxu0 %v21422_v20  ;;  %v21515_v20 = vld [vmem:[%s25555_s21 + $0x18f0] ss:$76 sps:$4 sm:$0xff]  }
 0x3d6   : > { %15729 = vmatpush1.bf16.msra.mxu1 %v21425_v12  ;;  %6261 = vmatprep.subr.bf16.mxu0 %v21430_v30  ;;  %v21523_v12 = vld [vmem:[%s25555_s21 + $0x198c] ss:$76 sps:$4 sm:$0xff]  }
 0x3d7   : > { %15730 = vmatprep.subr.bf16.mxu1 %v21433_v31  ;;  %v21490_v30 = vld [vmem:[%s25080_s9 + $0xde4] ss:$40 sps:$4 sm:$0xff]  }
 0x3d8   : > { %v21521_v31 = vld [vmem:[%s25555_s21 + $0x1988] ss:$76 sps:$4 sm:$0xff]  }
 0x3d9   : > { %6262 = vmatpush1.bf16.msra.mxu0 %v21428_v24  ;;  %v21529_v24 = vld [vmem:[%s25555_s21 + $0x1a24] ss:$76 sps:$4 sm:$0xff]  }
 0x3da   : > { %15731 = vmatpush1.bf16.msra.mxu1 %v21431_v34  ;;  %6272 = vmatprep.subr.bf16.mxu0 %v21436_v29  ;;  %v21488_v34 = vld [vmem:[%s25080_s9 + $0xde0] ss:$40 sps:$4 sm:$0xff]  }
 0x3db   : > { %15741 = vmatprep.subr.bf16.mxu1 %v21457_v38  ;;  %v21527_v29 = vld [vmem:[%s25555_s21 + $0x1a20] ss:$76 sps:$4 sm:$0xff]   ;;  %v21535_v38 = vld [vmem:[%s25555_s21 + $0x1abc] ss:$76 sps:$4 sm:$0xff]  }
 0x3dc   : > { %6264 = vmatmul.mubr.bf16.vlgmr.msra.gmra.mrb[8].mxu0 %v25246_v28  ;;  %v21467_v28 = vld [vmem:[%s25555_s21 + $0x1430] ss:$76 sps:$4 sm:$0xff]  }
 0x3dd   : > { %15733 = vmatmul.mubr.bf16.vlgmr.msra.gmra.mrb[8].mxu1 %v25872_v43  ;;  %6273 = vmatpush1.bf16.msra.mxu0 %v21434_v39  ;;  %v21494_v39 = vld [vmem:[%s25080_s9 + $0xe30] ss:$40 sps:$4 sm:$0xff]  }
 0x3de   : > { %15742 = vmatpush1.bf16.msra.mxu1 %v21455_v40  ;;  %6274 = vmatprep.subr.bf16.mxu0 %v21439_v54  ;;  %v21502_v54 = vld [vmem:[%s25080_s9 + $0xe84] ss:$40 sps:$4 sm:$0xff]   ;;  %v21533_v40 = vld [vmem:[%s25555_s21 + $0x1ab8] ss:$76 sps:$4 sm:$0xff]  }
 0x3df   : > { %15743 = vmatprep.subr.bf16.mxu1 %v21463_v41  ;;  %6304 = vmatprep.mubr.bf16.mxu0 %v25267_v37  ;;  %v21481_v37 = vld [vmem:[%s25555_s21 + $0x1564] ss:$76 sps:$4 sm:$0xff]   ;;  %v21541_v41 = vld [vmem:[%s25555_s21 + $0x1b54] ss:$76 sps:$4 sm:$0xff]  }
 0x3e1   : > { %6275 = vmatpush1.bf16.msra.mxu0 %v21437_v44  ;;  %v21500_v44 = vld [vmem:[%s25080_s9 + $0xe80] ss:$40 sps:$4 sm:$0xff]  }
 0x3e2   : > { %15744 = vmatpush1.bf16.msra.mxu1 %v21461_v45  ;;  %6276 = vmatprep.subr.bf16.mxu0 %v21442_v47  ;;  %v21508_v45 = vld [vmem:[%s25080_s9 + $0xed4] ss:$40 sps:$4 sm:$0xff]  }
 0x3e3   : > { %15745 = vmatprep.subr.bf16.mxu1 %v21469_v32  ;;  %v21539_v47 = vld [vmem:[%s25555_s21 + $0x1b50] ss:$76 sps:$4 sm:$0xff]   ;;  %v21547_v32 = vld [vmem:[%s25555_s21 + $0x1bec] ss:$76 sps:$4 sm:$0xff]  }
 0x3e5   : > { %6277 = vmatpush1.bf16.msra.mxu0 %v21440_v48  ;;  %v21506_v48 = vld [vmem:[%s25080_s9 + $0xed0] ss:$40 sps:$4 sm:$0xff]  }
 0x3e6   : > { %15746 = vmatpush1.bf16.msra.mxu1 %v21467_v28  ;;  %6278 = vmatprep.subr.bf16.mxu0 %v21445_v49  ;;  %v21514_v49 = vld [vmem:[%s25080_s9 + $0xf24] ss:$40 sps:$4 sm:$0xff]  }
 0x3e7   : > { %15747 = vmatprep.subr.bf16.mxu1 %v21475_v50  ;;  %v21545_v28 = vld [vmem:[%s25555_s21 + $0x1be8] ss:$76 sps:$4 sm:$0xff]   ;;  %v21553_v50 = vld [vmem:[%s25555_s21 + $0x1c84] ss:$76 sps:$4 sm:$0xff]  }
 0x3e9   : > { %6279 = vmatpush1.bf16.msra.mxu0 %v21443_v51  ;;  %v21512_v51 = vld [vmem:[%s25080_s9 + $0xf20] ss:$40 sps:$4 sm:$0xff]  }
 0x3ea   : > { %15748 = vmatpush1.bf16.msra.mxu1 %v21473_v55  ;;  %6280 = vmatprep.subr.bf16.mxu0 %v21448_v35  ;;  %v21520_v35 = vld [vmem:[%s25080_s9 + $0xf74] ss:$40 sps:$4 sm:$0xff]   ;;  %v21518_v55 = vld [vmem:[%s25080_s9 + $0xf70] ss:$40 sps:$4 sm:$0xff]  }
 0x3eb   : > { %15749 = vmatprep.subr.bf16.mxu1 %v21481_v37  ;;  %v21526_v37 = vld [vmem:[%s25080_s9 + $0xfc4] ss:$40 sps:$4 sm:$0xff]  }
 0x3ed   : > { %6281 = vmatpush1.bf16.msra.mxu0 %v21446_v58  ;;  %v21524_v58 = vld [vmem:[%s25080_s9 + $0xfc0] ss:$40 sps:$4 sm:$0xff]  }
 0x3ee   : > { %15750 = vmatpush1.bf16.msra.mxu1 %v21479_v61  ;;  %6282 = vmatprep.subr.bf16.mxu0 %v21451_v59  ;;  %v21532_v59 = vld [vmem:[%s25080_s9 + $0x1014] ss:$40 sps:$4 sm:$0xff]   ;;  %v21530_v61 = vld [vmem:[%s25080_s9 + $0x1010] ss:$40 sps:$4 sm:$0xff]  }
 0x3ef   : > { %15751 = vmatprep.subr.bf16.mxu1 %v21487_v62  ;;  %v21538_v62 = vld [vmem:[%s25080_s9 + $0x1064] ss:$40 sps:$4 sm:$0xff]  }
 0x3f1   : > { %6283 = vmatpush1.bf16.msra.mxu0 %v21449_v63  ;;  %v21536_v63 = vld [vmem:[%s25080_s9 + $0x1060] ss:$40 sps:$4 sm:$0xff]  }
 0x3f2   : > { %15752 = vmatpush1.bf16.msra.mxu1 %v21485_v1  ;;  %6284 = vmatprep.subr.bf16.mxu0 %v21454_v0  ;;  %v2306_v0 = vsub.s32 5, %v25073_v3  ;;  %v2314_v1 = vsub.s32 7, %v25073_v3 }
 0x3f3   : > { %15753 = vmatprep.subr.bf16.mxu1 %v21493_v2 }
 0x3f5   : > { %6285 = vmatpush1.bf16.msra.mxu0 %v21452_v5  ;;  %v2307_v5 = vrot.slane %v25854_v22, %v2306_v0  ;;  %v21593_v0 = vld [vmem:[%s25555_s21 + $0x20a8] ss:$76 sps:$4 sm:$0xff]  }
 0x3f6   : > { %15754 = vmatpush1.bf16.msra.mxu1 %v21491_v7  ;;  %6286 = vmatprep.subr.bf16.mxu0 %v21460_v6  ;;  %v2315_v6 = vrot.slane %v25854_v22, %v2314_v1  ;;  %v21542_v7 = vld [vmem:[%s25080_s9 + $0x10b0] ss:$40 sps:$4 sm:$0xff]   ;;  %v21596_v1 = vld [vmem:[%s25080_s9 + $0x1380] ss:$40 sps:$4 sm:$0xff]  }
 0x3f7   : > { %15755 = vmatprep.subr.bf16.mxu1 %v21499_v9  ;;  %v21550_v9 = vld [vmem:[%s25080_s9 + $0x1104] ss:$40 sps:$4 sm:$0xff]  }
 0x3f9   : > { %6287 = vmatpush1.bf16.msra.mxu0 %v21458_v21 }
 0x3fa   : > { %15756 = vmatpush1.bf16.msra.mxu1 %v21497_v10  ;;  %6288 = vmatprep.subr.bf16.mxu0 %v21466_v13 }
 0x3fb   : > { %15757 = vmatprep.subr.bf16.mxu1 %v21505_v11 }
 0x3fd   : > { %6289 = vmatpush1.bf16.msra.mxu0 %v21464_v14 }
 0x3fe   : > { %15758 = vmatpush1.bf16.msra.mxu1 %v21503_v53  ;;  %6290 = vmatprep.subr.bf16.mxu0 %v21472_v15 }
 0x3ff   : > { %15759 = vmatprep.subr.bf16.mxu1 %v21511_v4 }
 0x401   : > { %6291 = vmatpush1.bf16.msra.mxu0 %v21470_v16 }
 0x402   : > { %15760 = vmatpush1.bf16.msra.mxu1 %v21509_v18  ;;  %6292 = vmatprep.subr.bf16.mxu0 %v21478_v56  ;;  %v21548_v56 = vld [vmem:[%s25080_s9 + $0x1100] ss:$40 sps:$4 sm:$0xff]  }
 0x403   : > { %15761 = vmatprep.subr.bf16.mxu1 %v21517_v23 }
 0x405   : > { %6293 = vmatpush1.bf16.msra.mxu0 %v21476_v25 }
 0x406   : > { %15762 = vmatpush1.bf16.msra.mxu1 %v21515_v20  ;;  %6294 = vmatprep.subr.bf16.mxu0 %v21484_v26  ;;  %v21551_v20 = vld [vmem:[%s25555_s21 + $0x1c80] ss:$76 sps:$4 sm:$0xff]  }
 0x407   : > { %15763 = vmatprep.subr.bf16.mxu1 %v21523_v12  ;;  %v21554_v12 = vld [vmem:[%s25080_s9 + $0x1150] ss:$40 sps:$4 sm:$0xff]  }
 0x409   : > { %6295 = vmatpush1.bf16.msra.mxu0 %v21482_v27 }
 0x40a   : > { %15764 = vmatpush1.bf16.msra.mxu1 %v21521_v31  ;;  %6296 = vmatprep.subr.bf16.mxu0 %v21490_v30  ;;  %v21559_v31 = vld [vmem:[%s25555_s21 + $0x1d1c] ss:$76 sps:$4 sm:$0xff]  }
 0x40b   : > { %15765 = vmatprep.subr.bf16.mxu1 %v21529_v24  ;;  %v21562_v24 = vld [vmem:[%s25080_s9 + $0x11a4] ss:$40 sps:$4 sm:$0xff]  }
 0x40d   : > { %6297 = vmatpush1.bf16.msra.mxu0 %v21488_v34 }
 0x40e   : > { %15766 = vmatpush1.bf16.msra.mxu1 %v21527_v29  ;;  %6298 = vmatprep.subr.bf16.mxu0 %v21496_v36  ;;  %v21557_v36 = vld [vmem:[%s25555_s21 + $0x1d18] ss:$76 sps:$4 sm:$0xff]  }
 0x40f   : > { %15767 = vmatprep.subr.bf16.mxu1 %v21535_v38  ;;  %v21560_v29 = vld [vmem:[%s25080_s9 + $0x11a0] ss:$40 sps:$4 sm:$0xff]  }
 0x411   : > { %6299 = vmatpush1.bf16.msra.mxu0 %v21494_v39  ;;  %v21565_v39 = vld [vmem:[%s25555_s21 + $0x1db4] ss:$76 sps:$4 sm:$0xff]  }
 0x412   : > { %15768 = vmatpush1.bf16.msra.mxu1 %v21533_v40  ;;  %6300 = vmatprep.subr.bf16.mxu0 %v21502_v54  ;;  %v21568_v54 = vld [vmem:[%s25080_s9 + $0x11f4] ss:$40 sps:$4 sm:$0xff]  }
 0x413   : > { %15769 = vmatprep.subr.bf16.mxu1 %v21541_v41  ;;  %v21563_v40 = vld [vmem:[%s25555_s21 + $0x1db0] ss:$76 sps:$4 sm:$0xff]  }
 0x414   : > { %v21566_v41 = vld [vmem:[%s25080_s9 + $0x11f0] ss:$40 sps:$4 sm:$0xff]  }
 0x415   : > { %6301 = vmatpush1.bf16.msra.mxu0 %v21500_v44  ;;  %v21571_v44 = vld [vmem:[%s25555_s21 + $0x1e4c] ss:$76 sps:$4 sm:$0xff]  }
 0x416   : > { %15770 = vmatpush1.bf16.msra.mxu1 %v21539_v47  ;;  %6302 = vmatprep.subr.bf16.mxu0 %v21508_v45  ;;  %v21574_v45 = vld [vmem:[%s25080_s9 + $0x1244] ss:$40 sps:$4 sm:$0xff]  }
 0x417   : > { %15771 = vmatprep.subr.bf16.mxu1 %v21547_v32  ;;  %v21569_v47 = vld [vmem:[%s25555_s21 + $0x1e48] ss:$76 sps:$4 sm:$0xff]  }
 0x418   : > { %v21572_v32 = vld [vmem:[%s25080_s9 + $0x1240] ss:$40 sps:$4 sm:$0xff]  }
 0x419   : > { %6303 = vmatpush1.bf16.msra.mxu0 %v21506_v48  ;;  %v21577_v48 = vld [vmem:[%s25555_s21 + $0x1ee4] ss:$76 sps:$4 sm:$0xff]  }
 0x41a   : > { %15772 = vmatpush1.bf16.msra.mxu1 %v21545_v28  ;;  %6313 = vmatprep.subr.bf16.mxu0 %v21514_v49  ;;  %v21580_v49 = vld [vmem:[%s25080_s9 + $0x1294] ss:$40 sps:$4 sm:$0xff]  }
 0x41b   : > { %15782 = vmatprep.subr.bf16.mxu1 %v21553_v50  ;;  %v21575_v28 = vld [vmem:[%s25555_s21 + $0x1ee0] ss:$76 sps:$4 sm:$0xff]  }
 0x41c   : > { %6305 = vmatmul.mubr.bf16.vlgmr.msra.gmra.mrb[8].mxu0 %v25337_v42  ;;  %v2302_v42 = vsub.s32 4, %v25073_v3  ;;  %v21578_v50 = vld [vmem:[%s25080_s9 + $0x1290] ss:$40 sps:$4 sm:$0xff]  }
 0x41d   : > { %6314 = vmatpush1.bf16.msra.mxu0 %v21512_v51  ;;  %6345 = vmatprep.mubr.bf16.mxu0 %v25342_v46  ;;  %v21544_v46 = vld [vmem:[%s25080_s9 + $0x10b4] ss:$40 sps:$4 sm:$0xff]  }
 0x41e   : > { %6315 = vmatprep.subr.bf16.mxu0 %v21520_v35  ;;  %v2303_v2 = vrot.slane %v25854_v22, %v2302_v42  ;;  %v21556_v22 = vld [vmem:[%s25080_s9 + $0x1154] ss:$40 sps:$4 sm:$0xff]   ;;  %v21586_v35 = vld [vmem:[%s25080_s9 + $0x12e4] ss:$40 sps:$4 sm:$0xff]  }
 0x41f   : > { %v21583_v51 = vld [vmem:[%s25555_s21 + $0x1f7c] ss:$76 sps:$4 sm:$0xff]  }
 0x420   : > { %v21598_v42 = vld [vmem:[%s25080_s9 + $0x1384] ss:$40 sps:$4 sm:$0xff]  }
 0x421   : > { %6316 = vmatpush1.bf16.msra.mxu0 %v21518_v55  ;;  %v21581_v55 = vld [vmem:[%s25555_s21 + $0x1f78] ss:$76 sps:$4 sm:$0xff]  }
 0x422   : > { %6317 = vmatprep.subr.bf16.mxu0 %v21526_v37  ;;  %v21584_v37 = vld [vmem:[%s25080_s9 + $0x12e0] ss:$40 sps:$4 sm:$0xff]  }
 0x425   : > { %6318 = vmatpush1.bf16.msra.mxu0 %v21524_v58  ;;  %v21589_v58 = vld [vmem:[%s25555_s21 + $0x2014] ss:$76 sps:$4 sm:$0xff]  }
 0x426   : > { %6319 = vmatprep.subr.bf16.mxu0 %v21532_v59  ;;  %v21592_v59 = vld [vmem:[%s25080_s9 + $0x1334] ss:$40 sps:$4 sm:$0xff]  }
 0x429   : > { %6320 = vmatpush1.bf16.msra.mxu0 %v21530_v61  ;;  %v21587_v61 = vld [vmem:[%s25555_s21 + $0x2010] ss:$76 sps:$4 sm:$0xff]  }
 0x42a   : > { %6321 = vmatprep.subr.bf16.mxu0 %v21538_v62  ;;  %v21590_v62 = vld [vmem:[%s25080_s9 + $0x1330] ss:$40 sps:$4 sm:$0xff]  }
 0x42d   : > { %6322 = vmatpush1.bf16.msra.mxu0 %v21536_v63  ;;  %v21595_v63 = vld [vmem:[%s25555_s21 + $0x20ac] ss:$76 sps:$4 sm:$0xff]  }
 0x42e   : > { %6323 = vmatprep.subr.bf16.mxu0 %v21544_v46  ;;  %v21601_v46 = vld [vmem:[%s25555_s21 + $0x2144] ss:$76 sps:$4 sm:$0xff]  }
 0x42f   : > { %v6019_v21 = vpop.f32.mrb[4].mxu0 }
 0x430   : > { %v25957_v10 = vpop.f32.mrb[4].mxu1  ;;  %v20216_v13 = vadd.f32 %v6019_v21, %v2303_v2  ;;  %v6021_v11 = vpop.f32.mrb[5].mxu0  ;;  %v21604_v2 = vld [vmem:[%s25080_s9 + $0x13d4] ss:$40 sps:$4 sm:$0xff]  }
 0x431   : > { %v6185_v14 = vpop.f32.mrb[5].mxu1  ;;  %v20217_v15 = vadd.f32 %v6021_v11, %v2307_v5  ;;  %v6023_v4 = vpop.f32.mrb[6].mxu0  ;;  %6324 = vmatpush1.bf16.msra.mxu0 %v21542_v7  ;;  %v21599_v5 = vld [vmem:[%s25555_s21 + $0x2140] ss:$76 sps:$4 sm:$0xff]   ;;  %v21607_v7 = vld [vmem:[%s25555_s21 + $0x21dc] ss:$76 sps:$4 sm:$0xff]  }
 0x432   : > { %v20219_v53 = vadd.f32 %v6185_v14, %v2315_v6  ;;  %v6187_v16 = vpop.f32.mrb[6].mxu1  ;;  %v6358_v18 = vmax.f32 %v20216_v13, 0.0  ;;  %v6024_v23 = vpop.f32.mrb[7].mxu0  ;;  %6325 = vmatprep.subr.bf16.mxu0 %v21550_v9  ;;  %v21602_v6 = vld [vmem:[%s25080_s9 + $0x13d0] ss:$40 sps:$4 sm:$0xff]  }
 0x433   : > { %v6188_v25 = vpop.f32.mrb[7].mxu1  ;;  %v6359_v26 = vmax.f32 %v20217_v15, 0.0  ;;  %v21610_v9 = vld [vmem:[%s25555_s21 + $0xc] ss:$76 sps:$4 sm:$0xff]   ;;  %v21608_v13 = vld [vmem:[%s25555_s21 + $0x8] ss:$76 sps:$4 sm:$0xff]  }
 0x434   : > { %v6361_v27 = vmax.f32 %v20219_v53, 0.0  ;;  %v25967_v34 = vpack.c.bf16 %v6358_v18, %v6358_v18  ;;  %v21605_v21 = vld [vmem:[%s25555_s21 + $0x21d8] ss:$76 sps:$4 sm:$0xff]   ;;  %v21613_v11 = vld [vmem:[%s25555_s21 + $0x2274] ss:$76 sps:$4 sm:$0xff]  }
 0x435   : > { %v25963_v30 = vpack.c.bf16 %v6359_v26, %v6359_v26  ;;  %6326 = vmatpush1.bf16.msra.mxu0 %v21548_v56  ;;  %v21611_v14 = vld [vmem:[%s25555_s21 + $0x2270] ss:$76 sps:$4 sm:$0xff]   ;;  %v21614_v53 = vld [vmem:[%s25555_s21 + $0xa0] ss:$76 sps:$4 sm:$0xff]   ;;  %v21617_v56 = vld [vmem:[%s25555_s21 + $0x2308] ss:$76 sps:$4 sm:$0xff]  }
 0x436   : > { %6327 = vmatprep.subr.bf16.mxu0 %v21556_v22  ;;  %v25972_v38 = vpack.c.bf16 %v6361_v27, %v6361_v27  ;;  %v21616_v15 = vld [vmem:[%s25555_s21 + $0xa4] ss:$76 sps:$4 sm:$0xff]   ;;  %v21619_v4 = vld [vmem:[%s25555_s21 + $0x230c] ss:$76 sps:$4 sm:$0xff]   ;;  %v21622_v16 = vld [vmem:[%s25555_s21 + $0x13c] ss:$76 sps:$4 sm:$0xff]  }
 0x437   : > { %15773 = vmatprep.mubr.bf16.mxu1 %v25963_v30  ;;  %v21620_v22 = vld [vmem:[%s25555_s21 + $0x138] ss:$76 sps:$4 sm:$0xff]   ;;  %v21628_v18 = vld [vmem:[%s25555_s21 + $0x1d4] ss:$76 sps:$4 sm:$0xff]   ;;  %v21626_v25 = vld [vmem:[%s25555_s21 + $0x1d0] ss:$76 sps:$4 sm:$0xff]  }
 0x438   : > { %15774 = vmatmul.mubr.bf16.vlgmr.msra.gmra.mrb[8].mxu1 %v25967_v34  ;;  %v21623_v23 = vld [vmem:[%s25555_s21 + $0x23a0] ss:$76 sps:$4 sm:$0xff]   ;;  %v21631_v26 = vld [vmem:[%s25555_s21 + $0x243c] ss:$76 sps:$4 sm:$0xff]   ;;  %v21629_v27 = vld [vmem:[%s25555_s21 + $0x2438] ss:$76 sps:$4 sm:$0xff]  }
 0x439   : > { %15783 = vmatpush1.bf16.msra.mxu1 %v21551_v20  ;;  %6328 = vmatpush1.bf16.msra.mxu0 %v21554_v12  ;;  %v21634_v20 = vld [vmem:[%s25555_s21 + $0x26c] ss:$76 sps:$4 sm:$0xff]   ;;  %v2310_v12 = vsub.s32 6, %v25073_v3  ;;  %v21844_v3 = vld [vmem:[%s25555_s21 + $0x20b4] ss:$76 sps:$4 sm:$0xff]  }
 0x43a   : > { %15814 = vmatprep.mubr.bf16.mxu1 %v25972_v38  ;;  %15784 = vmatprep.subr.bf16.mxu1 %v21559_v31  ;;  %v21632_v31 = vld [vmem:[%s25555_s21 + $0x268] ss:$76 sps:$4 sm:$0xff]  }
 0x43b   : > { %6329 = vmatprep.subr.bf16.mxu0 %v21562_v24  ;;  %v21637_v24 = vld [vmem:[%s25555_s21 + $0x24d4] ss:$76 sps:$4 sm:$0xff]  }
 0x43d   : > { %15785 = vmatpush1.bf16.msra.mxu1 %v21557_v36  ;;  %6330 = vmatpush1.bf16.msra.mxu0 %v21560_v29  ;;  %v21640_v36 = vld [vmem:[%s25555_s21 + $0x304] ss:$76 sps:$4 sm:$0xff]  }
 0x43e   : > { %15786 = vmatprep.subr.bf16.mxu1 %v21565_v39  ;;  %6331 = vmatprep.subr.bf16.mxu0 %v21568_v54  ;;  %v23675_v29 = vld [vmem:[%s25686_s26] sm:$0xff]  ;;  %v21635_v54 = vld [vmem:[%s25555_s21 + $0x24d0] ss:$76 sps:$4 sm:$0xff]  }
 0x43f   : > { %v2311_v39 = vrot.slane %v23675_v29, %v2310_v12  ;;  %v21674_v12 = vld [vmem:[%s25555_s21 + $0x988] ss:$76 sps:$4 sm:$0xff]  }
 0x440   : > { %v21682_v29 = vld [vmem:[%s25555_s21 + $0xabc] ss:$76 sps:$4 sm:$0xff]  }
 0x441   : > { %15787 = vmatpush1.bf16.msra.mxu1 %v21563_v40  ;;  %6332 = vmatpush1.bf16.msra.mxu0 %v21566_v41  ;;  %v21638_v40 = vld [vmem:[%s25555_s21 + $0x300] ss:$76 sps:$4 sm:$0xff]  }
 0x442   : > { %15788 = vmatprep.subr.bf16.mxu1 %v21571_v44  ;;  %6333 = vmatprep.subr.bf16.mxu0 %v21574_v45  ;;  %v21643_v41 = vld [vmem:[%s25555_s21 + $0x256c] ss:$76 sps:$4 sm:$0xff]   ;;  %v21646_v44 = vld [vmem:[%s25555_s21 + $0x39c] ss:$76 sps:$4 sm:$0xff]   ;;  %v20218_v45 = vadd.f32 %v25957_v10, %v2311_v39  ;;  %v21745_v10 = vld [vmem:[%s25555_s21 + $0x2604] ss:$76 sps:$4 sm:$0xff]  }
 0x443   : > { %v21805_v39 = vld [vmem:[%s25555_s21 + $0x2bf4] ss:$76 sps:$4 sm:$0xff]  }
 0x445   : > { %15789 = vmatpush1.bf16.msra.mxu1 %v21569_v47  ;;  %6334 = vmatpush1.bf16.msra.mxu0 %v21572_v32  ;;  %v21641_v47 = vld [vmem:[%s25555_s21 + $0x2568] ss:$76 sps:$4 sm:$0xff]   ;;  %v21644_v32 = vld [vmem:[%s25555_s21 + $0x398] ss:$76 sps:$4 sm:$0xff]  }
 0x446   : > { %15790 = vmatprep.subr.bf16.mxu1 %v21577_v48  ;;  %6335 = vmatprep.subr.bf16.mxu0 %v21580_v49  ;;  %v21649_v48 = vld [vmem:[%s25555_s21 + $0x434] ss:$76 sps:$4 sm:$0xff]   ;;  %v6360_v49 = vmax.f32 %v20218_v45, 0.0 }
 0x447   : > { %v21809_v45 = vld [vmem:[%s25555_s21 + $0x2c88] ss:$76 sps:$4 sm:$0xff]  }
 0x449   : > { %15791 = vmatpush1.bf16.msra.mxu1 %v21575_v28  ;;  %6336 = vmatpush1.bf16.msra.mxu0 %v21578_v50  ;;  %v21647_v28 = vld [vmem:[%s25555_s21 + $0x430] ss:$76 sps:$4 sm:$0xff]   ;;  %v21743_v50 = vld [vmem:[%s25555_s21 + $0x2600] ss:$76 sps:$4 sm:$0xff]  }
 0x44a   : > { %15792 = vmatprep.subr.bf16.mxu1 %v21583_v51  ;;  %6337 = vmatprep.subr.bf16.mxu0 %v21586_v35  ;;  %v26041_v51 = vpack.c.bf16 %v6360_v49, %v6360_v49  ;;  %v21652_v35 = vld [vmem:[%s25555_s21 + $0x4cc] ss:$76 sps:$4 sm:$0xff]  }
 0x44b   : > { %v21815_v49 = vld [vmem:[%s25555_s21 + $0x2d20] ss:$76 sps:$4 sm:$0xff]  }
 0x44d   : > { %15793 = vmatpush1.bf16.msra.mxu1 %v21581_v55  ;;  %6338 = vmatpush1.bf16.msra.mxu0 %v21584_v37  ;;  %v21650_v55 = vld [vmem:[%s25555_s21 + $0x4c8] ss:$76 sps:$4 sm:$0xff]   ;;  %v21749_v37 = vld [vmem:[%s25555_s21 + $0x2698] ss:$76 sps:$4 sm:$0xff]  }
 0x44e   : > { %15794 = vmatprep.subr.bf16.mxu1 %v21589_v58  ;;  %6339 = vmatprep.subr.bf16.mxu0 %v21592_v59  ;;  %v21751_v58 = vld [vmem:[%s25555_s21 + $0x269c] ss:$76 sps:$4 sm:$0xff]   ;;  %v21655_v59 = vld [vmem:[%s25555_s21 + $0x564] ss:$76 sps:$4 sm:$0xff]  }
 0x451   : > { %15795 = vmatpush1.bf16.msra.mxu1 %v21587_v61  ;;  %6340 = vmatpush1.bf16.msra.mxu0 %v21590_v62  ;;  %v21653_v61 = vld [vmem:[%s25555_s21 + $0x560] ss:$76 sps:$4 sm:$0xff]   ;;  %v21755_v62 = vld [vmem:[%s25555_s21 + $0x2730] ss:$76 sps:$4 sm:$0xff]  }
 0x452   : > { %15796 = vmatprep.subr.bf16.mxu1 %v21595_v63  ;;  %6341 = vmatprep.subr.bf16.mxu0 %v21598_v42  ;;  %v21757_v63 = vld [vmem:[%s25555_s21 + $0x2734] ss:$76 sps:$4 sm:$0xff]   ;;  %v21658_v42 = vld [vmem:[%s25555_s21 + $0x5fc] ss:$76 sps:$4 sm:$0xff]  }
 0x455   : > { %15797 = vmatpush1.bf16.msra.mxu1 %v21593_v0  ;;  %6342 = vmatpush1.bf16.msra.mxu0 %v21596_v1  ;;  %v21656_v0 = vld [vmem:[%s25555_s21 + $0x5f8] ss:$76 sps:$4 sm:$0xff]   ;;  %v21761_v1 = vld [vmem:[%s25555_s21 + $0x27c8] ss:$76 sps:$4 sm:$0xff]  }
 0x456   : > { %15798 = vmatprep.subr.bf16.mxu1 %v21601_v46  ;;  %6343 = vmatprep.subr.bf16.mxu0 %v21604_v2  ;;  %v21763_v46 = vld [vmem:[%s25555_s21 + $0x27cc] ss:$76 sps:$4 sm:$0xff]   ;;  %v21661_v2 = vld [vmem:[%s25555_s21 + $0x694] ss:$76 sps:$4 sm:$0xff]  }
 0x459   : > { %15799 = vmatpush1.bf16.msra.mxu1 %v21599_v5  ;;  %6344 = vmatpush1.bf16.msra.mxu0 %v21602_v6  ;;  %v21659_v5 = vld [vmem:[%s25555_s21 + $0x690] ss:$76 sps:$4 sm:$0xff]   ;;  %v21767_v6 = vld [vmem:[%s25555_s21 + $0x2860] ss:$76 sps:$4 sm:$0xff]  }
 0x45a   : > { %15800 = vmatprep.subr.bf16.mxu1 %v21607_v7  ;;  %15864 = vmatprep.subr.bf16.mxu0 %v21610_v9  ;;  %v21769_v7 = vld [vmem:[%s25555_s21 + $0x2864] ss:$76 sps:$4 sm:$0xff]   ;;  %v21664_v9 = vld [vmem:[%s25555_s21 + $0x72c] ss:$76 sps:$4 sm:$0xff]  }
 0x45c   : > { %6346 = vmatmul.mubr.bf16.vlgmr.msra.gmra.mrb[8].mxu0 %v25410_v52  ;;  %v21625_v52 = vld [vmem:[%s25555_s21 + $0x23a4] ss:$76 sps:$4 sm:$0xff]  }
 0x45d   : > { %15801 = vmatpush1.bf16.msra.mxu1 %v21605_v21  ;;  %15865 = vmatpush1.bf16.msra.mxu0 %v21608_v13  ;;  %v21662_v21 = vld [vmem:[%s25555_s21 + $0x728] ss:$76 sps:$4 sm:$0xff]   ;;  %v21773_v13 = vld [vmem:[%s25555_s21 + $0x28f8] ss:$76 sps:$4 sm:$0xff]  }
 0x45e   : > { %15896 = vmatprep.mubr.bf16.mxu0 %v25718_v60  ;;  %15802 = vmatprep.subr.bf16.mxu1 %v21613_v11  ;;  %v21775_v11 = vld [vmem:[%s25555_s21 + $0x28fc] ss:$76 sps:$4 sm:$0xff]  }
 0x45f   : > { %15866 = vmatprep.subr.bf16.mxu0 %v21616_v15  ;;  %v21665_v15 = vld [vmem:[%s25555_s21 + $0x7c0] ss:$76 sps:$4 sm:$0xff]  }
 0x461   : > { %15803 = vmatpush1.bf16.msra.mxu1 %v21611_v14  ;;  %15867 = vmatpush1.bf16.msra.mxu0 %v21614_v53  ;;  %v21667_v14 = vld [vmem:[%s25555_s21 + $0x7c4] ss:$76 sps:$4 sm:$0xff]  }
 0x462   : > { %15804 = vmatprep.subr.bf16.mxu1 %v21619_v4  ;;  %15868 = vmatprep.subr.bf16.mxu0 %v21622_v16  ;;  %v21779_v53 = vld [vmem:[%s25555_s21 + $0x2990] ss:$76 sps:$4 sm:$0xff]   ;;  %v21781_v4 = vld [vmem:[%s25555_s21 + $0x2994] ss:$76 sps:$4 sm:$0xff]  }
 0x463   : > { %v21670_v16 = vld [vmem:[%s25555_s21 + $0x85c] ss:$76 sps:$4 sm:$0xff]  }
 0x465   : > { %15805 = vmatpush1.bf16.msra.mxu1 %v21617_v56  ;;  %15869 = vmatpush1.bf16.msra.mxu0 %v21620_v22  ;;  %v21668_v56 = vld [vmem:[%s25555_s21 + $0x858] ss:$76 sps:$4 sm:$0xff]   ;;  %v21785_v22 = vld [vmem:[%s25555_s21 + $0x2a28] ss:$76 sps:$4 sm:$0xff]  }
 0x466   : > { %15806 = vmatprep.subr.bf16.mxu1 %v21625_v52  ;;  %15870 = vmatprep.subr.bf16.mxu0 %v21628_v18  ;;  %v21787_v52 = vld [vmem:[%s25555_s21 + $0x2a2c] ss:$76 sps:$4 sm:$0xff]   ;;  %v21673_v18 = vld [vmem:[%s25555_s21 + $0x8f4] ss:$76 sps:$4 sm:$0xff]  }
 0x469   : > { %15807 = vmatpush1.bf16.msra.mxu1 %v21623_v23  ;;  %15871 = vmatpush1.bf16.msra.mxu0 %v21626_v25  ;;  %v21671_v23 = vld [vmem:[%s25555_s21 + $0x8f0] ss:$76 sps:$4 sm:$0xff]   ;;  %v21791_v25 = vld [vmem:[%s25555_s21 + $0x2ac0] ss:$76 sps:$4 sm:$0xff]  }
 0x46a   : > { %15808 = vmatprep.subr.bf16.mxu1 %v21631_v26  ;;  %15872 = vmatprep.subr.bf16.mxu0 %v21634_v20  ;;  %v21793_v26 = vld [vmem:[%s25555_s21 + $0x2ac4] ss:$76 sps:$4 sm:$0xff]   ;;  %v21676_v20 = vld [vmem:[%s25555_s21 + $0x98c] ss:$76 sps:$4 sm:$0xff]  }
 0x46d   : > { %15809 = vmatpush1.bf16.msra.mxu1 %v21629_v27  ;;  %15873 = vmatpush1.bf16.msra.mxu0 %v21632_v31  ;;  %v21679_v27 = vld [vmem:[%s25555_s21 + $0xa24] ss:$76 sps:$4 sm:$0xff]  }
 0x46e   : > { %15810 = vmatprep.subr.bf16.mxu1 %v21637_v24  ;;  %15874 = vmatprep.subr.bf16.mxu0 %v21640_v36  ;;  %v21797_v31 = vld [vmem:[%s25555_s21 + $0x2b58] ss:$76 sps:$4 sm:$0xff]   ;;  %v21799_v24 = vld [vmem:[%s25555_s21 + $0x2b5c] ss:$76 sps:$4 sm:$0xff]   ;;  %v21677_v36 = vld [vmem:[%s25555_s21 + $0xa20] ss:$76 sps:$4 sm:$0xff]  }
 0x471   : > { %15811 = vmatpush1.bf16.msra.mxu1 %v21635_v54  ;;  %15875 = vmatpush1.bf16.msra.mxu0 %v21638_v40  ;;  %v21803_v54 = vld [vmem:[%s25555_s21 + $0x2bf0] ss:$76 sps:$4 sm:$0xff]   ;;  %v21680_v40 = vld [vmem:[%s25555_s21 + $0xab8] ss:$76 sps:$4 sm:$0xff]  }
 0x472   : > { %15812 = vmatprep.subr.bf16.mxu1 %v21643_v41  ;;  %15876 = vmatprep.subr.bf16.mxu0 %v21646_v44  ;;  %v21685_v41 = vld [vmem:[%s25555_s21 + $0xb54] ss:$76 sps:$4 sm:$0xff]   ;;  %v21811_v44 = vld [vmem:[%s25555_s21 + $0x2c8c] ss:$76 sps:$4 sm:$0xff]  }
 0x475   : > { %15813 = vmatpush1.bf16.msra.mxu1 %v21641_v47  ;;  %15877 = vmatpush1.bf16.msra.mxu0 %v21644_v32  ;;  %v21683_v47 = vld [vmem:[%s25555_s21 + $0xb50] ss:$76 sps:$4 sm:$0xff]   ;;  %v21688_v32 = vld [vmem:[%s25555_s21 + $0xbec] ss:$76 sps:$4 sm:$0xff]  }
 0x476   : > { %15878 = vmatprep.subr.bf16.mxu0 %v21649_v48  ;;  %15823 = vmatprep.subr.bf16.mxu1 %v21745_v10  ;;  %v21817_v48 = vld [vmem:[%s25555_s21 + $0x2d24] ss:$76 sps:$4 sm:$0xff]   ;;  %v21823_v10 = vld [vmem:[%s25555_s21 + $0x2dbc] ss:$76 sps:$4 sm:$0xff]  }
 0x478   : > { %15815 = vmatmul.mubr.bf16.vlgmr.msra.gmra.mrb[8].mxu1 %v26041_v51 }
 0x479   : > { %15879 = vmatpush1.bf16.msra.mxu0 %v21647_v28  ;;  %15824 = vmatpush1.bf16.msra.mxu1 %v21743_v50  ;;  %v21686_v28 = vld [vmem:[%s25555_s21 + $0xbe8] ss:$76 sps:$4 sm:$0xff]   ;;  %v21691_v50 = vld [vmem:[%s25555_s21 + $0xc84] ss:$76 sps:$4 sm:$0xff]  }
 0x47a   : > { %15880 = vmatprep.subr.bf16.mxu0 %v21652_v35  ;;  %15825 = vmatprep.subr.bf16.mxu1 %v21751_v58  ;;  %v21821_v35 = vld [vmem:[%s25555_s21 + $0x2db8] ss:$76 sps:$4 sm:$0xff]   ;;  %v21829_v58 = vld [vmem:[%s25555_s21 + $0x2e54] ss:$76 sps:$4 sm:$0xff]  }
 0x47d   : > { %15881 = vmatpush1.bf16.msra.mxu0 %v21650_v55  ;;  %15826 = vmatpush1.bf16.msra.mxu1 %v21749_v37  ;;  %v21689_v55 = vld [vmem:[%s25555_s21 + $0xc80] ss:$76 sps:$4 sm:$0xff]   ;;  %v21694_v37 = vld [vmem:[%s25555_s21 + $0xd1c] ss:$76 sps:$4 sm:$0xff]  }
 0x47e   : > { %15882 = vmatprep.subr.bf16.mxu0 %v21655_v59  ;;  %15827 = vmatprep.subr.bf16.mxu1 %v21757_v63  ;;  %v21692_v59 = vld [vmem:[%s25555_s21 + $0xd18] ss:$76 sps:$4 sm:$0xff]  }
 0x47f   : > { %v21835_v63 = vld [vmem:[%s25555_s21 + $0x2eec] ss:$76 sps:$4 sm:$0xff]  }
 0x481   : > { %15883 = vmatpush1.bf16.msra.mxu0 %v21653_v61  ;;  %15828 = vmatpush1.bf16.msra.mxu1 %v21755_v62  ;;  %v21827_v61 = vld [vmem:[%s25555_s21 + $0x2e50] ss:$76 sps:$4 sm:$0xff]   ;;  %v21697_v62 = vld [vmem:[%s25555_s21 + $0xdb4] ss:$76 sps:$4 sm:$0xff]  }
 0x482   : > { %15884 = vmatprep.subr.bf16.mxu0 %v21658_v42  ;;  %15829 = vmatprep.subr.bf16.mxu1 %v21763_v46  ;;  %v21695_v42 = vld [vmem:[%s25555_s21 + $0xdb0] ss:$76 sps:$4 sm:$0xff]   ;;  %v21841_v46 = vld [vmem:[%s25555_s21 + $0x14] ss:$76 sps:$4 sm:$0xff]  }
 0x485   : > { %15885 = vmatpush1.bf16.msra.mxu0 %v21656_v0  ;;  %15830 = vmatpush1.bf16.msra.mxu1 %v21761_v1  ;;  %v21833_v0 = vld [vmem:[%s25555_s21 + $0x2ee8] ss:$76 sps:$4 sm:$0xff]   ;;  %v21700_v1 = vld [vmem:[%s25555_s21 + $0xe4c] ss:$76 sps:$4 sm:$0xff]  }
 0x486   : > { %15886 = vmatprep.subr.bf16.mxu0 %v21661_v2  ;;  %15831 = vmatprep.subr.bf16.mxu1 %v21769_v7  ;;  %v21698_v2 = vld [vmem:[%s25555_s21 + $0xe48] ss:$76 sps:$4 sm:$0xff]  }
 0x487   : > { %v21706_v7 = vld [vmem:[%s25555_s21 + $0xf7c] ss:$76 sps:$4 sm:$0xff]  }
 0x489   : > { %15887 = vmatpush1.bf16.msra.mxu0 %v21659_v5  ;;  %15832 = vmatpush1.bf16.msra.mxu1 %v21767_v6  ;;  %v21703_v5 = vld [vmem:[%s25555_s21 + $0xee4] ss:$76 sps:$4 sm:$0xff]   ;;  %v21701_v6 = vld [vmem:[%s25555_s21 + $0xee0] ss:$76 sps:$4 sm:$0xff]  }
 0x48a   : > { %15888 = vmatprep.subr.bf16.mxu0 %v21664_v9  ;;  %15833 = vmatprep.subr.bf16.mxu1 %v21775_v11  ;;  %v21704_v9 = vld [vmem:[%s25555_s21 + $0xf78] ss:$76 sps:$4 sm:$0xff]  }
 0x48b   : > { %v21712_v11 = vld [vmem:[%s25555_s21 + $0x10ac] ss:$76 sps:$4 sm:$0xff]  }
 0x48d   : > { %15889 = vmatpush1.bf16.msra.mxu0 %v21662_v21  ;;  %15834 = vmatpush1.bf16.msra.mxu1 %v21773_v13  ;;  %v21709_v21 = vld [vmem:[%s25555_s21 + $0x1014] ss:$76 sps:$4 sm:$0xff]   ;;  %v21707_v13 = vld [vmem:[%s25555_s21 + $0x1010] ss:$76 sps:$4 sm:$0xff]  }
 0x48e   : > { %15890 = vmatprep.subr.bf16.mxu0 %v21667_v14  ;;  %15835 = vmatprep.subr.bf16.mxu1 %v21781_v4  ;;  %v21710_v14 = vld [vmem:[%s25555_s21 + $0x10a8] ss:$76 sps:$4 sm:$0xff]  }
 0x48f   : > { %v21718_v4 = vld [vmem:[%s25555_s21 + $0x11dc] ss:$76 sps:$4 sm:$0xff]  }
 0x491   : > { %15891 = vmatpush1.bf16.msra.mxu0 %v21665_v15  ;;  %15836 = vmatpush1.bf16.msra.mxu1 %v21779_v53  ;;  %v21715_v15 = vld [vmem:[%s25555_s21 + $0x1144] ss:$76 sps:$4 sm:$0xff]   ;;  %v21713_v53 = vld [vmem:[%s25555_s21 + $0x1140] ss:$76 sps:$4 sm:$0xff]  }
 0x492   : > { %15892 = vmatprep.subr.bf16.mxu0 %v21670_v16  ;;  %15837 = vmatprep.subr.bf16.mxu1 %v21787_v52  ;;  %v21716_v16 = vld [vmem:[%s25555_s21 + $0x11d8] ss:$76 sps:$4 sm:$0xff]  }
 0x493   : > { %v21724_v52 = vld [vmem:[%s25555_s21 + $0x130c] ss:$76 sps:$4 sm:$0xff]  }
 0x495   : > { %15893 = vmatpush1.bf16.msra.mxu0 %v21668_v56  ;;  %15838 = vmatpush1.bf16.msra.mxu1 %v21785_v22  ;;  %v21721_v56 = vld [vmem:[%s25555_s21 + $0x1274] ss:$76 sps:$4 sm:$0xff]   ;;  %v21719_v22 = vld [vmem:[%s25555_s21 + $0x1270] ss:$76 sps:$4 sm:$0xff]  }
 0x496   : > { %15894 = vmatprep.subr.bf16.mxu0 %v21673_v18  ;;  %15839 = vmatprep.subr.bf16.mxu1 %v21793_v26  ;;  %v21722_v18 = vld [vmem:[%s25555_s21 + $0x1308] ss:$76 sps:$4 sm:$0xff]  }
 0x497   : > { %v21730_v26 = vld [vmem:[%s25555_s21 + $0x143c] ss:$76 sps:$4 sm:$0xff]  }
 0x499   : > { %15895 = vmatpush1.bf16.msra.mxu0 %v21671_v23  ;;  %15840 = vmatpush1.bf16.msra.mxu1 %v21791_v25  ;;  %v21727_v23 = vld [vmem:[%s25555_s21 + $0x13a4] ss:$76 sps:$4 sm:$0xff]   ;;  %v21725_v25 = vld [vmem:[%s25555_s21 + $0x13a0] ss:$76 sps:$4 sm:$0xff]  }
 0x49a   : > { %15905 = vmatprep.subr.bf16.mxu0 %v21676_v20  ;;  %15841 = vmatprep.subr.bf16.mxu1 %v21799_v24  ;;  %v21728_v20 = vld [vmem:[%s25555_s21 + $0x1438] ss:$76 sps:$4 sm:$0xff]   ;;  %v21734_v24 = vld [vmem:[%s25555_s21 + $0x1568] ss:$76 sps:$4 sm:$0xff]  }
 0x49c   : > { %15897 = vmatmul.mubr.bf16.vlgmr.msra.gmra.mrb[12].mxu0 %v25793_v17 }
 0x49d   : > { %15906 = vmatpush1.bf16.msra.mxu0 %v21674_v12  ;;  %15937 = vmatprep.mubr.bf16.mxu0 %v25796_v19  ;;  %v21733_v12 = vld [vmem:[%s25555_s21 + $0x14d4] ss:$76 sps:$4 sm:$0xff]  }
 0x49e   : > { %15907 = vmatprep.subr.bf16.mxu0 %v21679_v27  ;;  %15842 = vmatpush1.bf16.msra.mxu1 %v21797_v31  ;;  %v21731_v27 = vld [vmem:[%s25555_s21 + $0x14d0] ss:$76 sps:$4 sm:$0xff]   ;;  %v21736_v31 = vld [vmem:[%s25555_s21 + $0x156c] ss:$76 sps:$4 sm:$0xff]  }
 0x49f   : > { %15843 = vmatprep.subr.bf16.mxu1 %v21805_v39  ;;  %v21742_v39 = vld [vmem:[%s25555_s21 + $0x169c] ss:$76 sps:$4 sm:$0xff]  }
 0x4a1   : > { %15908 = vmatpush1.bf16.msra.mxu0 %v21677_v36  ;;  %v21739_v36 = vld [vmem:[%s25555_s21 + $0x1604] ss:$76 sps:$4 sm:$0xff]  }
 0x4a2   : > { %15909 = vmatprep.subr.bf16.mxu0 %v21682_v29  ;;  %15844 = vmatpush1.bf16.msra.mxu1 %v21803_v54  ;;  %v21737_v29 = vld [vmem:[%s25555_s21 + $0x1600] ss:$76 sps:$4 sm:$0xff]   ;;  %v21740_v54 = vld [vmem:[%s25555_s21 + $0x1698] ss:$76 sps:$4 sm:$0xff]  }
 0x4a3   : > { %15845 = vmatprep.subr.bf16.mxu1 %v21811_v44  ;;  %v21754_v44 = vld [vmem:[%s25555_s21 + $0x17cc] ss:$76 sps:$4 sm:$0xff]  }
 0x4a5   : > { %15910 = vmatpush1.bf16.msra.mxu0 %v21680_v40  ;;  %v21748_v40 = vld [vmem:[%s25555_s21 + $0x1734] ss:$76 sps:$4 sm:$0xff]  }
 0x4a6   : > { %15911 = vmatprep.subr.bf16.mxu0 %v21685_v41  ;;  %15846 = vmatpush1.bf16.msra.mxu1 %v21809_v45  ;;  %v21746_v41 = vld [vmem:[%s25555_s21 + $0x1730] ss:$76 sps:$4 sm:$0xff]   ;;  %v21752_v45 = vld [vmem:[%s25555_s21 + $0x17c8] ss:$76 sps:$4 sm:$0xff]  }
 0x4a7   : > { %15847 = vmatprep.subr.bf16.mxu1 %v21817_v48  ;;  %v21766_v48 = vld [vmem:[%s25555_s21 + $0x18fc] ss:$76 sps:$4 sm:$0xff]  }
 0x4a9   : > { %15912 = vmatpush1.bf16.msra.mxu0 %v21683_v47  ;;  %v21760_v47 = vld [vmem:[%s25555_s21 + $0x1864] ss:$76 sps:$4 sm:$0xff]  }
 0x4aa   : > { %15913 = vmatprep.subr.bf16.mxu0 %v21688_v32  ;;  %15848 = vmatpush1.bf16.msra.mxu1 %v21815_v49  ;;  %v21758_v32 = vld [vmem:[%s25555_s21 + $0x1860] ss:$76 sps:$4 sm:$0xff]   ;;  %v21764_v49 = vld [vmem:[%s25555_s21 + $0x18f8] ss:$76 sps:$4 sm:$0xff]  }
 0x4ab   : > { %15849 = vmatprep.subr.bf16.mxu1 %v21823_v10  ;;  %v21778_v10 = vld [vmem:[%s25555_s21 + $0x1a2c] ss:$76 sps:$4 sm:$0xff]  }
 0x4ad   : > { %15914 = vmatpush1.bf16.msra.mxu0 %v21686_v28  ;;  %v21772_v28 = vld [vmem:[%s25555_s21 + $0x1994] ss:$76 sps:$4 sm:$0xff]  }
 0x4ae   : > { %15915 = vmatprep.subr.bf16.mxu0 %v21691_v50  ;;  %15850 = vmatpush1.bf16.msra.mxu1 %v21821_v35  ;;  %v21770_v50 = vld [vmem:[%s25555_s21 + $0x1990] ss:$76 sps:$4 sm:$0xff]   ;;  %v21776_v35 = vld [vmem:[%s25555_s21 + $0x1a28] ss:$76 sps:$4 sm:$0xff]  }
 0x4af   : > { %15851 = vmatprep.subr.bf16.mxu1 %v21829_v58  ;;  %v21790_v58 = vld [vmem:[%s25555_s21 + $0x1b5c] ss:$76 sps:$4 sm:$0xff]  }
 0x4b1   : > { %15916 = vmatpush1.bf16.msra.mxu0 %v21689_v55  ;;  %v21784_v55 = vld [vmem:[%s25555_s21 + $0x1ac4] ss:$76 sps:$4 sm:$0xff]  }
 0x4b2   : > { %15917 = vmatprep.subr.bf16.mxu0 %v21694_v37  ;;  %15852 = vmatpush1.bf16.msra.mxu1 %v21827_v61  ;;  %v21782_v37 = vld [vmem:[%s25555_s21 + $0x1ac0] ss:$76 sps:$4 sm:$0xff]  }
 0x4b3   : > { %15853 = vmatprep.subr.bf16.mxu1 %v21835_v63  ;;  %v21796_v61 = vld [vmem:[%s25555_s21 + $0x1bf4] ss:$76 sps:$4 sm:$0xff]   ;;  %v21802_v63 = vld [vmem:[%s25555_s21 + $0x1c8c] ss:$76 sps:$4 sm:$0xff]  }
 0x4b5   : > { %15918 = vmatpush1.bf16.msra.mxu0 %v21692_v59  ;;  %v21788_v59 = vld [vmem:[%s25555_s21 + $0x1b58] ss:$76 sps:$4 sm:$0xff]  }
 0x4b6   : > { %15919 = vmatprep.subr.bf16.mxu0 %v21697_v62  ;;  %15854 = vmatpush1.bf16.msra.mxu1 %v21833_v0  ;;  %v21794_v62 = vld [vmem:[%s25555_s21 + $0x1bf0] ss:$76 sps:$4 sm:$0xff]  }
 0x4b7   : > { %16069 = vmatprep.subr.bf16.mxu1 %v21841_v46  ;;  %v21808_v0 = vld [vmem:[%s25555_s21 + $0x1d24] ss:$76 sps:$4 sm:$0xff]   ;;  %v21814_v46 = vld [vmem:[%s25555_s21 + $0x1dbc] ss:$76 sps:$4 sm:$0xff]  }
 0x4b9   : > { %15920 = vmatpush1.bf16.msra.mxu0 %v21695_v42  ;;  %v21800_v42 = vld [vmem:[%s25555_s21 + $0x1c88] ss:$76 sps:$4 sm:$0xff]  }
 0x4ba   : > { %15921 = vmatprep.subr.bf16.mxu0 %v21700_v1  ;;  %v21806_v1 = vld [vmem:[%s25555_s21 + $0x1d20] ss:$76 sps:$4 sm:$0xff]  }
 0x4bd   : > { %15922 = vmatpush1.bf16.msra.mxu0 %v21698_v2  ;;  %v21812_v2 = vld [vmem:[%s25555_s21 + $0x1db8] ss:$76 sps:$4 sm:$0xff]  }
 0x4be   : > { %15923 = vmatprep.subr.bf16.mxu0 %v21703_v5  ;;  %v21820_v5 = vld [vmem:[%s25555_s21 + $0x1e54] ss:$76 sps:$4 sm:$0xff]  }
 0x4c1   : > { %15924 = vmatpush1.bf16.msra.mxu0 %v21701_v6  ;;  %v21818_v6 = vld [vmem:[%s25555_s21 + $0x1e50] ss:$76 sps:$4 sm:$0xff]  }
 0x4c2   : > { %15925 = vmatprep.subr.bf16.mxu0 %v21706_v7  ;;  %v21826_v7 = vld [vmem:[%s25555_s21 + $0x1eec] ss:$76 sps:$4 sm:$0xff]  }
 0x4c5   : > { %15926 = vmatpush1.bf16.msra.mxu0 %v21704_v9  ;;  %v21824_v9 = vld [vmem:[%s25555_s21 + $0x1ee8] ss:$76 sps:$4 sm:$0xff]  }
 0x4c6   : > { %15927 = vmatprep.subr.bf16.mxu0 %v21709_v21  ;;  %v2281_v21 = vld [vmem:[%s25686_s26 + $0x8] sm:$0x3] }
 0x4c9   : > { %15928 = vmatpush1.bf16.msra.mxu0 %v21707_v13  ;;  %v21832_v13 = vld [vmem:[%s25555_s21 + $0x1f84] ss:$76 sps:$4 sm:$0xff]  }
 0x4ca   : > { %15929 = vmatprep.subr.bf16.mxu0 %v21712_v11  ;;  %v2319_v11 = vrot.slane %v2281_v21, %v2286_v57 }
 0x4cd   : > { %15930 = vmatpush1.bf16.msra.mxu0 %v21710_v14  ;;  %v21830_v14 = vld [vmem:[%s25555_s21 + $0x1f80] ss:$76 sps:$4 sm:$0xff]  }
 0x4ce   : > { %15931 = vmatprep.subr.bf16.mxu0 %v21715_v15  ;;  %v2323_v15 = vrot.slane %v2281_v21, %v2290_v33  ;;  %v21839_v33 = vld [vmem:[%s25555_s21 + $0x10] ss:$76 sps:$4 sm:$0xff]   ;;  %v21896_v21 = vld [vmem:[%s25555_s21 + $0x2608] ss:$76 sps:$4 sm:$0xff]  }
 0x4d1   : > { %15932 = vmatpush1.bf16.msra.mxu0 %v21713_v53  ;;  %v21838_v53 = vld [vmem:[%s25555_s21 + $0x201c] ss:$76 sps:$4 sm:$0xff]  }
 0x4d2   : > { %15933 = vmatprep.subr.bf16.mxu0 %v21718_v4 }
 0x4d5   : > { %15934 = vmatpush1.bf16.msra.mxu0 %v21716_v16 }
 0x4d6   : > { %15935 = vmatprep.subr.bf16.mxu0 %v21721_v56 }
 0x4d9   : > { %15936 = vmatpush1.bf16.msra.mxu0 %v21719_v22  ;;  %v21836_v22 = vld [vmem:[%s25555_s21 + $0x2018] ss:$76 sps:$4 sm:$0xff]  }
 0x4da   : > { %15946 = vmatprep.subr.bf16.mxu0 %v21724_v52 }
 0x4dc   : > { %15938 = vmatmul.mubr.bf16.vlgmr.msra.gmra.mrb[12].mxu0 %v25872_v43 }
 0x4dd   : > { %15947 = vmatpush1.bf16.msra.mxu0 %v21722_v18  ;;  %15978 = vmatprep.mubr.bf16.mxu0 %v25963_v30 }
 0x4de   : > { %15948 = vmatprep.subr.bf16.mxu0 %v21727_v23 }
 0x4e1   : > { %15949 = vmatpush1.bf16.msra.mxu0 %v21725_v25 }
 0x4e2   : > { %15950 = vmatprep.subr.bf16.mxu0 %v21730_v26  ;;  %v21842_v26 = vld [vmem:[%s25555_s21 + $0x20b0] ss:$76 sps:$4 sm:$0xff]  }
 0x4e5   : > { %15951 = vmatpush1.bf16.msra.mxu0 %v21728_v20 }
 0x4e6   : > { %15952 = vmatprep.subr.bf16.mxu0 %v21733_v12 }
 0x4e9   : > { %15953 = vmatpush1.bf16.msra.mxu0 %v21731_v27  ;;  %v21847_v27 = vld [vmem:[%s25555_s21 + $0xac] ss:$76 sps:$4 sm:$0xff]  }
 0x4ea   : > { %15954 = vmatprep.subr.bf16.mxu0 %v21736_v31  ;;  %v21845_v31 = vld [vmem:[%s25555_s21 + $0xa8] ss:$76 sps:$4 sm:$0xff]  }
 0x4ed   : > { %15955 = vmatpush1.bf16.msra.mxu0 %v21734_v24  ;;  %v21850_v24 = vld [vmem:[%s25555_s21 + $0x214c] ss:$76 sps:$4 sm:$0xff]  }
 0x4ee   : > { %15956 = vmatprep.subr.bf16.mxu0 %v21739_v36  ;;  %v21848_v36 = vld [vmem:[%s25555_s21 + $0x2148] ss:$76 sps:$4 sm:$0xff]  }
 0x4f1   : > { %15957 = vmatpush1.bf16.msra.mxu0 %v21737_v29  ;;  %v21853_v29 = vld [vmem:[%s25555_s21 + $0x144] ss:$76 sps:$4 sm:$0xff]  }
 0x4f2   : > { %15958 = vmatprep.subr.bf16.mxu0 %v21742_v39  ;;  %v21856_v39 = vld [vmem:[%s25555_s21 + $0x21e4] ss:$76 sps:$4 sm:$0xff]  }
 0x4f5   : > { %15959 = vmatpush1.bf16.msra.mxu0 %v21740_v54  ;;  %v21851_v54 = vld [vmem:[%s25555_s21 + $0x140] ss:$76 sps:$4 sm:$0xff]  }
 0x4f6   : > { %15960 = vmatprep.subr.bf16.mxu0 %v21748_v40  ;;  %v21854_v40 = vld [vmem:[%s25555_s21 + $0x21e0] ss:$76 sps:$4 sm:$0xff]  }
 0x4f9   : > { %15961 = vmatpush1.bf16.msra.mxu0 %v21746_v41  ;;  %v21859_v41 = vld [vmem:[%s25555_s21 + $0x1dc] ss:$76 sps:$4 sm:$0xff]  }
 0x4fa   : > { %15962 = vmatprep.subr.bf16.mxu0 %v21754_v44  ;;  %v21862_v44 = vld [vmem:[%s25555_s21 + $0x227c] ss:$76 sps:$4 sm:$0xff]  }
 0x4fd   : > { %15963 = vmatpush1.bf16.msra.mxu0 %v21752_v45  ;;  %v21857_v45 = vld [vmem:[%s25555_s21 + $0x1d8] ss:$76 sps:$4 sm:$0xff]  }
 0x4fe   : > { %15964 = vmatprep.subr.bf16.mxu0 %v21760_v47  ;;  %v21860_v47 = vld [vmem:[%s25555_s21 + $0x2278] ss:$76 sps:$4 sm:$0xff]  }
 0x501   : > { %15965 = vmatpush1.bf16.msra.mxu0 %v21758_v32  ;;  %v21865_v32 = vld [vmem:[%s25555_s21 + $0x274] ss:$76 sps:$4 sm:$0xff]  }
 0x502   : > { %15966 = vmatprep.subr.bf16.mxu0 %v21766_v48  ;;  %v21868_v48 = vld [vmem:[%s25555_s21 + $0x2314] ss:$76 sps:$4 sm:$0xff]  }
 0x505   : > { %15967 = vmatpush1.bf16.msra.mxu0 %v21764_v49  ;;  %v21863_v49 = vld [vmem:[%s25555_s21 + $0x270] ss:$76 sps:$4 sm:$0xff]  }
 0x506   : > { %15968 = vmatprep.subr.bf16.mxu0 %v21772_v28  ;;  %v21866_v28 = vld [vmem:[%s25555_s21 + $0x2310] ss:$76 sps:$4 sm:$0xff]  }
 0x509   : > { %15969 = vmatpush1.bf16.msra.mxu0 %v21770_v50  ;;  %v21871_v50 = vld [vmem:[%s25555_s21 + $0x30c] ss:$76 sps:$4 sm:$0xff]  }
 0x50a   : > { %15970 = vmatprep.subr.bf16.mxu0 %v21778_v10  ;;  %v21874_v10 = vld [vmem:[%s25555_s21 + $0x23ac] ss:$76 sps:$4 sm:$0xff]  }
 0x50d   : > { %15971 = vmatpush1.bf16.msra.mxu0 %v21776_v35  ;;  %v21869_v35 = vld [vmem:[%s25555_s21 + $0x308] ss:$76 sps:$4 sm:$0xff]  }
 0x50e   : > { %15972 = vmatprep.subr.bf16.mxu0 %v21784_v55  ;;  %v21872_v55 = vld [vmem:[%s25555_s21 + $0x23a8] ss:$76 sps:$4 sm:$0xff]  }
 0x511   : > { %15973 = vmatpush1.bf16.msra.mxu0 %v21782_v37  ;;  %v21877_v37 = vld [vmem:[%s25555_s21 + $0x3a4] ss:$76 sps:$4 sm:$0xff]  }
 0x512   : > { %15974 = vmatprep.subr.bf16.mxu0 %v21790_v58  ;;  %v21880_v58 = vld [vmem:[%s25555_s21 + $0x2444] ss:$76 sps:$4 sm:$0xff]  }
 0x515   : > { %15975 = vmatpush1.bf16.msra.mxu0 %v21788_v59  ;;  %v21875_v59 = vld [vmem:[%s25555_s21 + $0x3a0] ss:$76 sps:$4 sm:$0xff]  }
 0x516   : > { %15976 = vmatprep.subr.bf16.mxu0 %v21796_v61  ;;  %v21878_v61 = vld [vmem:[%s25555_s21 + $0x2440] ss:$76 sps:$4 sm:$0xff]  }
 0x519   : > { %15977 = vmatpush1.bf16.msra.mxu0 %v21794_v62  ;;  %v21883_v62 = vld [vmem:[%s25555_s21 + $0x43c] ss:$76 sps:$4 sm:$0xff]  }
 0x51a   : > { %15987 = vmatprep.subr.bf16.mxu0 %v21802_v63  ;;  %v21886_v63 = vld [vmem:[%s25555_s21 + $0x24dc] ss:$76 sps:$4 sm:$0xff]  }
 0x51c   : > { %15979 = vmatmul.mubr.bf16.vlgmr.msra.gmra.mrb[12].mxu0 %v25967_v34 }
 0x51d   : > { %15988 = vmatpush1.bf16.msra.mxu0 %v21800_v42  ;;  %16019 = vmatprep.mubr.bf16.mxu0 %v25972_v38  ;;  %v21881_v42 = vld [vmem:[%s25555_s21 + $0x438] ss:$76 sps:$4 sm:$0xff]  }
 0x51e   : > { %15989 = vmatprep.subr.bf16.mxu0 %v21808_v0  ;;  %v21884_v0 = vld [vmem:[%s25555_s21 + $0x24d8] ss:$76 sps:$4 sm:$0xff]  }
 0x521   : > { %15990 = vmatpush1.bf16.msra.mxu0 %v21806_v1  ;;  %v21889_v1 = vld [vmem:[%s25555_s21 + $0x4d4] ss:$76 sps:$4 sm:$0xff]  }
 0x522   : > { %15991 = vmatprep.subr.bf16.mxu0 %v21814_v46  ;;  %v21892_v46 = vld [vmem:[%s25555_s21 + $0x2574] ss:$76 sps:$4 sm:$0xff]  }
 0x525   : > { %15992 = vmatpush1.bf16.msra.mxu0 %v21812_v2  ;;  %v21887_v2 = vld [vmem:[%s25555_s21 + $0x4d0] ss:$76 sps:$4 sm:$0xff]  }
 0x526   : > { %15993 = vmatprep.subr.bf16.mxu0 %v21820_v5  ;;  %v21890_v5 = vld [vmem:[%s25555_s21 + $0x2570] ss:$76 sps:$4 sm:$0xff]  }
 0x529   : > { %15994 = vmatpush1.bf16.msra.mxu0 %v21818_v6  ;;  %v21895_v6 = vld [vmem:[%s25555_s21 + $0x56c] ss:$76 sps:$4 sm:$0xff]  }
 0x52a   : > { %15995 = vmatprep.subr.bf16.mxu0 %v21826_v7  ;;  %v21898_v7 = vld [vmem:[%s25555_s21 + $0x260c] ss:$76 sps:$4 sm:$0xff]  }
 0x52d   : > { %15996 = vmatpush1.bf16.msra.mxu0 %v21824_v9  ;;  %v21893_v9 = vld [vmem:[%s25555_s21 + $0x568] ss:$76 sps:$4 sm:$0xff]  }
 0x52e   : > { %15997 = vmatprep.subr.bf16.mxu0 %v21832_v13  ;;  %v21901_v13 = vld [vmem:[%s25555_s21 + $0x604] ss:$76 sps:$4 sm:$0xff]  }
 0x52f   : > { %v6347_v4 = vpop.f32.mrb[8].mxu0 }
 0x530   : > { %v20220_v16 = vadd.f32 %v6347_v4, %v2319_v11  ;;  %v6349_v56 = vpop.f32.mrb[9].mxu0  ;;  %v21899_v11 = vld [vmem:[%s25555_s21 + $0x600] ss:$76 sps:$4 sm:$0xff]   ;;  %v21910_v4 = vld [vmem:[%s25555_s21 + $0x273c] ss:$76 sps:$4 sm:$0xff]  }
 0x531   : > { %v20221_v52 = vadd.f32 %v6349_v56, %v2323_v15  ;;  %v6351_v18 = vpop.f32.mrb[10].mxu0  ;;  %15998 = vmatpush1.bf16.msra.mxu0 %v21830_v14  ;;  %v21904_v14 = vld [vmem:[%s25555_s21 + $0x26a4] ss:$76 sps:$4 sm:$0xff]   ;;  %v21902_v15 = vld [vmem:[%s25555_s21 + $0x26a0] ss:$76 sps:$4 sm:$0xff]  }
 0x532   : > { %v6362_v57 = vmax.f32 %v20220_v16, 0.0  ;;  %v6352_v23 = vpop.f32.mrb[11].mxu0  ;;  %15999 = vmatprep.subr.bf16.mxu0 %v21838_v53  ;;  %v21907_v53 = vld [vmem:[%s25555_s21 + $0x69c] ss:$76 sps:$4 sm:$0xff]   ;;  %v21905_v16 = vld [vmem:[%s25555_s21 + $0x698] ss:$76 sps:$4 sm:$0xff]  }
 0x533   : > { %v6363_v25 = vmax.f32 %v20221_v52, 0.0  ;;  %v21908_v56 = vld [vmem:[%s25555_s21 + $0x2738] ss:$76 sps:$4 sm:$0xff]   ;;  %v21916_v52 = vld [vmem:[%s25555_s21 + $0x27d4] ss:$76 sps:$4 sm:$0xff]  }
 0x534   : > { %v26185_v12 = vpack.c.bf16 %v6362_v57, %v6362_v57  ;;  %v21911_v18 = vld [vmem:[%s25555_s21 + $0x730] ss:$76 sps:$4 sm:$0xff]   ;;  %v21919_v23 = vld [vmem:[%s25555_s21 + $0x7cc] ss:$76 sps:$4 sm:$0xff]  }
 0x535   : > { %v26183_v20 = vpack.c.bf16 %v6363_v25, %v6363_v25  ;;  %16000 = vmatpush1.bf16.msra.mxu0 %v21836_v22  ;;  %v21913_v22 = vld [vmem:[%s25555_s21 + $0x734] ss:$76 sps:$4 sm:$0xff]   ;;  %v21914_v57 = vld [vmem:[%s25555_s21 + $0x27d0] ss:$76 sps:$4 sm:$0xff]  }
 0x536   : > { %16001 = vmatprep.subr.bf16.mxu0 %v21844_v3  ;;  %v21922_v3 = vld [vmem:[%s25555_s21 + $0x286c] ss:$76 sps:$4 sm:$0xff]   ;;  %v21917_v25 = vld [vmem:[%s25555_s21 + $0x7c8] ss:$76 sps:$4 sm:$0xff]  }
 0x537   : > { %15855 = vmatprep.mubr.bf16.mxu1 %v26183_v20 }
 0x538   : > { %15856 = vmatmul.mubr.bf16.vlgmr.msra.gmra.mrb[8].mxu1 %v26185_v12 }
 0x539   : > { %16070 = vmatpush1.bf16.msra.mxu1 %v21839_v33  ;;  %16002 = vmatpush1.bf16.msra.mxu0 %v21842_v26  ;;  %v21920_v33 = vld [vmem:[%s25555_s21 + $0x2868] ss:$76 sps:$4 sm:$0xff]   ;;  %v21925_v26 = vld [vmem:[%s25555_s21 + $0x864] ss:$76 sps:$4 sm:$0xff]  }
 0x53a   : > { %16101 = vmatprep.mubr.bf16.mxu1 %v25718_v60  ;;  %16071 = vmatprep.subr.bf16.mxu1 %v21847_v27  ;;  %v21928_v27 = vld [vmem:[%s25555_s21 + $0x2904] ss:$76 sps:$4 sm:$0xff]  }
 0x53b   : > { %16003 = vmatprep.subr.bf16.mxu0 %v21850_v24  ;;  %v21926_v24 = vld [vmem:[%s25555_s21 + $0x2900] ss:$76 sps:$4 sm:$0xff]  }
 0x53d   : > { %16072 = vmatpush1.bf16.msra.mxu1 %v21845_v31  ;;  %16004 = vmatpush1.bf16.msra.mxu0 %v21848_v36  ;;  %v21923_v31 = vld [vmem:[%s25555_s21 + $0x860] ss:$76 sps:$4 sm:$0xff]   ;;  %v21931_v36 = vld [vmem:[%s25555_s21 + $0x8fc] ss:$76 sps:$4 sm:$0xff]  }
 0x53e   : > { %16073 = vmatprep.subr.bf16.mxu1 %v21853_v29  ;;  %16005 = vmatprep.subr.bf16.mxu0 %v21856_v39  ;;  %v21934_v29 = vld [vmem:[%s25555_s21 + $0x299c] ss:$76 sps:$4 sm:$0xff]   ;;  %v21929_v39 = vld [vmem:[%s25555_s21 + $0x8f8] ss:$76 sps:$4 sm:$0xff]  }
 0x541   : > { %16074 = vmatpush1.bf16.msra.mxu1 %v21851_v54  ;;  %16006 = vmatpush1.bf16.msra.mxu0 %v21854_v40  ;;  %v21932_v54 = vld [vmem:[%s25555_s21 + $0x2998] ss:$76 sps:$4 sm:$0xff]   ;;  %v21937_v40 = vld [vmem:[%s25555_s21 + $0x994] ss:$76 sps:$4 sm:$0xff]  }
 0x542   : > { %16075 = vmatprep.subr.bf16.mxu1 %v21859_v41  ;;  %16007 = vmatprep.subr.bf16.mxu0 %v21862_v44  ;;  %v21940_v41 = vld [vmem:[%s25555_s21 + $0x2a34] ss:$76 sps:$4 sm:$0xff]   ;;  %v21935_v44 = vld [vmem:[%s25555_s21 + $0x990] ss:$76 sps:$4 sm:$0xff]  }
 0x545   : > { %16076 = vmatpush1.bf16.msra.mxu1 %v21857_v45  ;;  %16008 = vmatpush1.bf16.msra.mxu0 %v21860_v47  ;;  %v21938_v45 = vld [vmem:[%s25555_s21 + $0x2a30] ss:$76 sps:$4 sm:$0xff]   ;;  %v21943_v47 = vld [vmem:[%s25555_s21 + $0xa2c] ss:$76 sps:$4 sm:$0xff]  }
 0x546   : > { %16077 = vmatprep.subr.bf16.mxu1 %v21865_v32  ;;  %16009 = vmatprep.subr.bf16.mxu0 %v21868_v48  ;;  %v21946_v32 = vld [vmem:[%s25555_s21 + $0x2acc] ss:$76 sps:$4 sm:$0xff]   ;;  %v21941_v48 = vld [vmem:[%s25555_s21 + $0xa28] ss:$76 sps:$4 sm:$0xff]  }
 0x549   : > { %16078 = vmatpush1.bf16.msra.mxu1 %v21863_v49  ;;  %16010 = vmatpush1.bf16.msra.mxu0 %v21866_v28  ;;  %v21944_v49 = vld [vmem:[%s25555_s21 + $0x2ac8] ss:$76 sps:$4 sm:$0xff]   ;;  %v21949_v28 = vld [vmem:[%s25555_s21 + $0xac4] ss:$76 sps:$4 sm:$0xff]  }
 0x54a   : > { %16079 = vmatprep.subr.bf16.mxu1 %v21871_v50  ;;  %16011 = vmatprep.subr.bf16.mxu0 %v21874_v10  ;;  %v21952_v50 = vld [vmem:[%s25555_s21 + $0x2b64] ss:$76 sps:$4 sm:$0xff]   ;;  %v21947_v10 = vld [vmem:[%s25555_s21 + $0xac0] ss:$76 sps:$4 sm:$0xff]  }
 0x54d   : > { %16080 = vmatpush1.bf16.msra.mxu1 %v21869_v35  ;;  %16012 = vmatpush1.bf16.msra.mxu0 %v21872_v55  ;;  %v21950_v35 = vld [vmem:[%s25555_s21 + $0x2b60] ss:$76 sps:$4 sm:$0xff]   ;;  %v21955_v55 = vld [vmem:[%s25555_s21 + $0xb5c] ss:$76 sps:$4 sm:$0xff]  }
 0x54e   : > { %16081 = vmatprep.subr.bf16.mxu1 %v21877_v37  ;;  %16013 = vmatprep.subr.bf16.mxu0 %v21880_v58  ;;  %v21958_v37 = vld [vmem:[%s25555_s21 + $0x2bfc] ss:$76 sps:$4 sm:$0xff]   ;;  %v21953_v58 = vld [vmem:[%s25555_s21 + $0xb58] ss:$76 sps:$4 sm:$0xff]  }
 0x551   : > { %16082 = vmatpush1.bf16.msra.mxu1 %v21875_v59  ;;  %16014 = vmatpush1.bf16.msra.mxu0 %v21878_v61  ;;  %v21956_v59 = vld [vmem:[%s25555_s21 + $0x2bf8] ss:$76 sps:$4 sm:$0xff]   ;;  %v21961_v61 = vld [vmem:[%s25555_s21 + $0xbf4] ss:$76 sps:$4 sm:$0xff]  }
 0x552   : > { %16083 = vmatprep.subr.bf16.mxu1 %v21883_v62  ;;  %16015 = vmatprep.subr.bf16.mxu0 %v21886_v63  ;;  %v21964_v62 = vld [vmem:[%s25555_s21 + $0x2c94] ss:$76 sps:$4 sm:$0xff]   ;;  %v21959_v63 = vld [vmem:[%s25555_s21 + $0xbf0] ss:$76 sps:$4 sm:$0xff]  }
 0x555   : > { %16084 = vmatpush1.bf16.msra.mxu1 %v21881_v42  ;;  %16016 = vmatpush1.bf16.msra.mxu0 %v21884_v0  ;;  %v21962_v42 = vld [vmem:[%s25555_s21 + $0x2c90] ss:$76 sps:$4 sm:$0xff]   ;;  %v21967_v0 = vld [vmem:[%s25555_s21 + $0xc8c] ss:$76 sps:$4 sm:$0xff]  }
 0x556   : > { %16085 = vmatprep.subr.bf16.mxu1 %v21889_v1  ;;  %16017 = vmatprep.subr.bf16.mxu0 %v21892_v46  ;;  %v21965_v1 = vld [vmem:[%s25555_s21 + $0xc88] ss:$76 sps:$4 sm:$0xff]   ;;  %v21970_v46 = vld [vmem:[%s25555_s21 + $0x2d2c] ss:$76 sps:$4 sm:$0xff]  }
 0x559   : > { %16086 = vmatpush1.bf16.msra.mxu1 %v21887_v2  ;;  %16018 = vmatpush1.bf16.msra.mxu0 %v21890_v5  ;;  %v21968_v2 = vld [vmem:[%s25555_s21 + $0x2d28] ss:$76 sps:$4 sm:$0xff]   ;;  %v21973_v5 = vld [vmem:[%s25555_s21 + $0xd24] ss:$76 sps:$4 sm:$0xff]  }
 0x55a   : > { %16087 = vmatprep.subr.bf16.mxu1 %v21895_v6  ;;  %16028 = vmatprep.subr.bf16.mxu0 %v21898_v7  ;;  %v21971_v6 = vld [vmem:[%s25555_s21 + $0xd20] ss:$76 sps:$4 sm:$0xff]   ;;  %v21976_v7 = vld [vmem:[%s25555_s21 + $0x2dc4] ss:$76 sps:$4 sm:$0xff]  }
 0x55c   : > { %16020 = vmatmul.mubr.bf16.vlgmr.msra.gmra.mrb[12].mxu0 %v26041_v51 }
 0x55d   : > { %16088 = vmatpush1.bf16.msra.mxu1 %v21893_v9  ;;  %16029 = vmatpush1.bf16.msra.mxu0 %v21896_v21  ;;  %v21974_v9 = vld [vmem:[%s25555_s21 + $0x2dc0] ss:$76 sps:$4 sm:$0xff]   ;;  %v21979_v21 = vld [vmem:[%s25555_s21 + $0xdbc] ss:$76 sps:$4 sm:$0xff]  }
 0x55e   : > { %16060 = vmatprep.mubr.bf16.mxu0 %v26183_v20  ;;  %16089 = vmatprep.subr.bf16.mxu1 %v21901_v13  ;;  %v21982_v13 = vld [vmem:[%s25555_s21 + $0x2e5c] ss:$76 sps:$4 sm:$0xff]  }
 0x55f   : > { %16030 = vmatprep.subr.bf16.mxu0 %v21904_v14  ;;  %v21980_v14 = vld [vmem:[%s25555_s21 + $0x2e58] ss:$76 sps:$4 sm:$0xff]  }
 0x561   : > { %16090 = vmatpush1.bf16.msra.mxu1 %v21899_v11  ;;  %16031 = vmatpush1.bf16.msra.mxu0 %v21902_v15  ;;  %v21977_v11 = vld [vmem:[%s25555_s21 + $0xdb8] ss:$76 sps:$4 sm:$0xff]   ;;  %v21985_v15 = vld [vmem:[%s25555_s21 + $0xe54] ss:$76 sps:$4 sm:$0xff]  }
 0x562   : > { %16091 = vmatprep.subr.bf16.mxu1 %v21907_v53  ;;  %16032 = vmatprep.subr.bf16.mxu0 %v21910_v4  ;;  %v21988_v53 = vld [vmem:[%s25555_s21 + $0x2ef4] ss:$76 sps:$4 sm:$0xff]   ;;  %v21983_v4 = vld [vmem:[%s25555_s21 + $0xe50] ss:$76 sps:$4 sm:$0xff]  }
 0x565   : > { %16092 = vmatpush1.bf16.msra.mxu1 %v21905_v16  ;;  %16033 = vmatpush1.bf16.msra.mxu0 %v21908_v56  ;;  %v21986_v16 = vld [vmem:[%s25555_s21 + $0x2ef0] ss:$76 sps:$4 sm:$0xff]   ;;  %v21991_v56 = vld [vmem:[%s25555_s21 + $0xeec] ss:$76 sps:$4 sm:$0xff]  }
 0x566   : > { %16093 = vmatprep.subr.bf16.mxu1 %v21913_v22  ;;  %16034 = vmatprep.subr.bf16.mxu0 %v21916_v52  ;;  %v21994_v22 = vld [vmem:[%s25555_s21 + $0x1c] ss:$76 sps:$4 sm:$0xff]  }
 0x567   : > { %v21989_v52 = vld [vmem:[%s25555_s21 + $0xee8] ss:$76 sps:$4 sm:$0xff]  }
 0x569   : > { %16094 = vmatpush1.bf16.msra.mxu1 %v21911_v18  ;;  %16035 = vmatpush1.bf16.msra.mxu0 %v21914_v57  ;;  %v21992_v18 = vld [vmem:[%s25555_s21 + $0x18] ss:$76 sps:$4 sm:$0xff]  }
 0x56a   : > { %16095 = vmatprep.subr.bf16.mxu1 %v21919_v23  ;;  %16036 = vmatprep.subr.bf16.mxu0 %v21922_v3  ;;  %v21997_v57 = vld [vmem:[%s25555_s21 + $0xf84] ss:$76 sps:$4 sm:$0xff]   ;;  %v22000_v23 = vld [vmem:[%s25555_s21 + $0xb4] ss:$76 sps:$4 sm:$0xff]  }
 0x56b   : > { %v21995_v3 = vld [vmem:[%s25555_s21 + $0xf80] ss:$76 sps:$4 sm:$0xff]  }
 0x56d   : > { %16096 = vmatpush1.bf16.msra.mxu1 %v21917_v25  ;;  %16037 = vmatpush1.bf16.msra.mxu0 %v21920_v33  ;;  %v21998_v25 = vld [vmem:[%s25555_s21 + $0xb0] ss:$76 sps:$4 sm:$0xff]  }
 0x56e   : > { %16097 = vmatprep.subr.bf16.mxu1 %v21925_v26  ;;  %16038 = vmatprep.subr.bf16.mxu0 %v21928_v27  ;;  %v22003_v33 = vld [vmem:[%s25555_s21 + $0x101c] ss:$76 sps:$4 sm:$0xff]   ;;  %v22006_v26 = vld [vmem:[%s25555_s21 + $0x14c] ss:$76 sps:$4 sm:$0xff]  }
 0x56f   : > { %v22001_v27 = vld [vmem:[%s25555_s21 + $0x1018] ss:$76 sps:$4 sm:$0xff]  }
 0x571   : > { %16098 = vmatpush1.bf16.msra.mxu1 %v21923_v31  ;;  %16039 = vmatpush1.bf16.msra.mxu0 %v21926_v24  ;;  %v22004_v31 = vld [vmem:[%s25555_s21 + $0x148] ss:$76 sps:$4 sm:$0xff]  }
 0x572   : > { %16099 = vmatprep.subr.bf16.mxu1 %v21931_v36  ;;  %16040 = vmatprep.subr.bf16.mxu0 %v21934_v29  ;;  %v22009_v24 = vld [vmem:[%s25555_s21 + $0x10b4] ss:$76 sps:$4 sm:$0xff]   ;;  %v22012_v36 = vld [vmem:[%s25555_s21 + $0x1e4] ss:$76 sps:$4 sm:$0xff]  }
 0x573   : > { %v22007_v29 = vld [vmem:[%s25555_s21 + $0x10b0] ss:$76 sps:$4 sm:$0xff]  }
 0x575   : > { %16100 = vmatpush1.bf16.msra.mxu1 %v21929_v39  ;;  %16041 = vmatpush1.bf16.msra.mxu0 %v21932_v54  ;;  %v22010_v39 = vld [vmem:[%s25555_s21 + $0x1e0] ss:$76 sps:$4 sm:$0xff]  }
 0x576   : > { %16110 = vmatprep.subr.bf16.mxu1 %v21937_v40  ;;  %16042 = vmatprep.subr.bf16.mxu0 %v21940_v41  ;;  %v22015_v54 = vld [vmem:[%s25555_s21 + $0x114c] ss:$76 sps:$4 sm:$0xff]   ;;  %v22018_v40 = vld [vmem:[%s25555_s21 + $0x27c] ss:$76 sps:$4 sm:$0xff]  }
 0x577   : > { %v22013_v41 = vld [vmem:[%s25555_s21 + $0x1148] ss:$76 sps:$4 sm:$0xff]  }
 0x578   : > { %16102 = vmatmul.mubr.bf16.vlgmr.msra.gmra.mrb[12].mxu1 %v25793_v17 }
 0x579   : > { %16111 = vmatpush1.bf16.msra.mxu1 %v21935_v44  ;;  %16142 = vmatprep.mubr.bf16.mxu1 %v25796_v19  ;;  %v22016_v44 = vld [vmem:[%s25555_s21 + $0x278] ss:$76 sps:$4 sm:$0xff]  }
 0x57a   : > { %16043 = vmatpush1.bf16.msra.mxu0 %v21938_v45  ;;  %16112 = vmatprep.subr.bf16.mxu1 %v21943_v47  ;;  %v22021_v45 = vld [vmem:[%s25555_s21 + $0x11e4] ss:$76 sps:$4 sm:$0xff]   ;;  %v22024_v47 = vld [vmem:[%s25555_s21 + $0x314] ss:$76 sps:$4 sm:$0xff]  }
 0x57b   : > { %16044 = vmatprep.subr.bf16.mxu0 %v21946_v32  ;;  %v22019_v32 = vld [vmem:[%s25555_s21 + $0x11e0] ss:$76 sps:$4 sm:$0xff]  }
 0x57d   : > { %16113 = vmatpush1.bf16.msra.mxu1 %v21941_v48  ;;  %v22022_v48 = vld [vmem:[%s25555_s21 + $0x310] ss:$76 sps:$4 sm:$0xff]  }
 0x57e   : > { %16045 = vmatpush1.bf16.msra.mxu0 %v21944_v49  ;;  %16114 = vmatprep.subr.bf16.mxu1 %v21949_v28  ;;  %v22027_v49 = vld [vmem:[%s25555_s21 + $0x127c] ss:$76 sps:$4 sm:$0xff]   ;;  %v22030_v28 = vld [vmem:[%s25555_s21 + $0x3ac] ss:$76 sps:$4 sm:$0xff]  }
 0x57f   : > { %16046 = vmatprep.subr.bf16.mxu0 %v21952_v50  ;;  %v22025_v50 = vld [vmem:[%s25555_s21 + $0x1278] ss:$76 sps:$4 sm:$0xff]  }
 0x581   : > { %16115 = vmatpush1.bf16.msra.mxu1 %v21947_v10  ;;  %v22028_v10 = vld [vmem:[%s25555_s21 + $0x3a8] ss:$76 sps:$4 sm:$0xff]  }
 0x582   : > { %16047 = vmatpush1.bf16.msra.mxu0 %v21950_v35  ;;  %16116 = vmatprep.subr.bf16.mxu1 %v21955_v55  ;;  %v22033_v35 = vld [vmem:[%s25555_s21 + $0x1314] ss:$76 sps:$4 sm:$0xff]   ;;  %v22031_v55 = vld [vmem:[%s25555_s21 + $0x1310] ss:$76 sps:$4 sm:$0xff]  }
 0x583   : > { %16048 = vmatprep.subr.bf16.mxu0 %v21958_v37  ;;  %v22036_v37 = vld [vmem:[%s25555_s21 + $0x444] ss:$76 sps:$4 sm:$0xff]  }
 0x585   : > { %16117 = vmatpush1.bf16.msra.mxu1 %v21953_v58  ;;  %v22034_v58 = vld [vmem:[%s25555_s21 + $0x440] ss:$76 sps:$4 sm:$0xff]  }
 0x586   : > { %16049 = vmatpush1.bf16.msra.mxu0 %v21956_v59  ;;  %16118 = vmatprep.subr.bf16.mxu1 %v21961_v61  ;;  %v22039_v59 = vld [vmem:[%s25555_s21 + $0x13ac] ss:$76 sps:$4 sm:$0xff]   ;;  %v22042_v61 = vld [vmem:[%s25555_s21 + $0x4dc] ss:$76 sps:$4 sm:$0xff]  }
 0x587   : > { %16050 = vmatprep.subr.bf16.mxu0 %v21964_v62  ;;  %v22037_v62 = vld [vmem:[%s25555_s21 + $0x13a8] ss:$76 sps:$4 sm:$0xff]  }
 0x589   : > { %16119 = vmatpush1.bf16.msra.mxu1 %v21959_v63  ;;  %v22040_v63 = vld [vmem:[%s25555_s21 + $0x4d8] ss:$76 sps:$4 sm:$0xff]  }
 0x58a   : > { %16051 = vmatpush1.bf16.msra.mxu0 %v21962_v42  ;;  %16120 = vmatprep.subr.bf16.mxu1 %v21967_v0  ;;  %v22045_v42 = vld [vmem:[%s25555_s21 + $0x1444] ss:$76 sps:$4 sm:$0xff]   ;;  %v22048_v0 = vld [vmem:[%s25555_s21 + $0x574] ss:$76 sps:$4 sm:$0xff]  }
 0x58b   : > { %16052 = vmatprep.subr.bf16.mxu0 %v21970_v46  ;;  %v22046_v46 = vld [vmem:[%s25555_s21 + $0x570] ss:$76 sps:$4 sm:$0xff]  }
 0x58d   : > { %16121 = vmatpush1.bf16.msra.mxu1 %v21965_v1  ;;  %v22043_v1 = vld [vmem:[%s25555_s21 + $0x1440] ss:$76 sps:$4 sm:$0xff]  }
 0x58e   : > { %16053 = vmatpush1.bf16.msra.mxu0 %v21968_v2  ;;  %16122 = vmatprep.subr.bf16.mxu1 %v21973_v5  ;;  %v22051_v2 = vld [vmem:[%s25555_s21 + $0x14dc] ss:$76 sps:$4 sm:$0xff]   ;;  %v22054_v5 = vld [vmem:[%s25555_s21 + $0x60c] ss:$76 sps:$4 sm:$0xff]  }
 0x58f   : > { %16054 = vmatprep.subr.bf16.mxu0 %v21976_v7  ;;  %v22052_v7 = vld [vmem:[%s25555_s21 + $0x608] ss:$76 sps:$4 sm:$0xff]  }
 0x591   : > { %16123 = vmatpush1.bf16.msra.mxu1 %v21971_v6  ;;  %v22049_v6 = vld [vmem:[%s25555_s21 + $0x14d8] ss:$76 sps:$4 sm:$0xff]  }
 0x592   : > { %16055 = vmatpush1.bf16.msra.mxu0 %v21974_v9  ;;  %16124 = vmatprep.subr.bf16.mxu1 %v21979_v21  ;;  %v22057_v9 = vld [vmem:[%s25555_s21 + $0x1574] ss:$76 sps:$4 sm:$0xff]   ;;  %v22060_v21 = vld [vmem:[%s25555_s21 + $0x6a4] ss:$76 sps:$4 sm:$0xff]  }
 0x593   : > { %16056 = vmatprep.subr.bf16.mxu0 %v21982_v13  ;;  %v22055_v13 = vld [vmem:[%s25555_s21 + $0x1570] ss:$76 sps:$4 sm:$0xff]  }
 0x595   : > { %16125 = vmatpush1.bf16.msra.mxu1 %v21977_v11  ;;  %v22058_v11 = vld [vmem:[%s25555_s21 + $0x6a0] ss:$76 sps:$4 sm:$0xff]  }
 0x596   : > { %16057 = vmatpush1.bf16.msra.mxu0 %v21980_v14  ;;  %16126 = vmatprep.subr.bf16.mxu1 %v21985_v15  ;;  %v22063_v14 = vld [vmem:[%s25555_s21 + $0x160c] ss:$76 sps:$4 sm:$0xff]   ;;  %v22066_v15 = vld [vmem:[%s25555_s21 + $0x73c] ss:$76 sps:$4 sm:$0xff]  }
 0x597   : > { %16058 = vmatprep.subr.bf16.mxu0 %v21988_v53  ;;  %v22061_v53 = vld [vmem:[%s25555_s21 + $0x1608] ss:$76 sps:$4 sm:$0xff]  }
 0x599   : > { %16127 = vmatpush1.bf16.msra.mxu1 %v21983_v4  ;;  %v22064_v4 = vld [vmem:[%s25555_s21 + $0x738] ss:$76 sps:$4 sm:$0xff]  }
 0x59a   : > { %16059 = vmatpush1.bf16.msra.mxu0 %v21986_v16  ;;  %16128 = vmatprep.subr.bf16.mxu1 %v21991_v56  ;;  %v22069_v16 = vld [vmem:[%s25555_s21 + $0x16a4] ss:$76 sps:$4 sm:$0xff]   ;;  %v22072_v56 = vld [vmem:[%s25555_s21 + $0x7d4] ss:$76 sps:$4 sm:$0xff]  }
 0x59b   : > { %16274 = vmatprep.subr.bf16.mxu0 %v21994_v22  ;;  %v22067_v22 = vld [vmem:[%s25555_s21 + $0x16a0] ss:$76 sps:$4 sm:$0xff]  }
 0x59d   : > { %16061 = vmatmul.mubr.bf16.vlgmr.msra.gmra.mrb[12].mxu0 %v26185_v12  ;;  %16129 = vmatpush1.bf16.msra.mxu1 %v21989_v52  ;;  %v22070_v52 = vld [vmem:[%s25555_s21 + $0x7d0] ss:$76 sps:$4 sm:$0xff]  }
 0x59e   : > { %16275 = vmatpush1.bf16.msra.mxu0 %v21992_v18  ;;  %16306 = vmatprep.mubr.bf16.mxu0 %v25718_v60  ;;  %v22075_v18 = vld [vmem:[%s25555_s21 + $0x173c] ss:$76 sps:$4 sm:$0xff]  }
 0x59f   : > { %16130 = vmatprep.subr.bf16.mxu1 %v21997_v57  ;;  %16276 = vmatprep.subr.bf16.mxu0 %v22000_v23  ;;  %v22078_v57 = vld [vmem:[%s25555_s21 + $0x86c] ss:$76 sps:$4 sm:$0xff]  }
 0x5a0   : > { %v22073_v23 = vld [vmem:[%s25555_s21 + $0x1738] ss:$76 sps:$4 sm:$0xff]  }
 0x5a1   : > { %16131 = vmatpush1.bf16.msra.mxu1 %v21995_v3  ;;  %v22076_v3 = vld [vmem:[%s25555_s21 + $0x868] ss:$76 sps:$4 sm:$0xff]  }
 0x5a2   : > { %16277 = vmatpush1.bf16.msra.mxu0 %v21998_v25  ;;  %16132 = vmatprep.subr.bf16.mxu1 %v22003_v33  ;;  %v22081_v25 = vld [vmem:[%s25555_s21 + $0x17d4] ss:$76 sps:$4 sm:$0xff]   ;;  %v22084_v33 = vld [vmem:[%s25555_s21 + $0x904] ss:$76 sps:$4 sm:$0xff]  }
 0x5a3   : > { %16278 = vmatprep.subr.bf16.mxu0 %v22006_v26  ;;  %v22079_v26 = vld [vmem:[%s25555_s21 + $0x17d0] ss:$76 sps:$4 sm:$0xff]  }
 0x5a5   : > { %16133 = vmatpush1.bf16.msra.mxu1 %v22001_v27  ;;  %v22082_v27 = vld [vmem:[%s25555_s21 + $0x900] ss:$76 sps:$4 sm:$0xff]  }
 0x5a6   : > { %16279 = vmatpush1.bf16.msra.mxu0 %v22004_v31  ;;  %16134 = vmatprep.subr.bf16.mxu1 %v22009_v24  ;;  %v22087_v31 = vld [vmem:[%s25555_s21 + $0x186c] ss:$76 sps:$4 sm:$0xff]   ;;  %v22090_v24 = vld [vmem:[%s25555_s21 + $0x99c] ss:$76 sps:$4 sm:$0xff]  }
 0x5a7   : > { %16280 = vmatprep.subr.bf16.mxu0 %v22012_v36  ;;  %v22085_v36 = vld [vmem:[%s25555_s21 + $0x1868] ss:$76 sps:$4 sm:$0xff]  }
 0x5a9   : > { %16135 = vmatpush1.bf16.msra.mxu1 %v22007_v29  ;;  %v22088_v29 = vld [vmem:[%s25555_s21 + $0x998] ss:$76 sps:$4 sm:$0xff]  }
 0x5aa   : > { %16281 = vmatpush1.bf16.msra.mxu0 %v22010_v39  ;;  %16136 = vmatprep.subr.bf16.mxu1 %v22015_v54  ;;  %v22093_v39 = vld [vmem:[%s25555_s21 + $0x1904] ss:$76 sps:$4 sm:$0xff]   ;;  %v22096_v54 = vld [vmem:[%s25555_s21 + $0xa34] ss:$76 sps:$4 sm:$0xff]  }
 0x5ab   : > { %16282 = vmatprep.subr.bf16.mxu0 %v22018_v40  ;;  %v22091_v40 = vld [vmem:[%s25555_s21 + $0x1900] ss:$76 sps:$4 sm:$0xff]  }
 0x5ad   : > { %16137 = vmatpush1.bf16.msra.mxu1 %v22013_v41  ;;  %v22094_v41 = vld [vmem:[%s25555_s21 + $0xa30] ss:$76 sps:$4 sm:$0xff]  }
 0x5ae   : > { %16283 = vmatpush1.bf16.msra.mxu0 %v22016_v44  ;;  %16138 = vmatprep.subr.bf16.mxu1 %v22021_v45  ;;  %v22099_v44 = vld [vmem:[%s25555_s21 + $0x199c] ss:$76 sps:$4 sm:$0xff]   ;;  %v22102_v45 = vld [vmem:[%s25555_s21 + $0xacc] ss:$76 sps:$4 sm:$0xff]  }
 0x5af   : > { %16284 = vmatprep.subr.bf16.mxu0 %v22024_v47  ;;  %v22097_v47 = vld [vmem:[%s25555_s21 + $0x1998] ss:$76 sps:$4 sm:$0xff]  }
 0x5b1   : > { %16139 = vmatpush1.bf16.msra.mxu1 %v22019_v32  ;;  %v22100_v32 = vld [vmem:[%s25555_s21 + $0xac8] ss:$76 sps:$4 sm:$0xff]  }
 0x5b2   : > { %16285 = vmatpush1.bf16.msra.mxu0 %v22022_v48  ;;  %16140 = vmatprep.subr.bf16.mxu1 %v22027_v49  ;;  %v22105_v48 = vld [vmem:[%s25555_s21 + $0x1a34] ss:$76 sps:$4 sm:$0xff]   ;;  %v22108_v49 = vld [vmem:[%s25555_s21 + $0xb64] ss:$76 sps:$4 sm:$0xff]  }
 0x5b3   : > { %16286 = vmatprep.subr.bf16.mxu0 %v22030_v28  ;;  %v22103_v28 = vld [vmem:[%s25555_s21 + $0x1a30] ss:$76 sps:$4 sm:$0xff]  }
 0x5b5   : > { %16141 = vmatpush1.bf16.msra.mxu1 %v22025_v50  ;;  %v22106_v50 = vld [vmem:[%s25555_s21 + $0xb60] ss:$76 sps:$4 sm:$0xff]  }
 0x5b6   : > { %16287 = vmatpush1.bf16.msra.mxu0 %v22028_v10  ;;  %16151 = vmatprep.subr.bf16.mxu1 %v22033_v35  ;;  %v22111_v10 = vld [vmem:[%s25555_s21 + $0x1acc] ss:$76 sps:$4 sm:$0xff]   ;;  %v22114_v35 = vld [vmem:[%s25555_s21 + $0xbfc] ss:$76 sps:$4 sm:$0xff]  }
 0x5b7   : > { %16288 = vmatprep.subr.bf16.mxu0 %v22036_v37  ;;  %v22112_v37 = vld [vmem:[%s25555_s21 + $0xbf8] ss:$76 sps:$4 sm:$0xff]  }
 0x5b8   : > { %16143 = vmatmul.mubr.bf16.vlgmr.msra.gmra.mrb[12].mxu1 %v25872_v43 }
 0x5b9   : > { %16152 = vmatpush1.bf16.msra.mxu1 %v22031_v55  ;;  %16183 = vmatprep.mubr.bf16.mxu1 %v25963_v30  ;;  %v22109_v55 = vld [vmem:[%s25555_s21 + $0x1ac8] ss:$76 sps:$4 sm:$0xff]  }
 0x5ba   : > { %16289 = vmatpush1.bf16.msra.mxu0 %v22034_v58  ;;  %16153 = vmatprep.subr.bf16.mxu1 %v22039_v59  ;;  %v22117_v58 = vld [vmem:[%s25555_s21 + $0x1b64] ss:$76 sps:$4 sm:$0xff]   ;;  %v22120_v59 = vld [vmem:[%s25555_s21 + $0xc94] ss:$76 sps:$4 sm:$0xff]  }
 0x5bb   : > { %16290 = vmatprep.subr.bf16.mxu0 %v22042_v61  ;;  %v22115_v61 = vld [vmem:[%s25555_s21 + $0x1b60] ss:$76 sps:$4 sm:$0xff]  }
 0x5bd   : > { %16154 = vmatpush1.bf16.msra.mxu1 %v22037_v62  ;;  %v22118_v62 = vld [vmem:[%s25555_s21 + $0xc90] ss:$76 sps:$4 sm:$0xff]  }
 0x5be   : > { %16291 = vmatpush1.bf16.msra.mxu0 %v22040_v63  ;;  %16155 = vmatprep.subr.bf16.mxu1 %v22045_v42  ;;  %v22123_v63 = vld [vmem:[%s25555_s21 + $0x1bfc] ss:$76 sps:$4 sm:$0xff]   ;;  %v22126_v42 = vld [vmem:[%s25555_s21 + $0xd2c] ss:$76 sps:$4 sm:$0xff]  }
 0x5bf   : > { %16292 = vmatprep.subr.bf16.mxu0 %v22048_v0  ;;  %v22121_v0 = vld [vmem:[%s25555_s21 + $0x1bf8] ss:$76 sps:$4 sm:$0xff]  }
 0x5c1   : > { %16156 = vmatpush1.bf16.msra.mxu1 %v22043_v1  ;;  %v22124_v1 = vld [vmem:[%s25555_s21 + $0xd28] ss:$76 sps:$4 sm:$0xff]  }
 0x5c2   : > { %16293 = vmatpush1.bf16.msra.mxu0 %v22046_v46  ;;  %16157 = vmatprep.subr.bf16.mxu1 %v22051_v2  ;;  %v22129_v46 = vld [vmem:[%s25555_s21 + $0x1c94] ss:$76 sps:$4 sm:$0xff]   ;;  %v22132_v2 = vld [vmem:[%s25555_s21 + $0xdc4] ss:$76 sps:$4 sm:$0xff]  }
 0x5c3   : > { %16294 = vmatprep.subr.bf16.mxu0 %v22054_v5  ;;  %v22127_v5 = vld [vmem:[%s25555_s21 + $0x1c90] ss:$76 sps:$4 sm:$0xff]  }
 0x5c5   : > { %16158 = vmatpush1.bf16.msra.mxu1 %v22049_v6  ;;  %v22130_v6 = vld [vmem:[%s25555_s21 + $0xdc0] ss:$76 sps:$4 sm:$0xff]  }
 0x5c6   : > { %16295 = vmatpush1.bf16.msra.mxu0 %v22052_v7  ;;  %16159 = vmatprep.subr.bf16.mxu1 %v22057_v9  ;;  %v22135_v7 = vld [vmem:[%s25555_s21 + $0x1d2c] ss:$76 sps:$4 sm:$0xff]   ;;  %v22138_v9 = vld [vmem:[%s25555_s21 + $0xe5c] ss:$76 sps:$4 sm:$0xff]  }
 0x5c7   : > { %16296 = vmatprep.subr.bf16.mxu0 %v22060_v21  ;;  %v22133_v21 = vld [vmem:[%s25555_s21 + $0x1d28] ss:$76 sps:$4 sm:$0xff]  }
 0x5c9   : > { %16160 = vmatpush1.bf16.msra.mxu1 %v22055_v13  ;;  %v22136_v13 = vld [vmem:[%s25555_s21 + $0xe58] ss:$76 sps:$4 sm:$0xff]  }
 0x5ca   : > { %16297 = vmatpush1.bf16.msra.mxu0 %v22058_v11  ;;  %16161 = vmatprep.subr.bf16.mxu1 %v22063_v14  ;;  %v22141_v11 = vld [vmem:[%s25555_s21 + $0x1dc4] ss:$76 sps:$4 sm:$0xff]   ;;  %v22144_v14 = vld [vmem:[%s25555_s21 + $0xef4] ss:$76 sps:$4 sm:$0xff]  }
 0x5cb   : > { %16298 = vmatprep.subr.bf16.mxu0 %v22066_v15  ;;  %v22139_v15 = vld [vmem:[%s25555_s21 + $0x1dc0] ss:$76 sps:$4 sm:$0xff]  }
 0x5cd   : > { %16162 = vmatpush1.bf16.msra.mxu1 %v22061_v53  ;;  %v22142_v53 = vld [vmem:[%s25555_s21 + $0xef0] ss:$76 sps:$4 sm:$0xff]  }
 0x5ce   : > { %16299 = vmatpush1.bf16.msra.mxu0 %v22064_v4  ;;  %16163 = vmatprep.subr.bf16.mxu1 %v22069_v16  ;;  %v22147_v4 = vld [vmem:[%s25555_s21 + $0x1e5c] ss:$76 sps:$4 sm:$0xff]   ;;  %v22150_v16 = vld [vmem:[%s25555_s21 + $0xf8c] ss:$76 sps:$4 sm:$0xff]  }
 0x5cf   : > { %16300 = vmatprep.subr.bf16.mxu0 %v22072_v56  ;;  %v22145_v56 = vld [vmem:[%s25555_s21 + $0x1e58] ss:$76 sps:$4 sm:$0xff]  }
 0x5d1   : > { %16164 = vmatpush1.bf16.msra.mxu1 %v22067_v22  ;;  %v22148_v22 = vld [vmem:[%s25555_s21 + $0xf88] ss:$76 sps:$4 sm:$0xff]  }
 0x5d2   : > { %16301 = vmatpush1.bf16.msra.mxu0 %v22070_v52  ;;  %16165 = vmatprep.subr.bf16.mxu1 %v22075_v18  ;;  %v22153_v52 = vld [vmem:[%s25555_s21 + $0x1ef4] ss:$76 sps:$4 sm:$0xff]   ;;  %v22156_v18 = vld [vmem:[%s25555_s21 + $0x1024] ss:$76 sps:$4 sm:$0xff]  }
 0x5d3   : > { %16302 = vmatprep.subr.bf16.mxu0 %v22078_v57  ;;  %v22151_v57 = vld [vmem:[%s25555_s21 + $0x1ef0] ss:$76 sps:$4 sm:$0xff]  }
 0x5d5   : > { %16166 = vmatpush1.bf16.msra.mxu1 %v22073_v23  ;;  %v22154_v23 = vld [vmem:[%s25555_s21 + $0x1020] ss:$76 sps:$4 sm:$0xff]  }
 0x5d6   : > { %16303 = vmatpush1.bf16.msra.mxu0 %v22076_v3  ;;  %16167 = vmatprep.subr.bf16.mxu1 %v22081_v25  ;;  %v22159_v3 = vld [vmem:[%s25555_s21 + $0x1f8c] ss:$76 sps:$4 sm:$0xff]   ;;  %v22162_v25 = vld [vmem:[%s25555_s21 + $0x10bc] ss:$76 sps:$4 sm:$0xff]  }
 0x5d7   : > { %16304 = vmatprep.subr.bf16.mxu0 %v22084_v33  ;;  %v22157_v33 = vld [vmem:[%s25555_s21 + $0x1f88] ss:$76 sps:$4 sm:$0xff]  }
 0x5d9   : > { %16168 = vmatpush1.bf16.msra.mxu1 %v22079_v26  ;;  %v22160_v26 = vld [vmem:[%s25555_s21 + $0x10b8] ss:$76 sps:$4 sm:$0xff]  }
 0x5da   : > { %16305 = vmatpush1.bf16.msra.mxu0 %v22082_v27  ;;  %16169 = vmatprep.subr.bf16.mxu1 %v22087_v31  ;;  %v22165_v27 = vld [vmem:[%s25555_s21 + $0x2024] ss:$76 sps:$4 sm:$0xff]  }
 0x5db   : > { %16315 = vmatprep.subr.bf16.mxu0 %v22090_v24  ;;  %v22168_v24 = vld [vmem:[%s25555_s21 + $0x1154] ss:$76 sps:$4 sm:$0xff]  }
 0x5dd   : > { %16170 = vmatpush1.bf16.msra.mxu1 %v22085_v36  ;;  %16307 = vmatmul.mubr.bf16.vlgmr.msra.gmra.mrb[16].mxu0 %v25793_v17 }
 0x5de   : > { %16316 = vmatpush1.bf16.msra.mxu0 %v22088_v29  ;;  %16347 = vmatprep.mubr.bf16.mxu0 %v25796_v19 }
 0x5df   : > { %16171 = vmatprep.subr.bf16.mxu1 %v22093_v39  ;;  %16317 = vmatprep.subr.bf16.mxu0 %v22096_v54  ;;  %v22163_v54 = vld [vmem:[%s25555_s21 + $0x2020] ss:$76 sps:$4 sm:$0xff]  }
 0x5e1   : > { %16172 = vmatpush1.bf16.msra.mxu1 %v22091_v40 }
 0x5e2   : > { %16318 = vmatpush1.bf16.msra.mxu0 %v22094_v41  ;;  %16173 = vmatprep.subr.bf16.mxu1 %v22099_v44  ;;  %v22166_v41 = vld [vmem:[%s25555_s21 + $0x1150] ss:$76 sps:$4 sm:$0xff]  }
 0x5e3   : > { %16319 = vmatprep.subr.bf16.mxu0 %v22102_v45  ;;  %v22171_v44 = vld [vmem:[%s25555_s21 + $0x20bc] ss:$76 sps:$4 sm:$0xff]   ;;  %v22174_v45 = vld [vmem:[%s25555_s21 + $0x11ec] ss:$76 sps:$4 sm:$0xff]  }
 0x5e5   : > { %16174 = vmatpush1.bf16.msra.mxu1 %v22097_v47  ;;  %v22169_v47 = vld [vmem:[%s25555_s21 + $0x20b8] ss:$76 sps:$4 sm:$0xff]  }
 0x5e6   : > { %16320 = vmatpush1.bf16.msra.mxu0 %v22100_v32  ;;  %16175 = vmatprep.subr.bf16.mxu1 %v22105_v48  ;;  %v22172_v32 = vld [vmem:[%s25555_s21 + $0x11e8] ss:$76 sps:$4 sm:$0xff]  }
 0x5e7   : > { %16321 = vmatprep.subr.bf16.mxu0 %v22108_v49  ;;  %v22177_v48 = vld [vmem:[%s25555_s21 + $0x2154] ss:$76 sps:$4 sm:$0xff]   ;;  %v22180_v49 = vld [vmem:[%s25555_s21 + $0x1284] ss:$76 sps:$4 sm:$0xff]  }
 0x5e9   : > { %16176 = vmatpush1.bf16.msra.mxu1 %v22103_v28  ;;  %v22175_v28 = vld [vmem:[%s25555_s21 + $0x2150] ss:$76 sps:$4 sm:$0xff]  }
 0x5ea   : > { %16322 = vmatpush1.bf16.msra.mxu0 %v22106_v50  ;;  %16177 = vmatprep.subr.bf16.mxu1 %v22111_v10  ;;  %v22178_v50 = vld [vmem:[%s25555_s21 + $0x1280] ss:$76 sps:$4 sm:$0xff]  }
 0x5eb   : > { %16323 = vmatprep.subr.bf16.mxu0 %v22114_v35  ;;  %v22183_v10 = vld [vmem:[%s25555_s21 + $0x21ec] ss:$76 sps:$4 sm:$0xff]   ;;  %v22186_v35 = vld [vmem:[%s25555_s21 + $0x131c] ss:$76 sps:$4 sm:$0xff]  }
 0x5ed   : > { %16178 = vmatpush1.bf16.msra.mxu1 %v22109_v55  ;;  %v22181_v55 = vld [vmem:[%s25555_s21 + $0x21e8] ss:$76 sps:$4 sm:$0xff]  }
 0x5ee   : > { %16324 = vmatpush1.bf16.msra.mxu0 %v22112_v37  ;;  %16179 = vmatprep.subr.bf16.mxu1 %v22117_v58  ;;  %v22184_v37 = vld [vmem:[%s25555_s21 + $0x1318] ss:$76 sps:$4 sm:$0xff]  }
 0x5ef   : > { %16325 = vmatprep.subr.bf16.mxu0 %v22120_v59  ;;  %v22189_v58 = vld [vmem:[%s25555_s21 + $0x2284] ss:$76 sps:$4 sm:$0xff]   ;;  %v22192_v59 = vld [vmem:[%s25555_s21 + $0x13b4] ss:$76 sps:$4 sm:$0xff]  }
 0x5f1   : > { %16180 = vmatpush1.bf16.msra.mxu1 %v22115_v61  ;;  %v22187_v61 = vld [vmem:[%s25555_s21 + $0x2280] ss:$76 sps:$4 sm:$0xff]  }
 0x5f2   : > { %16326 = vmatpush1.bf16.msra.mxu0 %v22118_v62  ;;  %16181 = vmatprep.subr.bf16.mxu1 %v22123_v63  ;;  %v22190_v62 = vld [vmem:[%s25555_s21 + $0x13b0] ss:$76 sps:$4 sm:$0xff]  }
 0x5f3   : > { %16327 = vmatprep.subr.bf16.mxu0 %v22126_v42  ;;  %v22195_v63 = vld [vmem:[%s25555_s21 + $0x231c] ss:$76 sps:$4 sm:$0xff]   ;;  %v22198_v42 = vld [vmem:[%s25555_s21 + $0x144c] ss:$76 sps:$4 sm:$0xff]  }
 0x5f5   : > { %16182 = vmatpush1.bf16.msra.mxu1 %v22121_v0  ;;  %v22193_v0 = vld [vmem:[%s25555_s21 + $0x2318] ss:$76 sps:$4 sm:$0xff]  }
 0x5f6   : > { %16328 = vmatpush1.bf16.msra.mxu0 %v22124_v1  ;;  %16192 = vmatprep.subr.bf16.mxu1 %v22129_v46  ;;  %v22196_v1 = vld [vmem:[%s25555_s21 + $0x1448] ss:$76 sps:$4 sm:$0xff]  }
 0x5f7   : > { %16329 = vmatprep.subr.bf16.mxu0 %v22132_v2  ;;  %v22201_v46 = vld [vmem:[%s25555_s21 + $0x23b4] ss:$76 sps:$4 sm:$0xff]   ;;  %v22204_v2 = vld [vmem:[%s25555_s21 + $0x14e4] ss:$76 sps:$4 sm:$0xff]  }
 0x5f8   : > { %16184 = vmatmul.mubr.bf16.vlgmr.msra.gmra.mrb[12].mxu1 %v25967_v34 }
 0x5f9   : > { %16193 = vmatpush1.bf16.msra.mxu1 %v22127_v5  ;;  %16224 = vmatprep.mubr.bf16.mxu1 %v25972_v38  ;;  %v22199_v5 = vld [vmem:[%s25555_s21 + $0x23b0] ss:$76 sps:$4 sm:$0xff]  }
 0x5fa   : > { %16330 = vmatpush1.bf16.msra.mxu0 %v22130_v6  ;;  %16194 = vmatprep.subr.bf16.mxu1 %v22135_v7  ;;  %v22202_v6 = vld [vmem:[%s25555_s21 + $0x14e0] ss:$76 sps:$4 sm:$0xff]  }
 0x5fb   : > { %16331 = vmatprep.subr.bf16.mxu0 %v22138_v9  ;;  %v22207_v7 = vld [vmem:[%s25555_s21 + $0x244c] ss:$76 sps:$4 sm:$0xff]   ;;  %v22210_v9 = vld [vmem:[%s25555_s21 + $0x157c] ss:$76 sps:$4 sm:$0xff]  }
 0x5fd   : > { %16195 = vmatpush1.bf16.msra.mxu1 %v22133_v21  ;;  %v22205_v21 = vld [vmem:[%s25555_s21 + $0x2448] ss:$76 sps:$4 sm:$0xff]  }
 0x5fe   : > { %16332 = vmatpush1.bf16.msra.mxu0 %v22136_v13  ;;  %16196 = vmatprep.subr.bf16.mxu1 %v22141_v11  ;;  %v22208_v13 = vld [vmem:[%s25555_s21 + $0x1578] ss:$76 sps:$4 sm:$0xff]  }
 0x5ff   : > { %16333 = vmatprep.subr.bf16.mxu0 %v22144_v14  ;;  %v22213_v11 = vld [vmem:[%s25555_s21 + $0x24e4] ss:$76 sps:$4 sm:$0xff]   ;;  %v22216_v14 = vld [vmem:[%s25555_s21 + $0x1614] ss:$76 sps:$4 sm:$0xff]  }
 0x601   : > { %16197 = vmatpush1.bf16.msra.mxu1 %v22139_v15  ;;  %v22211_v15 = vld [vmem:[%s25555_s21 + $0x24e0] ss:$76 sps:$4 sm:$0xff]  }
 0x602   : > { %16334 = vmatpush1.bf16.msra.mxu0 %v22142_v53  ;;  %16198 = vmatprep.subr.bf16.mxu1 %v22147_v4  ;;  %v22214_v53 = vld [vmem:[%s25555_s21 + $0x1610] ss:$76 sps:$4 sm:$0xff]  }
 0x603   : > { %16335 = vmatprep.subr.bf16.mxu0 %v22150_v16  ;;  %v22219_v4 = vld [vmem:[%s25555_s21 + $0x257c] ss:$76 sps:$4 sm:$0xff]   ;;  %v22222_v16 = vld [vmem:[%s25555_s21 + $0x16ac] ss:$76 sps:$4 sm:$0xff]  }
 0x605   : > { %16199 = vmatpush1.bf16.msra.mxu1 %v22145_v56  ;;  %v22217_v56 = vld [vmem:[%s25555_s21 + $0x2578] ss:$76 sps:$4 sm:$0xff]  }
 0x606   : > { %16336 = vmatpush1.bf16.msra.mxu0 %v22148_v22  ;;  %16200 = vmatprep.subr.bf16.mxu1 %v22153_v52  ;;  %v22220_v22 = vld [vmem:[%s25555_s21 + $0x16a8] ss:$76 sps:$4 sm:$0xff]  }
 0x607   : > { %16337 = vmatprep.subr.bf16.mxu0 %v22156_v18  ;;  %v22225_v52 = vld [vmem:[%s25555_s21 + $0x2614] ss:$76 sps:$4 sm:$0xff]   ;;  %v22228_v18 = vld [vmem:[%s25555_s21 + $0x1744] ss:$76 sps:$4 sm:$0xff]  }
 0x609   : > { %16201 = vmatpush1.bf16.msra.mxu1 %v22151_v57  ;;  %v22223_v57 = vld [vmem:[%s25555_s21 + $0x2610] ss:$76 sps:$4 sm:$0xff]  }
 0x60a   : > { %16338 = vmatpush1.bf16.msra.mxu0 %v22154_v23  ;;  %16202 = vmatprep.subr.bf16.mxu1 %v22159_v3  ;;  %v22226_v23 = vld [vmem:[%s25555_s21 + $0x1740] ss:$76 sps:$4 sm:$0xff]  }
 0x60b   : > { %v26415_v31 = vpop.f32.mrb[8].mxu1  ;;  %16339 = vmatprep.subr.bf16.mxu0 %v22162_v25  ;;  %v22231_v3 = vld [vmem:[%s25555_s21 + $0x26ac] ss:$76 sps:$4 sm:$0xff]   ;;  %v22234_v25 = vld [vmem:[%s25555_s21 + $0x17dc] ss:$76 sps:$4 sm:$0xff]  }
 0x60c   : > { %v26418_v36 = vpop.f32.mrb[9].mxu1 }
 0x60d   : > { %v17723_v29 = vcombine.low %v26415_v31, %v26418_v36  ;;  %16203 = vmatpush1.bf16.msra.mxu1 %v22157_v33  ;;  %v15861_v39 = vpop.f32.mrb[10].mxu1  ;;  %v22229_v33 = vld [vmem:[%s25555_s21 + $0x26a8] ss:$76 sps:$4 sm:$0xff]   ;;  %v22325_v31 = vld [vmem:[%s25555_s21 + $0xb8] ss:$76 sps:$4 sm:$0xff]  }
 0x60e   : > { %16340 = vmatpush1.bf16.msra.mxu0 %v22160_v26  ;;  %v15862_v40 = vpop.f32.mrb[11].mxu1  ;;  %16204 = vmatprep.subr.bf16.mxu1 %v22165_v27  ;;  %v22232_v26 = vld [vmem:[%s25555_s21 + $0x17d8] ss:$76 sps:$4 sm:$0xff]   ;;  %v22235_v39 = vld [vmem:[%s25555_s21 + $0x2740] ss:$76 sps:$4 sm:$0xff]  }
 0x60f   : > { %16341 = vmatprep.subr.bf16.mxu0 %v22168_v24  ;;  %v22237_v27 = vld [vmem:[%s25555_s21 + $0x2744] ss:$76 sps:$4 sm:$0xff]   ;;  %v22240_v24 = vld [vmem:[%s25555_s21 + $0x1874] ss:$76 sps:$4 sm:$0xff]   ;;  %v22243_v40 = vld [vmem:[%s25555_s21 + $0x27dc] ss:$76 sps:$4 sm:$0xff]  }
 0x610   : > { %v22328_v36 = vld [vmem:[%s25555_s21 + $0x2158] ss:$76 sps:$4 sm:$0xff]  }
 0x611   : > { %16205 = vmatpush1.bf16.msra.mxu1 %v22163_v54  ;;  %v22238_v54 = vld [vmem:[%s25555_s21 + $0x1870] ss:$76 sps:$4 sm:$0xff]  }
 0x612   : > { %16342 = vmatpush1.bf16.msra.mxu0 %v22166_v41  ;;  %16206 = vmatprep.subr.bf16.mxu1 %v22171_v44  ;;  %v22246_v41 = vld [vmem:[%s25555_s21 + $0x190c] ss:$76 sps:$4 sm:$0xff]  }
 0x613   : > { %16343 = vmatprep.subr.bf16.mxu0 %v22174_v45  ;;  %v22241_v44 = vld [vmem:[%s25555_s21 + $0x27d8] ss:$76 sps:$4 sm:$0xff]   ;;  %v22244_v45 = vld [vmem:[%s25555_s21 + $0x1908] ss:$76 sps:$4 sm:$0xff]  }
 0x615   : > { %16207 = vmatpush1.bf16.msra.mxu1 %v22169_v47  ;;  %v22249_v47 = vld [vmem:[%s25555_s21 + $0x2874] ss:$76 sps:$4 sm:$0xff]  }
 0x616   : > { %16344 = vmatpush1.bf16.msra.mxu0 %v22172_v32  ;;  %16208 = vmatprep.subr.bf16.mxu1 %v22177_v48  ;;  %v22252_v32 = vld [vmem:[%s25555_s21 + $0x19a4] ss:$76 sps:$4 sm:$0xff]  }
 0x617   : > { %16345 = vmatprep.subr.bf16.mxu0 %v22180_v49  ;;  %v22247_v48 = vld [vmem:[%s25555_s21 + $0x2870] ss:$76 sps:$4 sm:$0xff]   ;;  %v22250_v49 = vld [vmem:[%s25555_s21 + $0x19a0] ss:$76 sps:$4 sm:$0xff]  }
 0x619   : > { %16209 = vmatpush1.bf16.msra.mxu1 %v22175_v28  ;;  %v22255_v28 = vld [vmem:[%s25555_s21 + $0x290c] ss:$76 sps:$4 sm:$0xff]  }
 0x61a   : > { %16346 = vmatpush1.bf16.msra.mxu0 %v22178_v50  ;;  %16210 = vmatprep.subr.bf16.mxu1 %v22183_v10  ;;  %v22258_v50 = vld [vmem:[%s25555_s21 + $0x1a3c] ss:$76 sps:$4 sm:$0xff]  }
 0x61b   : > { %16356 = vmatprep.subr.bf16.mxu0 %v22186_v35  ;;  %v22253_v10 = vld [vmem:[%s25555_s21 + $0x2908] ss:$76 sps:$4 sm:$0xff]   ;;  %v22256_v35 = vld [vmem:[%s25555_s21 + $0x1a38] ss:$76 sps:$4 sm:$0xff]  }
 0x61d   : > { %16211 = vmatpush1.bf16.msra.mxu1 %v22181_v55  ;;  %16348 = vmatmul.mubr.bf16.vlgmr.msra.gmra.mrb[16].mxu0 %v25872_v43  ;;  %v22261_v55 = vld [vmem:[%s25555_s21 + $0x29a4] ss:$76 sps:$4 sm:$0xff]  }
 0x61e   : > { %16357 = vmatpush1.bf16.msra.mxu0 %v22184_v37  ;;  %16388 = vmatprep.mubr.bf16.mxu0 %v25963_v30  ;;  %v22264_v37 = vld [vmem:[%s25555_s21 + $0x1ad4] ss:$76 sps:$4 sm:$0xff]  }
 0x61f   : > { %16212 = vmatprep.subr.bf16.mxu1 %v22189_v58  ;;  %16358 = vmatprep.subr.bf16.mxu0 %v22192_v59  ;;  %v22259_v58 = vld [vmem:[%s25555_s21 + $0x29a0] ss:$76 sps:$4 sm:$0xff]   ;;  %v22262_v59 = vld [vmem:[%s25555_s21 + $0x1ad0] ss:$76 sps:$4 sm:$0xff]  }
 0x621   : > { %16213 = vmatpush1.bf16.msra.mxu1 %v22187_v61  ;;  %v22267_v61 = vld [vmem:[%s25555_s21 + $0x2a3c] ss:$76 sps:$4 sm:$0xff]  }
 0x622   : > { %16359 = vmatpush1.bf16.msra.mxu0 %v22190_v62  ;;  %16214 = vmatprep.subr.bf16.mxu1 %v22195_v63  ;;  %v22270_v62 = vld [vmem:[%s25555_s21 + $0x1b6c] ss:$76 sps:$4 sm:$0xff]  }
 0x623   : > { %16360 = vmatprep.subr.bf16.mxu0 %v22198_v42  ;;  %v22265_v63 = vld [vmem:[%s25555_s21 + $0x2a38] ss:$76 sps:$4 sm:$0xff]   ;;  %v22268_v42 = vld [vmem:[%s25555_s21 + $0x1b68] ss:$76 sps:$4 sm:$0xff]  }
 0x625   : > { %16215 = vmatpush1.bf16.msra.mxu1 %v22193_v0  ;;  %v22273_v0 = vld [vmem:[%s25555_s21 + $0x2ad4] ss:$76 sps:$4 sm:$0xff]  }
 0x626   : > { %16361 = vmatpush1.bf16.msra.mxu0 %v22196_v1  ;;  %16216 = vmatprep.subr.bf16.mxu1 %v22201_v46  ;;  %v22276_v1 = vld [vmem:[%s25555_s21 + $0x1c04] ss:$76 sps:$4 sm:$0xff]  }
 0x627   : > { %16362 = vmatprep.subr.bf16.mxu0 %v22204_v2  ;;  %v22271_v46 = vld [vmem:[%s25555_s21 + $0x2ad0] ss:$76 sps:$4 sm:$0xff]   ;;  %v22274_v2 = vld [vmem:[%s25555_s21 + $0x1c00] ss:$76 sps:$4 sm:$0xff]  }
 0x629   : > { %16217 = vmatpush1.bf16.msra.mxu1 %v22199_v5  ;;  %v22279_v5 = vld [vmem:[%s25555_s21 + $0x2b6c] ss:$76 sps:$4 sm:$0xff]  }
 0x62a   : > { %16363 = vmatpush1.bf16.msra.mxu0 %v22202_v6  ;;  %16218 = vmatprep.subr.bf16.mxu1 %v22207_v7  ;;  %v22282_v6 = vld [vmem:[%s25555_s21 + $0x1c9c] ss:$76 sps:$4 sm:$0xff]  }
 0x62b   : > { %16364 = vmatprep.subr.bf16.mxu0 %v22210_v9  ;;  %v22277_v7 = vld [vmem:[%s25555_s21 + $0x2b68] ss:$76 sps:$4 sm:$0xff]   ;;  %v22280_v9 = vld [vmem:[%s25555_s21 + $0x1c98] ss:$76 sps:$4 sm:$0xff]  }
 0x62d   : > { %16219 = vmatpush1.bf16.msra.mxu1 %v22205_v21  ;;  %v22285_v21 = vld [vmem:[%s25555_s21 + $0x2c04] ss:$76 sps:$4 sm:$0xff]  }
 0x62e   : > { %16365 = vmatpush1.bf16.msra.mxu0 %v22208_v13  ;;  %16220 = vmatprep.subr.bf16.mxu1 %v22213_v11  ;;  %v22288_v13 = vld [vmem:[%s25555_s21 + $0x1d34] ss:$76 sps:$4 sm:$0xff]  }
 0x62f   : > { %16366 = vmatprep.subr.bf16.mxu0 %v22216_v14  ;;  %v22283_v11 = vld [vmem:[%s25555_s21 + $0x2c00] ss:$76 sps:$4 sm:$0xff]   ;;  %v22286_v14 = vld [vmem:[%s25555_s21 + $0x1d30] ss:$76 sps:$4 sm:$0xff]  }
 0x631   : > { %16221 = vmatpush1.bf16.msra.mxu1 %v22211_v15  ;;  %v22291_v15 = vld [vmem:[%s25555_s21 + $0x2c9c] ss:$76 sps:$4 sm:$0xff]  }
 0x632   : > { %16367 = vmatpush1.bf16.msra.mxu0 %v22214_v53  ;;  %16222 = vmatprep.subr.bf16.mxu1 %v22219_v4  ;;  %v22294_v53 = vld [vmem:[%s25555_s21 + $0x1dcc] ss:$76 sps:$4 sm:$0xff]  }
 0x633   : > { %16368 = vmatprep.subr.bf16.mxu0 %v22222_v16  ;;  %v22289_v4 = vld [vmem:[%s25555_s21 + $0x2c98] ss:$76 sps:$4 sm:$0xff]   ;;  %v22292_v16 = vld [vmem:[%s25555_s21 + $0x1dc8] ss:$76 sps:$4 sm:$0xff]  }
 0x635   : > { %16223 = vmatpush1.bf16.msra.mxu1 %v22217_v56  ;;  %v22297_v56 = vld [vmem:[%s25555_s21 + $0x2d34] ss:$76 sps:$4 sm:$0xff]  }
 0x636   : > { %16369 = vmatpush1.bf16.msra.mxu0 %v22220_v22  ;;  %16233 = vmatprep.subr.bf16.mxu1 %v22225_v52  ;;  %v22300_v22 = vld [vmem:[%s25555_s21 + $0x1e64] ss:$76 sps:$4 sm:$0xff]  }
 0x637   : > { %16370 = vmatprep.subr.bf16.mxu0 %v22228_v18  ;;  %v22295_v52 = vld [vmem:[%s25555_s21 + $0x2d30] ss:$76 sps:$4 sm:$0xff]   ;;  %v22298_v18 = vld [vmem:[%s25555_s21 + $0x1e60] ss:$76 sps:$4 sm:$0xff]  }
 0x638   : > { %16225 = vmatmul.mubr.bf16.vlgmr.msra.gmra.mrb[12].mxu1 %v26041_v51 }
 0x639   : > { %16234 = vmatpush1.bf16.msra.mxu1 %v22223_v57  ;;  %16265 = vmatprep.mubr.bf16.mxu1 %v26183_v20  ;;  %v22303_v57 = vld [vmem:[%s25555_s21 + $0x2dcc] ss:$76 sps:$4 sm:$0xff]  }
 0x63a   : > { %16371 = vmatpush1.bf16.msra.mxu0 %v22226_v23  ;;  %16235 = vmatprep.subr.bf16.mxu1 %v22231_v3  ;;  %v22306_v23 = vld [vmem:[%s25555_s21 + $0x1efc] ss:$76 sps:$4 sm:$0xff]  }
 0x63b   : > { %16372 = vmatprep.subr.bf16.mxu0 %v22234_v25  ;;  %v22301_v3 = vld [vmem:[%s25555_s21 + $0x2dc8] ss:$76 sps:$4 sm:$0xff]   ;;  %v22304_v25 = vld [vmem:[%s25555_s21 + $0x1ef8] ss:$76 sps:$4 sm:$0xff]  }
 0x63d   : > { %16236 = vmatpush1.bf16.msra.mxu1 %v22229_v33  ;;  %v22309_v33 = vld [vmem:[%s25555_s21 + $0x2e64] ss:$76 sps:$4 sm:$0xff]  }
 0x63e   : > { %16373 = vmatpush1.bf16.msra.mxu0 %v22232_v26  ;;  %16237 = vmatprep.subr.bf16.mxu1 %v22237_v27  ;;  %v22312_v26 = vld [vmem:[%s25555_s21 + $0x1f94] ss:$76 sps:$4 sm:$0xff]  }
 0x63f   : > { %16374 = vmatprep.subr.bf16.mxu0 %v22240_v24  ;;  %v22307_v27 = vld [vmem:[%s25555_s21 + $0x2e60] ss:$76 sps:$4 sm:$0xff]   ;;  %v22310_v24 = vld [vmem:[%s25555_s21 + $0x1f90] ss:$76 sps:$4 sm:$0xff]  }
 0x641   : > { %16238 = vmatpush1.bf16.msra.mxu1 %v22235_v39  ;;  %v22315_v39 = vld [vmem:[%s25555_s21 + $0x2efc] ss:$76 sps:$4 sm:$0xff]  }
 0x642   : > { %16375 = vmatpush1.bf16.msra.mxu0 %v22238_v54  ;;  %16239 = vmatprep.subr.bf16.mxu1 %v22243_v40  ;;  %v22318_v54 = vld [vmem:[%s25555_s21 + $0x202c] ss:$76 sps:$4 sm:$0xff]  }
 0x643   : > { %16376 = vmatprep.subr.bf16.mxu0 %v22246_v41 }
 0x645   : > { %16240 = vmatpush1.bf16.msra.mxu1 %v22241_v44  ;;  %v22313_v44 = vld [vmem:[%s25555_s21 + $0x2ef8] ss:$76 sps:$4 sm:$0xff]  }
 0x646   : > { %16377 = vmatpush1.bf16.msra.mxu0 %v22244_v45  ;;  %16241 = vmatprep.subr.bf16.mxu1 %v22249_v47 }
 0x647   : > { %16378 = vmatprep.subr.bf16.mxu0 %v22252_v32  ;;  %v22316_v32 = vld [vmem:[%s25555_s21 + $0x2028] ss:$76 sps:$4 sm:$0xff]  }
 0x649   : > { %16242 = vmatpush1.bf16.msra.mxu1 %v22247_v48  ;;  %v22321_v48 = vld [vmem:[%s25555_s21 + $0x24] ss:$76 sps:$4 sm:$0xff]  }
 0x64a   : > { %16379 = vmatpush1.bf16.msra.mxu0 %v22250_v49  ;;  %16243 = vmatprep.subr.bf16.mxu1 %v22255_v28  ;;  %v22324_v28 = vld [vmem:[%s25555_s21 + $0x20c4] ss:$76 sps:$4 sm:$0xff]  }
 0x64b   : > { %16380 = vmatprep.subr.bf16.mxu0 %v22258_v50  ;;  %v17731_v50 = vrot.slane %v17723_v29, %v25085_v8  ;;  %v22333_v29 = vld [vmem:[%s25555_s21 + $0x154] ss:$76 sps:$4 sm:$0xff]  }
 0x64d   : > { %16244 = vmatpush1.bf16.msra.mxu1 %v22253_v10 }
 0x64e   : > { %16381 = vmatpush1.bf16.msra.mxu0 %v22256_v35  ;;  %16245 = vmatprep.subr.bf16.mxu1 %v22261_v55  ;;  %v22319_v35 = vld [vmem:[%s25555_s21 + $0x20] ss:$76 sps:$4 sm:$0xff]  }
 0x64f   : > { %16382 = vmatprep.subr.bf16.mxu0 %v22264_v37  ;;  %v22322_v37 = vld [vmem:[%s25555_s21 + $0x20c0] ss:$76 sps:$4 sm:$0xff]  }
 0x651   : > { %16246 = vmatpush1.bf16.msra.mxu1 %v22259_v58  ;;  %v22327_v58 = vld [vmem:[%s25555_s21 + $0xbc] ss:$76 sps:$4 sm:$0xff]  }
 0x652   : > { %16383 = vmatpush1.bf16.msra.mxu0 %v22262_v59  ;;  %16247 = vmatprep.subr.bf16.mxu1 %v22267_v61  ;;  %v22330_v59 = vld [vmem:[%s25555_s21 + $0x215c] ss:$76 sps:$4 sm:$0xff]   ;;  %v22336_v61 = vld [vmem:[%s25555_s21 + $0x21f4] ss:$76 sps:$4 sm:$0xff]  }
 0x653   : > { %16384 = vmatprep.subr.bf16.mxu0 %v22270_v62  ;;  %v22331_v62 = vld [vmem:[%s25555_s21 + $0x150] ss:$76 sps:$4 sm:$0xff]  }
 0x655   : > { %16248 = vmatpush1.bf16.msra.mxu1 %v22265_v63  ;;  %v22334_v63 = vld [vmem:[%s25555_s21 + $0x21f0] ss:$76 sps:$4 sm:$0xff]  }
 0x656   : > { %16385 = vmatpush1.bf16.msra.mxu0 %v22268_v42  ;;  %16249 = vmatprep.subr.bf16.mxu1 %v22273_v0  ;;  %v22339_v42 = vld [vmem:[%s25555_s21 + $0x1ec] ss:$76 sps:$4 sm:$0xff]  }
 0x657   : > { %16386 = vmatprep.subr.bf16.mxu0 %v22276_v1  ;;  %v22342_v0 = vld [vmem:[%s25555_s21 + $0x228c] ss:$76 sps:$4 sm:$0xff]   ;;  %v22337_v1 = vld [vmem:[%s25555_s21 + $0x1e8] ss:$76 sps:$4 sm:$0xff]  }
 0x659   : > { %16250 = vmatpush1.bf16.msra.mxu1 %v22271_v46 }
 0x65a   : > { %16387 = vmatpush1.bf16.msra.mxu0 %v22274_v2  ;;  %16251 = vmatprep.subr.bf16.mxu1 %v22279_v5  ;;  %v22340_v2 = vld [vmem:[%s25555_s21 + $0x2288] ss:$76 sps:$4 sm:$0xff]   ;;  %v22345_v5 = vld [vmem:[%s25555_s21 + $0x284] ss:$76 sps:$4 sm:$0xff]  }
 0x65b   : > { %16397 = vmatprep.subr.bf16.mxu0 %v22282_v6  ;;  %v22348_v6 = vld [vmem:[%s25555_s21 + $0x2324] ss:$76 sps:$4 sm:$0xff]  }
 0x65d   : > { %16252 = vmatpush1.bf16.msra.mxu1 %v22277_v7  ;;  %16389 = vmatmul.mubr.bf16.vlgmr.msra.gmra.mrb[16].mxu0 %v25967_v34  ;;  %v22343_v7 = vld [vmem:[%s25555_s21 + $0x280] ss:$76 sps:$4 sm:$0xff]  }
 0x65e   : > { %16398 = vmatpush1.bf16.msra.mxu0 %v22280_v9  ;;  %16429 = vmatprep.mubr.bf16.mxu0 %v25972_v38  ;;  %v22346_v9 = vld [vmem:[%s25555_s21 + $0x2320] ss:$76 sps:$4 sm:$0xff]  }
 0x65f   : > { %16253 = vmatprep.subr.bf16.mxu1 %v22285_v21  ;;  %16399 = vmatprep.subr.bf16.mxu0 %v22288_v13  ;;  %v22351_v21 = vld [vmem:[%s25555_s21 + $0x31c] ss:$76 sps:$4 sm:$0xff]  }
 0x660   : > { %v22354_v13 = vld [vmem:[%s25555_s21 + $0x23bc] ss:$76 sps:$4 sm:$0xff]  }
 0x661   : > { %16254 = vmatpush1.bf16.msra.mxu1 %v22283_v11  ;;  %v22349_v11 = vld [vmem:[%s25555_s21 + $0x318] ss:$76 sps:$4 sm:$0xff]  }
 0x662   : > { %16400 = vmatpush1.bf16.msra.mxu0 %v22286_v14  ;;  %16255 = vmatprep.subr.bf16.mxu1 %v22291_v15  ;;  %v22352_v14 = vld [vmem:[%s25555_s21 + $0x23b8] ss:$76 sps:$4 sm:$0xff]   ;;  %v22357_v15 = vld [vmem:[%s25555_s21 + $0x3b4] ss:$76 sps:$4 sm:$0xff]  }
 0x663   : > { %16401 = vmatprep.subr.bf16.mxu0 %v22294_v53  ;;  %v22360_v53 = vld [vmem:[%s25555_s21 + $0x2454] ss:$76 sps:$4 sm:$0xff]  }
 0x665   : > { %16256 = vmatpush1.bf16.msra.mxu1 %v22289_v4  ;;  %v22355_v4 = vld [vmem:[%s25555_s21 + $0x3b0] ss:$76 sps:$4 sm:$0xff]  }
 0x666   : > { %16402 = vmatpush1.bf16.msra.mxu0 %v22292_v16  ;;  %16257 = vmatprep.subr.bf16.mxu1 %v22297_v56  ;;  %v22358_v16 = vld [vmem:[%s25555_s21 + $0x2450] ss:$76 sps:$4 sm:$0xff]   ;;  %v22363_v56 = vld [vmem:[%s25555_s21 + $0x44c] ss:$76 sps:$4 sm:$0xff]  }
 0x667   : > { %16403 = vmatprep.subr.bf16.mxu0 %v22300_v22  ;;  %v22366_v22 = vld [vmem:[%s25555_s21 + $0x24ec] ss:$76 sps:$4 sm:$0xff]  }
 0x669   : > { %16258 = vmatpush1.bf16.msra.mxu1 %v22295_v52  ;;  %v22361_v52 = vld [vmem:[%s25555_s21 + $0x448] ss:$76 sps:$4 sm:$0xff]  }
 0x66a   : > { %16404 = vmatpush1.bf16.msra.mxu0 %v22298_v18  ;;  %16259 = vmatprep.subr.bf16.mxu1 %v22303_v57  ;;  %v22364_v18 = vld [vmem:[%s25555_s21 + $0x24e8] ss:$76 sps:$4 sm:$0xff]   ;;  %v22369_v57 = vld [vmem:[%s25555_s21 + $0x4e4] ss:$76 sps:$4 sm:$0xff]  }
 0x66b   : > { %16405 = vmatprep.subr.bf16.mxu0 %v22306_v23  ;;  %v22372_v23 = vld [vmem:[%s25555_s21 + $0x2584] ss:$76 sps:$4 sm:$0xff]  }
 0x66d   : > { %16260 = vmatpush1.bf16.msra.mxu1 %v22301_v3  ;;  %v22367_v3 = vld [vmem:[%s25555_s21 + $0x4e0] ss:$76 sps:$4 sm:$0xff]  }
 0x66e   : > { %16406 = vmatpush1.bf16.msra.mxu0 %v22304_v25  ;;  %16261 = vmatprep.subr.bf16.mxu1 %v22309_v33  ;;  %v22370_v25 = vld [vmem:[%s25555_s21 + $0x2580] ss:$76 sps:$4 sm:$0xff]   ;;  %v22375_v33 = vld [vmem:[%s25555_s21 + $0x57c] ss:$76 sps:$4 sm:$0xff]  }
 0x66f   : > { %16407 = vmatprep.subr.bf16.mxu0 %v22312_v26  ;;  %v22378_v26 = vld [vmem:[%s25555_s21 + $0x261c] ss:$76 sps:$4 sm:$0xff]  }
 0x670   : > { %v16062_v40 = vpop.f32.mrb[12].mxu0 }
 0x671   : > { %v16064_v41 = vpop.f32.mrb[13].mxu0  ;;  %16262 = vmatpush1.bf16.msra.mxu1 %v22307_v27  ;;  %v22373_v27 = vld [vmem:[%s25555_s21 + $0x578] ss:$76 sps:$4 sm:$0xff]  }
 0x672   : > { %v17724_v45 = vcombine.low %v16062_v40, %v16064_v41  ;;  %v16066_v47 = vpop.f32.mrb[14].mxu0  ;;  %16408 = vmatpush1.bf16.msra.mxu0 %v22310_v24  ;;  %16263 = vmatprep.subr.bf16.mxu1 %v22315_v39  ;;  %v22376_v24 = vld [vmem:[%s25555_s21 + $0x2618] ss:$76 sps:$4 sm:$0xff]   ;;  %v22381_v39 = vld [vmem:[%s25555_s21 + $0x614] ss:$76 sps:$4 sm:$0xff]  }
 0x673   : > { %v16067_v49 = vpop.f32.mrb[15].mxu0  ;;  %16409 = vmatprep.subr.bf16.mxu0 %v22318_v54  ;;  %v22384_v54 = vld [vmem:[%s25555_s21 + $0x26b4] ss:$76 sps:$4 sm:$0xff]   ;;  %v22379_v40 = vld [vmem:[%s25555_s21 + $0x610] ss:$76 sps:$4 sm:$0xff]  }
 0x674   : > { %v17738_v10 = vrot.slane %v17724_v45, %v25085_v8  ;;  %v22382_v41 = vld [vmem:[%s25555_s21 + $0x26b0] ss:$76 sps:$4 sm:$0xff]   ;;  %v22390_v45 = vld [vmem:[%s25555_s21 + $0x274c] ss:$76 sps:$4 sm:$0xff]   ;;  %v22385_v47 = vld [vmem:[%s25555_s21 + $0x6a8] ss:$76 sps:$4 sm:$0xff]  }
 0x675   : > { %16264 = vmatpush1.bf16.msra.mxu1 %v22313_v44  ;;  %v22387_v44 = vld [vmem:[%s25555_s21 + $0x6ac] ss:$76 sps:$4 sm:$0xff]   ;;  %v22396_v49 = vld [vmem:[%s25555_s21 + $0x27e4] ss:$76 sps:$4 sm:$0xff]  }
 0x676   : > { %v17739_v55 = vcombine.low %v17731_v50, %v17738_v10  ;;  %16410 = vmatpush1.bf16.msra.mxu0 %v22316_v32  ;;  %16479 = vmatprep.subr.bf16.mxu1 %v22321_v48  ;;  %v22388_v32 = vld [vmem:[%s25555_s21 + $0x2748] ss:$76 sps:$4 sm:$0xff]   ;;  %v22393_v48 = vld [vmem:[%s25555_s21 + $0x744] ss:$76 sps:$4 sm:$0xff]   ;;  %v22394_v50 = vld [vmem:[%s25555_s21 + $0x27e0] ss:$76 sps:$4 sm:$0xff]  }
 0x677   : > { %16411 = vmatprep.subr.bf16.mxu0 %v22324_v28  ;;  %v22391_v28 = vld [vmem:[%s25555_s21 + $0x740] ss:$76 sps:$4 sm:$0xff]   ;;  %v22399_v10 = vld [vmem:[%s25555_s21 + $0x7dc] ss:$76 sps:$4 sm:$0xff]  }
 0x678   : > { %16266 = vmatmul.mubr.bf16.vlgmr.msra.gmra.mrb[12].mxu1 %v26185_v12  ;;  %17817 = vst [vmem:[#allocation2] sm:$0xff] %v17739_v55  ;;  %v22397_v55 = vld [vmem:[%s25555_s21 + $0x7d8] ss:$76 sps:$4 sm:$0xff]  }
 0x679   : > { %16480 = vmatpush1.bf16.msra.mxu1 %v22319_v35  ;;  %16511 = vmatprep.mubr.bf16.mxu1 %v25718_v60  ;;  %v22402_v35 = vld [vmem:[%s25555_s21 + $0x287c] ss:$76 sps:$4 sm:$0xff]  }
 0x67a   : > { %16412 = vmatpush1.bf16.msra.mxu0 %v22322_v37  ;;  %16481 = vmatprep.subr.bf16.mxu1 %v22327_v58  ;;  %v22400_v37 = vld [vmem:[%s25555_s21 + $0x2878] ss:$76 sps:$4 sm:$0xff]   ;;  %v22405_v58 = vld [vmem:[%s25555_s21 + $0x874] ss:$76 sps:$4 sm:$0xff]  }
 0x67b   : > { %16413 = vmatprep.subr.bf16.mxu0 %v22330_v59  ;;  %v22408_v59 = vld [vmem:[%s25555_s21 + $0x2914] ss:$76 sps:$4 sm:$0xff]  }
 0x67d   : > { %16482 = vmatpush1.bf16.msra.mxu1 %v22325_v31  ;;  %v22403_v31 = vld [vmem:[%s25555_s21 + $0x870] ss:$76 sps:$4 sm:$0xff]  }
 0x67e   : > { %16414 = vmatpush1.bf16.msra.mxu0 %v22328_v36  ;;  %16483 = vmatprep.subr.bf16.mxu1 %v22333_v29  ;;  %v22406_v36 = vld [vmem:[%s25555_s21 + $0x2910] ss:$76 sps:$4 sm:$0xff]   ;;  %v22411_v29 = vld [vmem:[%s25555_s21 + $0x90c] ss:$76 sps:$4 sm:$0xff]  }
 0x67f   : > { %16415 = vmatprep.subr.bf16.mxu0 %v22336_v61  ;;  %v17830_v46 = vld [vmem:[#allocation2] sm:$0xff]  ;;  %v22414_v61 = vld [vmem:[%s25555_s21 + $0x29ac] ss:$76 sps:$4 sm:$0xff]  }
 0x680   : > { %17835 = vst [vmem:[%s26556_s30] sm:$0xff] %v17830_v46  ;;  %v22418_v46 = vld [vmem:[%s25555_s21 + $0x2a40] ss:$76 sps:$4 sm:$0xff]  }
 0x681   : > { %16484 = vmatpush1.bf16.msra.mxu1 %v22331_v62  ;;  %v22409_v62 = vld [vmem:[%s25555_s21 + $0x908] ss:$76 sps:$4 sm:$0xff]  }
 0x682   : > { %16416 = vmatpush1.bf16.msra.mxu0 %v22334_v63  ;;  %16485 = vmatprep.subr.bf16.mxu1 %v22339_v42  ;;  %v22412_v63 = vld [vmem:[%s25555_s21 + $0x29a8] ss:$76 sps:$4 sm:$0xff]   ;;  %v22417_v42 = vld [vmem:[%s25555_s21 + $0x9a4] ss:$76 sps:$4 sm:$0xff]  }
 0x683   : > { %16417 = vmatprep.subr.bf16.mxu0 %v22342_v0  ;;  %v22420_v0 = vld [vmem:[%s25555_s21 + $0x2a44] ss:$76 sps:$4 sm:$0xff]  }
 0x685   : > { %16486 = vmatpush1.bf16.msra.mxu1 %v22337_v1  ;;  %v22415_v1 = vld [vmem:[%s25555_s21 + $0x9a0] ss:$76 sps:$4 sm:$0xff]  }
 0x686   : > { %16418 = vmatpush1.bf16.msra.mxu0 %v22340_v2  ;;  %16487 = vmatprep.subr.bf16.mxu1 %v22345_v5  ;;  %v22423_v2 = vld [vmem:[%s25555_s21 + $0xa3c] ss:$76 sps:$4 sm:$0xff]  }
 0x687   : > { %16419 = vmatprep.subr.bf16.mxu0 %v22348_v6  ;;  %v22426_v5 = vld [vmem:[%s25555_s21 + $0x2adc] ss:$76 sps:$4 sm:$0xff]   ;;  %v22421_v6 = vld [vmem:[%s25555_s21 + $0xa38] ss:$76 sps:$4 sm:$0xff]  }
 0x689   : > { %16488 = vmatpush1.bf16.msra.mxu1 %v22343_v7  ;;  %v22424_v7 = vld [vmem:[%s25555_s21 + $0x2ad8] ss:$76 sps:$4 sm:$0xff]  }
 0x68a   : > { %16420 = vmatpush1.bf16.msra.mxu0 %v22346_v9  ;;  %16489 = vmatprep.subr.bf16.mxu1 %v22351_v21  ;;  %v22429_v9 = vld [vmem:[%s25555_s21 + $0xad4] ss:$76 sps:$4 sm:$0xff]  }
 0x68b   : > { %16421 = vmatprep.subr.bf16.mxu0 %v22354_v13  ;;  %v22432_v21 = vld [vmem:[%s25555_s21 + $0x2b74] ss:$76 sps:$4 sm:$0xff]   ;;  %v22427_v13 = vld [vmem:[%s25555_s21 + $0xad0] ss:$76 sps:$4 sm:$0xff]  }
 0x68d   : > { %16490 = vmatpush1.bf16.msra.mxu1 %v22349_v11  ;;  %v22430_v11 = vld [vmem:[%s25555_s21 + $0x2b70] ss:$76 sps:$4 sm:$0xff]  }
 0x68e   : > { %16422 = vmatpush1.bf16.msra.mxu0 %v22352_v14  ;;  %16491 = vmatprep.subr.bf16.mxu1 %v22357_v15  ;;  %v22435_v14 = vld [vmem:[%s25555_s21 + $0xb6c] ss:$76 sps:$4 sm:$0xff]  }
 0x68f   : > { %16423 = vmatprep.subr.bf16.mxu0 %v22360_v53  ;;  %v22438_v15 = vld [vmem:[%s25555_s21 + $0x2c0c] ss:$76 sps:$4 sm:$0xff]   ;;  %v22433_v53 = vld [vmem:[%s25555_s21 + $0xb68] ss:$76 sps:$4 sm:$0xff]  }
 0x691   : > { %16492 = vmatpush1.bf16.msra.mxu1 %v22355_v4  ;;  %v22436_v4 = vld [vmem:[%s25555_s21 + $0x2c08] ss:$76 sps:$4 sm:$0xff]  }
 0x692   : > { %16424 = vmatpush1.bf16.msra.mxu0 %v22358_v16  ;;  %16493 = vmatprep.subr.bf16.mxu1 %v22363_v56  ;;  %v22441_v16 = vld [vmem:[%s25555_s21 + $0xc04] ss:$76 sps:$4 sm:$0xff]  }
 0x693   : > { %16425 = vmatprep.subr.bf16.mxu0 %v22366_v22  ;;  %v22444_v56 = vld [vmem:[%s25555_s21 + $0x2ca4] ss:$76 sps:$4 sm:$0xff]   ;;  %v22439_v22 = vld [vmem:[%s25555_s21 + $0xc00] ss:$76 sps:$4 sm:$0xff]  }
 0x695   : > { %16494 = vmatpush1.bf16.msra.mxu1 %v22361_v52  ;;  %v22442_v52 = vld [vmem:[%s25555_s21 + $0x2ca0] ss:$76 sps:$4 sm:$0xff]  }
 0x696   : > { %16426 = vmatpush1.bf16.msra.mxu0 %v22364_v18  ;;  %16495 = vmatprep.subr.bf16.mxu1 %v22369_v57  ;;  %v22447_v18 = vld [vmem:[%s25555_s21 + $0xc9c] ss:$76 sps:$4 sm:$0xff]  }
 0x697   : > { %16427 = vmatprep.subr.bf16.mxu0 %v22372_v23  ;;  %v22450_v57 = vld [vmem:[%s25555_s21 + $0x2d3c] ss:$76 sps:$4 sm:$0xff]   ;;  %v22445_v23 = vld [vmem:[%s25555_s21 + $0xc98] ss:$76 sps:$4 sm:$0xff]  }
 0x699   : > { %16496 = vmatpush1.bf16.msra.mxu1 %v22367_v3  ;;  %v22448_v3 = vld [vmem:[%s25555_s21 + $0x2d38] ss:$76 sps:$4 sm:$0xff]  }
 0x69a   : > { %16428 = vmatpush1.bf16.msra.mxu0 %v22370_v25  ;;  %16497 = vmatprep.subr.bf16.mxu1 %v22375_v33  ;;  %v22453_v25 = vld [vmem:[%s25555_s21 + $0xd34] ss:$76 sps:$4 sm:$0xff]  }
 0x69b   : > { %16438 = vmatprep.subr.bf16.mxu0 %v22378_v26  ;;  %v22456_v33 = vld [vmem:[%s25555_s21 + $0x2dd4] ss:$76 sps:$4 sm:$0xff]   ;;  %v22451_v26 = vld [vmem:[%s25555_s21 + $0xd30] ss:$76 sps:$4 sm:$0xff]  }
 0x69d   : > { %16430 = vmatmul.mubr.bf16.vlgmr.msra.gmra.mrb[16].mxu0 %v26041_v51  ;;  %16498 = vmatpush1.bf16.msra.mxu1 %v22373_v27  ;;  %v22454_v27 = vld [vmem:[%s25555_s21 + $0x2dd0] ss:$76 sps:$4 sm:$0xff]  }
 0x69e   : > { %16439 = vmatpush1.bf16.msra.mxu0 %v22376_v24  ;;  %16470 = vmatprep.mubr.bf16.mxu0 %v26183_v20  ;;  %v22459_v24 = vld [vmem:[%s25555_s21 + $0xdcc] ss:$76 sps:$4 sm:$0xff]  }
 0x69f   : > { %16499 = vmatprep.subr.bf16.mxu1 %v22381_v39  ;;  %16440 = vmatprep.subr.bf16.mxu0 %v22384_v54  ;;  %v22462_v39 = vld [vmem:[%s25555_s21 + $0x2e6c] ss:$76 sps:$4 sm:$0xff]   ;;  %v22457_v54 = vld [vmem:[%s25555_s21 + $0xdc8] ss:$76 sps:$4 sm:$0xff]  }
 0x6a1   : > { %16500 = vmatpush1.bf16.msra.mxu1 %v22379_v40  ;;  %v22460_v40 = vld [vmem:[%s25555_s21 + $0x2e68] ss:$76 sps:$4 sm:$0xff]  }
 0x6a2   : > { %16441 = vmatpush1.bf16.msra.mxu0 %v22382_v41  ;;  %16501 = vmatprep.subr.bf16.mxu1 %v22387_v44  ;;  %v22465_v41 = vld [vmem:[%s25555_s21 + $0xe64] ss:$76 sps:$4 sm:$0xff]  }
 0x6a3   : > { %16442 = vmatprep.subr.bf16.mxu0 %v22390_v45  ;;  %v22468_v44 = vld [vmem:[%s25555_s21 + $0x2f04] ss:$76 sps:$4 sm:$0xff]   ;;  %v22463_v45 = vld [vmem:[%s25555_s21 + $0xe60] ss:$76 sps:$4 sm:$0xff]  }
 0x6a5   : > { %16502 = vmatpush1.bf16.msra.mxu1 %v22385_v47  ;;  %v22466_v47 = vld [vmem:[%s25555_s21 + $0x2f00] ss:$76 sps:$4 sm:$0xff]  }
 0x6a6   : > { %16443 = vmatpush1.bf16.msra.mxu0 %v22388_v32  ;;  %16503 = vmatprep.subr.bf16.mxu1 %v22393_v48  ;;  %v22471_v32 = vld [vmem:[%s25555_s21 + $0xefc] ss:$76 sps:$4 sm:$0xff]   ;;  %v22474_v48 = vld [vmem:[%s25555_s21 + $0x2c] ss:$76 sps:$4 sm:$0xff]  }
 0x6a7   : > { %16444 = vmatprep.subr.bf16.mxu0 %v22396_v49  ;;  %v22469_v49 = vld [vmem:[%s25555_s21 + $0xef8] ss:$76 sps:$4 sm:$0xff]  }
 0x6a9   : > { %16504 = vmatpush1.bf16.msra.mxu1 %v22391_v28  ;;  %v22472_v28 = vld [vmem:[%s25555_s21 + $0x28] ss:$76 sps:$4 sm:$0xff]  }
 0x6aa   : > { %16445 = vmatpush1.bf16.msra.mxu0 %v22394_v50  ;;  %16505 = vmatprep.subr.bf16.mxu1 %v22399_v10  ;;  %v22477_v50 = vld [vmem:[%s25555_s21 + $0xf94] ss:$76 sps:$4 sm:$0xff]   ;;  %v22480_v10 = vld [vmem:[%s25555_s21 + $0xc4] ss:$76 sps:$4 sm:$0xff]  }
 0x6ab   : > { %16446 = vmatprep.subr.bf16.mxu0 %v22402_v35  ;;  %v22475_v35 = vld [vmem:[%s25555_s21 + $0xf90] ss:$76 sps:$4 sm:$0xff]  }
 0x6ad   : > { %16506 = vmatpush1.bf16.msra.mxu1 %v22397_v55  ;;  %v22478_v55 = vld [vmem:[%s25555_s21 + $0xc0] ss:$76 sps:$4 sm:$0xff]  }
 0x6ae   : > { %16447 = vmatpush1.bf16.msra.mxu0 %v22400_v37  ;;  %16507 = vmatprep.subr.bf16.mxu1 %v22405_v58  ;;  %v22483_v37 = vld [vmem:[%s25555_s21 + $0x102c] ss:$76 sps:$4 sm:$0xff]   ;;  %v22486_v58 = vld [vmem:[%s25555_s21 + $0x15c] ss:$76 sps:$4 sm:$0xff]  }
 0x6af   : > { %16448 = vmatprep.subr.bf16.mxu0 %v22408_v59  ;;  %v22481_v59 = vld [vmem:[%s25555_s21 + $0x1028] ss:$76 sps:$4 sm:$0xff]  }
 0x6b1   : > { %16508 = vmatpush1.bf16.msra.mxu1 %v22403_v31  ;;  %v22484_v31 = vld [vmem:[%s25555_s21 + $0x158] ss:$76 sps:$4 sm:$0xff]  }
 0x6b2   : > { %16449 = vmatpush1.bf16.msra.mxu0 %v22406_v36  ;;  %16509 = vmatprep.subr.bf16.mxu1 %v22411_v29  ;;  %v22489_v36 = vld [vmem:[%s25555_s21 + $0x10c4] ss:$76 sps:$4 sm:$0xff]   ;;  %v22492_v29 = vld [vmem:[%s25555_s21 + $0x1f4] ss:$76 sps:$4 sm:$0xff]  }
 0x6b3   : > { %16450 = vmatprep.subr.bf16.mxu0 %v22414_v61  ;;  %v22487_v61 = vld [vmem:[%s25555_s21 + $0x10c0] ss:$76 sps:$4 sm:$0xff]  }
 0x6b5   : > { %16510 = vmatpush1.bf16.msra.mxu1 %v22409_v62  ;;  %v22490_v62 = vld [vmem:[%s25555_s21 + $0x1f0] ss:$76 sps:$4 sm:$0xff]  }
 0x6b6   : > { %16451 = vmatpush1.bf16.msra.mxu0 %v22412_v63  ;;  %16520 = vmatprep.subr.bf16.mxu1 %v22417_v42  ;;  %v22495_v63 = vld [vmem:[%s25555_s21 + $0x115c] ss:$76 sps:$4 sm:$0xff]   ;;  %v22498_v42 = vld [vmem:[%s25555_s21 + $0x28c] ss:$76 sps:$4 sm:$0xff]  }
 0x6b7   : > { %16452 = vmatprep.subr.bf16.mxu0 %v22420_v0  ;;  %v22493_v0 = vld [vmem:[%s25555_s21 + $0x1158] ss:$76 sps:$4 sm:$0xff]  }
 0x6b8   : > { %16512 = vmatmul.mubr.bf16.vlgmr.msra.gmra.mrb[16].mxu1 %v25793_v17 }
 0x6b9   : > { %16521 = vmatpush1.bf16.msra.mxu1 %v22415_v1  ;;  %16552 = vmatprep.mubr.bf16.mxu1 %v25796_v19  ;;  %v22496_v1 = vld [vmem:[%s25555_s21 + $0x288] ss:$76 sps:$4 sm:$0xff]  }
 0x6ba   : > { %16453 = vmatpush1.bf16.msra.mxu0 %v22418_v46  ;;  %16522 = vmatprep.subr.bf16.mxu1 %v22423_v2  ;;  %v22501_v46 = vld [vmem:[%s25555_s21 + $0x11f4] ss:$76 sps:$4 sm:$0xff]   ;;  %v22504_v2 = vld [vmem:[%s25555_s21 + $0x324] ss:$76 sps:$4 sm:$0xff]  }
 0x6bb   : > { %16454 = vmatprep.subr.bf16.mxu0 %v22426_v5  ;;  %v22499_v5 = vld [vmem:[%s25555_s21 + $0x11f0] ss:$76 sps:$4 sm:$0xff]  }
 0x6bd   : > { %16523 = vmatpush1.bf16.msra.mxu1 %v22421_v6  ;;  %v22502_v6 = vld [vmem:[%s25555_s21 + $0x320] ss:$76 sps:$4 sm:$0xff]  }
 0x6be   : > { %16455 = vmatpush1.bf16.msra.mxu0 %v22424_v7  ;;  %16524 = vmatprep.subr.bf16.mxu1 %v22429_v9  ;;  %v22507_v7 = vld [vmem:[%s25555_s21 + $0x128c] ss:$76 sps:$4 sm:$0xff]   ;;  %v22510_v9 = vld [vmem:[%s25555_s21 + $0x3bc] ss:$76 sps:$4 sm:$0xff]  }
 0x6bf   : > { %16456 = vmatprep.subr.bf16.mxu0 %v22432_v21  ;;  %v22505_v21 = vld [vmem:[%s25555_s21 + $0x1288] ss:$76 sps:$4 sm:$0xff]  }
 0x6c1   : > { %16525 = vmatpush1.bf16.msra.mxu1 %v22427_v13  ;;  %v22508_v13 = vld [vmem:[%s25555_s21 + $0x3b8] ss:$76 sps:$4 sm:$0xff]  }
 0x6c2   : > { %16457 = vmatpush1.bf16.msra.mxu0 %v22430_v11  ;;  %16526 = vmatprep.subr.bf16.mxu1 %v22435_v14  ;;  %v22513_v11 = vld [vmem:[%s25555_s21 + $0x1324] ss:$76 sps:$4 sm:$0xff]   ;;  %v22516_v14 = vld [vmem:[%s25555_s21 + $0x454] ss:$76 sps:$4 sm:$0xff]  }
 0x6c3   : > { %16458 = vmatprep.subr.bf16.mxu0 %v22438_v15  ;;  %v22511_v15 = vld [vmem:[%s25555_s21 + $0x1320] ss:$76 sps:$4 sm:$0xff]  }
 0x6c5   : > { %16527 = vmatpush1.bf16.msra.mxu1 %v22433_v53  ;;  %v22514_v53 = vld [vmem:[%s25555_s21 + $0x450] ss:$76 sps:$4 sm:$0xff]  }
 0x6c6   : > { %16459 = vmatpush1.bf16.msra.mxu0 %v22436_v4  ;;  %16528 = vmatprep.subr.bf16.mxu1 %v22441_v16  ;;  %v22519_v4 = vld [vmem:[%s25555_s21 + $0x13bc] ss:$76 sps:$4 sm:$0xff]   ;;  %v22522_v16 = vld [vmem:[%s25555_s21 + $0x4ec] ss:$76 sps:$4 sm:$0xff]  }
 0x6c7   : > { %16460 = vmatprep.subr.bf16.mxu0 %v22444_v56  ;;  %v22517_v56 = vld [vmem:[%s25555_s21 + $0x13b8] ss:$76 sps:$4 sm:$0xff]  }
 0x6c9   : > { %16529 = vmatpush1.bf16.msra.mxu1 %v22439_v22  ;;  %v22520_v22 = vld [vmem:[%s25555_s21 + $0x4e8] ss:$76 sps:$4 sm:$0xff]  }
 0x6ca   : > { %16461 = vmatpush1.bf16.msra.mxu0 %v22442_v52  ;;  %16530 = vmatprep.subr.bf16.mxu1 %v22447_v18  ;;  %v22525_v52 = vld [vmem:[%s25555_s21 + $0x1454] ss:$76 sps:$4 sm:$0xff]   ;;  %v22528_v18 = vld [vmem:[%s25555_s21 + $0x584] ss:$76 sps:$4 sm:$0xff]  }
 0x6cb   : > { %16462 = vmatprep.subr.bf16.mxu0 %v22450_v57  ;;  %v22523_v57 = vld [vmem:[%s25555_s21 + $0x1450] ss:$76 sps:$4 sm:$0xff]  }
 0x6cd   : > { %16531 = vmatpush1.bf16.msra.mxu1 %v22445_v23  ;;  %v22526_v23 = vld [vmem:[%s25555_s21 + $0x580] ss:$76 sps:$4 sm:$0xff]  }
 0x6ce   : > { %16463 = vmatpush1.bf16.msra.mxu0 %v22448_v3  ;;  %16532 = vmatprep.subr.bf16.mxu1 %v22453_v25  ;;  %v22531_v3 = vld [vmem:[%s25555_s21 + $0x14ec] ss:$76 sps:$4 sm:$0xff]   ;;  %v22534_v25 = vld [vmem:[%s25555_s21 + $0x61c] ss:$76 sps:$4 sm:$0xff]  }
 0x6cf   : > { %16464 = vmatprep.subr.bf16.mxu0 %v22456_v33  ;;  %v22529_v33 = vld [vmem:[%s25555_s21 + $0x14e8] ss:$76 sps:$4 sm:$0xff]  }
 0x6d1   : > { %16533 = vmatpush1.bf16.msra.mxu1 %v22451_v26  ;;  %v22532_v26 = vld [vmem:[%s25555_s21 + $0x618] ss:$76 sps:$4 sm:$0xff]  }
 0x6d2   : > { %16465 = vmatpush1.bf16.msra.mxu0 %v22454_v27  ;;  %16534 = vmatprep.subr.bf16.mxu1 %v22459_v24  ;;  %v22537_v27 = vld [vmem:[%s25555_s21 + $0x1584] ss:$76 sps:$4 sm:$0xff]   ;;  %v22540_v24 = vld [vmem:[%s25555_s21 + $0x6b4] ss:$76 sps:$4 sm:$0xff]  }
 0x6d3   : > { %16466 = vmatprep.subr.bf16.mxu0 %v22462_v39  ;;  %v22535_v39 = vld [vmem:[%s25555_s21 + $0x1580] ss:$76 sps:$4 sm:$0xff]  }
 0x6d5   : > { %16535 = vmatpush1.bf16.msra.mxu1 %v22457_v54  ;;  %v22538_v54 = vld [vmem:[%s25555_s21 + $0x6b0] ss:$76 sps:$4 sm:$0xff]  }
 0x6d6   : > { %16467 = vmatpush1.bf16.msra.mxu0 %v22460_v40  ;;  %16536 = vmatprep.subr.bf16.mxu1 %v22465_v41  ;;  %v22543_v40 = vld [vmem:[%s25555_s21 + $0x161c] ss:$76 sps:$4 sm:$0xff]   ;;  %v22546_v41 = vld [vmem:[%s25555_s21 + $0x74c] ss:$76 sps:$4 sm:$0xff]  }
 0x6d7   : > { %16468 = vmatprep.subr.bf16.mxu0 %v22468_v44  ;;  %v22541_v44 = vld [vmem:[%s25555_s21 + $0x1618] ss:$76 sps:$4 sm:$0xff]  }
 0x6d9   : > { %16537 = vmatpush1.bf16.msra.mxu1 %v22463_v45  ;;  %v22544_v45 = vld [vmem:[%s25555_s21 + $0x748] ss:$76 sps:$4 sm:$0xff]  }
 0x6da   : > { %16469 = vmatpush1.bf16.msra.mxu0 %v22466_v47  ;;  %16538 = vmatprep.subr.bf16.mxu1 %v22471_v32  ;;  %v22549_v47 = vld [vmem:[%s25555_s21 + $0x16b4] ss:$76 sps:$4 sm:$0xff]   ;;  %v22552_v32 = vld [vmem:[%s25555_s21 + $0x7e4] ss:$76 sps:$4 sm:$0xff]  }
 0x6db   : > { %16684 = vmatprep.subr.bf16.mxu0 %v22474_v48  ;;  %v22547_v48 = vld [vmem:[%s25555_s21 + $0x16b0] ss:$76 sps:$4 sm:$0xff]  }
 0x6dd   : > { %16471 = vmatmul.mubr.bf16.vlgmr.msra.gmra.mrb[16].mxu0 %v26185_v12  ;;  %16539 = vmatpush1.bf16.msra.mxu1 %v22469_v49  ;;  %v22550_v49 = vld [vmem:[%s25555_s21 + $0x7e0] ss:$76 sps:$4 sm:$0xff]  }
 0x6de   : > { %16685 = vmatpush1.bf16.msra.mxu0 %v22472_v28  ;;  %16716 = vmatprep.mubr.bf16.mxu0 %v25718_v60  ;;  %v22555_v28 = vld [vmem:[%s25555_s21 + $0x174c] ss:$76 sps:$4 sm:$0xff]  }
 0x6df   : > { %16540 = vmatprep.subr.bf16.mxu1 %v22477_v50  ;;  %16686 = vmatprep.subr.bf16.mxu0 %v22480_v10  ;;  %v22558_v50 = vld [vmem:[%s25555_s21 + $0x87c] ss:$76 sps:$4 sm:$0xff]  }
 0x6e0   : > { %v22553_v10 = vld [vmem:[%s25555_s21 + $0x1748] ss:$76 sps:$4 sm:$0xff]  }
 0x6e1   : > { %16541 = vmatpush1.bf16.msra.mxu1 %v22475_v35  ;;  %v22556_v35 = vld [vmem:[%s25555_s21 + $0x878] ss:$76 sps:$4 sm:$0xff]  }
 0x6e2   : > { %16687 = vmatpush1.bf16.msra.mxu0 %v22478_v55  ;;  %16542 = vmatprep.subr.bf16.mxu1 %v22483_v37  ;;  %v22561_v55 = vld [vmem:[%s25555_s21 + $0x17e4] ss:$76 sps:$4 sm:$0xff]   ;;  %v22564_v37 = vld [vmem:[%s25555_s21 + $0x914] ss:$76 sps:$4 sm:$0xff]  }
 0x6e3   : > { %16688 = vmatprep.subr.bf16.mxu0 %v22486_v58  ;;  %v22559_v58 = vld [vmem:[%s25555_s21 + $0x17e0] ss:$76 sps:$4 sm:$0xff]  }
 0x6e5   : > { %16543 = vmatpush1.bf16.msra.mxu1 %v22481_v59  ;;  %v22562_v59 = vld [vmem:[%s25555_s21 + $0x910] ss:$76 sps:$4 sm:$0xff]  }
 0x6e6   : > { %16689 = vmatpush1.bf16.msra.mxu0 %v22484_v31  ;;  %16544 = vmatprep.subr.bf16.mxu1 %v22489_v36  ;;  %v22567_v31 = vld [vmem:[%s25555_s21 + $0x187c] ss:$76 sps:$4 sm:$0xff]   ;;  %v22570_v36 = vld [vmem:[%s25555_s21 + $0x9ac] ss:$76 sps:$4 sm:$0xff]  }
 0x6e7   : > { %16690 = vmatprep.subr.bf16.mxu0 %v22492_v29  ;;  %v22565_v29 = vld [vmem:[%s25555_s21 + $0x1878] ss:$76 sps:$4 sm:$0xff]  }
 0x6e9   : > { %16545 = vmatpush1.bf16.msra.mxu1 %v22487_v61  ;;  %v22568_v61 = vld [vmem:[%s25555_s21 + $0x9a8] ss:$76 sps:$4 sm:$0xff]  }
 0x6ea   : > { %16691 = vmatpush1.bf16.msra.mxu0 %v22490_v62  ;;  %16546 = vmatprep.subr.bf16.mxu1 %v22495_v63  ;;  %v22573_v62 = vld [vmem:[%s25555_s21 + $0x1914] ss:$76 sps:$4 sm:$0xff]   ;;  %v22576_v63 = vld [vmem:[%s25555_s21 + $0xa44] ss:$76 sps:$4 sm:$0xff]  }
 0x6eb   : > { %16692 = vmatprep.subr.bf16.mxu0 %v22498_v42  ;;  %v22571_v42 = vld [vmem:[%s25555_s21 + $0x1910] ss:$76 sps:$4 sm:$0xff]  }
 0x6ed   : > { %16547 = vmatpush1.bf16.msra.mxu1 %v22493_v0  ;;  %v22574_v0 = vld [vmem:[%s25555_s21 + $0xa40] ss:$76 sps:$4 sm:$0xff]  }
 0x6ee   : > { %16693 = vmatpush1.bf16.msra.mxu0 %v22496_v1  ;;  %16548 = vmatprep.subr.bf16.mxu1 %v22501_v46  ;;  %v22579_v1 = vld [vmem:[%s25555_s21 + $0x19ac] ss:$76 sps:$4 sm:$0xff]   ;;  %v22582_v46 = vld [vmem:[%s25555_s21 + $0xadc] ss:$76 sps:$4 sm:$0xff]  }
 0x6ef   : > { %16694 = vmatprep.subr.bf16.mxu0 %v22504_v2  ;;  %v22577_v2 = vld [vmem:[%s25555_s21 + $0x19a8] ss:$76 sps:$4 sm:$0xff]  }
 0x6f1   : > { %16549 = vmatpush1.bf16.msra.mxu1 %v22499_v5  ;;  %v22580_v5 = vld [vmem:[%s25555_s21 + $0xad8] ss:$76 sps:$4 sm:$0xff]  }
 0x6f2   : > { %16695 = vmatpush1.bf16.msra.mxu0 %v22502_v6  ;;  %16550 = vmatprep.subr.bf16.mxu1 %v22507_v7  ;;  %v22585_v6 = vld [vmem:[%s25555_s21 + $0x1a44] ss:$76 sps:$4 sm:$0xff]   ;;  %v22588_v7 = vld [vmem:[%s25555_s21 + $0xb74] ss:$76 sps:$4 sm:$0xff]  }
 0x6f3   : > { %16696 = vmatprep.subr.bf16.mxu0 %v22510_v9  ;;  %v22583_v9 = vld [vmem:[%s25555_s21 + $0x1a40] ss:$76 sps:$4 sm:$0xff]  }
 0x6f5   : > { %16551 = vmatpush1.bf16.msra.mxu1 %v22505_v21  ;;  %v22586_v21 = vld [vmem:[%s25555_s21 + $0xb70] ss:$76 sps:$4 sm:$0xff]  }
 0x6f6   : > { %16697 = vmatpush1.bf16.msra.mxu0 %v22508_v13  ;;  %16561 = vmatprep.subr.bf16.mxu1 %v22513_v11  ;;  %v22591_v13 = vld [vmem:[%s25555_s21 + $0x1adc] ss:$76 sps:$4 sm:$0xff]   ;;  %v22594_v11 = vld [vmem:[%s25555_s21 + $0xc0c] ss:$76 sps:$4 sm:$0xff]  }
 0x6f7   : > { %16698 = vmatprep.subr.bf16.mxu0 %v22516_v14  ;;  %v22589_v14 = vld [vmem:[%s25555_s21 + $0x1ad8] ss:$76 sps:$4 sm:$0xff]  }
 0x6f8   : > { %16553 = vmatmul.mubr.bf16.vlgmr.msra.gmra.mrb[16].mxu1 %v25872_v43 }
 0x6f9   : > { %16562 = vmatpush1.bf16.msra.mxu1 %v22511_v15  ;;  %16593 = vmatprep.mubr.bf16.mxu1 %v25963_v30  ;;  %v22592_v15 = vld [vmem:[%s25555_s21 + $0xc08] ss:$76 sps:$4 sm:$0xff]  }
 0x6fa   : > { %16699 = vmatpush1.bf16.msra.mxu0 %v22514_v53  ;;  %16563 = vmatprep.subr.bf16.mxu1 %v22519_v4  ;;  %v22597_v53 = vld [vmem:[%s25555_s21 + $0x1b74] ss:$76 sps:$4 sm:$0xff]   ;;  %v22600_v4 = vld [vmem:[%s25555_s21 + $0xca4] ss:$76 sps:$4 sm:$0xff]  }
 0x6fb   : > { %16700 = vmatprep.subr.bf16.mxu0 %v22522_v16  ;;  %v22595_v16 = vld [vmem:[%s25555_s21 + $0x1b70] ss:$76 sps:$4 sm:$0xff]  }
 0x6fd   : > { %16564 = vmatpush1.bf16.msra.mxu1 %v22517_v56  ;;  %v22598_v56 = vld [vmem:[%s25555_s21 + $0xca0] ss:$76 sps:$4 sm:$0xff]  }
 0x6fe   : > { %16701 = vmatpush1.bf16.msra.mxu0 %v22520_v22  ;;  %16565 = vmatprep.subr.bf16.mxu1 %v22525_v52  ;;  %v22603_v22 = vld [vmem:[%s25555_s21 + $0x1c0c] ss:$76 sps:$4 sm:$0xff]   ;;  %v22606_v52 = vld [vmem:[%s25555_s21 + $0xd3c] ss:$76 sps:$4 sm:$0xff]  }
 0x6ff   : > { %16702 = vmatprep.subr.bf16.mxu0 %v22528_v18  ;;  %v22601_v18 = vld [vmem:[%s25555_s21 + $0x1c08] ss:$76 sps:$4 sm:$0xff]  }
 0x701   : > { %16566 = vmatpush1.bf16.msra.mxu1 %v22523_v57  ;;  %v22604_v57 = vld [vmem:[%s25555_s21 + $0xd38] ss:$76 sps:$4 sm:$0xff]  }
 0x702   : > { %16703 = vmatpush1.bf16.msra.mxu0 %v22526_v23  ;;  %16567 = vmatprep.subr.bf16.mxu1 %v22531_v3  ;;  %v22609_v23 = vld [vmem:[%s25555_s21 + $0x1ca4] ss:$76 sps:$4 sm:$0xff]   ;;  %v22612_v3 = vld [vmem:[%s25555_s21 + $0xdd4] ss:$76 sps:$4 sm:$0xff]  }
 0x703   : > { %16704 = vmatprep.subr.bf16.mxu0 %v22534_v25  ;;  %v22607_v25 = vld [vmem:[%s25555_s21 + $0x1ca0] ss:$76 sps:$4 sm:$0xff]  }
 0x705   : > { %16568 = vmatpush1.bf16.msra.mxu1 %v22529_v33  ;;  %v22610_v33 = vld [vmem:[%s25555_s21 + $0xdd0] ss:$76 sps:$4 sm:$0xff]  }
 0x706   : > { %16705 = vmatpush1.bf16.msra.mxu0 %v22532_v26  ;;  %16569 = vmatprep.subr.bf16.mxu1 %v22537_v27  ;;  %v22615_v26 = vld [vmem:[%s25555_s21 + $0x1d3c] ss:$76 sps:$4 sm:$0xff]   ;;  %v22618_v27 = vld [vmem:[%s25555_s21 + $0xe6c] ss:$76 sps:$4 sm:$0xff]  }
 0x707   : > { %16706 = vmatprep.subr.bf16.mxu0 %v22540_v24  ;;  %v22613_v24 = vld [vmem:[%s25555_s21 + $0x1d38] ss:$76 sps:$4 sm:$0xff]  }
 0x709   : > { %16570 = vmatpush1.bf16.msra.mxu1 %v22535_v39  ;;  %v22616_v39 = vld [vmem:[%s25555_s21 + $0xe68] ss:$76 sps:$4 sm:$0xff]  }
 0x70a   : > { %16707 = vmatpush1.bf16.msra.mxu0 %v22538_v54  ;;  %16571 = vmatprep.subr.bf16.mxu1 %v22543_v40  ;;  %v22621_v54 = vld [vmem:[%s25555_s21 + $0x1dd4] ss:$76 sps:$4 sm:$0xff]   ;;  %v22624_v40 = vld [vmem:[%s25555_s21 + $0xf04] ss:$76 sps:$4 sm:$0xff]  }
 0x70b   : > { %16708 = vmatprep.subr.bf16.mxu0 %v22546_v41  ;;  %v22619_v41 = vld [vmem:[%s25555_s21 + $0x1dd0] ss:$76 sps:$4 sm:$0xff]  }
 0x70d   : > { %16572 = vmatpush1.bf16.msra.mxu1 %v22541_v44  ;;  %v22622_v44 = vld [vmem:[%s25555_s21 + $0xf00] ss:$76 sps:$4 sm:$0xff]  }
 0x70e   : > { %16709 = vmatpush1.bf16.msra.mxu0 %v22544_v45  ;;  %16573 = vmatprep.subr.bf16.mxu1 %v22549_v47  ;;  %v22627_v45 = vld [vmem:[%s25555_s21 + $0x1e6c] ss:$76 sps:$4 sm:$0xff]   ;;  %v22630_v47 = vld [vmem:[%s25555_s21 + $0xf9c] ss:$76 sps:$4 sm:$0xff]  }
 0x70f   : > { %16710 = vmatprep.subr.bf16.mxu0 %v22552_v32  ;;  %v22625_v32 = vld [vmem:[%s25555_s21 + $0x1e68] ss:$76 sps:$4 sm:$0xff]  }
 0x711   : > { %16574 = vmatpush1.bf16.msra.mxu1 %v22547_v48  ;;  %v22628_v48 = vld [vmem:[%s25555_s21 + $0xf98] ss:$76 sps:$4 sm:$0xff]  }
 0x712   : > { %16711 = vmatpush1.bf16.msra.mxu0 %v22550_v49  ;;  %16575 = vmatprep.subr.bf16.mxu1 %v22555_v28  ;;  %v22633_v49 = vld [vmem:[%s25555_s21 + $0x1f04] ss:$76 sps:$4 sm:$0xff]   ;;  %v22636_v28 = vld [vmem:[%s25555_s21 + $0x1034] ss:$76 sps:$4 sm:$0xff]  }
 0x713   : > { %16712 = vmatprep.subr.bf16.mxu0 %v22558_v50  ;;  %v22631_v50 = vld [vmem:[%s25555_s21 + $0x1f00] ss:$76 sps:$4 sm:$0xff]  }
 0x715   : > { %16576 = vmatpush1.bf16.msra.mxu1 %v22553_v10  ;;  %v22634_v10 = vld [vmem:[%s25555_s21 + $0x1030] ss:$76 sps:$4 sm:$0xff]  }
 0x716   : > { %16713 = vmatpush1.bf16.msra.mxu0 %v22556_v35  ;;  %16577 = vmatprep.subr.bf16.mxu1 %v22561_v55  ;;  %v22639_v35 = vld [vmem:[%s25555_s21 + $0x1f9c] ss:$76 sps:$4 sm:$0xff]   ;;  %v22642_v55 = vld [vmem:[%s25555_s21 + $0x10cc] ss:$76 sps:$4 sm:$0xff]  }
 0x717   : > { %16714 = vmatprep.subr.bf16.mxu0 %v22564_v37  ;;  %v22637_v37 = vld [vmem:[%s25555_s21 + $0x1f98] ss:$76 sps:$4 sm:$0xff]  }
 0x719   : > { %16578 = vmatpush1.bf16.msra.mxu1 %v22559_v58  ;;  %v22640_v58 = vld [vmem:[%s25555_s21 + $0x10c8] ss:$76 sps:$4 sm:$0xff]  }
 0x71a   : > { %16715 = vmatpush1.bf16.msra.mxu0 %v22562_v59  ;;  %16579 = vmatprep.subr.bf16.mxu1 %v22567_v31  ;;  %v22645_v59 = vld [vmem:[%s25555_s21 + $0x2034] ss:$76 sps:$4 sm:$0xff]  }
 0x71b   : > { %16725 = vmatprep.subr.bf16.mxu0 %v22570_v36  ;;  %v22648_v36 = vld [vmem:[%s25555_s21 + $0x1164] ss:$76 sps:$4 sm:$0xff]  }
 0x71d   : > { %16580 = vmatpush1.bf16.msra.mxu1 %v22565_v29  ;;  %16717 = vmatmul.mubr.bf16.vlgmr.msra.gmra.mrb[20].mxu0 %v25793_v17 }
 0x71e   : > { %16726 = vmatpush1.bf16.msra.mxu0 %v22568_v61  ;;  %16757 = vmatprep.mubr.bf16.mxu0 %v25796_v19 }
 0x71f   : > { %16581 = vmatprep.subr.bf16.mxu1 %v22573_v62  ;;  %16727 = vmatprep.subr.bf16.mxu0 %v22576_v63  ;;  %v22643_v63 = vld [vmem:[%s25555_s21 + $0x2030] ss:$76 sps:$4 sm:$0xff]  }
 0x721   : > { %16582 = vmatpush1.bf16.msra.mxu1 %v22571_v42 }
 0x722   : > { %16728 = vmatpush1.bf16.msra.mxu0 %v22574_v0  ;;  %16583 = vmatprep.subr.bf16.mxu1 %v22579_v1  ;;  %v22646_v0 = vld [vmem:[%s25555_s21 + $0x1160] ss:$76 sps:$4 sm:$0xff]  }
 0x723   : > { %16729 = vmatprep.subr.bf16.mxu0 %v22582_v46  ;;  %v22651_v1 = vld [vmem:[%s25555_s21 + $0x20cc] ss:$76 sps:$4 sm:$0xff]   ;;  %v22654_v46 = vld [vmem:[%s25555_s21 + $0x11fc] ss:$76 sps:$4 sm:$0xff]  }
 0x725   : > { %16584 = vmatpush1.bf16.msra.mxu1 %v22577_v2  ;;  %v22649_v2 = vld [vmem:[%s25555_s21 + $0x20c8] ss:$76 sps:$4 sm:$0xff]  }
 0x726   : > { %16730 = vmatpush1.bf16.msra.mxu0 %v22580_v5  ;;  %16585 = vmatprep.subr.bf16.mxu1 %v22585_v6  ;;  %v22652_v5 = vld [vmem:[%s25555_s21 + $0x11f8] ss:$76 sps:$4 sm:$0xff]  }
 0x727   : > { %16731 = vmatprep.subr.bf16.mxu0 %v22588_v7  ;;  %v22657_v6 = vld [vmem:[%s25555_s21 + $0x2164] ss:$76 sps:$4 sm:$0xff]   ;;  %v22660_v7 = vld [vmem:[%s25555_s21 + $0x1294] ss:$76 sps:$4 sm:$0xff]  }
 0x729   : > { %16586 = vmatpush1.bf16.msra.mxu1 %v22583_v9  ;;  %v22655_v9 = vld [vmem:[%s25555_s21 + $0x2160] ss:$76 sps:$4 sm:$0xff]  }
 0x72a   : > { %16732 = vmatpush1.bf16.msra.mxu0 %v22586_v21  ;;  %16587 = vmatprep.subr.bf16.mxu1 %v22591_v13  ;;  %v22658_v21 = vld [vmem:[%s25555_s21 + $0x1290] ss:$76 sps:$4 sm:$0xff]  }
 0x72b   : > { %16733 = vmatprep.subr.bf16.mxu0 %v22594_v11  ;;  %v22663_v13 = vld [vmem:[%s25555_s21 + $0x21fc] ss:$76 sps:$4 sm:$0xff]   ;;  %v22666_v11 = vld [vmem:[%s25555_s21 + $0x132c] ss:$76 sps:$4 sm:$0xff]  }
 0x72d   : > { %16588 = vmatpush1.bf16.msra.mxu1 %v22589_v14  ;;  %v22661_v14 = vld [vmem:[%s25555_s21 + $0x21f8] ss:$76 sps:$4 sm:$0xff]  }
 0x72e   : > { %16734 = vmatpush1.bf16.msra.mxu0 %v22592_v15  ;;  %16589 = vmatprep.subr.bf16.mxu1 %v22597_v53  ;;  %v22664_v15 = vld [vmem:[%s25555_s21 + $0x1328] ss:$76 sps:$4 sm:$0xff]  }
 0x72f   : > { %16735 = vmatprep.subr.bf16.mxu0 %v22600_v4  ;;  %v22669_v53 = vld [vmem:[%s25555_s21 + $0x2294] ss:$76 sps:$4 sm:$0xff]   ;;  %v22672_v4 = vld [vmem:[%s25555_s21 + $0x13c4] ss:$76 sps:$4 sm:$0xff]  }
 0x731   : > { %16590 = vmatpush1.bf16.msra.mxu1 %v22595_v16  ;;  %v22667_v16 = vld [vmem:[%s25555_s21 + $0x2290] ss:$76 sps:$4 sm:$0xff]  }
 0x732   : > { %16736 = vmatpush1.bf16.msra.mxu0 %v22598_v56  ;;  %16591 = vmatprep.subr.bf16.mxu1 %v22603_v22  ;;  %v22670_v56 = vld [vmem:[%s25555_s21 + $0x13c0] ss:$76 sps:$4 sm:$0xff]  }
 0x733   : > { %16737 = vmatprep.subr.bf16.mxu0 %v22606_v52  ;;  %v22675_v22 = vld [vmem:[%s25555_s21 + $0x232c] ss:$76 sps:$4 sm:$0xff]   ;;  %v22678_v52 = vld [vmem:[%s25555_s21 + $0x145c] ss:$76 sps:$4 sm:$0xff]  }
 0x735   : > { %16592 = vmatpush1.bf16.msra.mxu1 %v22601_v18  ;;  %v22673_v18 = vld [vmem:[%s25555_s21 + $0x2328] ss:$76 sps:$4 sm:$0xff]  }
 0x736   : > { %16738 = vmatpush1.bf16.msra.mxu0 %v22604_v57  ;;  %16602 = vmatprep.subr.bf16.mxu1 %v22609_v23  ;;  %v22676_v57 = vld [vmem:[%s25555_s21 + $0x1458] ss:$76 sps:$4 sm:$0xff]  }
 0x737   : > { %16739 = vmatprep.subr.bf16.mxu0 %v22612_v3  ;;  %v22681_v23 = vld [vmem:[%s25555_s21 + $0x23c4] ss:$76 sps:$4 sm:$0xff]   ;;  %v22684_v3 = vld [vmem:[%s25555_s21 + $0x14f4] ss:$76 sps:$4 sm:$0xff]  }
 0x738   : > { %16594 = vmatmul.mubr.bf16.vlgmr.msra.gmra.mrb[16].mxu1 %v25967_v34 }
 0x739   : > { %16603 = vmatpush1.bf16.msra.mxu1 %v22607_v25  ;;  %16634 = vmatprep.mubr.bf16.mxu1 %v25972_v38  ;;  %v22679_v25 = vld [vmem:[%s25555_s21 + $0x23c0] ss:$76 sps:$4 sm:$0xff]  }
 0x73a   : > { %16740 = vmatpush1.bf16.msra.mxu0 %v22610_v33  ;;  %16604 = vmatprep.subr.bf16.mxu1 %v22615_v26  ;;  %v22682_v33 = vld [vmem:[%s25555_s21 + $0x14f0] ss:$76 sps:$4 sm:$0xff]  }
 0x73b   : > { %16741 = vmatprep.subr.bf16.mxu0 %v22618_v27  ;;  %v22687_v26 = vld [vmem:[%s25555_s21 + $0x245c] ss:$76 sps:$4 sm:$0xff]   ;;  %v22690_v27 = vld [vmem:[%s25555_s21 + $0x158c] ss:$76 sps:$4 sm:$0xff]  }
 0x73d   : > { %16605 = vmatpush1.bf16.msra.mxu1 %v22613_v24  ;;  %v22685_v24 = vld [vmem:[%s25555_s21 + $0x2458] ss:$76 sps:$4 sm:$0xff]  }
 0x73e   : > { %16742 = vmatpush1.bf16.msra.mxu0 %v22616_v39  ;;  %16606 = vmatprep.subr.bf16.mxu1 %v22621_v54  ;;  %v22688_v39 = vld [vmem:[%s25555_s21 + $0x1588] ss:$76 sps:$4 sm:$0xff]  }
 0x73f   : > { %16743 = vmatprep.subr.bf16.mxu0 %v22624_v40  ;;  %v22693_v54 = vld [vmem:[%s25555_s21 + $0x24f4] ss:$76 sps:$4 sm:$0xff]   ;;  %v22696_v40 = vld [vmem:[%s25555_s21 + $0x1624] ss:$76 sps:$4 sm:$0xff]  }
 0x741   : > { %16607 = vmatpush1.bf16.msra.mxu1 %v22619_v41  ;;  %v22691_v41 = vld [vmem:[%s25555_s21 + $0x24f0] ss:$76 sps:$4 sm:$0xff]  }
 0x742   : > { %16744 = vmatpush1.bf16.msra.mxu0 %v22622_v44  ;;  %16608 = vmatprep.subr.bf16.mxu1 %v22627_v45  ;;  %v22694_v44 = vld [vmem:[%s25555_s21 + $0x1620] ss:$76 sps:$4 sm:$0xff]  }
 0x743   : > { %16745 = vmatprep.subr.bf16.mxu0 %v22630_v47  ;;  %v22699_v45 = vld [vmem:[%s25555_s21 + $0x258c] ss:$76 sps:$4 sm:$0xff]   ;;  %v22702_v47 = vld [vmem:[%s25555_s21 + $0x16bc] ss:$76 sps:$4 sm:$0xff]  }
 0x745   : > { %16609 = vmatpush1.bf16.msra.mxu1 %v22625_v32  ;;  %v22697_v32 = vld [vmem:[%s25555_s21 + $0x2588] ss:$76 sps:$4 sm:$0xff]  }
 0x746   : > { %16746 = vmatpush1.bf16.msra.mxu0 %v22628_v48  ;;  %16610 = vmatprep.subr.bf16.mxu1 %v22633_v49  ;;  %v22700_v48 = vld [vmem:[%s25555_s21 + $0x16b8] ss:$76 sps:$4 sm:$0xff]  }
 0x747   : > { %16747 = vmatprep.subr.bf16.mxu0 %v22636_v28  ;;  %v22705_v49 = vld [vmem:[%s25555_s21 + $0x2624] ss:$76 sps:$4 sm:$0xff]   ;;  %v22708_v28 = vld [vmem:[%s25555_s21 + $0x1754] ss:$76 sps:$4 sm:$0xff]  }
 0x749   : > { %16611 = vmatpush1.bf16.msra.mxu1 %v22631_v50  ;;  %v22703_v50 = vld [vmem:[%s25555_s21 + $0x2620] ss:$76 sps:$4 sm:$0xff]  }
 0x74a   : > { %16748 = vmatpush1.bf16.msra.mxu0 %v22634_v10  ;;  %16612 = vmatprep.subr.bf16.mxu1 %v22639_v35  ;;  %v22706_v10 = vld [vmem:[%s25555_s21 + $0x1750] ss:$76 sps:$4 sm:$0xff]  }
 0x74b   : > { %v26774_v31 = vpop.f32.mrb[12].mxu1  ;;  %16749 = vmatprep.subr.bf16.mxu0 %v22642_v55  ;;  %v22711_v35 = vld [vmem:[%s25555_s21 + $0x26bc] ss:$76 sps:$4 sm:$0xff]   ;;  %v22714_v55 = vld [vmem:[%s25555_s21 + $0x17ec] ss:$76 sps:$4 sm:$0xff]  }
 0x74c   : > { %v26777_v29 = vpop.f32.mrb[13].mxu1 }
 0x74d   : > { %v17740_v61 = vcombine.low %v26774_v31, %v26777_v29  ;;  %v16271_v62 = vpop.f32.mrb[14].mxu1  ;;  %16613 = vmatpush1.bf16.msra.mxu1 %v22637_v37  ;;  %v22709_v37 = vld [vmem:[%s25555_s21 + $0x26b8] ss:$76 sps:$4 sm:$0xff]   ;;  %v22805_v31 = vld [vmem:[%s25555_s21 + $0xc8] ss:$76 sps:$4 sm:$0xff]  }
 0x74e   : > { %v16272_v42 = vpop.f32.mrb[15].mxu1  ;;  %16750 = vmatpush1.bf16.msra.mxu0 %v22640_v58  ;;  %16614 = vmatprep.subr.bf16.mxu1 %v22645_v59  ;;  %v22712_v58 = vld [vmem:[%s25555_s21 + $0x17e8] ss:$76 sps:$4 sm:$0xff]   ;;  %v22715_v62 = vld [vmem:[%s25555_s21 + $0x2750] ss:$76 sps:$4 sm:$0xff]  }
 0x74f   : > { %16751 = vmatprep.subr.bf16.mxu0 %v22648_v36  ;;  %v22717_v59 = vld [vmem:[%s25555_s21 + $0x2754] ss:$76 sps:$4 sm:$0xff]   ;;  %v22720_v36 = vld [vmem:[%s25555_s21 + $0x1884] ss:$76 sps:$4 sm:$0xff]   ;;  %v22723_v42 = vld [vmem:[%s25555_s21 + $0x27ec] ss:$76 sps:$4 sm:$0xff]  }
 0x750   : > { %v22808_v29 = vld [vmem:[%s25555_s21 + $0x2168] ss:$76 sps:$4 sm:$0xff]  }
 0x751   : > { %16615 = vmatpush1.bf16.msra.mxu1 %v22643_v63  ;;  %v22718_v63 = vld [vmem:[%s25555_s21 + $0x1880] ss:$76 sps:$4 sm:$0xff]  }
 0x752   : > { %16752 = vmatpush1.bf16.msra.mxu0 %v22646_v0  ;;  %16616 = vmatprep.subr.bf16.mxu1 %v22651_v1  ;;  %v22726_v0 = vld [vmem:[%s25555_s21 + $0x191c] ss:$76 sps:$4 sm:$0xff]  }
 0x753   : > { %16753 = vmatprep.subr.bf16.mxu0 %v22654_v46  ;;  %v22721_v1 = vld [vmem:[%s25555_s21 + $0x27e8] ss:$76 sps:$4 sm:$0xff]   ;;  %v22724_v46 = vld [vmem:[%s25555_s21 + $0x1918] ss:$76 sps:$4 sm:$0xff]  }
 0x755   : > { %16617 = vmatpush1.bf16.msra.mxu1 %v22649_v2  ;;  %v22729_v2 = vld [vmem:[%s25555_s21 + $0x2884] ss:$76 sps:$4 sm:$0xff]  }
 0x756   : > { %16754 = vmatpush1.bf16.msra.mxu0 %v22652_v5  ;;  %16618 = vmatprep.subr.bf16.mxu1 %v22657_v6  ;;  %v22732_v5 = vld [vmem:[%s25555_s21 + $0x19b4] ss:$76 sps:$4 sm:$0xff]  }
 0x757   : > { %16755 = vmatprep.subr.bf16.mxu0 %v22660_v7  ;;  %v22727_v6 = vld [vmem:[%s25555_s21 + $0x2880] ss:$76 sps:$4 sm:$0xff]   ;;  %v22730_v7 = vld [vmem:[%s25555_s21 + $0x19b0] ss:$76 sps:$4 sm:$0xff]  }
 0x759   : > { %16619 = vmatpush1.bf16.msra.mxu1 %v22655_v9  ;;  %v22735_v9 = vld [vmem:[%s25555_s21 + $0x291c] ss:$76 sps:$4 sm:$0xff]  }
 0x75a   : > { %16756 = vmatpush1.bf16.msra.mxu0 %v22658_v21  ;;  %16620 = vmatprep.subr.bf16.mxu1 %v22663_v13  ;;  %v22738_v21 = vld [vmem:[%s25555_s21 + $0x1a4c] ss:$76 sps:$4 sm:$0xff]  }
 0x75b   : > { %16766 = vmatprep.subr.bf16.mxu0 %v22666_v11  ;;  %v22733_v13 = vld [vmem:[%s25555_s21 + $0x2918] ss:$76 sps:$4 sm:$0xff]   ;;  %v22736_v11 = vld [vmem:[%s25555_s21 + $0x1a48] ss:$76 sps:$4 sm:$0xff]  }
 0x75d   : > { %16621 = vmatpush1.bf16.msra.mxu1 %v22661_v14  ;;  %16758 = vmatmul.mubr.bf16.vlgmr.msra.gmra.mrb[20].mxu0 %v25872_v43  ;;  %v22741_v14 = vld [vmem:[%s25555_s21 + $0x29b4] ss:$76 sps:$4 sm:$0xff]  }
 0x75e   : > { %16767 = vmatpush1.bf16.msra.mxu0 %v22664_v15  ;;  %16798 = vmatprep.mubr.bf16.mxu0 %v25963_v30  ;;  %v22744_v15 = vld [vmem:[%s25555_s21 + $0x1ae4] ss:$76 sps:$4 sm:$0xff]  }
 0x75f   : > { %16622 = vmatprep.subr.bf16.mxu1 %v22669_v53  ;;  %16768 = vmatprep.subr.bf16.mxu0 %v22672_v4  ;;  %v22739_v53 = vld [vmem:[%s25555_s21 + $0x29b0] ss:$76 sps:$4 sm:$0xff]   ;;  %v22742_v4 = vld [vmem:[%s25555_s21 + $0x1ae0] ss:$76 sps:$4 sm:$0xff]  }
 0x761   : > { %16623 = vmatpush1.bf16.msra.mxu1 %v22667_v16  ;;  %v22747_v16 = vld [vmem:[%s25555_s21 + $0x2a4c] ss:$76 sps:$4 sm:$0xff]  }
 0x762   : > { %16769 = vmatpush1.bf16.msra.mxu0 %v22670_v56  ;;  %16624 = vmatprep.subr.bf16.mxu1 %v22675_v22  ;;  %v22750_v56 = vld [vmem:[%s25555_s21 + $0x1b7c] ss:$76 sps:$4 sm:$0xff]  }
 0x763   : > { %16770 = vmatprep.subr.bf16.mxu0 %v22678_v52  ;;  %v22745_v22 = vld [vmem:[%s25555_s21 + $0x2a48] ss:$76 sps:$4 sm:$0xff]   ;;  %v22748_v52 = vld [vmem:[%s25555_s21 + $0x1b78] ss:$76 sps:$4 sm:$0xff]  }
 0x765   : > { %16625 = vmatpush1.bf16.msra.mxu1 %v22673_v18  ;;  %v22753_v18 = vld [vmem:[%s25555_s21 + $0x2ae4] ss:$76 sps:$4 sm:$0xff]  }
 0x766   : > { %16771 = vmatpush1.bf16.msra.mxu0 %v22676_v57  ;;  %16626 = vmatprep.subr.bf16.mxu1 %v22681_v23  ;;  %v22756_v57 = vld [vmem:[%s25555_s21 + $0x1c14] ss:$76 sps:$4 sm:$0xff]  }
 0x767   : > { %16772 = vmatprep.subr.bf16.mxu0 %v22684_v3  ;;  %v22751_v23 = vld [vmem:[%s25555_s21 + $0x2ae0] ss:$76 sps:$4 sm:$0xff]   ;;  %v22754_v3 = vld [vmem:[%s25555_s21 + $0x1c10] ss:$76 sps:$4 sm:$0xff]  }
 0x769   : > { %16627 = vmatpush1.bf16.msra.mxu1 %v22679_v25  ;;  %v22759_v25 = vld [vmem:[%s25555_s21 + $0x2b7c] ss:$76 sps:$4 sm:$0xff]  }
 0x76a   : > { %16773 = vmatpush1.bf16.msra.mxu0 %v22682_v33  ;;  %16628 = vmatprep.subr.bf16.mxu1 %v22687_v26  ;;  %v22762_v33 = vld [vmem:[%s25555_s21 + $0x1cac] ss:$76 sps:$4 sm:$0xff]  }
 0x76b   : > { %16774 = vmatprep.subr.bf16.mxu0 %v22690_v27  ;;  %v22757_v26 = vld [vmem:[%s25555_s21 + $0x2b78] ss:$76 sps:$4 sm:$0xff]   ;;  %v22760_v27 = vld [vmem:[%s25555_s21 + $0x1ca8] ss:$76 sps:$4 sm:$0xff]  }
 0x76d   : > { %16629 = vmatpush1.bf16.msra.mxu1 %v22685_v24  ;;  %v22765_v24 = vld [vmem:[%s25555_s21 + $0x2c14] ss:$76 sps:$4 sm:$0xff]  }
 0x76e   : > { %16775 = vmatpush1.bf16.msra.mxu0 %v22688_v39  ;;  %16630 = vmatprep.subr.bf16.mxu1 %v22693_v54  ;;  %v22768_v39 = vld [vmem:[%s25555_s21 + $0x1d44] ss:$76 sps:$4 sm:$0xff]  }
 0x76f   : > { %16776 = vmatprep.subr.bf16.mxu0 %v22696_v40  ;;  %v22763_v54 = vld [vmem:[%s25555_s21 + $0x2c10] ss:$76 sps:$4 sm:$0xff]   ;;  %v22766_v40 = vld [vmem:[%s25555_s21 + $0x1d40] ss:$76 sps:$4 sm:$0xff]  }
 0x771   : > { %16631 = vmatpush1.bf16.msra.mxu1 %v22691_v41  ;;  %v22771_v41 = vld [vmem:[%s25555_s21 + $0x2cac] ss:$76 sps:$4 sm:$0xff]  }
 0x772   : > { %16777 = vmatpush1.bf16.msra.mxu0 %v22694_v44  ;;  %16632 = vmatprep.subr.bf16.mxu1 %v22699_v45  ;;  %v22774_v44 = vld [vmem:[%s25555_s21 + $0x1ddc] ss:$76 sps:$4 sm:$0xff]  }
 0x773   : > { %16778 = vmatprep.subr.bf16.mxu0 %v22702_v47  ;;  %v22769_v45 = vld [vmem:[%s25555_s21 + $0x2ca8] ss:$76 sps:$4 sm:$0xff]   ;;  %v22772_v47 = vld [vmem:[%s25555_s21 + $0x1dd8] ss:$76 sps:$4 sm:$0xff]  }
 0x775   : > { %16633 = vmatpush1.bf16.msra.mxu1 %v22697_v32  ;;  %v22777_v32 = vld [vmem:[%s25555_s21 + $0x2d44] ss:$76 sps:$4 sm:$0xff]  }
 0x776   : > { %16779 = vmatpush1.bf16.msra.mxu0 %v22700_v48  ;;  %16643 = vmatprep.subr.bf16.mxu1 %v22705_v49  ;;  %v22780_v48 = vld [vmem:[%s25555_s21 + $0x1e74] ss:$76 sps:$4 sm:$0xff]  }
 0x777   : > { %16780 = vmatprep.subr.bf16.mxu0 %v22708_v28  ;;  %v22775_v49 = vld [vmem:[%s25555_s21 + $0x2d40] ss:$76 sps:$4 sm:$0xff]   ;;  %v22778_v28 = vld [vmem:[%s25555_s21 + $0x1e70] ss:$76 sps:$4 sm:$0xff]  }
 0x778   : > { %16635 = vmatmul.mubr.bf16.vlgmr.msra.gmra.mrb[16].mxu1 %v26041_v51 }
 0x779   : > { %16644 = vmatpush1.bf16.msra.mxu1 %v22703_v50  ;;  %16675 = vmatprep.mubr.bf16.mxu1 %v26183_v20  ;;  %v22783_v50 = vld [vmem:[%s25555_s21 + $0x2ddc] ss:$76 sps:$4 sm:$0xff]  }
 0x77a   : > { %16781 = vmatpush1.bf16.msra.mxu0 %v22706_v10  ;;  %16645 = vmatprep.subr.bf16.mxu1 %v22711_v35  ;;  %v22786_v10 = vld [vmem:[%s25555_s21 + $0x1f0c] ss:$76 sps:$4 sm:$0xff]  }
 0x77b   : > { %16782 = vmatprep.subr.bf16.mxu0 %v22714_v55  ;;  %v22781_v35 = vld [vmem:[%s25555_s21 + $0x2dd8] ss:$76 sps:$4 sm:$0xff]   ;;  %v22784_v55 = vld [vmem:[%s25555_s21 + $0x1f08] ss:$76 sps:$4 sm:$0xff]  }
 0x77d   : > { %16646 = vmatpush1.bf16.msra.mxu1 %v22709_v37  ;;  %v22789_v37 = vld [vmem:[%s25555_s21 + $0x2e74] ss:$76 sps:$4 sm:$0xff]  }
 0x77e   : > { %16783 = vmatpush1.bf16.msra.mxu0 %v22712_v58  ;;  %16647 = vmatprep.subr.bf16.mxu1 %v22717_v59  ;;  %v22792_v58 = vld [vmem:[%s25555_s21 + $0x1fa4] ss:$76 sps:$4 sm:$0xff]  }
 0x77f   : > { %16784 = vmatprep.subr.bf16.mxu0 %v22720_v36  ;;  %v22787_v59 = vld [vmem:[%s25555_s21 + $0x2e70] ss:$76 sps:$4 sm:$0xff]   ;;  %v22790_v36 = vld [vmem:[%s25555_s21 + $0x1fa0] ss:$76 sps:$4 sm:$0xff]  }
 0x781   : > { %16648 = vmatpush1.bf16.msra.mxu1 %v22715_v62  ;;  %v22795_v62 = vld [vmem:[%s25555_s21 + $0x2f0c] ss:$76 sps:$4 sm:$0xff]  }
 0x782   : > { %16785 = vmatpush1.bf16.msra.mxu0 %v22718_v63  ;;  %16649 = vmatprep.subr.bf16.mxu1 %v22723_v42  ;;  %v22798_v63 = vld [vmem:[%s25555_s21 + $0x203c] ss:$76 sps:$4 sm:$0xff]  }
 0x783   : > { %16786 = vmatprep.subr.bf16.mxu0 %v22726_v0 }
 0x785   : > { %16650 = vmatpush1.bf16.msra.mxu1 %v22721_v1  ;;  %v22793_v1 = vld [vmem:[%s25555_s21 + $0x2f08] ss:$76 sps:$4 sm:$0xff]  }
 0x786   : > { %16787 = vmatpush1.bf16.msra.mxu0 %v22724_v46  ;;  %16651 = vmatprep.subr.bf16.mxu1 %v22729_v2 }
 0x787   : > { %16788 = vmatprep.subr.bf16.mxu0 %v22732_v5  ;;  %v22796_v5 = vld [vmem:[%s25555_s21 + $0x2038] ss:$76 sps:$4 sm:$0xff]  }
 0x789   : > { %16652 = vmatpush1.bf16.msra.mxu1 %v22727_v6  ;;  %v22801_v6 = vld [vmem:[%s25555_s21 + $0x34] ss:$76 sps:$4 sm:$0xff]  }
 0x78a   : > { %16789 = vmatpush1.bf16.msra.mxu0 %v22730_v7  ;;  %16653 = vmatprep.subr.bf16.mxu1 %v22735_v9  ;;  %v22804_v9 = vld [vmem:[%s25555_s21 + $0x20d4] ss:$76 sps:$4 sm:$0xff]  }
 0x78b   : > { %16790 = vmatprep.subr.bf16.mxu0 %v22738_v21  ;;  %v17748_v21 = vrot.slane %v17740_v61, %v25085_v8  ;;  %v22813_v61 = vld [vmem:[%s25555_s21 + $0x164] ss:$76 sps:$4 sm:$0xff]  }
 0x78d   : > { %16654 = vmatpush1.bf16.msra.mxu1 %v22733_v13 }
 0x78e   : > { %16791 = vmatpush1.bf16.msra.mxu0 %v22736_v11  ;;  %16655 = vmatprep.subr.bf16.mxu1 %v22741_v14  ;;  %v22799_v11 = vld [vmem:[%s25555_s21 + $0x30] ss:$76 sps:$4 sm:$0xff]  }
 0x78f   : > { %16792 = vmatprep.subr.bf16.mxu0 %v22744_v15  ;;  %v22802_v15 = vld [vmem:[%s25555_s21 + $0x20d0] ss:$76 sps:$4 sm:$0xff]  }
 0x791   : > { %16656 = vmatpush1.bf16.msra.mxu1 %v22739_v53  ;;  %v22807_v53 = vld [vmem:[%s25555_s21 + $0xcc] ss:$76 sps:$4 sm:$0xff]  }
 0x792   : > { %16793 = vmatpush1.bf16.msra.mxu0 %v22742_v4  ;;  %16657 = vmatprep.subr.bf16.mxu1 %v22747_v16  ;;  %v22810_v4 = vld [vmem:[%s25555_s21 + $0x216c] ss:$76 sps:$4 sm:$0xff]   ;;  %v22816_v16 = vld [vmem:[%s25555_s21 + $0x2204] ss:$76 sps:$4 sm:$0xff]  }
 0x793   : > { %16794 = vmatprep.subr.bf16.mxu0 %v22750_v56  ;;  %v22811_v56 = vld [vmem:[%s25555_s21 + $0x160] ss:$76 sps:$4 sm:$0xff]  }
 0x795   : > { %16658 = vmatpush1.bf16.msra.mxu1 %v22745_v22  ;;  %v22814_v22 = vld [vmem:[%s25555_s21 + $0x2200] ss:$76 sps:$4 sm:$0xff]  }
 0x796   : > { %16795 = vmatpush1.bf16.msra.mxu0 %v22748_v52  ;;  %16659 = vmatprep.subr.bf16.mxu1 %v22753_v18  ;;  %v22819_v52 = vld [vmem:[%s25555_s21 + $0x1fc] ss:$76 sps:$4 sm:$0xff]  }
 0x797   : > { %16796 = vmatprep.subr.bf16.mxu0 %v22756_v57  ;;  %v22822_v18 = vld [vmem:[%s25555_s21 + $0x229c] ss:$76 sps:$4 sm:$0xff]   ;;  %v22817_v57 = vld [vmem:[%s25555_s21 + $0x1f8] ss:$76 sps:$4 sm:$0xff]  }
 0x799   : > { %16660 = vmatpush1.bf16.msra.mxu1 %v22751_v23 }
 0x79a   : > { %16797 = vmatpush1.bf16.msra.mxu0 %v22754_v3  ;;  %16661 = vmatprep.subr.bf16.mxu1 %v22759_v25  ;;  %v22820_v3 = vld [vmem:[%s25555_s21 + $0x2298] ss:$76 sps:$4 sm:$0xff]   ;;  %v22825_v25 = vld [vmem:[%s25555_s21 + $0x294] ss:$76 sps:$4 sm:$0xff]  }
 0x79b   : > { %16807 = vmatprep.subr.bf16.mxu0 %v22762_v33  ;;  %v22828_v33 = vld [vmem:[%s25555_s21 + $0x2334] ss:$76 sps:$4 sm:$0xff]  }
 0x79d   : > { %16662 = vmatpush1.bf16.msra.mxu1 %v22757_v26  ;;  %16799 = vmatmul.mubr.bf16.vlgmr.msra.gmra.mrb[20].mxu0 %v25967_v34  ;;  %v22823_v26 = vld [vmem:[%s25555_s21 + $0x290] ss:$76 sps:$4 sm:$0xff]  }
 0x79e   : > { %16808 = vmatpush1.bf16.msra.mxu0 %v22760_v27  ;;  %16839 = vmatprep.mubr.bf16.mxu0 %v25972_v38  ;;  %v22826_v27 = vld [vmem:[%s25555_s21 + $0x2330] ss:$76 sps:$4 sm:$0xff]  }
 0x79f   : > { %16663 = vmatprep.subr.bf16.mxu1 %v22765_v24  ;;  %16809 = vmatprep.subr.bf16.mxu0 %v22768_v39  ;;  %v22831_v24 = vld [vmem:[%s25555_s21 + $0x32c] ss:$76 sps:$4 sm:$0xff]  }
 0x7a0   : > { %v22834_v39 = vld [vmem:[%s25555_s21 + $0x23cc] ss:$76 sps:$4 sm:$0xff]  }
 0x7a1   : > { %16664 = vmatpush1.bf16.msra.mxu1 %v22763_v54  ;;  %v22829_v54 = vld [vmem:[%s25555_s21 + $0x328] ss:$76 sps:$4 sm:$0xff]  }
 0x7a2   : > { %16810 = vmatpush1.bf16.msra.mxu0 %v22766_v40  ;;  %16665 = vmatprep.subr.bf16.mxu1 %v22771_v41  ;;  %v22832_v40 = vld [vmem:[%s25555_s21 + $0x23c8] ss:$76 sps:$4 sm:$0xff]   ;;  %v22837_v41 = vld [vmem:[%s25555_s21 + $0x3c4] ss:$76 sps:$4 sm:$0xff]  }
 0x7a3   : > { %16811 = vmatprep.subr.bf16.mxu0 %v22774_v44  ;;  %v22840_v44 = vld [vmem:[%s25555_s21 + $0x2464] ss:$76 sps:$4 sm:$0xff]  }
 0x7a5   : > { %16666 = vmatpush1.bf16.msra.mxu1 %v22769_v45  ;;  %v22835_v45 = vld [vmem:[%s25555_s21 + $0x3c0] ss:$76 sps:$4 sm:$0xff]  }
 0x7a6   : > { %16812 = vmatpush1.bf16.msra.mxu0 %v22772_v47  ;;  %16667 = vmatprep.subr.bf16.mxu1 %v22777_v32  ;;  %v22838_v47 = vld [vmem:[%s25555_s21 + $0x2460] ss:$76 sps:$4 sm:$0xff]   ;;  %v22843_v32 = vld [vmem:[%s25555_s21 + $0x45c] ss:$76 sps:$4 sm:$0xff]  }
 0x7a7   : > { %16813 = vmatprep.subr.bf16.mxu0 %v22780_v48  ;;  %v22846_v48 = vld [vmem:[%s25555_s21 + $0x24fc] ss:$76 sps:$4 sm:$0xff]  }
 0x7a9   : > { %16668 = vmatpush1.bf16.msra.mxu1 %v22775_v49  ;;  %v22841_v49 = vld [vmem:[%s25555_s21 + $0x458] ss:$76 sps:$4 sm:$0xff]  }
 0x7aa   : > { %16814 = vmatpush1.bf16.msra.mxu0 %v22778_v28  ;;  %16669 = vmatprep.subr.bf16.mxu1 %v22783_v50  ;;  %v22844_v28 = vld [vmem:[%s25555_s21 + $0x24f8] ss:$76 sps:$4 sm:$0xff]   ;;  %v22849_v50 = vld [vmem:[%s25555_s21 + $0x4f4] ss:$76 sps:$4 sm:$0xff]  }
 0x7ab   : > { %16815 = vmatprep.subr.bf16.mxu0 %v22786_v10  ;;  %v22852_v10 = vld [vmem:[%s25555_s21 + $0x2594] ss:$76 sps:$4 sm:$0xff]  }
 0x7ad   : > { %16670 = vmatpush1.bf16.msra.mxu1 %v22781_v35  ;;  %v22847_v35 = vld [vmem:[%s25555_s21 + $0x4f0] ss:$76 sps:$4 sm:$0xff]  }
 0x7ae   : > { %16816 = vmatpush1.bf16.msra.mxu0 %v22784_v55  ;;  %16671 = vmatprep.subr.bf16.mxu1 %v22789_v37  ;;  %v22850_v55 = vld [vmem:[%s25555_s21 + $0x2590] ss:$76 sps:$4 sm:$0xff]   ;;  %v22855_v37 = vld [vmem:[%s25555_s21 + $0x58c] ss:$76 sps:$4 sm:$0xff]  }
 0x7af   : > { %16817 = vmatprep.subr.bf16.mxu0 %v22792_v58  ;;  %v22858_v58 = vld [vmem:[%s25555_s21 + $0x262c] ss:$76 sps:$4 sm:$0xff]  }
 0x7b0   : > { %v16472_v42 = vpop.f32.mrb[16].mxu0 }
 0x7b1   : > { %v16474_v0 = vpop.f32.mrb[17].mxu0  ;;  %16672 = vmatpush1.bf16.msra.mxu1 %v22787_v59  ;;  %v22853_v59 = vld [vmem:[%s25555_s21 + $0x588] ss:$76 sps:$4 sm:$0xff]  }
 0x7b2   : > { %v17741_v46 = vcombine.low %v16472_v42, %v16474_v0  ;;  %v16476_v2 = vpop.f32.mrb[18].mxu0  ;;  %16818 = vmatpush1.bf16.msra.mxu0 %v22790_v36  ;;  %16673 = vmatprep.subr.bf16.mxu1 %v22795_v62  ;;  %v22856_v36 = vld [vmem:[%s25555_s21 + $0x2628] ss:$76 sps:$4 sm:$0xff]   ;;  %v22861_v62 = vld [vmem:[%s25555_s21 + $0x624] ss:$76 sps:$4 sm:$0xff]  }
 0x7b3   : > { %v16477_v7 = vpop.f32.mrb[19].mxu0  ;;  %16819 = vmatprep.subr.bf16.mxu0 %v22798_v63  ;;  %v22864_v63 = vld [vmem:[%s25555_s21 + $0x26c4] ss:$76 sps:$4 sm:$0xff]   ;;  %v22859_v42 = vld [vmem:[%s25555_s21 + $0x620] ss:$76 sps:$4 sm:$0xff]  }
 0x7b4   : > { %v17755_v13 = vrot.slane %v17741_v46, %v25085_v8  ;;  %v22862_v0 = vld [vmem:[%s25555_s21 + $0x26c0] ss:$76 sps:$4 sm:$0xff]   ;;  %v22870_v46 = vld [vmem:[%s25555_s21 + $0x275c] ss:$76 sps:$4 sm:$0xff]   ;;  %v22865_v2 = vld [vmem:[%s25555_s21 + $0x6b8] ss:$76 sps:$4 sm:$0xff]  }
 0x7b5   : > { %16674 = vmatpush1.bf16.msra.mxu1 %v22793_v1  ;;  %v22867_v1 = vld [vmem:[%s25555_s21 + $0x6bc] ss:$76 sps:$4 sm:$0xff]   ;;  %v22876_v7 = vld [vmem:[%s25555_s21 + $0x27f4] ss:$76 sps:$4 sm:$0xff]  }
 0x7b6   : > { %v17756_v14 = vcombine.low %v17748_v21, %v17755_v13  ;;  %16820 = vmatpush1.bf16.msra.mxu0 %v22796_v5  ;;  %16889 = vmatprep.subr.bf16.mxu1 %v22801_v6  ;;  %v22868_v5 = vld [vmem:[%s25555_s21 + $0x2758] ss:$76 sps:$4 sm:$0xff]   ;;  %v22873_v6 = vld [vmem:[%s25555_s21 + $0x754] ss:$76 sps:$4 sm:$0xff]   ;;  %v22874_v21 = vld [vmem:[%s25555_s21 + $0x27f0] ss:$76 sps:$4 sm:$0xff]  }
 0x7b7   : > { %16821 = vmatprep.subr.bf16.mxu0 %v22804_v9  ;;  %v22871_v9 = vld [vmem:[%s25555_s21 + $0x750] ss:$76 sps:$4 sm:$0xff]   ;;  %v22879_v13 = vld [vmem:[%s25555_s21 + $0x7ec] ss:$76 sps:$4 sm:$0xff]  }
 0x7b8   : > { %16676 = vmatmul.mubr.bf16.vlgmr.msra.gmra.mrb[16].mxu1 %v26185_v12  ;;  %17818 = vst [vmem:[#allocation2 + $0x8] sm:$0xff] %v17756_v14  ;;  %v22877_v14 = vld [vmem:[%s25555_s21 + $0x7e8] ss:$76 sps:$4 sm:$0xff]  }
 0x7b9   : > { %16890 = vmatpush1.bf16.msra.mxu1 %v22799_v11  ;;  %16921 = vmatprep.mubr.bf16.mxu1 %v25718_v60  ;;  %v22882_v11 = vld [vmem:[%s25555_s21 + $0x288c] ss:$76 sps:$4 sm:$0xff]  }
 0x7ba   : > { %16822 = vmatpush1.bf16.msra.mxu0 %v22802_v15  ;;  %16891 = vmatprep.subr.bf16.mxu1 %v22807_v53  ;;  %v22880_v15 = vld [vmem:[%s25555_s21 + $0x2888] ss:$76 sps:$4 sm:$0xff]   ;;  %v22885_v53 = vld [vmem:[%s25555_s21 + $0x884] ss:$76 sps:$4 sm:$0xff]  }
 0x7bb   : > { %16823 = vmatprep.subr.bf16.mxu0 %v22810_v4  ;;  %v22888_v4 = vld [vmem:[%s25555_s21 + $0x2924] ss:$76 sps:$4 sm:$0xff]  }
 0x7bd   : > { %16892 = vmatpush1.bf16.msra.mxu1 %v22805_v31  ;;  %v22883_v31 = vld [vmem:[%s25555_s21 + $0x880] ss:$76 sps:$4 sm:$0xff]  }
 0x7be   : > { %16824 = vmatpush1.bf16.msra.mxu0 %v22808_v29  ;;  %16893 = vmatprep.subr.bf16.mxu1 %v22813_v61  ;;  %v22886_v29 = vld [vmem:[%s25555_s21 + $0x2920] ss:$76 sps:$4 sm:$0xff]   ;;  %v22891_v61 = vld [vmem:[%s25555_s21 + $0x91c] ss:$76 sps:$4 sm:$0xff]  }
 0x7bf   : > { %16825 = vmatprep.subr.bf16.mxu0 %v22816_v16  ;;  %v17831_v23 = vld [vmem:[#allocation2 + $0x8] sm:$0xff] }
 0x7c0   : > { %17836 = vst [vmem:[%s26556_s30 + $0x8] sm:$0xff] %v17831_v23  ;;  %v22894_v16 = vld [vmem:[%s25555_s21 + $0x29bc] ss:$76 sps:$4 sm:$0xff]  }
 0x7c1   : > { %16894 = vmatpush1.bf16.msra.mxu1 %v22811_v56  ;;  %v22889_v56 = vld [vmem:[%s25555_s21 + $0x918] ss:$76 sps:$4 sm:$0xff]   ;;  %v22898_v23 = vld [vmem:[%s25555_s21 + $0x2a50] ss:$76 sps:$4 sm:$0xff]  }
 0x7c2   : > { %16826 = vmatpush1.bf16.msra.mxu0 %v22814_v22  ;;  %16895 = vmatprep.subr.bf16.mxu1 %v22819_v52  ;;  %v22892_v22 = vld [vmem:[%s25555_s21 + $0x29b8] ss:$76 sps:$4 sm:$0xff]   ;;  %v22897_v52 = vld [vmem:[%s25555_s21 + $0x9b4] ss:$76 sps:$4 sm:$0xff]  }
 0x7c3   : > { %16827 = vmatprep.subr.bf16.mxu0 %v22822_v18  ;;  %v22900_v18 = vld [vmem:[%s25555_s21 + $0x2a54] ss:$76 sps:$4 sm:$0xff]  }
 0x7c5   : > { %16896 = vmatpush1.bf16.msra.mxu1 %v22817_v57  ;;  %v22895_v57 = vld [vmem:[%s25555_s21 + $0x9b0] ss:$76 sps:$4 sm:$0xff]  }
 0x7c6   : > { %16828 = vmatpush1.bf16.msra.mxu0 %v22820_v3  ;;  %16897 = vmatprep.subr.bf16.mxu1 %v22825_v25  ;;  %v22903_v3 = vld [vmem:[%s25555_s21 + $0xa4c] ss:$76 sps:$4 sm:$0xff]  }
 0x7c7   : > { %16829 = vmatprep.subr.bf16.mxu0 %v22828_v33  ;;  %v22906_v25 = vld [vmem:[%s25555_s21 + $0x2aec] ss:$76 sps:$4 sm:$0xff]   ;;  %v22901_v33 = vld [vmem:[%s25555_s21 + $0xa48] ss:$76 sps:$4 sm:$0xff]  }
 0x7c9   : > { %16898 = vmatpush1.bf16.msra.mxu1 %v22823_v26  ;;  %v22904_v26 = vld [vmem:[%s25555_s21 + $0x2ae8] ss:$76 sps:$4 sm:$0xff]  }
 0x7ca   : > { %16830 = vmatpush1.bf16.msra.mxu0 %v22826_v27  ;;  %16899 = vmatprep.subr.bf16.mxu1 %v22831_v24  ;;  %v22909_v27 = vld [vmem:[%s25555_s21 + $0xae4] ss:$76 sps:$4 sm:$0xff]  }
 0x7cb   : > { %16831 = vmatprep.subr.bf16.mxu0 %v22834_v39  ;;  %v22912_v24 = vld [vmem:[%s25555_s21 + $0x2b84] ss:$76 sps:$4 sm:$0xff]   ;;  %v22907_v39 = vld [vmem:[%s25555_s21 + $0xae0] ss:$76 sps:$4 sm:$0xff]  }
 0x7cd   : > { %16900 = vmatpush1.bf16.msra.mxu1 %v22829_v54  ;;  %v22910_v54 = vld [vmem:[%s25555_s21 + $0x2b80] ss:$76 sps:$4 sm:$0xff]  }
 0x7ce   : > { %16832 = vmatpush1.bf16.msra.mxu0 %v22832_v40  ;;  %16901 = vmatprep.subr.bf16.mxu1 %v22837_v41  ;;  %v22915_v40 = vld [vmem:[%s25555_s21 + $0xb7c] ss:$76 sps:$4 sm:$0xff]  }
 0x7cf   : > { %16833 = vmatprep.subr.bf16.mxu0 %v22840_v44  ;;  %v22918_v41 = vld [vmem:[%s25555_s21 + $0x2c1c] ss:$76 sps:$4 sm:$0xff]   ;;  %v22913_v44 = vld [vmem:[%s25555_s21 + $0xb78] ss:$76 sps:$4 sm:$0xff]  }
 0x7d1   : > { %16902 = vmatpush1.bf16.msra.mxu1 %v22835_v45  ;;  %v22916_v45 = vld [vmem:[%s25555_s21 + $0x2c18] ss:$76 sps:$4 sm:$0xff]  }
 0x7d2   : > { %16834 = vmatpush1.bf16.msra.mxu0 %v22838_v47  ;;  %16903 = vmatprep.subr.bf16.mxu1 %v22843_v32  ;;  %v22921_v47 = vld [vmem:[%s25555_s21 + $0xc14] ss:$76 sps:$4 sm:$0xff]  }
 0x7d3   : > { %16835 = vmatprep.subr.bf16.mxu0 %v22846_v48  ;;  %v22924_v32 = vld [vmem:[%s25555_s21 + $0x2cb4] ss:$76 sps:$4 sm:$0xff]   ;;  %v22919_v48 = vld [vmem:[%s25555_s21 + $0xc10] ss:$76 sps:$4 sm:$0xff]  }
 0x7d5   : > { %16904 = vmatpush1.bf16.msra.mxu1 %v22841_v49  ;;  %v22922_v49 = vld [vmem:[%s25555_s21 + $0x2cb0] ss:$76 sps:$4 sm:$0xff]  }
 0x7d6   : > { %16836 = vmatpush1.bf16.msra.mxu0 %v22844_v28  ;;  %16905 = vmatprep.subr.bf16.mxu1 %v22849_v50  ;;  %v22927_v28 = vld [vmem:[%s25555_s21 + $0xcac] ss:$76 sps:$4 sm:$0xff]  }
 0x7d7   : > { %16837 = vmatprep.subr.bf16.mxu0 %v22852_v10  ;;  %v22930_v50 = vld [vmem:[%s25555_s21 + $0x2d4c] ss:$76 sps:$4 sm:$0xff]   ;;  %v22925_v10 = vld [vmem:[%s25555_s21 + $0xca8] ss:$76 sps:$4 sm:$0xff]  }
 0x7d9   : > { %16906 = vmatpush1.bf16.msra.mxu1 %v22847_v35  ;;  %v22928_v35 = vld [vmem:[%s25555_s21 + $0x2d48] ss:$76 sps:$4 sm:$0xff]  }
 0x7da   : > { %16838 = vmatpush1.bf16.msra.mxu0 %v22850_v55  ;;  %16907 = vmatprep.subr.bf16.mxu1 %v22855_v37  ;;  %v22933_v55 = vld [vmem:[%s25555_s21 + $0xd44] ss:$76 sps:$4 sm:$0xff]  }
 0x7db   : > { %16848 = vmatprep.subr.bf16.mxu0 %v22858_v58  ;;  %v22936_v37 = vld [vmem:[%s25555_s21 + $0x2de4] ss:$76 sps:$4 sm:$0xff]   ;;  %v22931_v58 = vld [vmem:[%s25555_s21 + $0xd40] ss:$76 sps:$4 sm:$0xff]  }
 0x7dd   : > { %16840 = vmatmul.mubr.bf16.vlgmr.msra.gmra.mrb[20].mxu0 %v26041_v51  ;;  %16908 = vmatpush1.bf16.msra.mxu1 %v22853_v59  ;;  %v22934_v59 = vld [vmem:[%s25555_s21 + $0x2de0] ss:$76 sps:$4 sm:$0xff]  }
 0x7de   : > { %16849 = vmatpush1.bf16.msra.mxu0 %v22856_v36  ;;  %16880 = vmatprep.mubr.bf16.mxu0 %v26183_v20  ;;  %v22939_v36 = vld [vmem:[%s25555_s21 + $0xddc] ss:$76 sps:$4 sm:$0xff]  }
 0x7df   : > { %16909 = vmatprep.subr.bf16.mxu1 %v22861_v62  ;;  %16850 = vmatprep.subr.bf16.mxu0 %v22864_v63  ;;  %v22942_v62 = vld [vmem:[%s25555_s21 + $0x2e7c] ss:$76 sps:$4 sm:$0xff]   ;;  %v22937_v63 = vld [vmem:[%s25555_s21 + $0xdd8] ss:$76 sps:$4 sm:$0xff]  }
 0x7e1   : > { %16910 = vmatpush1.bf16.msra.mxu1 %v22859_v42  ;;  %v22940_v42 = vld [vmem:[%s25555_s21 + $0x2e78] ss:$76 sps:$4 sm:$0xff]  }
 0x7e2   : > { %16851 = vmatpush1.bf16.msra.mxu0 %v22862_v0  ;;  %16911 = vmatprep.subr.bf16.mxu1 %v22867_v1  ;;  %v22945_v0 = vld [vmem:[%s25555_s21 + $0xe74] ss:$76 sps:$4 sm:$0xff]  }
 0x7e3   : > { %16852 = vmatprep.subr.bf16.mxu0 %v22870_v46  ;;  %v22948_v1 = vld [vmem:[%s25555_s21 + $0x2f14] ss:$76 sps:$4 sm:$0xff]   ;;  %v22943_v46 = vld [vmem:[%s25555_s21 + $0xe70] ss:$76 sps:$4 sm:$0xff]  }
 0x7e5   : > { %16912 = vmatpush1.bf16.msra.mxu1 %v22865_v2  ;;  %v22946_v2 = vld [vmem:[%s25555_s21 + $0x2f10] ss:$76 sps:$4 sm:$0xff]  }
 0x7e6   : > { %16853 = vmatpush1.bf16.msra.mxu0 %v22868_v5  ;;  %16913 = vmatprep.subr.bf16.mxu1 %v22873_v6  ;;  %v22951_v5 = vld [vmem:[%s25555_s21 + $0xf0c] ss:$76 sps:$4 sm:$0xff]   ;;  %v22954_v6 = vld [vmem:[%s25555_s21 + $0x3c] ss:$76 sps:$4 sm:$0xff]  }
 0x7e7   : > { %16854 = vmatprep.subr.bf16.mxu0 %v22876_v7  ;;  %v22949_v7 = vld [vmem:[%s25555_s21 + $0xf08] ss:$76 sps:$4 sm:$0xff]  }
 0x7e9   : > { %16914 = vmatpush1.bf16.msra.mxu1 %v22871_v9  ;;  %v22952_v9 = vld [vmem:[%s25555_s21 + $0x38] ss:$76 sps:$4 sm:$0xff]  }
 0x7ea   : > { %16855 = vmatpush1.bf16.msra.mxu0 %v22874_v21  ;;  %16915 = vmatprep.subr.bf16.mxu1 %v22879_v13  ;;  %v22957_v21 = vld [vmem:[%s25555_s21 + $0xfa4] ss:$76 sps:$4 sm:$0xff]   ;;  %v22960_v13 = vld [vmem:[%s25555_s21 + $0xd4] ss:$76 sps:$4 sm:$0xff]  }
 0x7eb   : > { %16856 = vmatprep.subr.bf16.mxu0 %v22882_v11  ;;  %v22955_v11 = vld [vmem:[%s25555_s21 + $0xfa0] ss:$76 sps:$4 sm:$0xff]  }
 0x7ed   : > { %16916 = vmatpush1.bf16.msra.mxu1 %v22877_v14  ;;  %v22958_v14 = vld [vmem:[%s25555_s21 + $0xd0] ss:$76 sps:$4 sm:$0xff]  }
 0x7ee   : > { %16857 = vmatpush1.bf16.msra.mxu0 %v22880_v15  ;;  %16917 = vmatprep.subr.bf16.mxu1 %v22885_v53  ;;  %v22963_v15 = vld [vmem:[%s25555_s21 + $0x103c] ss:$76 sps:$4 sm:$0xff]   ;;  %v22966_v53 = vld [vmem:[%s25555_s21 + $0x16c] ss:$76 sps:$4 sm:$0xff]  }
 0x7ef   : > { %16858 = vmatprep.subr.bf16.mxu0 %v22888_v4  ;;  %v22961_v4 = vld [vmem:[%s25555_s21 + $0x1038] ss:$76 sps:$4 sm:$0xff]  }
 0x7f1   : > { %16918 = vmatpush1.bf16.msra.mxu1 %v22883_v31  ;;  %v22964_v31 = vld [vmem:[%s25555_s21 + $0x168] ss:$76 sps:$4 sm:$0xff]  }
 0x7f2   : > { %16859 = vmatpush1.bf16.msra.mxu0 %v22886_v29  ;;  %16919 = vmatprep.subr.bf16.mxu1 %v22891_v61  ;;  %v22969_v29 = vld [vmem:[%s25555_s21 + $0x10d4] ss:$76 sps:$4 sm:$0xff]   ;;  %v22972_v61 = vld [vmem:[%s25555_s21 + $0x204] ss:$76 sps:$4 sm:$0xff]  }
 0x7f3   : > { %16860 = vmatprep.subr.bf16.mxu0 %v22894_v16  ;;  %v22967_v16 = vld [vmem:[%s25555_s21 + $0x10d0] ss:$76 sps:$4 sm:$0xff]  }
 0x7f5   : > { %16920 = vmatpush1.bf16.msra.mxu1 %v22889_v56  ;;  %v22970_v56 = vld [vmem:[%s25555_s21 + $0x200] ss:$76 sps:$4 sm:$0xff]  }
 0x7f6   : > { %16861 = vmatpush1.bf16.msra.mxu0 %v22892_v22  ;;  %16930 = vmatprep.subr.bf16.mxu1 %v22897_v52  ;;  %v22975_v22 = vld [vmem:[%s25555_s21 + $0x116c] ss:$76 sps:$4 sm:$0xff]   ;;  %v22978_v52 = vld [vmem:[%s25555_s21 + $0x29c] ss:$76 sps:$4 sm:$0xff]  }
 0x7f7   : > { %16862 = vmatprep.subr.bf16.mxu0 %v22900_v18  ;;  %v22973_v18 = vld [vmem:[%s25555_s21 + $0x1168] ss:$76 sps:$4 sm:$0xff]  }
 0x7f8   : > { %16922 = vmatmul.mubr.bf16.vlgmr.msra.gmra.mrb[20].mxu1 %v25793_v17 }
 0x7f9   : > { %16931 = vmatpush1.bf16.msra.mxu1 %v22895_v57  ;;  %16962 = vmatprep.mubr.bf16.mxu1 %v25796_v19  ;;  %v22976_v57 = vld [vmem:[%s25555_s21 + $0x298] ss:$76 sps:$4 sm:$0xff]  }
 0x7fa   : > { %16863 = vmatpush1.bf16.msra.mxu0 %v22898_v23  ;;  %16932 = vmatprep.subr.bf16.mxu1 %v22903_v3  ;;  %v22981_v23 = vld [vmem:[%s25555_s21 + $0x1204] ss:$76 sps:$4 sm:$0xff]   ;;  %v22984_v3 = vld [vmem:[%s25555_s21 + $0x334] ss:$76 sps:$4 sm:$0xff]  }
 0x7fb   : > { %16864 = vmatprep.subr.bf16.mxu0 %v22906_v25  ;;  %v22979_v25 = vld [vmem:[%s25555_s21 + $0x1200] ss:$76 sps:$4 sm:$0xff]  }
 0x7fd   : > { %16933 = vmatpush1.bf16.msra.mxu1 %v22901_v33  ;;  %v22982_v33 = vld [vmem:[%s25555_s21 + $0x330] ss:$76 sps:$4 sm:$0xff]  }
 0x7fe   : > { %16865 = vmatpush1.bf16.msra.mxu0 %v22904_v26  ;;  %16934 = vmatprep.subr.bf16.mxu1 %v22909_v27  ;;  %v22987_v26 = vld [vmem:[%s25555_s21 + $0x129c] ss:$76 sps:$4 sm:$0xff]   ;;  %v22990_v27 = vld [vmem:[%s25555_s21 + $0x3cc] ss:$76 sps:$4 sm:$0xff]  }
 0x7ff   : > { %16866 = vmatprep.subr.bf16.mxu0 %v22912_v24  ;;  %v22985_v24 = vld [vmem:[%s25555_s21 + $0x1298] ss:$76 sps:$4 sm:$0xff]  }
 0x801   : > { %16935 = vmatpush1.bf16.msra.mxu1 %v22907_v39  ;;  %v22988_v39 = vld [vmem:[%s25555_s21 + $0x3c8] ss:$76 sps:$4 sm:$0xff]  }
 0x802   : > { %16867 = vmatpush1.bf16.msra.mxu0 %v22910_v54  ;;  %16936 = vmatprep.subr.bf16.mxu1 %v22915_v40  ;;  %v22993_v54 = vld [vmem:[%s25555_s21 + $0x1334] ss:$76 sps:$4 sm:$0xff]   ;;  %v22996_v40 = vld [vmem:[%s25555_s21 + $0x464] ss:$76 sps:$4 sm:$0xff]  }
 0x803   : > { %16868 = vmatprep.subr.bf16.mxu0 %v22918_v41  ;;  %v22991_v41 = vld [vmem:[%s25555_s21 + $0x1330] ss:$76 sps:$4 sm:$0xff]  }
 0x805   : > { %16937 = vmatpush1.bf16.msra.mxu1 %v22913_v44  ;;  %v22994_v44 = vld [vmem:[%s25555_s21 + $0x460] ss:$76 sps:$4 sm:$0xff]  }
 0x806   : > { %16869 = vmatpush1.bf16.msra.mxu0 %v22916_v45  ;;  %16938 = vmatprep.subr.bf16.mxu1 %v22921_v47  ;;  %v22999_v45 = vld [vmem:[%s25555_s21 + $0x13cc] ss:$76 sps:$4 sm:$0xff]   ;;  %v23002_v47 = vld [vmem:[%s25555_s21 + $0x4fc] ss:$76 sps:$4 sm:$0xff]  }
 0x807   : > { %16870 = vmatprep.subr.bf16.mxu0 %v22924_v32  ;;  %v22997_v32 = vld [vmem:[%s25555_s21 + $0x13c8] ss:$76 sps:$4 sm:$0xff]  }
 0x809   : > { %16939 = vmatpush1.bf16.msra.mxu1 %v22919_v48  ;;  %v23000_v48 = vld [vmem:[%s25555_s21 + $0x4f8] ss:$76 sps:$4 sm:$0xff]  }
 0x80a   : > { %16871 = vmatpush1.bf16.msra.mxu0 %v22922_v49  ;;  %16940 = vmatprep.subr.bf16.mxu1 %v22927_v28  ;;  %v23005_v49 = vld [vmem:[%s25555_s21 + $0x1464] ss:$76 sps:$4 sm:$0xff]   ;;  %v23008_v28 = vld [vmem:[%s25555_s21 + $0x594] ss:$76 sps:$4 sm:$0xff]  }
 0x80b   : > { %16872 = vmatprep.subr.bf16.mxu0 %v22930_v50  ;;  %v23003_v50 = vld [vmem:[%s25555_s21 + $0x1460] ss:$76 sps:$4 sm:$0xff]  }
 0x80d   : > { %16941 = vmatpush1.bf16.msra.mxu1 %v22925_v10  ;;  %v23006_v10 = vld [vmem:[%s25555_s21 + $0x590] ss:$76 sps:$4 sm:$0xff]  }
 0x80e   : > { %16873 = vmatpush1.bf16.msra.mxu0 %v22928_v35  ;;  %16942 = vmatprep.subr.bf16.mxu1 %v22933_v55  ;;  %v23011_v35 = vld [vmem:[%s25555_s21 + $0x14fc] ss:$76 sps:$4 sm:$0xff]   ;;  %v23014_v55 = vld [vmem:[%s25555_s21 + $0x62c] ss:$76 sps:$4 sm:$0xff]  }
 0x80f   : > { %16874 = vmatprep.subr.bf16.mxu0 %v22936_v37  ;;  %v23009_v37 = vld [vmem:[%s25555_s21 + $0x14f8] ss:$76 sps:$4 sm:$0xff]  }
 0x811   : > { %16943 = vmatpush1.bf16.msra.mxu1 %v22931_v58  ;;  %v23012_v58 = vld [vmem:[%s25555_s21 + $0x628] ss:$76 sps:$4 sm:$0xff]  }
 0x812   : > { %16875 = vmatpush1.bf16.msra.mxu0 %v22934_v59  ;;  %16944 = vmatprep.subr.bf16.mxu1 %v22939_v36  ;;  %v23017_v59 = vld [vmem:[%s25555_s21 + $0x1594] ss:$76 sps:$4 sm:$0xff]   ;;  %v23020_v36 = vld [vmem:[%s25555_s21 + $0x6c4] ss:$76 sps:$4 sm:$0xff]  }
 0x813   : > { %16876 = vmatprep.subr.bf16.mxu0 %v22942_v62  ;;  %v23015_v62 = vld [vmem:[%s25555_s21 + $0x1590] ss:$76 sps:$4 sm:$0xff]  }
 0x815   : > { %16945 = vmatpush1.bf16.msra.mxu1 %v22937_v63  ;;  %v23018_v63 = vld [vmem:[%s25555_s21 + $0x6c0] ss:$76 sps:$4 sm:$0xff]  }
 0x816   : > { %16877 = vmatpush1.bf16.msra.mxu0 %v22940_v42  ;;  %16946 = vmatprep.subr.bf16.mxu1 %v22945_v0  ;;  %v23023_v42 = vld [vmem:[%s25555_s21 + $0x162c] ss:$76 sps:$4 sm:$0xff]   ;;  %v23026_v0 = vld [vmem:[%s25555_s21 + $0x75c] ss:$76 sps:$4 sm:$0xff]  }
 0x817   : > { %16878 = vmatprep.subr.bf16.mxu0 %v22948_v1  ;;  %v23021_v1 = vld [vmem:[%s25555_s21 + $0x1628] ss:$76 sps:$4 sm:$0xff]  }
 0x819   : > { %16947 = vmatpush1.bf16.msra.mxu1 %v22943_v46  ;;  %v23024_v46 = vld [vmem:[%s25555_s21 + $0x758] ss:$76 sps:$4 sm:$0xff]  }
 0x81a   : > { %16879 = vmatpush1.bf16.msra.mxu0 %v22946_v2  ;;  %16948 = vmatprep.subr.bf16.mxu1 %v22951_v5  ;;  %v23029_v2 = vld [vmem:[%s25555_s21 + $0x16c4] ss:$76 sps:$4 sm:$0xff]   ;;  %v23032_v5 = vld [vmem:[%s25555_s21 + $0x7f4] ss:$76 sps:$4 sm:$0xff]  }
 0x81b   : > { %17094 = vmatprep.subr.bf16.mxu0 %v22954_v6  ;;  %v23027_v6 = vld [vmem:[%s25555_s21 + $0x16c0] ss:$76 sps:$4 sm:$0xff]  }
 0x81d   : > { %16881 = vmatmul.mubr.bf16.vlgmr.msra.gmra.mrb[20].mxu0 %v26185_v12  ;;  %16949 = vmatpush1.bf16.msra.mxu1 %v22949_v7  ;;  %v23030_v7 = vld [vmem:[%s25555_s21 + $0x7f0] ss:$76 sps:$4 sm:$0xff]  }
 0x81e   : > { %17095 = vmatpush1.bf16.msra.mxu0 %v22952_v9  ;;  %17126 = vmatprep.mubr.bf16.mxu0 %v25718_v60  ;;  %v23035_v9 = vld [vmem:[%s25555_s21 + $0x175c] ss:$76 sps:$4 sm:$0xff]  }
 0x81f   : > { %16950 = vmatprep.subr.bf16.mxu1 %v22957_v21  ;;  %17096 = vmatprep.subr.bf16.mxu0 %v22960_v13  ;;  %v23038_v21 = vld [vmem:[%s25555_s21 + $0x88c] ss:$76 sps:$4 sm:$0xff]  }
 0x820   : > { %v23033_v13 = vld [vmem:[%s25555_s21 + $0x1758] ss:$76 sps:$4 sm:$0xff]  }
 0x821   : > { %16951 = vmatpush1.bf16.msra.mxu1 %v22955_v11  ;;  %v23036_v11 = vld [vmem:[%s25555_s21 + $0x888] ss:$76 sps:$4 sm:$0xff]  }
 0x822   : > { %17097 = vmatpush1.bf16.msra.mxu0 %v22958_v14  ;;  %16952 = vmatprep.subr.bf16.mxu1 %v22963_v15  ;;  %v23041_v14 = vld [vmem:[%s25555_s21 + $0x17f4] ss:$76 sps:$4 sm:$0xff]   ;;  %v23044_v15 = vld [vmem:[%s25555_s21 + $0x924] ss:$76 sps:$4 sm:$0xff]  }
 0x823   : > { %17098 = vmatprep.subr.bf16.mxu0 %v22966_v53  ;;  %v23039_v53 = vld [vmem:[%s25555_s21 + $0x17f0] ss:$76 sps:$4 sm:$0xff]  }
 0x825   : > { %16953 = vmatpush1.bf16.msra.mxu1 %v22961_v4  ;;  %v23042_v4 = vld [vmem:[%s25555_s21 + $0x920] ss:$76 sps:$4 sm:$0xff]  }
 0x826   : > { %17099 = vmatpush1.bf16.msra.mxu0 %v22964_v31  ;;  %16954 = vmatprep.subr.bf16.mxu1 %v22969_v29  ;;  %v23047_v31 = vld [vmem:[%s25555_s21 + $0x188c] ss:$76 sps:$4 sm:$0xff]   ;;  %v23050_v29 = vld [vmem:[%s25555_s21 + $0x9bc] ss:$76 sps:$4 sm:$0xff]  }
 0x827   : > { %17100 = vmatprep.subr.bf16.mxu0 %v22972_v61  ;;  %v23045_v61 = vld [vmem:[%s25555_s21 + $0x1888] ss:$76 sps:$4 sm:$0xff]  }
 0x829   : > { %16955 = vmatpush1.bf16.msra.mxu1 %v22967_v16  ;;  %v23048_v16 = vld [vmem:[%s25555_s21 + $0x9b8] ss:$76 sps:$4 sm:$0xff]  }
 0x82a   : > { %17101 = vmatpush1.bf16.msra.mxu0 %v22970_v56  ;;  %16956 = vmatprep.subr.bf16.mxu1 %v22975_v22  ;;  %v23053_v56 = vld [vmem:[%s25555_s21 + $0x1924] ss:$76 sps:$4 sm:$0xff]   ;;  %v23056_v22 = vld [vmem:[%s25555_s21 + $0xa54] ss:$76 sps:$4 sm:$0xff]  }
 0x82b   : > { %17102 = vmatprep.subr.bf16.mxu0 %v22978_v52  ;;  %v23051_v52 = vld [vmem:[%s25555_s21 + $0x1920] ss:$76 sps:$4 sm:$0xff]  }
 0x82d   : > { %16957 = vmatpush1.bf16.msra.mxu1 %v22973_v18  ;;  %v23054_v18 = vld [vmem:[%s25555_s21 + $0xa50] ss:$76 sps:$4 sm:$0xff]  }
 0x82e   : > { %17103 = vmatpush1.bf16.msra.mxu0 %v22976_v57  ;;  %16958 = vmatprep.subr.bf16.mxu1 %v22981_v23  ;;  %v23059_v57 = vld [vmem:[%s25555_s21 + $0x19bc] ss:$76 sps:$4 sm:$0xff]   ;;  %v23062_v23 = vld [vmem:[%s25555_s21 + $0xaec] ss:$76 sps:$4 sm:$0xff]  }
 0x82f   : > { %17104 = vmatprep.subr.bf16.mxu0 %v22984_v3  ;;  %v23057_v3 = vld [vmem:[%s25555_s21 + $0x19b8] ss:$76 sps:$4 sm:$0xff]  }
 0x831   : > { %16959 = vmatpush1.bf16.msra.mxu1 %v22979_v25  ;;  %v23060_v25 = vld [vmem:[%s25555_s21 + $0xae8] ss:$76 sps:$4 sm:$0xff]  }
 0x832   : > { %17105 = vmatpush1.bf16.msra.mxu0 %v22982_v33  ;;  %16960 = vmatprep.subr.bf16.mxu1 %v22987_v26  ;;  %v23065_v33 = vld [vmem:[%s25555_s21 + $0x1a54] ss:$76 sps:$4 sm:$0xff]   ;;  %v23068_v26 = vld [vmem:[%s25555_s21 + $0xb84] ss:$76 sps:$4 sm:$0xff]  }
 0x833   : > { %17106 = vmatprep.subr.bf16.mxu0 %v22990_v27  ;;  %v23063_v27 = vld [vmem:[%s25555_s21 + $0x1a50] ss:$76 sps:$4 sm:$0xff]  }
 0x835   : > { %16961 = vmatpush1.bf16.msra.mxu1 %v22985_v24  ;;  %v23066_v24 = vld [vmem:[%s25555_s21 + $0xb80] ss:$76 sps:$4 sm:$0xff]  }
 0x836   : > { %17107 = vmatpush1.bf16.msra.mxu0 %v22988_v39  ;;  %16971 = vmatprep.subr.bf16.mxu1 %v22993_v54  ;;  %v23071_v39 = vld [vmem:[%s25555_s21 + $0x1aec] ss:$76 sps:$4 sm:$0xff]   ;;  %v23074_v54 = vld [vmem:[%s25555_s21 + $0xc1c] ss:$76 sps:$4 sm:$0xff]  }
 0x837   : > { %17108 = vmatprep.subr.bf16.mxu0 %v22996_v40  ;;  %v23069_v40 = vld [vmem:[%s25555_s21 + $0x1ae8] ss:$76 sps:$4 sm:$0xff]  }
 0x838   : > { %16963 = vmatmul.mubr.bf16.vlgmr.msra.gmra.mrb[20].mxu1 %v25872_v43 }
 0x839   : > { %16972 = vmatpush1.bf16.msra.mxu1 %v22991_v41  ;;  %17003 = vmatprep.mubr.bf16.mxu1 %v25963_v30  ;;  %v23072_v41 = vld [vmem:[%s25555_s21 + $0xc18] ss:$76 sps:$4 sm:$0xff]  }
 0x83a   : > { %17109 = vmatpush1.bf16.msra.mxu0 %v22994_v44  ;;  %16973 = vmatprep.subr.bf16.mxu1 %v22999_v45  ;;  %v23077_v44 = vld [vmem:[%s25555_s21 + $0x1b84] ss:$76 sps:$4 sm:$0xff]   ;;  %v23080_v45 = vld [vmem:[%s25555_s21 + $0xcb4] ss:$76 sps:$4 sm:$0xff]  }
 0x83b   : > { %17110 = vmatprep.subr.bf16.mxu0 %v23002_v47  ;;  %v23075_v47 = vld [vmem:[%s25555_s21 + $0x1b80] ss:$76 sps:$4 sm:$0xff]  }
 0x83d   : > { %16974 = vmatpush1.bf16.msra.mxu1 %v22997_v32  ;;  %v23078_v32 = vld [vmem:[%s25555_s21 + $0xcb0] ss:$76 sps:$4 sm:$0xff]  }
 0x83e   : > { %17111 = vmatpush1.bf16.msra.mxu0 %v23000_v48  ;;  %16975 = vmatprep.subr.bf16.mxu1 %v23005_v49  ;;  %v23083_v48 = vld [vmem:[%s25555_s21 + $0x1c1c] ss:$76 sps:$4 sm:$0xff]   ;;  %v23086_v49 = vld [vmem:[%s25555_s21 + $0xd4c] ss:$76 sps:$4 sm:$0xff]  }
 0x83f   : > { %17112 = vmatprep.subr.bf16.mxu0 %v23008_v28  ;;  %v23081_v28 = vld [vmem:[%s25555_s21 + $0x1c18] ss:$76 sps:$4 sm:$0xff]  }
 0x841   : > { %16976 = vmatpush1.bf16.msra.mxu1 %v23003_v50  ;;  %v23084_v50 = vld [vmem:[%s25555_s21 + $0xd48] ss:$76 sps:$4 sm:$0xff]  }
 0x842   : > { %17113 = vmatpush1.bf16.msra.mxu0 %v23006_v10  ;;  %16977 = vmatprep.subr.bf16.mxu1 %v23011_v35  ;;  %v23089_v10 = vld [vmem:[%s25555_s21 + $0x1cb4] ss:$76 sps:$4 sm:$0xff]   ;;  %v23092_v35 = vld [vmem:[%s25555_s21 + $0xde4] ss:$76 sps:$4 sm:$0xff]  }
 0x843   : > { %17114 = vmatprep.subr.bf16.mxu0 %v23014_v55  ;;  %v23087_v55 = vld [vmem:[%s25555_s21 + $0x1cb0] ss:$76 sps:$4 sm:$0xff]  }
 0x845   : > { %16978 = vmatpush1.bf16.msra.mxu1 %v23009_v37  ;;  %v23090_v37 = vld [vmem:[%s25555_s21 + $0xde0] ss:$76 sps:$4 sm:$0xff]  }
 0x846   : > { %17115 = vmatpush1.bf16.msra.mxu0 %v23012_v58  ;;  %16979 = vmatprep.subr.bf16.mxu1 %v23017_v59  ;;  %v23095_v58 = vld [vmem:[%s25555_s21 + $0x1d4c] ss:$76 sps:$4 sm:$0xff]   ;;  %v23098_v59 = vld [vmem:[%s25555_s21 + $0xe7c] ss:$76 sps:$4 sm:$0xff]  }
 0x847   : > { %17116 = vmatprep.subr.bf16.mxu0 %v23020_v36  ;;  %v23093_v36 = vld [vmem:[%s25555_s21 + $0x1d48] ss:$76 sps:$4 sm:$0xff]  }
 0x849   : > { %16980 = vmatpush1.bf16.msra.mxu1 %v23015_v62  ;;  %v23096_v62 = vld [vmem:[%s25555_s21 + $0xe78] ss:$76 sps:$4 sm:$0xff]  }
 0x84a   : > { %17117 = vmatpush1.bf16.msra.mxu0 %v23018_v63  ;;  %16981 = vmatprep.subr.bf16.mxu1 %v23023_v42  ;;  %v23101_v63 = vld [vmem:[%s25555_s21 + $0x1de4] ss:$76 sps:$4 sm:$0xff]   ;;  %v23104_v42 = vld [vmem:[%s25555_s21 + $0xf14] ss:$76 sps:$4 sm:$0xff]  }
 0x84b   : > { %17118 = vmatprep.subr.bf16.mxu0 %v23026_v0  ;;  %v23099_v0 = vld [vmem:[%s25555_s21 + $0x1de0] ss:$76 sps:$4 sm:$0xff]  }
 0x84d   : > { %16982 = vmatpush1.bf16.msra.mxu1 %v23021_v1  ;;  %v23102_v1 = vld [vmem:[%s25555_s21 + $0xf10] ss:$76 sps:$4 sm:$0xff]  }
 0x84e   : > { %17119 = vmatpush1.bf16.msra.mxu0 %v23024_v46  ;;  %16983 = vmatprep.subr.bf16.mxu1 %v23029_v2  ;;  %v23107_v46 = vld [vmem:[%s25555_s21 + $0x1e7c] ss:$76 sps:$4 sm:$0xff]   ;;  %v23110_v2 = vld [vmem:[%s25555_s21 + $0xfac] ss:$76 sps:$4 sm:$0xff]  }
 0x84f   : > { %17120 = vmatprep.subr.bf16.mxu0 %v23032_v5  ;;  %v23105_v5 = vld [vmem:[%s25555_s21 + $0x1e78] ss:$76 sps:$4 sm:$0xff]  }
 0x851   : > { %16984 = vmatpush1.bf16.msra.mxu1 %v23027_v6  ;;  %v23108_v6 = vld [vmem:[%s25555_s21 + $0xfa8] ss:$76 sps:$4 sm:$0xff]  }
 0x852   : > { %17121 = vmatpush1.bf16.msra.mxu0 %v23030_v7  ;;  %16985 = vmatprep.subr.bf16.mxu1 %v23035_v9  ;;  %v23113_v7 = vld [vmem:[%s25555_s21 + $0x1f14] ss:$76 sps:$4 sm:$0xff]   ;;  %v23116_v9 = vld [vmem:[%s25555_s21 + $0x1044] ss:$76 sps:$4 sm:$0xff]  }
 0x853   : > { %17122 = vmatprep.subr.bf16.mxu0 %v23038_v21  ;;  %v23111_v21 = vld [vmem:[%s25555_s21 + $0x1f10] ss:$76 sps:$4 sm:$0xff]  }
 0x855   : > { %16986 = vmatpush1.bf16.msra.mxu1 %v23033_v13  ;;  %v23114_v13 = vld [vmem:[%s25555_s21 + $0x1040] ss:$76 sps:$4 sm:$0xff]  }
 0x856   : > { %17123 = vmatpush1.bf16.msra.mxu0 %v23036_v11  ;;  %16987 = vmatprep.subr.bf16.mxu1 %v23041_v14  ;;  %v23119_v11 = vld [vmem:[%s25555_s21 + $0x1fac] ss:$76 sps:$4 sm:$0xff]   ;;  %v23122_v14 = vld [vmem:[%s25555_s21 + $0x10dc] ss:$76 sps:$4 sm:$0xff]  }
 0x857   : > { %17124 = vmatprep.subr.bf16.mxu0 %v23044_v15  ;;  %v23117_v15 = vld [vmem:[%s25555_s21 + $0x1fa8] ss:$76 sps:$4 sm:$0xff]  }
 0x859   : > { %16988 = vmatpush1.bf16.msra.mxu1 %v23039_v53  ;;  %v23120_v53 = vld [vmem:[%s25555_s21 + $0x10d8] ss:$76 sps:$4 sm:$0xff]  }
 0x85a   : > { %17125 = vmatpush1.bf16.msra.mxu0 %v23042_v4  ;;  %16989 = vmatprep.subr.bf16.mxu1 %v23047_v31  ;;  %v23125_v4 = vld [vmem:[%s25555_s21 + $0x2044] ss:$76 sps:$4 sm:$0xff]  }
 0x85b   : > { %17135 = vmatprep.subr.bf16.mxu0 %v23050_v29  ;;  %v23128_v29 = vld [vmem:[%s25555_s21 + $0x1174] ss:$76 sps:$4 sm:$0xff]  }
 0x85d   : > { %16990 = vmatpush1.bf16.msra.mxu1 %v23045_v61  ;;  %17127 = vmatmul.mubr.bf16.vlgmr.msra.gmra.mrb[24].mxu0 %v25793_v17 }
 0x85e   : > { %17136 = vmatpush1.bf16.msra.mxu0 %v23048_v16  ;;  %17167 = vmatprep.mubr.bf16.mxu0 %v25796_v19 }
 0x85f   : > { %16991 = vmatprep.subr.bf16.mxu1 %v23053_v56  ;;  %17137 = vmatprep.subr.bf16.mxu0 %v23056_v22  ;;  %v23123_v22 = vld [vmem:[%s25555_s21 + $0x2040] ss:$76 sps:$4 sm:$0xff]  }
 0x861   : > { %16992 = vmatpush1.bf16.msra.mxu1 %v23051_v52 }
 0x862   : > { %17138 = vmatpush1.bf16.msra.mxu0 %v23054_v18  ;;  %16993 = vmatprep.subr.bf16.mxu1 %v23059_v57  ;;  %v23126_v18 = vld [vmem:[%s25555_s21 + $0x1170] ss:$76 sps:$4 sm:$0xff]  }
 0x863   : > { %17139 = vmatprep.subr.bf16.mxu0 %v23062_v23  ;;  %v23131_v57 = vld [vmem:[%s25555_s21 + $0x20dc] ss:$76 sps:$4 sm:$0xff]   ;;  %v23134_v23 = vld [vmem:[%s25555_s21 + $0x120c] ss:$76 sps:$4 sm:$0xff]  }
 0x865   : > { %16994 = vmatpush1.bf16.msra.mxu1 %v23057_v3  ;;  %v23129_v3 = vld [vmem:[%s25555_s21 + $0x20d8] ss:$76 sps:$4 sm:$0xff]  }
 0x866   : > { %17140 = vmatpush1.bf16.msra.mxu0 %v23060_v25  ;;  %16995 = vmatprep.subr.bf16.mxu1 %v23065_v33  ;;  %v23132_v25 = vld [vmem:[%s25555_s21 + $0x1208] ss:$76 sps:$4 sm:$0xff]  }
 0x867   : > { %17141 = vmatprep.subr.bf16.mxu0 %v23068_v26  ;;  %v23137_v33 = vld [vmem:[%s25555_s21 + $0x2174] ss:$76 sps:$4 sm:$0xff]   ;;  %v23140_v26 = vld [vmem:[%s25555_s21 + $0x12a4] ss:$76 sps:$4 sm:$0xff]  }
 0x869   : > { %16996 = vmatpush1.bf16.msra.mxu1 %v23063_v27  ;;  %v23135_v27 = vld [vmem:[%s25555_s21 + $0x2170] ss:$76 sps:$4 sm:$0xff]  }
 0x86a   : > { %17142 = vmatpush1.bf16.msra.mxu0 %v23066_v24  ;;  %16997 = vmatprep.subr.bf16.mxu1 %v23071_v39  ;;  %v23138_v24 = vld [vmem:[%s25555_s21 + $0x12a0] ss:$76 sps:$4 sm:$0xff]  }
 0x86b   : > { %17143 = vmatprep.subr.bf16.mxu0 %v23074_v54  ;;  %v23143_v39 = vld [vmem:[%s25555_s21 + $0x220c] ss:$76 sps:$4 sm:$0xff]   ;;  %v23146_v54 = vld [vmem:[%s25555_s21 + $0x133c] ss:$76 sps:$4 sm:$0xff]  }
 0x86d   : > { %16998 = vmatpush1.bf16.msra.mxu1 %v23069_v40  ;;  %v23141_v40 = vld [vmem:[%s25555_s21 + $0x2208] ss:$76 sps:$4 sm:$0xff]  }
 0x86e   : > { %17144 = vmatpush1.bf16.msra.mxu0 %v23072_v41  ;;  %16999 = vmatprep.subr.bf16.mxu1 %v23077_v44  ;;  %v23144_v41 = vld [vmem:[%s25555_s21 + $0x1338] ss:$76 sps:$4 sm:$0xff]  }
 0x86f   : > { %17145 = vmatprep.subr.bf16.mxu0 %v23080_v45  ;;  %v23149_v44 = vld [vmem:[%s25555_s21 + $0x22a4] ss:$76 sps:$4 sm:$0xff]   ;;  %v23152_v45 = vld [vmem:[%s25555_s21 + $0x13d4] ss:$76 sps:$4 sm:$0xff]  }
 0x871   : > { %17000 = vmatpush1.bf16.msra.mxu1 %v23075_v47  ;;  %v23147_v47 = vld [vmem:[%s25555_s21 + $0x22a0] ss:$76 sps:$4 sm:$0xff]  }
 0x872   : > { %17146 = vmatpush1.bf16.msra.mxu0 %v23078_v32  ;;  %17001 = vmatprep.subr.bf16.mxu1 %v23083_v48  ;;  %v23150_v32 = vld [vmem:[%s25555_s21 + $0x13d0] ss:$76 sps:$4 sm:$0xff]  }
 0x873   : > { %17147 = vmatprep.subr.bf16.mxu0 %v23086_v49  ;;  %v23155_v48 = vld [vmem:[%s25555_s21 + $0x233c] ss:$76 sps:$4 sm:$0xff]   ;;  %v23158_v49 = vld [vmem:[%s25555_s21 + $0x146c] ss:$76 sps:$4 sm:$0xff]  }
 0x875   : > { %17002 = vmatpush1.bf16.msra.mxu1 %v23081_v28  ;;  %v23153_v28 = vld [vmem:[%s25555_s21 + $0x2338] ss:$76 sps:$4 sm:$0xff]  }
 0x876   : > { %17148 = vmatpush1.bf16.msra.mxu0 %v23084_v50  ;;  %17012 = vmatprep.subr.bf16.mxu1 %v23089_v10  ;;  %v23156_v50 = vld [vmem:[%s25555_s21 + $0x1468] ss:$76 sps:$4 sm:$0xff]  }
 0x877   : > { %17149 = vmatprep.subr.bf16.mxu0 %v23092_v35  ;;  %v23161_v10 = vld [vmem:[%s25555_s21 + $0x23d4] ss:$76 sps:$4 sm:$0xff]   ;;  %v23164_v35 = vld [vmem:[%s25555_s21 + $0x1504] ss:$76 sps:$4 sm:$0xff]  }
 0x878   : > { %17004 = vmatmul.mubr.bf16.vlgmr.msra.gmra.mrb[20].mxu1 %v25967_v34 }
 0x879   : > { %17013 = vmatpush1.bf16.msra.mxu1 %v23087_v55  ;;  %17044 = vmatprep.mubr.bf16.mxu1 %v25972_v38  ;;  %v23159_v55 = vld [vmem:[%s25555_s21 + $0x23d0] ss:$76 sps:$4 sm:$0xff]  }
 0x87a   : > { %17150 = vmatpush1.bf16.msra.mxu0 %v23090_v37  ;;  %17014 = vmatprep.subr.bf16.mxu1 %v23095_v58  ;;  %v23162_v37 = vld [vmem:[%s25555_s21 + $0x1500] ss:$76 sps:$4 sm:$0xff]  }
 0x87b   : > { %17151 = vmatprep.subr.bf16.mxu0 %v23098_v59  ;;  %v23167_v58 = vld [vmem:[%s25555_s21 + $0x246c] ss:$76 sps:$4 sm:$0xff]   ;;  %v23170_v59 = vld [vmem:[%s25555_s21 + $0x159c] ss:$76 sps:$4 sm:$0xff]  }
 0x87d   : > { %17015 = vmatpush1.bf16.msra.mxu1 %v23093_v36  ;;  %v23165_v36 = vld [vmem:[%s25555_s21 + $0x2468] ss:$76 sps:$4 sm:$0xff]  }
 0x87e   : > { %17152 = vmatpush1.bf16.msra.mxu0 %v23096_v62  ;;  %17016 = vmatprep.subr.bf16.mxu1 %v23101_v63  ;;  %v23168_v62 = vld [vmem:[%s25555_s21 + $0x1598] ss:$76 sps:$4 sm:$0xff]  }
 0x87f   : > { %17153 = vmatprep.subr.bf16.mxu0 %v23104_v42  ;;  %v23173_v63 = vld [vmem:[%s25555_s21 + $0x2504] ss:$76 sps:$4 sm:$0xff]   ;;  %v23176_v42 = vld [vmem:[%s25555_s21 + $0x1634] ss:$76 sps:$4 sm:$0xff]  }
 0x881   : > { %17017 = vmatpush1.bf16.msra.mxu1 %v23099_v0  ;;  %v23171_v0 = vld [vmem:[%s25555_s21 + $0x2500] ss:$76 sps:$4 sm:$0xff]  }
 0x882   : > { %17154 = vmatpush1.bf16.msra.mxu0 %v23102_v1  ;;  %17018 = vmatprep.subr.bf16.mxu1 %v23107_v46  ;;  %v23174_v1 = vld [vmem:[%s25555_s21 + $0x1630] ss:$76 sps:$4 sm:$0xff]  }
 0x883   : > { %17155 = vmatprep.subr.bf16.mxu0 %v23110_v2  ;;  %v23179_v46 = vld [vmem:[%s25555_s21 + $0x259c] ss:$76 sps:$4 sm:$0xff]   ;;  %v23182_v2 = vld [vmem:[%s25555_s21 + $0x16cc] ss:$76 sps:$4 sm:$0xff]  }
 0x885   : > { %17019 = vmatpush1.bf16.msra.mxu1 %v23105_v5  ;;  %v23177_v5 = vld [vmem:[%s25555_s21 + $0x2598] ss:$76 sps:$4 sm:$0xff]  }
 0x886   : > { %17156 = vmatpush1.bf16.msra.mxu0 %v23108_v6  ;;  %17020 = vmatprep.subr.bf16.mxu1 %v23113_v7  ;;  %v23180_v6 = vld [vmem:[%s25555_s21 + $0x16c8] ss:$76 sps:$4 sm:$0xff]  }
 0x887   : > { %17157 = vmatprep.subr.bf16.mxu0 %v23116_v9  ;;  %v23185_v7 = vld [vmem:[%s25555_s21 + $0x2634] ss:$76 sps:$4 sm:$0xff]   ;;  %v23188_v9 = vld [vmem:[%s25555_s21 + $0x1764] ss:$76 sps:$4 sm:$0xff]  }
 0x889   : > { %17021 = vmatpush1.bf16.msra.mxu1 %v23111_v21  ;;  %v23183_v21 = vld [vmem:[%s25555_s21 + $0x2630] ss:$76 sps:$4 sm:$0xff]  }
 0x88a   : > { %17158 = vmatpush1.bf16.msra.mxu0 %v23114_v13  ;;  %17022 = vmatprep.subr.bf16.mxu1 %v23119_v11  ;;  %v23186_v13 = vld [vmem:[%s25555_s21 + $0x1760] ss:$76 sps:$4 sm:$0xff]  }
 0x88b   : > { %v27126_v31 = vpop.f32.mrb[16].mxu1  ;;  %17159 = vmatprep.subr.bf16.mxu0 %v23122_v14  ;;  %v23191_v11 = vld [vmem:[%s25555_s21 + $0x26cc] ss:$76 sps:$4 sm:$0xff]   ;;  %v23194_v14 = vld [vmem:[%s25555_s21 + $0x17fc] ss:$76 sps:$4 sm:$0xff]  }
 0x88c   : > { %v27129_v61 = vpop.f32.mrb[17].mxu1 }
 0x88d   : > { %v17757_v16 = vcombine.low %v27126_v31, %v27129_v61  ;;  %v16681_v56 = vpop.f32.mrb[18].mxu1  ;;  %17023 = vmatpush1.bf16.msra.mxu1 %v23117_v15  ;;  %v23189_v15 = vld [vmem:[%s25555_s21 + $0x26c8] ss:$76 sps:$4 sm:$0xff]   ;;  %v23285_v31 = vld [vmem:[%s25555_s21 + $0xd8] ss:$76 sps:$4 sm:$0xff]  }
 0x88e   : > { %v16682_v52 = vpop.f32.mrb[19].mxu1  ;;  %17160 = vmatpush1.bf16.msra.mxu0 %v23120_v53  ;;  %17024 = vmatprep.subr.bf16.mxu1 %v23125_v4  ;;  %v23192_v53 = vld [vmem:[%s25555_s21 + $0x17f8] ss:$76 sps:$4 sm:$0xff]   ;;  %v23195_v56 = vld [vmem:[%s25555_s21 + $0x2760] ss:$76 sps:$4 sm:$0xff]  }
 0x88f   : > { %17161 = vmatprep.subr.bf16.mxu0 %v23128_v29  ;;  %v23197_v4 = vld [vmem:[%s25555_s21 + $0x2764] ss:$76 sps:$4 sm:$0xff]   ;;  %v23200_v29 = vld [vmem:[%s25555_s21 + $0x1894] ss:$76 sps:$4 sm:$0xff]   ;;  %v23203_v52 = vld [vmem:[%s25555_s21 + $0x27fc] ss:$76 sps:$4 sm:$0xff]  }
 0x890   : > { %v23288_v61 = vld [vmem:[%s25555_s21 + $0x2178] ss:$76 sps:$4 sm:$0xff]  }
 0x891   : > { %17025 = vmatpush1.bf16.msra.mxu1 %v23123_v22  ;;  %v23198_v22 = vld [vmem:[%s25555_s21 + $0x1890] ss:$76 sps:$4 sm:$0xff]  }
 0x892   : > { %17162 = vmatpush1.bf16.msra.mxu0 %v23126_v18  ;;  %17026 = vmatprep.subr.bf16.mxu1 %v23131_v57  ;;  %v23206_v18 = vld [vmem:[%s25555_s21 + $0x192c] ss:$76 sps:$4 sm:$0xff]  }
 0x893   : > { %17163 = vmatprep.subr.bf16.mxu0 %v23134_v23  ;;  %v23201_v57 = vld [vmem:[%s25555_s21 + $0x27f8] ss:$76 sps:$4 sm:$0xff]   ;;  %v23204_v23 = vld [vmem:[%s25555_s21 + $0x1928] ss:$76 sps:$4 sm:$0xff]  }
 0x895   : > { %17027 = vmatpush1.bf16.msra.mxu1 %v23129_v3  ;;  %v23209_v3 = vld [vmem:[%s25555_s21 + $0x2894] ss:$76 sps:$4 sm:$0xff]  }
 0x896   : > { %17164 = vmatpush1.bf16.msra.mxu0 %v23132_v25  ;;  %17028 = vmatprep.subr.bf16.mxu1 %v23137_v33  ;;  %v23212_v25 = vld [vmem:[%s25555_s21 + $0x19c4] ss:$76 sps:$4 sm:$0xff]  }
 0x897   : > { %17165 = vmatprep.subr.bf16.mxu0 %v23140_v26  ;;  %v23207_v33 = vld [vmem:[%s25555_s21 + $0x2890] ss:$76 sps:$4 sm:$0xff]   ;;  %v23210_v26 = vld [vmem:[%s25555_s21 + $0x19c0] ss:$76 sps:$4 sm:$0xff]  }
 0x899   : > { %17029 = vmatpush1.bf16.msra.mxu1 %v23135_v27  ;;  %v23215_v27 = vld [vmem:[%s25555_s21 + $0x292c] ss:$76 sps:$4 sm:$0xff]  }
 0x89a   : > { %17166 = vmatpush1.bf16.msra.mxu0 %v23138_v24  ;;  %17030 = vmatprep.subr.bf16.mxu1 %v23143_v39  ;;  %v23218_v24 = vld [vmem:[%s25555_s21 + $0x1a5c] ss:$76 sps:$4 sm:$0xff]  }
 0x89b   : > { %17176 = vmatprep.subr.bf16.mxu0 %v23146_v54  ;;  %v23213_v39 = vld [vmem:[%s25555_s21 + $0x2928] ss:$76 sps:$4 sm:$0xff]   ;;  %v23216_v54 = vld [vmem:[%s25555_s21 + $0x1a58] ss:$76 sps:$4 sm:$0xff]  }
 0x89d   : > { %17031 = vmatpush1.bf16.msra.mxu1 %v23141_v40  ;;  %17168 = vmatmul.mubr.bf16.vlgmr.msra.gmra.mrb[24].mxu0 %v25872_v43  ;;  %v23221_v40 = vld [vmem:[%s25555_s21 + $0x29c4] ss:$76 sps:$4 sm:$0xff]  }
 0x89e   : > { %17177 = vmatpush1.bf16.msra.mxu0 %v23144_v41  ;;  %17208 = vmatprep.mubr.bf16.mxu0 %v25963_v30  ;;  %v23224_v41 = vld [vmem:[%s25555_s21 + $0x1af4] ss:$76 sps:$4 sm:$0xff]  }
 0x89f   : > { %17032 = vmatprep.subr.bf16.mxu1 %v23149_v44  ;;  %17178 = vmatprep.subr.bf16.mxu0 %v23152_v45  ;;  %v23219_v44 = vld [vmem:[%s25555_s21 + $0x29c0] ss:$76 sps:$4 sm:$0xff]   ;;  %v23222_v45 = vld [vmem:[%s25555_s21 + $0x1af0] ss:$76 sps:$4 sm:$0xff]  }
 0x8a1   : > { %17033 = vmatpush1.bf16.msra.mxu1 %v23147_v47  ;;  %v23227_v47 = vld [vmem:[%s25555_s21 + $0x2a5c] ss:$76 sps:$4 sm:$0xff]  }
 0x8a2   : > { %17179 = vmatpush1.bf16.msra.mxu0 %v23150_v32  ;;  %17034 = vmatprep.subr.bf16.mxu1 %v23155_v48  ;;  %v23230_v32 = vld [vmem:[%s25555_s21 + $0x1b8c] ss:$76 sps:$4 sm:$0xff]  }
 0x8a3   : > { %17180 = vmatprep.subr.bf16.mxu0 %v23158_v49  ;;  %v23225_v48 = vld [vmem:[%s25555_s21 + $0x2a58] ss:$76 sps:$4 sm:$0xff]   ;;  %v23228_v49 = vld [vmem:[%s25555_s21 + $0x1b88] ss:$76 sps:$4 sm:$0xff]  }
 0x8a5   : > { %17035 = vmatpush1.bf16.msra.mxu1 %v23153_v28  ;;  %v23233_v28 = vld [vmem:[%s25555_s21 + $0x2af4] ss:$76 sps:$4 sm:$0xff]  }
 0x8a6   : > { %17181 = vmatpush1.bf16.msra.mxu0 %v23156_v50  ;;  %17036 = vmatprep.subr.bf16.mxu1 %v23161_v10  ;;  %v23236_v50 = vld [vmem:[%s25555_s21 + $0x1c24] ss:$76 sps:$4 sm:$0xff]  }
 0x8a7   : > { %17182 = vmatprep.subr.bf16.mxu0 %v23164_v35  ;;  %v23231_v10 = vld [vmem:[%s25555_s21 + $0x2af0] ss:$76 sps:$4 sm:$0xff]   ;;  %v23234_v35 = vld [vmem:[%s25555_s21 + $0x1c20] ss:$76 sps:$4 sm:$0xff]  }
 0x8a9   : > { %17037 = vmatpush1.bf16.msra.mxu1 %v23159_v55  ;;  %v23239_v55 = vld [vmem:[%s25555_s21 + $0x2b8c] ss:$76 sps:$4 sm:$0xff]  }
 0x8aa   : > { %17183 = vmatpush1.bf16.msra.mxu0 %v23162_v37  ;;  %17038 = vmatprep.subr.bf16.mxu1 %v23167_v58  ;;  %v23242_v37 = vld [vmem:[%s25555_s21 + $0x1cbc] ss:$76 sps:$4 sm:$0xff]  }
 0x8ab   : > { %17184 = vmatprep.subr.bf16.mxu0 %v23170_v59  ;;  %v23237_v58 = vld [vmem:[%s25555_s21 + $0x2b88] ss:$76 sps:$4 sm:$0xff]   ;;  %v23240_v59 = vld [vmem:[%s25555_s21 + $0x1cb8] ss:$76 sps:$4 sm:$0xff]  }
 0x8ad   : > { %17039 = vmatpush1.bf16.msra.mxu1 %v23165_v36  ;;  %v23245_v36 = vld [vmem:[%s25555_s21 + $0x2c24] ss:$76 sps:$4 sm:$0xff]  }
 0x8ae   : > { %17185 = vmatpush1.bf16.msra.mxu0 %v23168_v62  ;;  %17040 = vmatprep.subr.bf16.mxu1 %v23173_v63  ;;  %v23248_v62 = vld [vmem:[%s25555_s21 + $0x1d54] ss:$76 sps:$4 sm:$0xff]  }
 0x8af   : > { %17186 = vmatprep.subr.bf16.mxu0 %v23176_v42  ;;  %v23243_v63 = vld [vmem:[%s25555_s21 + $0x2c20] ss:$76 sps:$4 sm:$0xff]   ;;  %v23246_v42 = vld [vmem:[%s25555_s21 + $0x1d50] ss:$76 sps:$4 sm:$0xff]  }
 0x8b1   : > { %17041 = vmatpush1.bf16.msra.mxu1 %v23171_v0  ;;  %v23251_v0 = vld [vmem:[%s25555_s21 + $0x2cbc] ss:$76 sps:$4 sm:$0xff]  }
 0x8b2   : > { %17187 = vmatpush1.bf16.msra.mxu0 %v23174_v1  ;;  %17042 = vmatprep.subr.bf16.mxu1 %v23179_v46  ;;  %v23254_v1 = vld [vmem:[%s25555_s21 + $0x1dec] ss:$76 sps:$4 sm:$0xff]  }
 0x8b3   : > { %17188 = vmatprep.subr.bf16.mxu0 %v23182_v2  ;;  %v23249_v46 = vld [vmem:[%s25555_s21 + $0x2cb8] ss:$76 sps:$4 sm:$0xff]   ;;  %v23252_v2 = vld [vmem:[%s25555_s21 + $0x1de8] ss:$76 sps:$4 sm:$0xff]  }
 0x8b5   : > { %17043 = vmatpush1.bf16.msra.mxu1 %v23177_v5  ;;  %v23257_v5 = vld [vmem:[%s25555_s21 + $0x2d54] ss:$76 sps:$4 sm:$0xff]  }
 0x8b6   : > { %17189 = vmatpush1.bf16.msra.mxu0 %v23180_v6  ;;  %17053 = vmatprep.subr.bf16.mxu1 %v23185_v7  ;;  %v23260_v6 = vld [vmem:[%s25555_s21 + $0x1e84] ss:$76 sps:$4 sm:$0xff]  }
 0x8b7   : > { %17190 = vmatprep.subr.bf16.mxu0 %v23188_v9  ;;  %v23255_v7 = vld [vmem:[%s25555_s21 + $0x2d50] ss:$76 sps:$4 sm:$0xff]   ;;  %v23258_v9 = vld [vmem:[%s25555_s21 + $0x1e80] ss:$76 sps:$4 sm:$0xff]  }
 0x8b8   : > { %17045 = vmatmul.mubr.bf16.vlgmr.msra.gmra.mrb[20].mxu1 %v26041_v51 }
 0x8b9   : > { %17054 = vmatpush1.bf16.msra.mxu1 %v23183_v21  ;;  %17085 = vmatprep.mubr.bf16.mxu1 %v26183_v20  ;;  %v23263_v21 = vld [vmem:[%s25555_s21 + $0x2dec] ss:$76 sps:$4 sm:$0xff]  }
 0x8ba   : > { %17191 = vmatpush1.bf16.msra.mxu0 %v23186_v13  ;;  %17055 = vmatprep.subr.bf16.mxu1 %v23191_v11  ;;  %v23266_v13 = vld [vmem:[%s25555_s21 + $0x1f1c] ss:$76 sps:$4 sm:$0xff]  }
 0x8bb   : > { %17192 = vmatprep.subr.bf16.mxu0 %v23194_v14  ;;  %v23261_v11 = vld [vmem:[%s25555_s21 + $0x2de8] ss:$76 sps:$4 sm:$0xff]   ;;  %v23264_v14 = vld [vmem:[%s25555_s21 + $0x1f18] ss:$76 sps:$4 sm:$0xff]  }
 0x8bd   : > { %17056 = vmatpush1.bf16.msra.mxu1 %v23189_v15  ;;  %v23269_v15 = vld [vmem:[%s25555_s21 + $0x2e84] ss:$76 sps:$4 sm:$0xff]  }
 0x8be   : > { %17193 = vmatpush1.bf16.msra.mxu0 %v23192_v53  ;;  %17057 = vmatprep.subr.bf16.mxu1 %v23197_v4  ;;  %v23272_v53 = vld [vmem:[%s25555_s21 + $0x1fb4] ss:$76 sps:$4 sm:$0xff]  }
 0x8bf   : > { %17194 = vmatprep.subr.bf16.mxu0 %v23200_v29  ;;  %v23267_v4 = vld [vmem:[%s25555_s21 + $0x2e80] ss:$76 sps:$4 sm:$0xff]   ;;  %v23270_v29 = vld [vmem:[%s25555_s21 + $0x1fb0] ss:$76 sps:$4 sm:$0xff]  }
 0x8c1   : > { %17058 = vmatpush1.bf16.msra.mxu1 %v23195_v56  ;;  %v23275_v56 = vld [vmem:[%s25555_s21 + $0x2f1c] ss:$76 sps:$4 sm:$0xff]  }
 0x8c2   : > { %17195 = vmatpush1.bf16.msra.mxu0 %v23198_v22  ;;  %17059 = vmatprep.subr.bf16.mxu1 %v23203_v52  ;;  %v23278_v22 = vld [vmem:[%s25555_s21 + $0x204c] ss:$76 sps:$4 sm:$0xff]  }
 0x8c3   : > { %17196 = vmatprep.subr.bf16.mxu0 %v23206_v18 }
 0x8c5   : > { %17060 = vmatpush1.bf16.msra.mxu1 %v23201_v57  ;;  %v23273_v57 = vld [vmem:[%s25555_s21 + $0x2f18] ss:$76 sps:$4 sm:$0xff]  }
 0x8c6   : > { %17197 = vmatpush1.bf16.msra.mxu0 %v23204_v23  ;;  %17061 = vmatprep.subr.bf16.mxu1 %v23209_v3 }
 0x8c7   : > { %17198 = vmatprep.subr.bf16.mxu0 %v23212_v25  ;;  %v23276_v25 = vld [vmem:[%s25555_s21 + $0x2048] ss:$76 sps:$4 sm:$0xff]  }
 0x8c9   : > { %17062 = vmatpush1.bf16.msra.mxu1 %v23207_v33  ;;  %v23281_v33 = vld [vmem:[%s25555_s21 + $0x44] ss:$76 sps:$4 sm:$0xff]  }
 0x8ca   : > { %17199 = vmatpush1.bf16.msra.mxu0 %v23210_v26  ;;  %17063 = vmatprep.subr.bf16.mxu1 %v23215_v27  ;;  %v23284_v27 = vld [vmem:[%s25555_s21 + $0x20e4] ss:$76 sps:$4 sm:$0xff]  }
 0x8cb   : > { %17200 = vmatprep.subr.bf16.mxu0 %v23218_v24  ;;  %v17765_v24 = vrot.slane %v17757_v16, %v25085_v8  ;;  %v23293_v16 = vld [vmem:[%s25555_s21 + $0x174] ss:$76 sps:$4 sm:$0xff]  }
 0x8cd   : > { %17064 = vmatpush1.bf16.msra.mxu1 %v23213_v39 }
 0x8ce   : > { %17201 = vmatpush1.bf16.msra.mxu0 %v23216_v54  ;;  %17065 = vmatprep.subr.bf16.mxu1 %v23221_v40  ;;  %v23279_v54 = vld [vmem:[%s25555_s21 + $0x40] ss:$76 sps:$4 sm:$0xff]  }
 0x8cf   : > { %17202 = vmatprep.subr.bf16.mxu0 %v23224_v41  ;;  %v23282_v41 = vld [vmem:[%s25555_s21 + $0x20e0] ss:$76 sps:$4 sm:$0xff]  }
 0x8d1   : > { %17066 = vmatpush1.bf16.msra.mxu1 %v23219_v44  ;;  %v23287_v44 = vld [vmem:[%s25555_s21 + $0xdc] ss:$76 sps:$4 sm:$0xff]  }
 0x8d2   : > { %17203 = vmatpush1.bf16.msra.mxu0 %v23222_v45  ;;  %17067 = vmatprep.subr.bf16.mxu1 %v23227_v47  ;;  %v23290_v45 = vld [vmem:[%s25555_s21 + $0x217c] ss:$76 sps:$4 sm:$0xff]   ;;  %v23296_v47 = vld [vmem:[%s25555_s21 + $0x2214] ss:$76 sps:$4 sm:$0xff]  }
 0x8d3   : > { %17204 = vmatprep.subr.bf16.mxu0 %v23230_v32  ;;  %v23291_v32 = vld [vmem:[%s25555_s21 + $0x170] ss:$76 sps:$4 sm:$0xff]  }
 0x8d5   : > { %17068 = vmatpush1.bf16.msra.mxu1 %v23225_v48  ;;  %v23294_v48 = vld [vmem:[%s25555_s21 + $0x2210] ss:$76 sps:$4 sm:$0xff]  }
 0x8d6   : > { %17205 = vmatpush1.bf16.msra.mxu0 %v23228_v49  ;;  %17069 = vmatprep.subr.bf16.mxu1 %v23233_v28  ;;  %v23299_v49 = vld [vmem:[%s25555_s21 + $0x20c] ss:$76 sps:$4 sm:$0xff]  }
 0x8d7   : > { %17206 = vmatprep.subr.bf16.mxu0 %v23236_v50  ;;  %v23302_v28 = vld [vmem:[%s25555_s21 + $0x22ac] ss:$76 sps:$4 sm:$0xff]   ;;  %v23297_v50 = vld [vmem:[%s25555_s21 + $0x208] ss:$76 sps:$4 sm:$0xff]  }
 0x8d9   : > { %17070 = vmatpush1.bf16.msra.mxu1 %v23231_v10 }
 0x8da   : > { %17207 = vmatpush1.bf16.msra.mxu0 %v23234_v35  ;;  %17071 = vmatprep.subr.bf16.mxu1 %v23239_v55  ;;  %v23300_v35 = vld [vmem:[%s25555_s21 + $0x22a8] ss:$76 sps:$4 sm:$0xff]   ;;  %v23305_v55 = vld [vmem:[%s25555_s21 + $0x2a4] ss:$76 sps:$4 sm:$0xff]  }
 0x8db   : > { %17217 = vmatprep.subr.bf16.mxu0 %v23242_v37  ;;  %v23308_v37 = vld [vmem:[%s25555_s21 + $0x2344] ss:$76 sps:$4 sm:$0xff]  }
 0x8dd   : > { %17072 = vmatpush1.bf16.msra.mxu1 %v23237_v58  ;;  %17209 = vmatmul.mubr.bf16.vlgmr.msra.gmra.mrb[24].mxu0 %v25967_v34  ;;  %v23303_v58 = vld [vmem:[%s25555_s21 + $0x2a0] ss:$76 sps:$4 sm:$0xff]  }
 0x8de   : > { %17218 = vmatpush1.bf16.msra.mxu0 %v23240_v59  ;;  %17249 = vmatprep.mubr.bf16.mxu0 %v25972_v38  ;;  %v23306_v59 = vld [vmem:[%s25555_s21 + $0x2340] ss:$76 sps:$4 sm:$0xff]  }
 0x8df   : > { %17073 = vmatprep.subr.bf16.mxu1 %v23245_v36  ;;  %17219 = vmatprep.subr.bf16.mxu0 %v23248_v62  ;;  %v23311_v36 = vld [vmem:[%s25555_s21 + $0x33c] ss:$76 sps:$4 sm:$0xff]  }
 0x8e0   : > { %v23314_v62 = vld [vmem:[%s25555_s21 + $0x23dc] ss:$76 sps:$4 sm:$0xff]  }
 0x8e1   : > { %17074 = vmatpush1.bf16.msra.mxu1 %v23243_v63  ;;  %v23309_v63 = vld [vmem:[%s25555_s21 + $0x338] ss:$76 sps:$4 sm:$0xff]  }
 0x8e2   : > { %17220 = vmatpush1.bf16.msra.mxu0 %v23246_v42  ;;  %17075 = vmatprep.subr.bf16.mxu1 %v23251_v0  ;;  %v23312_v42 = vld [vmem:[%s25555_s21 + $0x23d8] ss:$76 sps:$4 sm:$0xff]   ;;  %v23317_v0 = vld [vmem:[%s25555_s21 + $0x3d4] ss:$76 sps:$4 sm:$0xff]  }
 0x8e3   : > { %17221 = vmatprep.subr.bf16.mxu0 %v23254_v1  ;;  %v23320_v1 = vld [vmem:[%s25555_s21 + $0x2474] ss:$76 sps:$4 sm:$0xff]  }
 0x8e5   : > { %17076 = vmatpush1.bf16.msra.mxu1 %v23249_v46  ;;  %v23315_v46 = vld [vmem:[%s25555_s21 + $0x3d0] ss:$76 sps:$4 sm:$0xff]  }
 0x8e6   : > { %17222 = vmatpush1.bf16.msra.mxu0 %v23252_v2  ;;  %17077 = vmatprep.subr.bf16.mxu1 %v23257_v5  ;;  %v23318_v2 = vld [vmem:[%s25555_s21 + $0x2470] ss:$76 sps:$4 sm:$0xff]   ;;  %v23323_v5 = vld [vmem:[%s25555_s21 + $0x46c] ss:$76 sps:$4 sm:$0xff]  }
 0x8e7   : > { %17223 = vmatprep.subr.bf16.mxu0 %v23260_v6  ;;  %v23326_v6 = vld [vmem:[%s25555_s21 + $0x250c] ss:$76 sps:$4 sm:$0xff]  }
 0x8e9   : > { %17078 = vmatpush1.bf16.msra.mxu1 %v23255_v7  ;;  %v23321_v7 = vld [vmem:[%s25555_s21 + $0x468] ss:$76 sps:$4 sm:$0xff]  }
 0x8ea   : > { %17224 = vmatpush1.bf16.msra.mxu0 %v23258_v9  ;;  %17079 = vmatprep.subr.bf16.mxu1 %v23263_v21  ;;  %v23324_v9 = vld [vmem:[%s25555_s21 + $0x2508] ss:$76 sps:$4 sm:$0xff]   ;;  %v23329_v21 = vld [vmem:[%s25555_s21 + $0x504] ss:$76 sps:$4 sm:$0xff]  }
 0x8eb   : > { %17225 = vmatprep.subr.bf16.mxu0 %v23266_v13  ;;  %v23332_v13 = vld [vmem:[%s25555_s21 + $0x25a4] ss:$76 sps:$4 sm:$0xff]  }
 0x8ed   : > { %17080 = vmatpush1.bf16.msra.mxu1 %v23261_v11  ;;  %v23327_v11 = vld [vmem:[%s25555_s21 + $0x500] ss:$76 sps:$4 sm:$0xff]  }
 0x8ee   : > { %17226 = vmatpush1.bf16.msra.mxu0 %v23264_v14  ;;  %17081 = vmatprep.subr.bf16.mxu1 %v23269_v15  ;;  %v23330_v14 = vld [vmem:[%s25555_s21 + $0x25a0] ss:$76 sps:$4 sm:$0xff]   ;;  %v23335_v15 = vld [vmem:[%s25555_s21 + $0x59c] ss:$76 sps:$4 sm:$0xff]  }
 0x8ef   : > { %17227 = vmatprep.subr.bf16.mxu0 %v23272_v53  ;;  %v23338_v53 = vld [vmem:[%s25555_s21 + $0x263c] ss:$76 sps:$4 sm:$0xff]  }
 0x8f0   : > { %v16882_v52 = vpop.f32.mrb[20].mxu0 }
 0x8f1   : > { %v16884_v18 = vpop.f32.mrb[21].mxu0  ;;  %17082 = vmatpush1.bf16.msra.mxu1 %v23267_v4  ;;  %v23333_v4 = vld [vmem:[%s25555_s21 + $0x598] ss:$76 sps:$4 sm:$0xff]  }
 0x8f2   : > { %v17758_v23 = vcombine.low %v16882_v52, %v16884_v18  ;;  %v16886_v3 = vpop.f32.mrb[22].mxu0  ;;  %17228 = vmatpush1.bf16.msra.mxu0 %v23270_v29  ;;  %17083 = vmatprep.subr.bf16.mxu1 %v23275_v56  ;;  %v23336_v29 = vld [vmem:[%s25555_s21 + $0x2638] ss:$76 sps:$4 sm:$0xff]   ;;  %v23341_v56 = vld [vmem:[%s25555_s21 + $0x634] ss:$76 sps:$4 sm:$0xff]  }
 0x8f3   : > { %v16887_v26 = vpop.f32.mrb[23].mxu0  ;;  %17229 = vmatprep.subr.bf16.mxu0 %v23278_v22  ;;  %v23344_v22 = vld [vmem:[%s25555_s21 + $0x26d4] ss:$76 sps:$4 sm:$0xff]   ;;  %v23339_v52 = vld [vmem:[%s25555_s21 + $0x630] ss:$76 sps:$4 sm:$0xff]  }
 0x8f4   : > { %v17772_v39 = vrot.slane %v17758_v23, %v25085_v8  ;;  %v23342_v18 = vld [vmem:[%s25555_s21 + $0x26d0] ss:$76 sps:$4 sm:$0xff]   ;;  %v23350_v23 = vld [vmem:[%s25555_s21 + $0x276c] ss:$76 sps:$4 sm:$0xff]   ;;  %v23345_v3 = vld [vmem:[%s25555_s21 + $0x6c8] ss:$76 sps:$4 sm:$0xff]  }
 0x8f5   : > { %17084 = vmatpush1.bf16.msra.mxu1 %v23273_v57  ;;  %v23347_v57 = vld [vmem:[%s25555_s21 + $0x6cc] ss:$76 sps:$4 sm:$0xff]   ;;  %v23356_v26 = vld [vmem:[%s25555_s21 + $0x2804] ss:$76 sps:$4 sm:$0xff]  }
 0x8f6   : > { %v17773_v40 = vcombine.low %v17765_v24, %v17772_v39  ;;  %17230 = vmatpush1.bf16.msra.mxu0 %v23276_v25  ;;  %17299 = vmatprep.subr.bf16.mxu1 %v23281_v33  ;;  %v23348_v25 = vld [vmem:[%s25555_s21 + $0x2768] ss:$76 sps:$4 sm:$0xff]   ;;  %v23353_v33 = vld [vmem:[%s25555_s21 + $0x764] ss:$76 sps:$4 sm:$0xff]   ;;  %v23354_v24 = vld [vmem:[%s25555_s21 + $0x2800] ss:$76 sps:$4 sm:$0xff]  }
 0x8f7   : > { %17231 = vmatprep.subr.bf16.mxu0 %v23284_v27  ;;  %v23351_v27 = vld [vmem:[%s25555_s21 + $0x760] ss:$76 sps:$4 sm:$0xff]   ;;  %v23359_v39 = vld [vmem:[%s25555_s21 + $0x7fc] ss:$76 sps:$4 sm:$0xff]  }
 0x8f8   : > { %17086 = vmatmul.mubr.bf16.vlgmr.msra.gmra.mrb[20].mxu1 %v26185_v12  ;;  %17819 = vst [vmem:[#allocation2 + $0x10] sm:$0xff] %v17773_v40  ;;  %v23357_v40 = vld [vmem:[%s25555_s21 + $0x7f8] ss:$76 sps:$4 sm:$0xff]  }
 0x8f9   : > { %17300 = vmatpush1.bf16.msra.mxu1 %v23279_v54  ;;  %17331 = vmatprep.mubr.bf16.mxu1 %v25718_v60  ;;  %v23362_v54 = vld [vmem:[%s25555_s21 + $0x289c] ss:$76 sps:$4 sm:$0xff]  }
 0x8fa   : > { %17232 = vmatpush1.bf16.msra.mxu0 %v23282_v41  ;;  %17301 = vmatprep.subr.bf16.mxu1 %v23287_v44  ;;  %v23360_v41 = vld [vmem:[%s25555_s21 + $0x2898] ss:$76 sps:$4 sm:$0xff]   ;;  %v23365_v44 = vld [vmem:[%s25555_s21 + $0x894] ss:$76 sps:$4 sm:$0xff]  }
 0x8fb   : > { %17233 = vmatprep.subr.bf16.mxu0 %v23290_v45  ;;  %v23368_v45 = vld [vmem:[%s25555_s21 + $0x2934] ss:$76 sps:$4 sm:$0xff]  }
 0x8fd   : > { %17302 = vmatpush1.bf16.msra.mxu1 %v23285_v31  ;;  %v23363_v31 = vld [vmem:[%s25555_s21 + $0x890] ss:$76 sps:$4 sm:$0xff]  }
 0x8fe   : > { %17234 = vmatpush1.bf16.msra.mxu0 %v23288_v61  ;;  %17303 = vmatprep.subr.bf16.mxu1 %v23293_v16  ;;  %v23366_v61 = vld [vmem:[%s25555_s21 + $0x2930] ss:$76 sps:$4 sm:$0xff]   ;;  %v23371_v16 = vld [vmem:[%s25555_s21 + $0x92c] ss:$76 sps:$4 sm:$0xff]  }
 0x8ff   : > { %17235 = vmatprep.subr.bf16.mxu0 %v23296_v47  ;;  %v17832_v10 = vld [vmem:[#allocation2 + $0x10] sm:$0xff]  ;;  %v23374_v47 = vld [vmem:[%s25555_s21 + $0x29cc] ss:$76 sps:$4 sm:$0xff]  }
 0x900   : > { %17837 = vst [vmem:[%s26556_s30 + $0x10] sm:$0xff] %v17832_v10  ;;  %v23378_v10 = vld [vmem:[%s25555_s21 + $0x2a60] ss:$76 sps:$4 sm:$0xff]  }
 0x901   : > { %17304 = vmatpush1.bf16.msra.mxu1 %v23291_v32  ;;  %v23369_v32 = vld [vmem:[%s25555_s21 + $0x928] ss:$76 sps:$4 sm:$0xff]  }
 0x902   : > { %17236 = vmatpush1.bf16.msra.mxu0 %v23294_v48  ;;  %17305 = vmatprep.subr.bf16.mxu1 %v23299_v49  ;;  %v23372_v48 = vld [vmem:[%s25555_s21 + $0x29c8] ss:$76 sps:$4 sm:$0xff]   ;;  %v23377_v49 = vld [vmem:[%s25555_s21 + $0x9c4] ss:$76 sps:$4 sm:$0xff]  }
 0x903   : > { %17237 = vmatprep.subr.bf16.mxu0 %v23302_v28  ;;  %v23380_v28 = vld [vmem:[%s25555_s21 + $0x2a64] ss:$76 sps:$4 sm:$0xff]  }
 0x905   : > { %17306 = vmatpush1.bf16.msra.mxu1 %v23297_v50  ;;  %v23375_v50 = vld [vmem:[%s25555_s21 + $0x9c0] ss:$76 sps:$4 sm:$0xff]  }
 0x906   : > { %17238 = vmatpush1.bf16.msra.mxu0 %v23300_v35  ;;  %17307 = vmatprep.subr.bf16.mxu1 %v23305_v55  ;;  %v23383_v35 = vld [vmem:[%s25555_s21 + $0xa5c] ss:$76 sps:$4 sm:$0xff]  }
 0x907   : > { %17239 = vmatprep.subr.bf16.mxu0 %v23308_v37  ;;  %v23386_v55 = vld [vmem:[%s25555_s21 + $0x2afc] ss:$76 sps:$4 sm:$0xff]   ;;  %v23381_v37 = vld [vmem:[%s25555_s21 + $0xa58] ss:$76 sps:$4 sm:$0xff]  }
 0x909   : > { %17308 = vmatpush1.bf16.msra.mxu1 %v23303_v58  ;;  %v23384_v58 = vld [vmem:[%s25555_s21 + $0x2af8] ss:$76 sps:$4 sm:$0xff]  }
 0x90a   : > { %17240 = vmatpush1.bf16.msra.mxu0 %v23306_v59  ;;  %17309 = vmatprep.subr.bf16.mxu1 %v23311_v36  ;;  %v23389_v59 = vld [vmem:[%s25555_s21 + $0xaf4] ss:$76 sps:$4 sm:$0xff]  }
 0x90b   : > { %17241 = vmatprep.subr.bf16.mxu0 %v23314_v62  ;;  %v23392_v36 = vld [vmem:[%s25555_s21 + $0x2b94] ss:$76 sps:$4 sm:$0xff]   ;;  %v23387_v62 = vld [vmem:[%s25555_s21 + $0xaf0] ss:$76 sps:$4 sm:$0xff]  }
 0x90d   : > { %17310 = vmatpush1.bf16.msra.mxu1 %v23309_v63  ;;  %v23390_v63 = vld [vmem:[%s25555_s21 + $0x2b90] ss:$76 sps:$4 sm:$0xff]  }
 0x90e   : > { %17242 = vmatpush1.bf16.msra.mxu0 %v23312_v42  ;;  %17311 = vmatprep.subr.bf16.mxu1 %v23317_v0  ;;  %v23395_v42 = vld [vmem:[%s25555_s21 + $0xb8c] ss:$76 sps:$4 sm:$0xff]  }
 0x90f   : > { %17243 = vmatprep.subr.bf16.mxu0 %v23320_v1  ;;  %v23398_v0 = vld [vmem:[%s25555_s21 + $0x2c2c] ss:$76 sps:$4 sm:$0xff]   ;;  %v23393_v1 = vld [vmem:[%s25555_s21 + $0xb88] ss:$76 sps:$4 sm:$0xff]  }
 0x911   : > { %17312 = vmatpush1.bf16.msra.mxu1 %v23315_v46  ;;  %v23396_v46 = vld [vmem:[%s25555_s21 + $0x2c28] ss:$76 sps:$4 sm:$0xff]  }
 0x912   : > { %17244 = vmatpush1.bf16.msra.mxu0 %v23318_v2  ;;  %17313 = vmatprep.subr.bf16.mxu1 %v23323_v5  ;;  %v23401_v2 = vld [vmem:[%s25555_s21 + $0xc24] ss:$76 sps:$4 sm:$0xff]  }
 0x913   : > { %17245 = vmatprep.subr.bf16.mxu0 %v23326_v6  ;;  %v23404_v5 = vld [vmem:[%s25555_s21 + $0x2cc4] ss:$76 sps:$4 sm:$0xff]   ;;  %v23399_v6 = vld [vmem:[%s25555_s21 + $0xc20] ss:$76 sps:$4 sm:$0xff]  }
 0x915   : > { %17314 = vmatpush1.bf16.msra.mxu1 %v23321_v7  ;;  %v23402_v7 = vld [vmem:[%s25555_s21 + $0x2cc0] ss:$76 sps:$4 sm:$0xff]  }
 0x916   : > { %17246 = vmatpush1.bf16.msra.mxu0 %v23324_v9  ;;  %17315 = vmatprep.subr.bf16.mxu1 %v23329_v21  ;;  %v23407_v9 = vld [vmem:[%s25555_s21 + $0xcbc] ss:$76 sps:$4 sm:$0xff]  }
 0x917   : > { %17247 = vmatprep.subr.bf16.mxu0 %v23332_v13  ;;  %v23410_v21 = vld [vmem:[%s25555_s21 + $0x2d5c] ss:$76 sps:$4 sm:$0xff]   ;;  %v23405_v13 = vld [vmem:[%s25555_s21 + $0xcb8] ss:$76 sps:$4 sm:$0xff]  }
 0x919   : > { %17316 = vmatpush1.bf16.msra.mxu1 %v23327_v11  ;;  %v23408_v11 = vld [vmem:[%s25555_s21 + $0x2d58] ss:$76 sps:$4 sm:$0xff]  }
 0x91a   : > { %17248 = vmatpush1.bf16.msra.mxu0 %v23330_v14  ;;  %17317 = vmatprep.subr.bf16.mxu1 %v23335_v15  ;;  %v23413_v14 = vld [vmem:[%s25555_s21 + $0xd54] ss:$76 sps:$4 sm:$0xff]  }
 0x91b   : > { %17258 = vmatprep.subr.bf16.mxu0 %v23338_v53  ;;  %v23416_v15 = vld [vmem:[%s25555_s21 + $0x2df4] ss:$76 sps:$4 sm:$0xff]   ;;  %v23411_v53 = vld [vmem:[%s25555_s21 + $0xd50] ss:$76 sps:$4 sm:$0xff]  }
 0x91d   : > { %17250 = vmatmul.mubr.bf16.vlgmr.msra.gmra.mrb[24].mxu0 %v26041_v51  ;;  %17318 = vmatpush1.bf16.msra.mxu1 %v23333_v4  ;;  %v23414_v4 = vld [vmem:[%s25555_s21 + $0x2df0] ss:$76 sps:$4 sm:$0xff]  }
 0x91e   : > { %17259 = vmatpush1.bf16.msra.mxu0 %v23336_v29  ;;  %17290 = vmatprep.mubr.bf16.mxu0 %v26183_v20  ;;  %v23419_v29 = vld [vmem:[%s25555_s21 + $0xdec] ss:$76 sps:$4 sm:$0xff]  }
 0x91f   : > { %17319 = vmatprep.subr.bf16.mxu1 %v23341_v56  ;;  %17260 = vmatprep.subr.bf16.mxu0 %v23344_v22  ;;  %v23422_v56 = vld [vmem:[%s25555_s21 + $0x2e8c] ss:$76 sps:$4 sm:$0xff]   ;;  %v23417_v22 = vld [vmem:[%s25555_s21 + $0xde8] ss:$76 sps:$4 sm:$0xff]  }
 0x921   : > { %17320 = vmatpush1.bf16.msra.mxu1 %v23339_v52  ;;  %v23420_v52 = vld [vmem:[%s25555_s21 + $0x2e88] ss:$76 sps:$4 sm:$0xff]  }
 0x922   : > { %17261 = vmatpush1.bf16.msra.mxu0 %v23342_v18  ;;  %17321 = vmatprep.subr.bf16.mxu1 %v23347_v57  ;;  %v23425_v18 = vld [vmem:[%s25555_s21 + $0xe84] ss:$76 sps:$4 sm:$0xff]  }
 0x923   : > { %17262 = vmatprep.subr.bf16.mxu0 %v23350_v23  ;;  %v23428_v57 = vld [vmem:[%s25555_s21 + $0x2f24] ss:$76 sps:$4 sm:$0xff]   ;;  %v23423_v23 = vld [vmem:[%s25555_s21 + $0xe80] ss:$76 sps:$4 sm:$0xff]  }
 0x925   : > { %17322 = vmatpush1.bf16.msra.mxu1 %v23345_v3  ;;  %v23426_v3 = vld [vmem:[%s25555_s21 + $0x2f20] ss:$76 sps:$4 sm:$0xff]  }
 0x926   : > { %17263 = vmatpush1.bf16.msra.mxu0 %v23348_v25  ;;  %17323 = vmatprep.subr.bf16.mxu1 %v23353_v33  ;;  %v23431_v25 = vld [vmem:[%s25555_s21 + $0xf1c] ss:$76 sps:$4 sm:$0xff]  }
 0x927   : > { %17264 = vmatprep.subr.bf16.mxu0 %v23356_v26  ;;  %v23432_v33 = vld [vmem:[%s25555_s21 + $0x508] ss:$76 sps:$4 sm:$0xff]   ;;  %v23429_v26 = vld [vmem:[%s25555_s21 + $0xf18] ss:$76 sps:$4 sm:$0xff]  }
 0x929   : > { %17324 = vmatpush1.bf16.msra.mxu1 %v23351_v27  ;;  %v23433_v27 = vld [vmem:[%s25555_s21 + $0x48] ss:$76 sps:$4 sm:$0xff]  }
 0x92a   : > { %17265 = vmatpush1.bf16.msra.mxu0 %v23354_v24  ;;  %17325 = vmatprep.subr.bf16.mxu1 %v23359_v39  ;;  %v23436_v24 = vld [vmem:[%s25555_s21 + $0xfb4] ss:$76 sps:$4 sm:$0xff]  }
 0x92b   : > { %17266 = vmatprep.subr.bf16.mxu0 %v23362_v54  ;;  %v23437_v39 = vld [vmem:[%s25555_s21 + $0x5a0] ss:$76 sps:$4 sm:$0xff]   ;;  %v23434_v54 = vld [vmem:[%s25555_s21 + $0xfb0] ss:$76 sps:$4 sm:$0xff]  }
 0x92d   : > { %17326 = vmatpush1.bf16.msra.mxu1 %v23357_v40  ;;  %v23438_v40 = vld [vmem:[%s25555_s21 + $0xe0] ss:$76 sps:$4 sm:$0xff]  }
 0x92e   : > { %17267 = vmatpush1.bf16.msra.mxu0 %v23360_v41  ;;  %17327 = vmatprep.subr.bf16.mxu1 %v23365_v44  ;;  %v23441_v41 = vld [vmem:[%s25555_s21 + $0x104c] ss:$76 sps:$4 sm:$0xff]  }
 0x92f   : > { %17268 = vmatprep.subr.bf16.mxu0 %v23368_v45  ;;  %v23442_v44 = vld [vmem:[%s25555_s21 + $0x638] ss:$76 sps:$4 sm:$0xff]   ;;  %v23439_v45 = vld [vmem:[%s25555_s21 + $0x1048] ss:$76 sps:$4 sm:$0xff]  }
 0x931   : > { %17328 = vmatpush1.bf16.msra.mxu1 %v23363_v31  ;;  %v23443_v31 = vld [vmem:[%s25555_s21 + $0x178] ss:$76 sps:$4 sm:$0xff]  }
 0x932   : > { %17269 = vmatpush1.bf16.msra.mxu0 %v23366_v61  ;;  %17329 = vmatprep.subr.bf16.mxu1 %v23371_v16  ;;  %v23446_v61 = vld [vmem:[%s25555_s21 + $0x10e4] ss:$76 sps:$4 sm:$0xff]  }
 0x933   : > { %17270 = vmatprep.subr.bf16.mxu0 %v23374_v47  ;;  %v23447_v16 = vld [vmem:[%s25555_s21 + $0x6d0] ss:$76 sps:$4 sm:$0xff]  }
 0x934   : > { %v23448_v47 = vld [vmem:[%s25555_s21 + $0x210] ss:$76 sps:$4 sm:$0xff]  }
 0x935   : > { %17330 = vmatpush1.bf16.msra.mxu1 %v23369_v32  ;;  %v23451_v32 = vld [vmem:[%s25555_s21 + $0x117c] ss:$76 sps:$4 sm:$0xff]  }
 0x936   : > { %17271 = vmatpush1.bf16.msra.mxu0 %v23372_v48  ;;  %17340 = vmatprep.subr.bf16.mxu1 %v23377_v49  ;;  %v23452_v48 = vld [vmem:[%s25555_s21 + $0x768] ss:$76 sps:$4 sm:$0xff]   ;;  %v23449_v49 = vld [vmem:[%s25555_s21 + $0x1178] ss:$76 sps:$4 sm:$0xff]  }
 0x937   : > { %17272 = vmatprep.subr.bf16.mxu0 %v23380_v28  ;;  %v23453_v28 = vld [vmem:[%s25555_s21 + $0x2a8] ss:$76 sps:$4 sm:$0xff]  }
 0x938   : > { %17332 = vmatmul.mubr.bf16.vlgmr.msra.gmra.mrb[24].mxu1 %v25793_v17 }
 0x939   : > { %17341 = vmatpush1.bf16.msra.mxu1 %v23375_v50  ;;  %17372 = vmatprep.mubr.bf16.mxu1 %v25796_v19  ;;  %v23456_v50 = vld [vmem:[%s25555_s21 + $0x1214] ss:$76 sps:$4 sm:$0xff]  }
 0x93a   : > { %17273 = vmatpush1.bf16.msra.mxu0 %v23378_v10  ;;  %17342 = vmatprep.subr.bf16.mxu1 %v23383_v35  ;;  %v23457_v10 = vld [vmem:[%s25555_s21 + $0x800] ss:$76 sps:$4 sm:$0xff]   ;;  %v23454_v35 = vld [vmem:[%s25555_s21 + $0x1210] ss:$76 sps:$4 sm:$0xff]  }
 0x93b   : > { %17274 = vmatprep.subr.bf16.mxu0 %v23386_v55  ;;  %v23458_v55 = vld [vmem:[%s25555_s21 + $0x340] ss:$76 sps:$4 sm:$0xff]  }
 0x93d   : > { %17343 = vmatpush1.bf16.msra.mxu1 %v23381_v37  ;;  %v23461_v37 = vld [vmem:[%s25555_s21 + $0x12ac] ss:$76 sps:$4 sm:$0xff]  }
 0x93e   : > { %17275 = vmatpush1.bf16.msra.mxu0 %v23384_v58  ;;  %17344 = vmatprep.subr.bf16.mxu1 %v23389_v59  ;;  %v23462_v58 = vld [vmem:[%s25555_s21 + $0x898] ss:$76 sps:$4 sm:$0xff]   ;;  %v23459_v59 = vld [vmem:[%s25555_s21 + $0x12a8] ss:$76 sps:$4 sm:$0xff]  }
 0x93f   : > { %17276 = vmatprep.subr.bf16.mxu0 %v23392_v36  ;;  %v23463_v36 = vld [vmem:[%s25555_s21 + $0x3d8] ss:$76 sps:$4 sm:$0xff]  }
 0x941   : > { %17345 = vmatpush1.bf16.msra.mxu1 %v23387_v62  ;;  %v23466_v62 = vld [vmem:[%s25555_s21 + $0x1344] ss:$76 sps:$4 sm:$0xff]  }
 0x942   : > { %17277 = vmatpush1.bf16.msra.mxu0 %v23390_v63  ;;  %17346 = vmatprep.subr.bf16.mxu1 %v23395_v42  ;;  %v23467_v63 = vld [vmem:[%s25555_s21 + $0x930] ss:$76 sps:$4 sm:$0xff]   ;;  %v23464_v42 = vld [vmem:[%s25555_s21 + $0x1340] ss:$76 sps:$4 sm:$0xff]  }
 0x943   : > { %17278 = vmatprep.subr.bf16.mxu0 %v23398_v0  ;;  %v23468_v0 = vld [vmem:[%s25555_s21 + $0x470] ss:$76 sps:$4 sm:$0xff]  }
 0x945   : > { %17347 = vmatpush1.bf16.msra.mxu1 %v23393_v1  ;;  %v23471_v1 = vld [vmem:[%s25555_s21 + $0x13dc] ss:$76 sps:$4 sm:$0xff]  }
 0x946   : > { %17279 = vmatpush1.bf16.msra.mxu0 %v23396_v46  ;;  %17348 = vmatprep.subr.bf16.mxu1 %v23401_v2  ;;  %v23472_v46 = vld [vmem:[%s25555_s21 + $0xe88] ss:$76 sps:$4 sm:$0xff]   ;;  %v23469_v2 = vld [vmem:[%s25555_s21 + $0x13d8] ss:$76 sps:$4 sm:$0xff]  }
 0x947   : > { %17280 = vmatprep.subr.bf16.mxu0 %v23404_v5  ;;  %v23473_v5 = vld [vmem:[%s25555_s21 + $0x9c8] ss:$76 sps:$4 sm:$0xff]  }
 0x949   : > { %17349 = vmatpush1.bf16.msra.mxu1 %v23399_v6  ;;  %v23476_v6 = vld [vmem:[%s25555_s21 + $0x1474] ss:$76 sps:$4 sm:$0xff]  }
 0x94a   : > { %17281 = vmatpush1.bf16.msra.mxu0 %v23402_v7  ;;  %17350 = vmatprep.subr.bf16.mxu1 %v23407_v9  ;;  %v23477_v7 = vld [vmem:[%s25555_s21 + $0xf20] ss:$76 sps:$4 sm:$0xff]   ;;  %v23474_v9 = vld [vmem:[%s25555_s21 + $0x1470] ss:$76 sps:$4 sm:$0xff]  }
 0x94b   : > { %17282 = vmatprep.subr.bf16.mxu0 %v23410_v21  ;;  %v23478_v21 = vld [vmem:[%s25555_s21 + $0xa60] ss:$76 sps:$4 sm:$0xff]  }
 0x94d   : > { %17351 = vmatpush1.bf16.msra.mxu1 %v23405_v13  ;;  %v23481_v13 = vld [vmem:[%s25555_s21 + $0x150c] ss:$76 sps:$4 sm:$0xff]  }
 0x94e   : > { %17283 = vmatpush1.bf16.msra.mxu0 %v23408_v11  ;;  %17352 = vmatprep.subr.bf16.mxu1 %v23413_v14  ;;  %v23482_v11 = vld [vmem:[%s25555_s21 + $0xfb8] ss:$76 sps:$4 sm:$0xff]   ;;  %v23479_v14 = vld [vmem:[%s25555_s21 + $0x1508] ss:$76 sps:$4 sm:$0xff]  }
 0x94f   : > { %17284 = vmatprep.subr.bf16.mxu0 %v23416_v15  ;;  %v23486_v15 = vld [vmem:[%s25555_s21 + $0x15a4] ss:$76 sps:$4 sm:$0xff]  }
 0x951   : > { %17353 = vmatpush1.bf16.msra.mxu1 %v23411_v53  ;;  %v23487_v53 = vld [vmem:[%s25555_s21 + $0x1050] ss:$76 sps:$4 sm:$0xff]  }
 0x952   : > { %17285 = vmatpush1.bf16.msra.mxu0 %v23414_v4  ;;  %17354 = vmatprep.subr.bf16.mxu1 %v23419_v29  ;;  %v23488_v4 = vld [vmem:[%s25555_s21 + $0xb90] ss:$76 sps:$4 sm:$0xff]  }
 0x953   : > { %17286 = vmatprep.subr.bf16.mxu0 %v23422_v56  ;;  %v23491_v29 = vld [vmem:[%s25555_s21 + $0x163c] ss:$76 sps:$4 sm:$0xff]  }
 0x954   : > { %v23492_v56 = vld [vmem:[%s25555_s21 + $0x10e8] ss:$76 sps:$4 sm:$0xff]  }
 0x955   : > { %17355 = vmatpush1.bf16.msra.mxu1 %v23417_v22  ;;  %v23489_v22 = vld [vmem:[%s25555_s21 + $0x1638] ss:$76 sps:$4 sm:$0xff]  }
 0x956   : > { %17287 = vmatpush1.bf16.msra.mxu0 %v23420_v52  ;;  %17356 = vmatprep.subr.bf16.mxu1 %v23425_v18  ;;  %v23493_v52 = vld [vmem:[%s25555_s21 + $0xc28] ss:$76 sps:$4 sm:$0xff]  }
 0x957   : > { %17288 = vmatprep.subr.bf16.mxu0 %v23428_v57  ;;  %v23496_v18 = vld [vmem:[%s25555_s21 + $0x16d4] ss:$76 sps:$4 sm:$0xff]  }
 0x958   : > { %v23497_v57 = vld [vmem:[%s25555_s21 + $0x1180] ss:$76 sps:$4 sm:$0xff]  }
 0x959   : > { %17357 = vmatpush1.bf16.msra.mxu1 %v23423_v23  ;;  %v23494_v23 = vld [vmem:[%s25555_s21 + $0x16d0] ss:$76 sps:$4 sm:$0xff]  }
 0x95a   : > { %17289 = vmatpush1.bf16.msra.mxu0 %v23426_v3  ;;  %17358 = vmatprep.subr.bf16.mxu1 %v23431_v25  ;;  %v23498_v3 = vld [vmem:[%s25555_s21 + $0xcc0] ss:$76 sps:$4 sm:$0xff]  }
 0x95b   : > { %20102 = vmatprep.subr.bf16.mxu0 %v23432_v33  ;;  %v23501_v25 = vld [vmem:[%s25555_s21 + $0x176c] ss:$76 sps:$4 sm:$0xff]  }
 0x95c   : > { %v23502_v33 = vld [vmem:[%s25555_s21 + $0x1218] ss:$76 sps:$4 sm:$0xff]  }
 0x95d   : > { %17291 = vmatmul.mubr.bf16.vlgmr.msra.gmra.mrb[24].mxu0 %v26185_v12  ;;  %17359 = vmatpush1.bf16.msra.mxu1 %v23429_v26  ;;  %v23499_v26 = vld [vmem:[%s25555_s21 + $0x1768] ss:$76 sps:$4 sm:$0xff]  }
 0x95e   : > { %20103 = vmatpush3.bf16.msra.mxu0 %v23433_v27  ;;  %17536 = vmatprep.mubr.bf16.mxu0 %v25718_v60  ;;  %v23444_v60 = vld [vmem:[%s25555_s21 + $0x10e0] ss:$76 sps:$4 sm:$0xff]   ;;  %v23503_v27 = vld [vmem:[%s25555_s21 + $0xd58] ss:$76 sps:$4 sm:$0xff]  }
 0x95f   : > { %17360 = vmatprep.subr.bf16.mxu1 %v23436_v24  ;;  %20104 = vmatprep.subr.bf16.mxu0 %v23437_v39  ;;  %v23506_v24 = vld [vmem:[%s25555_s21 + $0x1804] ss:$76 sps:$4 sm:$0xff]  }
 0x960   : > { %v23507_v39 = vld [vmem:[%s25555_s21 + $0x12b0] ss:$76 sps:$4 sm:$0xff]  }
 0x961   : > { %17361 = vmatpush1.bf16.msra.mxu1 %v23434_v54  ;;  %v23504_v54 = vld [vmem:[%s25555_s21 + $0x1800] ss:$76 sps:$4 sm:$0xff]  }
 0x962   : > { %20105 = vmatpush3.bf16.msra.mxu0 %v23438_v40  ;;  %17362 = vmatprep.subr.bf16.mxu1 %v23441_v41  ;;  %v23508_v40 = vld [vmem:[%s25555_s21 + $0xdf0] ss:$76 sps:$4 sm:$0xff]  }
 0x963   : > { %20106 = vmatprep.subr.bf16.mxu0 %v23442_v44  ;;  %v23511_v41 = vld [vmem:[%s25555_s21 + $0x189c] ss:$76 sps:$4 sm:$0xff]  }
 0x964   : > { %v23512_v44 = vld [vmem:[%s25555_s21 + $0x1808] ss:$76 sps:$4 sm:$0xff]  }
 0x965   : > { %17363 = vmatpush1.bf16.msra.mxu1 %v23439_v45  ;;  %v23509_v45 = vld [vmem:[%s25555_s21 + $0x1898] ss:$76 sps:$4 sm:$0xff]  }
 0x966   : > { %20107 = vmatpush3.bf16.msra.mxu0 %v23443_v31  ;;  %17364 = vmatprep.subr.bf16.mxu1 %v23446_v61  ;;  %v23513_v31 = vld [vmem:[%s25555_s21 + $0x1348] ss:$76 sps:$4 sm:$0xff]  }
 0x967   : > { %20108 = vmatprep.subr.bf16.mxu0 %v23447_v16  ;;  %v23516_v61 = vld [vmem:[%s25555_s21 + $0x1934] ss:$76 sps:$4 sm:$0xff]  }
 0x968   : > { %v23517_v16 = vld [vmem:[%s25555_s21 + $0x18a0] ss:$76 sps:$4 sm:$0xff]  }
 0x969   : > { %17365 = vmatpush1.bf16.msra.mxu1 %v23444_v60  ;;  %v23514_v60 = vld [vmem:[%s25555_s21 + $0x1930] ss:$76 sps:$4 sm:$0xff]  }
 0x96a   : > { %20109 = vmatpush3.bf16.msra.mxu0 %v23448_v47  ;;  %17366 = vmatprep.subr.bf16.mxu1 %v23451_v32  ;;  %v23518_v47 = vld [vmem:[%s25555_s21 + $0x13e0] ss:$76 sps:$4 sm:$0xff]  }
 0x96b   : > { %20110 = vmatprep.subr.bf16.mxu0 %v23452_v48  ;;  %v23521_v32 = vld [vmem:[%s25555_s21 + $0x19cc] ss:$76 sps:$4 sm:$0xff]  }
 0x96c   : > { %v23522_v48 = vld [vmem:[%s25555_s21 + $0x1938] ss:$76 sps:$4 sm:$0xff]  }
 0x96d   : > { %17367 = vmatpush1.bf16.msra.mxu1 %v23449_v49  ;;  %v23519_v49 = vld [vmem:[%s25555_s21 + $0x19c8] ss:$76 sps:$4 sm:$0xff]  }
 0x96e   : > { %20111 = vmatpush3.bf16.msra.mxu0 %v23453_v28  ;;  %17368 = vmatprep.subr.bf16.mxu1 %v23456_v50  ;;  %v23526_v28 = vld [vmem:[%s25555_s21 + $0x1a64] ss:$76 sps:$4 sm:$0xff]  }
 0x96f   : > { %20112 = vmatprep.subr.bf16.mxu0 %v23457_v10  ;;  %v23527_v50 = vld [vmem:[%s25555_s21 + $0x19d0] ss:$76 sps:$4 sm:$0xff]  }
 0x970   : > { %v23528_v10 = vld [vmem:[%s25555_s21 + $0x1510] ss:$76 sps:$4 sm:$0xff]  }
 0x971   : > { %17369 = vmatpush1.bf16.msra.mxu1 %v23454_v35  ;;  %v23531_v35 = vld [vmem:[%s25555_s21 + $0x1afc] ss:$76 sps:$4 sm:$0xff]  }
 0x972   : > { %20113 = vmatpush3.bf16.msra.mxu0 %v23458_v55  ;;  %17370 = vmatprep.subr.bf16.mxu1 %v23461_v37  ;;  %v23532_v55 = vld [vmem:[%s25555_s21 + $0x1a68] ss:$76 sps:$4 sm:$0xff]   ;;  %v23529_v37 = vld [vmem:[%s25555_s21 + $0x1af8] ss:$76 sps:$4 sm:$0xff]  }
 0x973   : > { %20114 = vmatprep.subr.bf16.mxu0 %v23462_v58  ;;  %v23533_v58 = vld [vmem:[%s25555_s21 + $0x15a8] ss:$76 sps:$4 sm:$0xff]  }
 0x975   : > { %17371 = vmatpush1.bf16.msra.mxu1 %v23459_v59  ;;  %v23536_v59 = vld [vmem:[%s25555_s21 + $0x1b94] ss:$76 sps:$4 sm:$0xff]  }
 0x976   : > { %20115 = vmatpush3.bf16.msra.mxu0 %v23463_v36  ;;  %17381 = vmatprep.subr.bf16.mxu1 %v23466_v62  ;;  %v23537_v36 = vld [vmem:[%s25555_s21 + $0x1b00] ss:$76 sps:$4 sm:$0xff]   ;;  %v23534_v62 = vld [vmem:[%s25555_s21 + $0x1b90] ss:$76 sps:$4 sm:$0xff]  }
 0x977   : > { %20116 = vmatprep.subr.bf16.mxu0 %v23467_v63  ;;  %v23538_v63 = vld [vmem:[%s25555_s21 + $0x1640] ss:$76 sps:$4 sm:$0xff]  }
 0x978   : > { %17373 = vmatmul.mubr.bf16.vlgmr.msra.gmra.mrb[24].mxu1 %v25872_v43 }
 0x979   : > { %17382 = vmatpush1.bf16.msra.mxu1 %v23464_v42  ;;  %17413 = vmatprep.mubr.bf16.mxu1 %v25963_v30  ;;  %v23541_v42 = vld [vmem:[%s25555_s21 + $0x1c2c] ss:$76 sps:$4 sm:$0xff]  }
 0x97a   : > { %20117 = vmatpush3.bf16.msra.mxu0 %v23468_v0  ;;  %17383 = vmatprep.subr.bf16.mxu1 %v23471_v1  ;;  %v23542_v0 = vld [vmem:[%s25555_s21 + $0x1b98] ss:$76 sps:$4 sm:$0xff]   ;;  %v23539_v1 = vld [vmem:[%s25555_s21 + $0x1c28] ss:$76 sps:$4 sm:$0xff]  }
 0x97b   : > { %20124 = vmatprep.subr.bf16.mxu0 %v23472_v46  ;;  %v23543_v46 = vld [vmem:[%s25555_s21 + $0x16d8] ss:$76 sps:$4 sm:$0xff]  }
 0x97d   : > { %17384 = vmatpush1.bf16.msra.mxu1 %v23469_v2  ;;  %17537 = vmatmul.mubr.bf16.vlgmr.msra.gmra.mrb[28].mxu0 %v25793_v17  ;;  %v23483_v17 = vld [vmem:[%s25555_s21 + $0xaf8] ss:$76 sps:$4 sm:$0xff]  }
 0x97e   : > { %20125 = vmatpush3.bf16.msra.mxu0 %v23473_v5  ;;  %17576 = vmatprep.mubr.bf16.mxu0 %v25796_v19  ;;  %v23484_v19 = vld [vmem:[%s25555_s21 + $0x15a0] ss:$76 sps:$4 sm:$0xff]   ;;  %v23546_v2 = vld [vmem:[%s25555_s21 + $0x1cc4] ss:$76 sps:$4 sm:$0xff]  }
 0x97f   : > { %17385 = vmatprep.subr.bf16.mxu1 %v23476_v6  ;;  %20126 = vmatprep.subr.bf16.mxu0 %v23477_v7  ;;  %v23547_v5 = vld [vmem:[%s25555_s21 + $0x1c30] ss:$76 sps:$4 sm:$0xff]   ;;  %v23544_v6 = vld [vmem:[%s25555_s21 + $0x1cc0] ss:$76 sps:$4 sm:$0xff]  }
 0x980   : > { %v23548_v7 = vld [vmem:[%s25555_s21 + $0x1770] ss:$76 sps:$4 sm:$0xff]  }
 0x981   : > { %17386 = vmatpush1.bf16.msra.mxu1 %v23474_v9  ;;  %v23551_v9 = vld [vmem:[%s25555_s21 + $0x1d5c] ss:$76 sps:$4 sm:$0xff]  }
 0x982   : > { %20127 = vmatpush3.bf16.msra.mxu0 %v23478_v21  ;;  %17387 = vmatprep.subr.bf16.mxu1 %v23481_v13  ;;  %v23552_v21 = vld [vmem:[%s25555_s21 + $0x2b08] ss:$76 sps:$4 sm:$0xff]   ;;  %v23549_v13 = vld [vmem:[%s25555_s21 + $0x1d58] ss:$76 sps:$4 sm:$0xff]  }
 0x983   : > { %20128 = vmatprep.subr.bf16.mxu0 %v23482_v11  ;;  %v23553_v11 = vld [vmem:[%s25555_s21 + $0x2648] ss:$76 sps:$4 sm:$0xff]  }
 0x985   : > { %17388 = vmatpush1.bf16.msra.mxu1 %v23479_v14  ;;  %v23556_v14 = vld [vmem:[%s25555_s21 + $0x1df4] ss:$76 sps:$4 sm:$0xff]  }
 0x986   : > { %20129 = vmatpush3.bf16.msra.mxu0 %v23483_v17  ;;  %17389 = vmatprep.subr.bf16.mxu1 %v23486_v15  ;;  %v23557_v17 = vld [vmem:[%s25555_s21 + $0x2ba0] ss:$76 sps:$4 sm:$0xff]   ;;  %v23554_v15 = vld [vmem:[%s25555_s21 + $0x1df0] ss:$76 sps:$4 sm:$0xff]  }
 0x987   : > { %20130 = vmatprep.subr.bf16.mxu0 %v23487_v53  ;;  %v23558_v53 = vld [vmem:[%s25555_s21 + $0x26e0] ss:$76 sps:$4 sm:$0xff]  }
 0x989   : > { %17390 = vmatpush1.bf16.msra.mxu1 %v23484_v19  ;;  %v23561_v19 = vld [vmem:[%s25555_s21 + $0x1e8c] ss:$76 sps:$4 sm:$0xff]  }
 0x98a   : > { %20131 = vmatpush3.bf16.msra.mxu0 %v23488_v4  ;;  %17391 = vmatprep.subr.bf16.mxu1 %v23491_v29  ;;  %v23562_v4 = vld [vmem:[%s25555_s21 + $0x2c38] ss:$76 sps:$4 sm:$0xff]   ;;  %v23559_v29 = vld [vmem:[%s25555_s21 + $0x1e88] ss:$76 sps:$4 sm:$0xff]  }
 0x98b   : > { %20132 = vmatprep.subr.bf16.mxu0 %v23492_v56  ;;  %v23566_v56 = vld [vmem:[%s25555_s21 + $0x1f24] ss:$76 sps:$4 sm:$0xff]  }
 0x98d   : > { %17392 = vmatpush1.bf16.msra.mxu1 %v23489_v22  ;;  %v23567_v22 = vld [vmem:[%s25555_s21 + $0x2cd0] ss:$76 sps:$4 sm:$0xff]  }
 0x98e   : > { %20133 = vmatpush3.bf16.msra.mxu0 %v23493_v52  ;;  %17393 = vmatprep.subr.bf16.mxu1 %v23496_v18  ;;  %v23564_v52 = vld [vmem:[%s25555_s21 + $0x1f20] ss:$76 sps:$4 sm:$0xff]   ;;  %v23568_v18 = vld [vmem:[%s25555_s21 + $0x2810] ss:$76 sps:$4 sm:$0xff]  }
 0x98f   : > { %20134 = vmatprep.subr.bf16.mxu0 %v23497_v57  ;;  %v23571_v57 = vld [vmem:[%s25555_s21 + $0x1fbc] ss:$76 sps:$4 sm:$0xff]  }
 0x991   : > { %17394 = vmatpush1.bf16.msra.mxu1 %v23494_v23  ;;  %v23572_v23 = vld [vmem:[%s25555_s21 + $0x2d68] ss:$76 sps:$4 sm:$0xff]  }
 0x992   : > { %20135 = vmatpush3.bf16.msra.mxu0 %v23498_v3  ;;  %17395 = vmatprep.subr.bf16.mxu1 %v23501_v25  ;;  %v23569_v3 = vld [vmem:[%s25555_s21 + $0x1fb8] ss:$76 sps:$4 sm:$0xff]   ;;  %v23573_v25 = vld [vmem:[%s25555_s21 + $0x28a8] ss:$76 sps:$4 sm:$0xff]  }
 0x993   : > { %20136 = vmatprep.subr.bf16.mxu0 %v23502_v33  ;;  %v23576_v33 = vld [vmem:[%s25555_s21 + $0x2054] ss:$76 sps:$4 sm:$0xff]  }
 0x995   : > { %17396 = vmatpush1.bf16.msra.mxu1 %v23499_v26 }
 0x996   : > { %20137 = vmatpush3.bf16.msra.mxu0 %v23503_v27  ;;  %17397 = vmatprep.subr.bf16.mxu1 %v23506_v24  ;;  %v23577_v27 = vld [vmem:[%s25555_s21 + $0x2e00] ss:$76 sps:$4 sm:$0xff]  }
 0x997   : > { %20138 = vmatprep.subr.bf16.mxu0 %v23507_v39 }
 0x999   : > { %17398 = vmatpush1.bf16.msra.mxu1 %v23504_v54 }
 0x99a   : > { %20139 = vmatpush3.bf16.msra.mxu0 %v23508_v40  ;;  %17399 = vmatprep.subr.bf16.mxu1 %v23511_v41  ;;  %v23574_v40 = vld [vmem:[%s25555_s21 + $0x2050] ss:$76 sps:$4 sm:$0xff]  }
 0x99b   : > { %20146 = vmatprep.subr.bf16.mxu0 %v23512_v44  ;;  %v23578_v44 = vld [vmem:[%s25555_s21 + $0x2940] ss:$76 sps:$4 sm:$0xff]  }
 0x99d   : > { %17400 = vmatpush1.bf16.msra.mxu1 %v23509_v45  ;;  %17577 = vmatmul.mubr.bf16.vlgmr.msra.gmra.mrb[32].mxu0 %v25872_v43  ;;  %v23523_v43 = vld [vmem:[%s25555_s21 + $0x1478] ss:$76 sps:$4 sm:$0xff]  }
 0x99e   : > { %20147 = vmatpush3.bf16.msra.mxu0 %v23513_v31  ;;  %17616 = vmatprep.mubr.bf16.mxu0 %v25963_v30  ;;  %v23524_v30 = vld [vmem:[%s25555_s21 + $0x1a60] ss:$76 sps:$4 sm:$0xff]   ;;  %v23582_v31 = vld [vmem:[%s25555_s21 + $0x2e98] ss:$76 sps:$4 sm:$0xff]  }
 0x99f   : > { %17401 = vmatprep.subr.bf16.mxu1 %v23516_v61  ;;  %20148 = vmatprep.subr.bf16.mxu0 %v23517_v16  ;;  %v23581_v45 = vld [vmem:[%s25555_s21 + $0x20ec] ss:$76 sps:$4 sm:$0xff]   ;;  %v23579_v61 = vld [vmem:[%s25555_s21 + $0x20e8] ss:$76 sps:$4 sm:$0xff]  }
 0x9a0   : > { %v23583_v16 = vld [vmem:[%s25555_s21 + $0x29d8] ss:$76 sps:$4 sm:$0xff]  }
 0x9a1   : > { %17402 = vmatpush1.bf16.msra.mxu1 %v23514_v60  ;;  %v23586_v60 = vld [vmem:[%s25555_s21 + $0x2184] ss:$76 sps:$4 sm:$0xff]  }
 0x9a2   : > { %20149 = vmatpush3.bf16.msra.mxu0 %v23518_v47  ;;  %17403 = vmatprep.subr.bf16.mxu1 %v23521_v32  ;;  %v23587_v47 = vld [vmem:[%s25555_s21 + $0x2f30] ss:$76 sps:$4 sm:$0xff]   ;;  %v23584_v32 = vld [vmem:[%s25555_s21 + $0x2180] ss:$76 sps:$4 sm:$0xff]  }
 0x9a3   : > { %20150 = vmatprep.subr.bf16.mxu0 %v23522_v48  ;;  %v23588_v48 = vld [vmem:[%s25555_s21 + $0x2a70] ss:$76 sps:$4 sm:$0xff]  }
 0x9a5   : > { %17404 = vmatpush1.bf16.msra.mxu1 %v23519_v49  ;;  %v23591_v49 = vld [vmem:[%s25555_s21 + $0x221c] ss:$76 sps:$4 sm:$0xff]  }
 0x9a6   : > { %20151 = vmatpush3.bf16.msra.mxu0 %v23523_v43  ;;  %17405 = vmatprep.subr.bf16.mxu1 %v23526_v28  ;;  %v23589_v43 = vld [vmem:[%s25555_s21 + $0x2218] ss:$76 sps:$4 sm:$0xff]   ;;  %v23594_v28 = vld [vmem:[%s25555_s21 + $0x22b4] ss:$76 sps:$4 sm:$0xff]  }
 0x9a7   : > { %20152 = vmatprep.subr.bf16.mxu0 %v23527_v50  ;;  %v23592_v50 = vld [vmem:[%s25555_s21 + $0x22b0] ss:$76 sps:$4 sm:$0xff]  }
 0x9a9   : > { %17406 = vmatpush1.bf16.msra.mxu1 %v23524_v30  ;;  %v23597_v30 = vld [vmem:[%s25555_s21 + $0x234c] ss:$76 sps:$4 sm:$0xff]  }
 0x9aa   : > { %20153 = vmatpush3.bf16.msra.mxu0 %v23528_v10  ;;  %17407 = vmatprep.subr.bf16.mxu1 %v23531_v35  ;;  %v23595_v10 = vld [vmem:[%s25555_s21 + $0x2348] ss:$76 sps:$4 sm:$0xff]   ;;  %v23600_v35 = vld [vmem:[%s25555_s21 + $0x23e4] ss:$76 sps:$4 sm:$0xff]  }
 0x9ab   : > { %20154 = vmatprep.subr.bf16.mxu0 %v23532_v55  ;;  %v23598_v55 = vld [vmem:[%s25555_s21 + $0x23e0] ss:$76 sps:$4 sm:$0xff]  }
 0x9ad   : > { %17408 = vmatpush1.bf16.msra.mxu1 %v23529_v37  ;;  %v23603_v37 = vld [vmem:[%s25555_s21 + $0x247c] ss:$76 sps:$4 sm:$0xff]  }
 0x9ae   : > { %20155 = vmatpush3.bf16.msra.mxu0 %v23533_v58  ;;  %17409 = vmatprep.subr.bf16.mxu1 %v23536_v59  ;;  %v23601_v58 = vld [vmem:[%s25555_s21 + $0x2478] ss:$76 sps:$4 sm:$0xff]   ;;  %v23606_v59 = vld [vmem:[%s25555_s21 + $0x2514] ss:$76 sps:$4 sm:$0xff]  }
 0x9af   : > { %20156 = vmatprep.subr.bf16.mxu0 %v23537_v36  ;;  %v23604_v36 = vld [vmem:[%s25555_s21 + $0x2510] ss:$76 sps:$4 sm:$0xff]  }
 0x9b1   : > { %17410 = vmatpush1.bf16.msra.mxu1 %v23534_v62  ;;  %v23609_v62 = vld [vmem:[%s25555_s21 + $0x25ac] ss:$76 sps:$4 sm:$0xff]  }
 0x9b2   : > { %20157 = vmatpush3.bf16.msra.mxu0 %v23538_v63  ;;  %17411 = vmatprep.subr.bf16.mxu1 %v23541_v42  ;;  %v23607_v63 = vld [vmem:[%s25555_s21 + $0x25a8] ss:$76 sps:$4 sm:$0xff]   ;;  %v23612_v42 = vld [vmem:[%s25555_s21 + $0x2644] ss:$76 sps:$4 sm:$0xff]  }
 0x9b3   : > { %20158 = vmatprep.subr.bf16.mxu0 %v23542_v0  ;;  %v23610_v0 = vld [vmem:[%s25555_s21 + $0x2640] ss:$76 sps:$4 sm:$0xff]  }
 0x9b5   : > { %17412 = vmatpush1.bf16.msra.mxu1 %v23539_v1  ;;  %v23615_v1 = vld [vmem:[%s25555_s21 + $0x26dc] ss:$76 sps:$4 sm:$0xff]  }
 0x9b6   : > { %20159 = vmatpush3.bf16.msra.mxu0 %v23543_v46  ;;  %17422 = vmatprep.subr.bf16.mxu1 %v23546_v2  ;;  %v23613_v46 = vld [vmem:[%s25555_s21 + $0x26d8] ss:$76 sps:$4 sm:$0xff]   ;;  %v23618_v2 = vld [vmem:[%s25555_s21 + $0x2774] ss:$76 sps:$4 sm:$0xff]  }
 0x9b7   : > { %20160 = vmatprep.subr.bf16.mxu0 %v23547_v5  ;;  %v23616_v5 = vld [vmem:[%s25555_s21 + $0x2770] ss:$76 sps:$4 sm:$0xff]  }
 0x9b8   : > { %17414 = vmatmul.mubr.bf16.vlgmr.msra.gmra.mrb[24].mxu1 %v25967_v34 }
 0x9b9   : > { %17423 = vmatpush1.bf16.msra.mxu1 %v23544_v6  ;;  %17454 = vmatprep.mubr.bf16.mxu1 %v25972_v38  ;;  %v23621_v6 = vld [vmem:[%s25555_s21 + $0x280c] ss:$76 sps:$4 sm:$0xff]  }
 0x9ba   : > { %20161 = vmatpush3.bf16.msra.mxu0 %v23548_v7  ;;  %17424 = vmatprep.subr.bf16.mxu1 %v23551_v9  ;;  %v23619_v7 = vld [vmem:[%s25555_s21 + $0x2808] ss:$76 sps:$4 sm:$0xff]   ;;  %v23624_v9 = vld [vmem:[%s25555_s21 + $0x28a4] ss:$76 sps:$4 sm:$0xff]  }
 0x9bb   : > { %20190 = vmatprep.subr.bf16.mxu0 %v23552_v21  ;;  %v23622_v21 = vld [vmem:[%s25555_s21 + $0x28a0] ss:$76 sps:$4 sm:$0xff]  }
 0x9bd   : > { %17425 = vmatpush1.bf16.msra.mxu1 %v23549_v13  ;;  %17617 = vmatmul.mubr.bf16.vlgmr.msra.gmra.mrb[36].mxu0 %v25967_v34  ;;  %v23563_v34 = vld [vmem:[%s25555_s21 + $0x2778] ss:$76 sps:$4 sm:$0xff]  }
 0x9be   : > { %20191 = vmatpush3.bf16.msra.mxu0 %v23553_v11  ;;  %17696 = vmatprep.mubr.bf16.mxu0 %v26183_v20  ;;  %v23625_v13 = vld [vmem:[%s25555_s21 + $0x2938] ss:$76 sps:$4 sm:$0xff]   ;;  %v23630_v11 = vld [vmem:[%s25555_s21 + $0x29d4] ss:$76 sps:$4 sm:$0xff]  }
 0x9bf   : > { %17426 = vmatprep.subr.bf16.mxu1 %v23556_v14  ;;  %20192 = vmatprep.subr.bf16.mxu0 %v23557_v17  ;;  %v23628_v14 = vld [vmem:[%s25555_s21 + $0x29d0] ss:$76 sps:$4 sm:$0xff]   ;;  %v23633_v17 = vld [vmem:[%s25555_s21 + $0x2a6c] ss:$76 sps:$4 sm:$0xff]  }
 0x9c1   : > { %17427 = vmatpush1.bf16.msra.mxu1 %v23554_v15  ;;  %v23631_v15 = vld [vmem:[%s25555_s21 + $0x2a68] ss:$76 sps:$4 sm:$0xff]  }
 0x9c2   : > { %20193 = vmatpush3.bf16.msra.mxu0 %v23558_v53  ;;  %17428 = vmatprep.subr.bf16.mxu1 %v23561_v19  ;;  %v23636_v53 = vld [vmem:[%s25555_s21 + $0x2b04] ss:$76 sps:$4 sm:$0xff]   ;;  %v23634_v19 = vld [vmem:[%s25555_s21 + $0x2b00] ss:$76 sps:$4 sm:$0xff]  }
 0x9c3   : > { %20194 = vmatprep.subr.bf16.mxu0 %v23562_v4  ;;  %v23639_v4 = vld [vmem:[%s25555_s21 + $0x2b9c] ss:$76 sps:$4 sm:$0xff]  }
 0x9c5   : > { %17429 = vmatpush1.bf16.msra.mxu1 %v23559_v29  ;;  %v23637_v29 = vld [vmem:[%s25555_s21 + $0x2b98] ss:$76 sps:$4 sm:$0xff]  }
 0x9c6   : > { %20195 = vmatpush3.bf16.msra.mxu0 %v23563_v34  ;;  %17430 = vmatprep.subr.bf16.mxu1 %v23566_v56  ;;  %v23642_v34 = vld [vmem:[%s25555_s21 + $0x2c34] ss:$76 sps:$4 sm:$0xff]   ;;  %v23640_v56 = vld [vmem:[%s25555_s21 + $0x2c30] ss:$76 sps:$4 sm:$0xff]  }
 0x9c7   : > { %20196 = vmatprep.subr.bf16.mxu0 %v23567_v22  ;;  %v23645_v22 = vld [vmem:[%s25555_s21 + $0x2ccc] ss:$76 sps:$4 sm:$0xff]  }
 0x9c9   : > { %17431 = vmatpush1.bf16.msra.mxu1 %v23564_v52  ;;  %v23643_v52 = vld [vmem:[%s25555_s21 + $0x2cc8] ss:$76 sps:$4 sm:$0xff]  }
 0x9ca   : > { %20197 = vmatpush3.bf16.msra.mxu0 %v23568_v18  ;;  %17432 = vmatprep.subr.bf16.mxu1 %v23571_v57  ;;  %v23648_v18 = vld [vmem:[%s25555_s21 + $0x2d64] ss:$76 sps:$4 sm:$0xff]   ;;  %v23646_v57 = vld [vmem:[%s25555_s21 + $0x2d60] ss:$76 sps:$4 sm:$0xff]  }
 0x9cb   : > { %v27482_v26 = vpop.f32.mrb[20].mxu1  ;;  %20198 = vmatprep.subr.bf16.mxu0 %v23572_v23  ;;  %v23651_v23 = vld [vmem:[%s25555_s21 + $0x2dfc] ss:$76 sps:$4 sm:$0xff]  }
 0x9cc   : > { %v27485_v24 = vpop.f32.mrb[21].mxu1 }
 0x9cd   : > { %v17774_v39 = vcombine.low %v27482_v26, %v27485_v24  ;;  %v17091_v54 = vpop.f32.mrb[22].mxu1  ;;  %17433 = vmatpush1.bf16.msra.mxu1 %v23569_v3  ;;  %v23649_v3 = vld [vmem:[%s25555_s21 + $0x2df8] ss:$76 sps:$4 sm:$0xff]   ;;  %v23661_v26 = vld [vmem:[%s25555_s21 + $0x1d60] ss:$76 sps:$4 sm:$0xff]  }
 0x9ce   : > { %v17092_v41 = vpop.f32.mrb[23].mxu1  ;;  %20199 = vmatpush3.bf16.msra.mxu0 %v23573_v25  ;;  %17434 = vmatprep.subr.bf16.mxu1 %v23576_v33  ;;  %v23654_v25 = vld [vmem:[%s25555_s21 + $0x2e94] ss:$76 sps:$4 sm:$0xff]   ;;  %v23652_v33 = vld [vmem:[%s25555_s21 + $0x2e90] ss:$76 sps:$4 sm:$0xff]  }
 0x9cf   : > { %20200 = vmatprep.subr.bf16.mxu0 %v23577_v27  ;;  %v23657_v27 = vld [vmem:[%s25555_s21 + $0x2f2c] ss:$76 sps:$4 sm:$0xff]   ;;  %v23655_v41 = vld [vmem:[%s25555_s21 + $0x2f28] ss:$76 sps:$4 sm:$0xff]  }
 0x9d0   : > { %v23662_v24 = vld [vmem:[%s25555_s21 + $0x22b8] ss:$76 sps:$4 sm:$0xff]  }
 0x9d1   : > { %17435 = vmatpush1.bf16.msra.mxu1 %v23574_v40 }
 0x9d2   : > { %20201 = vmatpush3.bf16.msra.mxu0 %v23578_v44  ;;  %17436 = vmatprep.subr.bf16.mxu1 %v23581_v45 }
 0x9d3   : > { %20202 = vmatprep.subr.bf16.mxu0 %v23582_v31  ;;  %v23658_v31 = vld [vmem:[%s25555_s21 + $0x2188] ss:$76 sps:$4 sm:$0xff]  }
 0x9d5   : > { %17437 = vmatpush1.bf16.msra.mxu1 %v23579_v61 }
 0x9d6   : > { %20203 = vmatpush3.bf16.msra.mxu0 %v23583_v16  ;;  %17438 = vmatprep.subr.bf16.mxu1 %v23586_v60  ;;  %v17782_v16 = vrot.slane %v17774_v39, %v25085_v8  ;;  %v23663_v39 = vld [vmem:[%s25555_s21 + $0x1df8] ss:$76 sps:$4 sm:$0xff]  }
 0x9d7   : > { %20204 = vmatprep.subr.bf16.mxu0 %v23587_v47  ;;  %v23659_v47 = vld [vmem:[%s25555_s21 + $0x1cc8] ss:$76 sps:$4 sm:$0xff]  }
 0x9d9   : > { %17439 = vmatpush1.bf16.msra.mxu1 %v23584_v32 }
 0x9da   : > { %20205 = vmatpush3.bf16.msra.mxu0 %v23588_v48  ;;  %17440 = vmatprep.subr.bf16.mxu1 %v23591_v49  ;;  %v23660_v48 = vld [vmem:[%s25555_s21 + $0x2220] ss:$76 sps:$4 sm:$0xff]   ;;  %v23664_v49 = vld [vmem:[%s25555_s21 + $0x2350] ss:$76 sps:$4 sm:$0xff]  }
 0x9dd   : > { %17441 = vmatpush1.bf16.msra.mxu1 %v23589_v43  ;;  %17697 = vmatmul.mubr.bf16.vlgmr.msra.gmra.mrb[40].mxu0 %v26185_v12  ;;  %v23665_v43 = vld [vmem:[%s25555_s21 + $0x1e90] ss:$76 sps:$4 sm:$0xff]  }
 0x9de   : > { %17442 = vmatprep.subr.bf16.mxu1 %v23594_v28  ;;  %v23668_v28 = vld [vmem:[%s25555_s21 + $0x2480] ss:$76 sps:$4 sm:$0xff]  }
 0x9e1   : > { %17443 = vmatpush1.bf16.msra.mxu1 %v23592_v50  ;;  %v23669_v50 = vld [vmem:[%s25555_s21 + $0x1fc0] ss:$76 sps:$4 sm:$0xff]  }
 0x9e2   : > { %17444 = vmatprep.subr.bf16.mxu1 %v23597_v30  ;;  %v23670_v30 = vld [vmem:[%s25555_s21 + $0x2518] ss:$76 sps:$4 sm:$0xff]  }
 0x9e5   : > { %17445 = vmatpush1.bf16.msra.mxu1 %v23595_v10  ;;  %v23671_v10 = vld [vmem:[%s25555_s21 + $0x2058] ss:$76 sps:$4 sm:$0xff]  }
 0x9e6   : > { %17446 = vmatprep.subr.bf16.mxu1 %v23600_v35  ;;  %v23672_v35 = vld [vmem:[%s25555_s21 + $0x25b0] ss:$76 sps:$4 sm:$0xff]  }
 0x9e9   : > { %17447 = vmatpush1.bf16.msra.mxu1 %v23598_v55 }
 0x9ea   : > { %17448 = vmatprep.subr.bf16.mxu1 %v23603_v37 }
 0x9ed   : > { %17449 = vmatpush1.bf16.msra.mxu1 %v23601_v58  ;;  %v23673_v58 = vld [vmem:[%s25555_s21 + $0x20f0] ss:$76 sps:$4 sm:$0xff]  }
 0x9ee   : > { %17450 = vmatprep.subr.bf16.mxu1 %v23606_v59 }
 0x9f1   : > { %17451 = vmatpush1.bf16.msra.mxu1 %v23604_v36 }
 0x9f2   : > { %17452 = vmatprep.subr.bf16.mxu1 %v23609_v62 }
 0x9f5   : > { %17453 = vmatpush1.bf16.msra.mxu1 %v23607_v63 }
 0x9f6   : > { %17463 = vmatprep.subr.bf16.mxu1 %v23612_v42 }
 0x9f8   : > { %17455 = vmatmul.mubr.bf16.vlgmr.msra.gmra.mrb[24].mxu1 %v26041_v51 }
 0x9f9   : > { %17464 = vmatpush1.bf16.msra.mxu1 %v23610_v0  ;;  %17495 = vmatprep.mubr.bf16.mxu1 %v26183_v20  ;;  %v23627_v20 = vld [vmem:[%s25555_s21 + $0x293c] ss:$76 sps:$4 sm:$0xff]  }
 0x9fa   : > { %17465 = vmatprep.subr.bf16.mxu1 %v23615_v1 }
 0x9fd   : > { %17466 = vmatpush1.bf16.msra.mxu1 %v23613_v46 }
 0x9fe   : > { %17467 = vmatprep.subr.bf16.mxu1 %v23618_v2 }
 0xa01   : > { %17468 = vmatpush1.bf16.msra.mxu1 %v23616_v5 }
 0xa02   : > { %17469 = vmatprep.subr.bf16.mxu1 %v23621_v6 }
 0xa05   : > { %17470 = vmatpush1.bf16.msra.mxu1 %v23619_v7 }
 0xa06   : > { %17471 = vmatprep.subr.bf16.mxu1 %v23624_v9 }
 0xa09   : > { %17472 = vmatpush1.bf16.msra.mxu1 %v23622_v21 }
 0xa0a   : > { %17473 = vmatprep.subr.bf16.mxu1 %v23627_v20 }
 0xa0d   : > { %17474 = vmatpush1.bf16.msra.mxu1 %v23625_v13 }
 0xa0e   : > { %17475 = vmatprep.subr.bf16.mxu1 %v23630_v11 }
 0xa11   : > { %17476 = vmatpush1.bf16.msra.mxu1 %v23628_v14 }
 0xa12   : > { %17477 = vmatprep.subr.bf16.mxu1 %v23633_v17 }
 0xa15   : > { %17478 = vmatpush1.bf16.msra.mxu1 %v23631_v15 }
 0xa16   : > { %17479 = vmatprep.subr.bf16.mxu1 %v23636_v53 }
 0xa19   : > { %17480 = vmatpush1.bf16.msra.mxu1 %v23634_v19 }
 0xa1a   : > { %17481 = vmatprep.subr.bf16.mxu1 %v23639_v4 }
 0xa1d   : > { %17482 = vmatpush1.bf16.msra.mxu1 %v23637_v29 }
 0xa1e   : > { %17483 = vmatprep.subr.bf16.mxu1 %v23642_v34 }
 0xa21   : > { %17484 = vmatpush1.bf16.msra.mxu1 %v23640_v56 }
 0xa22   : > { %17485 = vmatprep.subr.bf16.mxu1 %v23645_v22 }
 0xa25   : > { %17486 = vmatpush1.bf16.msra.mxu1 %v23643_v52 }
 0xa26   : > { %17487 = vmatprep.subr.bf16.mxu1 %v23648_v18 }
 0xa29   : > { %17488 = vmatpush1.bf16.msra.mxu1 %v23646_v57 }
 0xa2a   : > { %17489 = vmatprep.subr.bf16.mxu1 %v23651_v23 }
 0xa2d   : > { %17490 = vmatpush1.bf16.msra.mxu1 %v23649_v3 }
 0xa2e   : > { %17491 = vmatprep.subr.bf16.mxu1 %v23654_v25 }
 0xa30   : > { %v17292_v54 = vpop.f32.mrb[24].mxu0 }
 0xa31   : > { %v17294_v40 = vpop.f32.mrb[25].mxu0  ;;  %17492 = vmatpush1.bf16.msra.mxu1 %v23652_v33 }
 0xa32   : > { %v17775_v44 = vcombine.low %v17292_v54, %v17294_v40  ;;  %v17296_v45 = vpop.f32.mrb[26].mxu0  ;;  %17493 = vmatprep.subr.bf16.mxu1 %v23657_v27 }
 0xa33   : > { %v17297_v61 = vpop.f32.mrb[27].mxu0 }
 0xa34   : > { %v17789_v60 = vrot.slane %v17775_v44, %v25085_v8 }
 0xa35   : > { %17494 = vmatpush1.bf16.msra.mxu1 %v23655_v41 }
 0xa36   : > { %v17790_v32 = vcombine.low %v17782_v16, %v17789_v60  ;;  %20168 = vmatprep.subr.bf16.mxu1 %v23658_v31 }
 0xa38   : > { %17496 = vmatmul.mubr.bf16.vlgmr.msra.gmra.mrb[24].mxu1 %v26185_v12  ;;  %17838 = vst [vmem:[%s26556_s30 + $0x18] sm:$0xff] %v17790_v32  ;;  %v23666_v12 = vld [vmem:[%s25555_s21 + $0x23e8] ss:$76 sps:$4 sm:$0xff]  }
 0xa39   : > { %20169 = vmatpush3.bf16.msra.mxu1 %v23659_v47  ;;  %17656 = vmatprep.mubr.bf16.mxu1 %v25972_v38  ;;  %v23667_v38 = vld [vmem:[%s25555_s21 + $0x1f28] ss:$76 sps:$4 sm:$0xff]  }
 0xa3a   : > { %20170 = vmatprep.subr.bf16.mxu1 %v23660_v48 }
 0xa3d   : > { %20171 = vmatpush3.bf16.msra.mxu1 %v23661_v26 }
 0xa3e   : > { %20172 = vmatprep.subr.bf16.mxu1 %v23662_v24 }
 0xa41   : > { %20173 = vmatpush3.bf16.msra.mxu1 %v23663_v39 }
 0xa42   : > { %20174 = vmatprep.subr.bf16.mxu1 %v23664_v49 }
 0xa45   : > { %20175 = vmatpush3.bf16.msra.mxu1 %v23665_v43 }
 0xa46   : > { %20176 = vmatprep.subr.bf16.mxu1 %v23666_v12 }
 0xa49   : > { %20177 = vmatpush3.bf16.msra.mxu1 %v23667_v38 }
 0xa4a   : > { %20178 = vmatprep.subr.bf16.mxu1 %v23668_v28 }
 0xa4d   : > { %20179 = vmatpush3.bf16.msra.mxu1 %v23669_v50 }
 0xa4e   : > { %20180 = vmatprep.subr.bf16.mxu1 %v23670_v30 }
 0xa50   : > { %v20118_v55 = vpop.f32.mrb[28].mxu0 }
 0xa51   : > { %v20119_v37 = vpop.f32.mrb[29].mxu0  ;;  %20181 = vmatpush3.bf16.msra.mxu1 %v23671_v10 }
 0xa52   : > { %v20120_v59 = vadd.f32 %v20119_v37, %v20118_v55  ;;  %v20121_v36 = vpop.f32.mrb[30].mxu0  ;;  %20182 = vmatprep.subr.bf16.mxu1 %v23672_v35 }
 0xa53   : > { %v20122_v62 = vpop.f32.mrb[31].mxu0 }
 0xa55   : > { %20183 = vmatpush3.bf16.msra.mxu1 %v23673_v58 }
 0xa58   : > { %17657 = vmatmul.mubr.bf16.vlgmr.msra.gmra.mrb[28].mxu1 %v26041_v51  ;;  %v23717_v51 = vmov 0.0  }
 0xa59   : > { %1585 = vst.msk [vmem:[#allocation2 + $0x20] sm:$0x3f] %vm27573_vm4, %v23717_v51 }
 0xa60   : > { %v6368_v54 = vld [vmem:[#allocation2 + $0x20] sm:$0x3f] }
 0xa70   : > { %v20140_v63 = vpop.f32.mrb[32].mxu0 }
 0xa71   : > { %v20141_v42 = vpop.f32.mrb[33].mxu0 }
 0xa72   : > { %v20142_v0 = vadd.f32 %v20141_v42, %v20140_v63  ;;  %v20143_v1 = vpop.f32.mrb[34].mxu0 }
 0xa73   : > { %v20144_v46 = vpop.f32.mrb[35].mxu0 }
 0xa74   : > { %v17579_v2 = vadd.f32 %v20142_v0, %v20120_v59 }
 0xa90   : > { %v20162_v5 = vpop.f32.mrb[36].mxu0 }
 0xa91   : > { %v20163_v6 = vpop.f32.mrb[37].mxu0 }
 0xa92   : > { %v20164_v7 = vadd.f32 %v20163_v6, %v20162_v5  ;;  %v20165_v9 = vpop.f32.mrb[38].mxu0 }
 0xa93   : > { %v20166_v21 = vpop.f32.mrb[39].mxu0 }
 0xa94   : > { %v17619_v20 = vadd.f32 %v20164_v7, %v17579_v2 }
 0xab0   : > { %v20206_v11 = vpop.f32.mrb[40].mxu0 }
 0xab1   : > { %v20207_v14 = vpop.f32.mrb[41].mxu0 }
 0xab2   : > { %v20208_v17 = vadd.f32 %v20207_v14, %v20206_v11  ;;  %v20209_v15 = vpop.f32.mrb[42].mxu0 }
 0xab3   : > { %v20210_v53 = vpop.f32.mrb[43].mxu0 }
 0xb0b   : > { %v17497_v19 = vpop.f32.mrb[24].mxu1 }
 0xb0c   : > { %v17499_v4 = vpop.f32.mrb[25].mxu1 }
 0xb0d   : > { %v17791_v29 = vcombine.low %v17497_v19, %v17499_v4  ;;  %v17501_v34 = vpop.f32.mrb[26].mxu1 }
 0xb0e   : > { %v17502_v56 = vpop.f32.mrb[27].mxu1 }
 0xb0f   : > { %v17798_v33 = vrot.slane %v17791_v29, %v25085_v8 }
 0xb2b   : > { %v20184_v22 = vpop.f32.mrb[28].mxu1 }
 0xb2c   : > { %v20185_v52 = vpop.f32.mrb[29].mxu1 }
 0xb2d   : > { %v20186_v18 = vadd.f32 %v20185_v52, %v20184_v22  ;;  %v20187_v57 = vpop.f32.mrb[30].mxu1 }
 0xb2e   : > { %v20188_v23 = vpop.f32.mrb[31].mxu1 }
 0xb2f   : > { %v17659_v3 = vadd.f32 %v20186_v18, %v17619_v20 }
 0xb31   : > { %v17699_v25 = vadd.f32 %v20208_v17, %v17659_v3 }
 0xb33   : > { %v17805_v27 = vrot.slane %v17699_v25, %v25085_v8 }
 0xb35   : > { %v17806_v40 = vcombine.low %v17798_v33, %v17805_v27 }
 0xb37   : > { %v17816_v41 = vadd.f32 %v17806_v40, %v6368_v54 }
 0xb39   : > { %17826 = vst.msk [vmem:[#allocation2 + $0x20] sm:$0x3f] %vm27573_vm4, %v17816_v41 }
 0xb40   : > { %v17834_v44 = vld [vmem:[#allocation2 + $0x20] sm:$0x3f] }
 0xb41   : > { %17839 = vst.msk [vmem:[%s26556_s30 + $0x20] sm:$0x3f] %vm27573_vm4, %v17834_v44 }
 0xb42 PF: > { %s14_s19 = sadd.s32 1, %s23714_s19   ;;  %s27608_s15 = smov %s23702_s16 }
 0xb43   : > { %p11_p12 = scmp.ge.s32.totalorder %s14_s19, 4   ;;  %s27609_s16 = smov %s23778_s23 }
 0xb44   : > { %s27610_s17 = smov %s23710_s18  ;;  %s27611_s18 = smov %s27613_s20 }
 0xb45   :  { %13 = sbr.rel (!%p11_p12) target bundleno = 3 (0x3), region = 108 }

</bundles_post_ra>
